<compile_context>
chip_gen: v5e
topology: v5e:2x2
jax: 0.10.0
libtpu: 0.0.40
codegen_flags: <defaults>
</compile_context>

<pallas_src>
import functools

import jax
import jax.numpy as jnp
from jax.experimental import pallas as pl
from jax.experimental.pallas import tpu as pltpu


def _round_up(x, m):
    return ((x + m - 1) // m) * m


def _apply_act(y, act):
    if act == "leaky":
        return jnp.where(y > 0, y, 0.2 * y)
    if act == "relu":
        return jnp.maximum(y, 0.0)
    if act == "sigmoid":
        return jax.nn.sigmoid(y)
    return y


# ----------------------------------------------------------------------------
# Pallas kernel 1: tiled MXU matmul — bf16 operands, f32 accumulate in o_ref,
# fused bias (no acc scratch: output block is f32 and resident across the k axis).
# ----------------------------------------------------------------------------
def _matmul_bias_kernel(a_ref, b_ref, bias_ref, o_ref):
    acc = jnp.dot(a_ref[...], b_ref[...], preferred_element_type=jnp.float32)

    @pl.when(pl.program_id(2) == 0)
    def _():
        o_ref[...] = acc + bias_ref[...]

    @pl.when(pl.program_id(2) != 0)
    def _():
        o_ref[...] += acc


def _pick_tk(K, single_ij):
    """Choose a K tile: full-extent when K isn't 128-aligned (no HBM pad), otherwise a
    single step unless the (i,j) grid is degenerate or K is large — then split 2-4x."""
    if K % 128 != 0:
        return K
    if (not single_ij) and K <= 2048:
        return K
    m = K // 128
    for steps in (3, 2, 4, 6, 8):
        if m % steps == 0 and (K // steps) <= 2048:
            return K // steps
    return K


def matmul_bias(a, p):
    """a: (M, K) bf16. p: {'w': (K, Np) bf16 (N pre-padded to mult of 128),
    'b': (1, N) f32 unpadded}. Returns (M, N) f32 with bias fused."""
    w, b = p["w"], p["b"]
    M, K = a.shape
    Np = w.shape[1]
    N = b.shape[1]

    # Launch-bound tiny matmuls (SE path feeders, psi/outconv 1x1, levels 3/4 and the
    # bottleneck at this toy resolution): plain XLA dot, same bf16xbf16->f32 numerics.
    if M < 64 or N < 64:
        out = jnp.dot(a, w, preferred_element_type=jnp.float32)
        if Np != N:
            out = out[:, :N]
        return out + b

    bias = b if Np == N else jnp.pad(b, ((0, 0), (0, Np - N)))   # tiny per-call pad

    if M % 128 == 0:
        tm = 256 if (M % 256 == 0 and M >= 512) else 128
    else:
        tm = M                                   # full-extent block (legal; no HBM pad)
    tn = 256 if (Np % 256 == 0 and Np >= 512) else 128
    gi, gj = M // tm, Np // tn
    tk = _pick_tk(K, single_ij=(gi * gj == 1))
    gk = K // tk

    out = pl.pallas_call(
        _matmul_bias_kernel,
        out_shape=jax.ShapeDtypeStruct((M, Np), jnp.float32),
        grid_spec=pltpu.PrefetchScalarGridSpec(
            num_scalar_prefetch=0,
            grid=(gi, gj, gk),
            in_specs=[
                pl.BlockSpec((tm, tk), lambda i, j, k: (i, k)),
                pl.BlockSpec((tk, tn), lambda i, j, k: (k, j)),
                pl.BlockSpec((1, tn), lambda i, j, k: (0, j)),
            ],
            out_specs=pl.BlockSpec((tm, tn), lambda i, j, k: (i, j)),
        ),
        compiler_params=pltpu.CompilerParams(
            dimension_semantics=("parallel", "parallel", "arbitrary"),
            vmem_limit_bytes=32 * 1024 * 1024),
    )(a, w, bias)
    if Np != N:
        out = out[:, :N]
    return out


# ----------------------------------------------------------------------------
# Pallas kernel 2: InstanceNorm2d (affine=False, eps=1e-5) + fused activation.
# Rows = H*W (sublanes), lanes = channels (or batch*channels for C < 128).
# ----------------------------------------------------------------------------
def _inorm_act_rows_kernel(x_ref, o_ref, *, act):
    x = x_ref[...]                                  # (rows, lanes) — per-lane stats
    mean = jnp.mean(x, axis=0, keepdims=True)
    var = jnp.mean(jnp.square(x - mean), axis=0, keepdims=True)
    o_ref[...] = _apply_act((x - mean) * jax.lax.rsqrt(var + 1e-5), act)


def _inorm_act_batch_kernel(x_ref, o_ref, *, act):
    x = x_ref[0]                                    # (HW, tc) — lane-dense channels
    mean = jnp.mean(x, axis=0, keepdims=True)
    var = jnp.mean(jnp.square(x - mean), axis=0, keepdims=True)
    o_ref[0] = _apply_act((x - mean) * jax.lax.rsqrt(var + 1e-5), act)


def _instance_norm_ref(x, act="none"):
    """Pure-JAX reference path (tiny spatial extents / lane-sparse psi gate)."""
    mean = jnp.mean(x, axis=(1, 2), keepdims=True)
    var = jnp.mean(jnp.square(x - mean), axis=(1, 2), keepdims=True)
    return _apply_act((x - mean) * jax.lax.rsqrt(var + 1e-5), act)


def instance_norm(x, act="none"):
    """x: (N, H, W, C) f32 -> same shape; per-(n, c) normalization over H*W."""
    n, h, w, c = x.shape
    hw = h * w
    x = x.astype(jnp.float32)
    # TODO(synk): two-pass (stats then normalize) HW-tiled variant so the block does not
    # scale with resolution (needed for v7x 64 MiB VMEM at realistic image sizes).
    if hw < 64:
        # deep levels at this toy resolution: not worth a kernel launch
        return _instance_norm_ref(x, act)

    if c % 128 == 0:
        tc = min(c, 512)
        x3 = x.reshape(n, hw, c)
        out = pl.pallas_call(
            functools.partial(_inorm_act_batch_kernel, act=act),
            out_shape=jax.ShapeDtypeStruct((n, hw, c), jnp.float32),
            grid_spec=pltpu.PrefetchScalarGridSpec(
                num_scalar_prefetch=0,
                grid=(n, c // tc),
                in_specs=[pl.BlockSpec((1, hw, tc), lambda i, j: (i, 0, j))],
                out_specs=pl.BlockSpec((1, hw, tc), lambda i, j: (i, 0, j)),
            ),
            compiler_params=pltpu.CompilerParams(
                dimension_semantics=("parallel", "parallel"),
                vmem_limit_bytes=32 * 1024 * 1024),
        )(x3)
        return out.reshape(n, h, w, c)

    nc = n * c
    if nc % 128 != 0:
        return _instance_norm_ref(x, act)

    # C < 128 (level-1 C=64): fold batch into lanes -> rows=HW, lanes=N*C (lane-dense
    # stores). Per-(n,c) stats are still per-lane since the reduce is over rows.
    x2 = x.reshape(n, hw, c).transpose(1, 0, 2).reshape(hw, nc)
    tcc = 128
    out = pl.pallas_call(
        functools.partial(_inorm_act_rows_kernel, act=act),
        out_shape=jax.ShapeDtypeStruct((hw, nc), jnp.float32),
        grid_spec=pltpu.PrefetchScalarGridSpec(
            num_scalar_prefetch=0,
            grid=(nc // tcc,),
            in_specs=[pl.BlockSpec((hw, tcc), lambda j: (0, j))],
            out_specs=pl.BlockSpec((hw, tcc), lambda j: (0, j)),
        ),
        compiler_params=pltpu.CompilerParams(
            dimension_semantics=("parallel",),
            vmem_limit_bytes=32 * 1024 * 1024),
    )(x2)
    return out.reshape(hw, n, c).transpose(1, 0, 2).reshape(n, h, w, c)


# ----------------------------------------------------------------------------
# Conv / pooling wrappers (NHWC; bf16 activations into the MXU path)
# ----------------------------------------------------------------------------
def conv3x3(x, p):
    """x: (N,H,W,Cin). p['w']: (9*Cin, Np) bf16, p['b']: (1, Cout) f32. padding=1."""
    n, h, w, c = x.shape
    xp = jnp.pad(x, ((0, 0), (1, 1), (1, 1), (0, 0))).astype(jnp.bfloat16)
    # TODO(synk): fold the 9 (kh,kw) taps into the matmul K grid (element offsets into
    # the padded NHWC input) so the 9x patch tensor is never materialized in HBM.
    patches = jnp.concatenate(
        [xp[:, kh:kh + h, kw:kw + w, :] for kh in range(3) for kw in range(3)],
        axis=-1)                                        # (N, H, W, 9*Cin) bf16
    out = matmul_bias(patches.reshape(n * h * w, 9 * c), p)
    return out.reshape(n, h, w, -1)


def conv1x1(x, p):
    n, h, w, c = x.shape
    out = matmul_bias(x.astype(jnp.bfloat16).reshape(n * h * w, c), p)
    return out.reshape(n, h, w, -1)


def conv_transpose2x2(x, p):
    """ConvTranspose2d(k=2, stride=2). p['w']: (Cin, 4*Cout) bf16, p['b']: (1,4*Cout)."""
    n, h, w, c = x.shape
    out = matmul_bias(x.astype(jnp.bfloat16).reshape(n * h * w, c), p)   # (M, kh*kw*Co)
    cout = out.shape[1] // 4
    out = out.reshape(n, h, w, 2, 2, cout)
    # TODO(synk): emit the 2x2 interleave directly via the matmul out index_map to avoid
    # this full relayout at realistic resolutions.
    return out.transpose(0, 1, 3, 2, 4, 5).reshape(n, 2 * h, 2 * w, cout)


def max_pool2(x):
    n, h, w, c = x.shape
    return x.reshape(n, h // 2, 2, w // 2, 2, c).max(axis=(2, 4))


# ----------------------------------------------------------------------------
# Model blocks
# ----------------------------------------------------------------------------
def se_block(x, w1_t, w2_t):
    """Squeeze -> Linear(no bias) -> ReLU -> Linear(no bias) -> sigmoid -> scale."""
    y = jnp.mean(x, axis=(1, 2))                        # (N, C) — tiny: stays in XLA
    y = jnp.maximum(jnp.dot(y, w1_t), 0.0)
    y = jax.nn.sigmoid(jnp.dot(y, w2_t))
    return x * y[:, None, None, :]


def double_conv(x, p):
    x = instance_norm(conv3x3(x, p["c1"]), act="leaky")
    x = instance_norm(conv3x3(x, p["c2"]), act="leaky")
    return se_block(x, p["se_w1"], p["se_w2"])


def residual_block(x, p):
    y = instance_norm(conv3x3(x, p["c1"]), act="leaky")
    y = instance_norm(conv3x3(y, p["c2"]), act="none")
    return x + se_block(y, p["se_w1"], p["se_w2"])


def attention_gate(g, x, p):
    g1 = instance_norm(conv1x1(g, p["wg"]), act="none")
    x1 = instance_norm(conv1x1(x, p["wx"]), act="none")
    a = jnp.maximum(g1 + x1, 0.0)
    # psi: Conv2d(F_int,1,1) + InstanceNorm2d(1) + Sigmoid — single-channel & tiny.
    s = conv1x1(a, p["psi"])                            # (N, H, W, 1)
    s = _instance_norm_ref(s, act="sigmoid")
    return x * s


# ----------------------------------------------------------------------------
# Deterministic parameter init (PyTorch layouts) + one-time prep for the kernels
# ----------------------------------------------------------------------------
def _conv_params(key, cout, cin, k):
    k1, k2 = jax.random.split(key)
    w = jax.random.normal(k1, (cout, cin, k, k), jnp.float32) * 0.05
    b = jax.random.normal(k2, (cout,), jnp.float32) * 0.05
    return w, b


def _double_conv_params(key, cin, cout, reduction=16):
    ks = jax.random.split(key, 4)
    w1, b1 = _conv_params(ks[0], cout, cin, 3)
    w2, b2 = _conv_params(ks[1], cout, cout, 3)
    se_w1 = jax.random.normal(ks[2], (cout // reduction, cout), jnp.float32) * 0.05
    se_w2 = jax.random.normal(ks[3], (cout, cout // reduction), jnp.float32) * 0.05
    return dict(w1=w1, b1=b1, w2=w2, b2=b2, se_w1=se_w1, se_w2=se_w2)


def _attn_params(key, fg, fl, fint):
    ks = jax.random.split(key, 3)
    wg_w, wg_b = _conv_params(ks[0], fint, fg, 1)
    wx_w, wx_b = _conv_params(ks[1], fint, fl, 1)
    psi_w, psi_b = _conv_params(ks[2], 1, fint, 1)
    return dict(wg_w=wg_w, wg_b=wg_b, wx_w=wx_w, wx_b=wx_b, psi_w=psi_w, psi_b=psi_b)


def _upconv_params(key, cin, cout):
    k1, k2 = jax.random.split(key)
    w = jax.random.normal(k1, (cin, cout, 2, 2), jnp.float32) * 0.05
    b = jax.random.normal(k2, (cout,), jnp.float32) * 0.05
    return w, b


def init_params(key, in_channels=3, out_channels=3):
    keys = iter(jax.random.split(key, 32))
    p = {}
    p["conv1"] = _double_conv_params(next(keys), in_channels, 64)
    p["res1"] = _double_conv_params(next(keys), 64, 64)
    p["conv2"] = _double_conv_params(next(keys), 64, 128)
    p["res2"] = _double_conv_params(next(keys), 128, 128)
    p["conv3"] = _double_conv_params(next(keys), 128, 256)
    p["res3"] = _double_conv_params(next(keys), 256, 256)
    p["conv4"] = _double_conv_params(next(keys), 256, 512)
    p["res4"] = _double_conv_params(next(keys), 512, 512)
    p["bottleneck"] = _double_conv_params(next(keys), 512, 1024)
    p["res_bottleneck"] = _double_conv_params(next(keys), 1024, 1024)
    p["upconv4"] = _upconv_params(next(keys), 1024, 512)
    p["att4"] = _attn_params(next(keys), 512, 512, 256)
    p["dconv4"] = _double_conv_params(next(keys), 1024, 512)
    p["upconv3"] = _upconv_params(next(keys), 512, 256)
    p["att3"] = _attn_params(next(keys), 256, 256, 128)
    p["dconv3"] = _double_conv_params(next(keys), 512, 256)
    p["upconv2"] = _upconv_params(next(keys), 256, 128)
    p["att2"] = _attn_params(next(keys), 128, 128, 64)
    p["dconv2"] = _double_conv_params(next(keys), 256, 128)
    p["upconv1"] = _upconv_params(next(keys), 128, 64)
    p["att1"] = _attn_params(next(keys), 64, 64, 32)
    p["dconv1"] = _double_conv_params(next(keys), 128, 64)
    p["outconv_w"], p["outconv_b"] = _conv_params(next(keys), out_channels, 64, 1)
    return p


def _prep_matmul(w2d, b):
    """bf16 weight, N padded (hoisted) to a lane-dense multiple of 128; f32 (1,N) bias."""
    # TODO(synk): optional fp8(e4m3) weight storage on v7x only (fp8 MXU path).
    K, N = w2d.shape
    Np = _round_up(N, 128)
    w = w2d.astype(jnp.bfloat16)
    if Np != N:
        w = jnp.pad(w, ((0, 0), (0, Np - N)))
    return dict(w=w, b=b.astype(jnp.float32).reshape(1, N))


def _prep_conv3x3(w, b):
    cout, cin = w.shape[0], w.shape[1]
    return _prep_matmul(w.transpose(2, 3, 1, 0).reshape(9 * cin, cout), b)


def _prep_conv1x1(w, b):
    cout, cin = w.shape[0], w.shape[1]
    return _prep_matmul(w.reshape(cout, cin).T, b)


def _prep_upconv(w, b):
    cin, cout = w.shape[0], w.shape[1]
    w2d = w.transpose(0, 2, 3, 1).reshape(cin, 4 * cout)    # columns = (kh, kw, co)
    return _prep_matmul(w2d, jnp.tile(b, 4))


def _prep_dc(p):
    return dict(c1=_prep_conv3x3(p["w1"], p["b1"]),
                c2=_prep_conv3x3(p["w2"], p["b2"]),
                se_w1=p["se_w1"].T, se_w2=p["se_w2"].T)


def _prep_attn(p):
    return dict(wg=_prep_conv1x1(p["wg_w"], p["wg_b"]),
                wx=_prep_conv1x1(p["wx_w"], p["wx_b"]),
                psi=_prep_conv1x1(p["psi_w"], p["psi_b"]))


def prepare_params(p):
    """Hoist every weight reshape / transpose / pad / bf16 cast out of the forward."""
    q = {}
    for name in ["conv1", "res1", "conv2", "res2", "conv3", "res3", "conv4", "res4",
                 "bottleneck", "res_bottleneck", "dconv4", "dconv3", "dconv2", "dconv1"]:
        q[name] = _prep_dc(p[name])
    for name in ["att4", "att3", "att2", "att1"]:
        q[name] = _prep_attn(p[name])
    for name in ["upconv4", "upconv3", "upconv2", "upconv1"]:
        q[name] = _prep_upconv(*p[name])
    q["outconv"] = _prep_conv1x1(p["outconv_w"], p["outconv_b"])
    return q


# ----------------------------------------------------------------------------
# ImprovedUNet forward pass (NCHW in/out, NHWC internally)
# ----------------------------------------------------------------------------
def improved_unet_forward(x_nchw, p):
    x = x_nchw.transpose(0, 2, 3, 1)                    # single NCHW -> NHWC transpose

    conv1 = residual_block(double_conv(x, p["conv1"]), p["res1"])
    pool1 = max_pool2(conv1)
    conv2 = residual_block(double_conv(pool1, p["conv2"]), p["res2"])
    pool2 = max_pool2(conv2)
    conv3 = residual_block(double_conv(pool2, p["conv3"]), p["res3"])
    pool3 = max_pool2(conv3)
    conv4 = residual_block(double_conv(pool3, p["conv4"]), p["res4"])
    pool4 = max_pool2(conv4)

    bott = residual_block(double_conv(pool4, p["bottleneck"]), p["res_bottleneck"])

    up4 = conv_transpose2x2(bott, p["upconv4"])
    att4 = attention_gate(up4, conv4, p["att4"])
    up4 = double_conv(jnp.concatenate([up4, att4], axis=-1), p["dconv4"])

    up3 = conv_transpose2x2(up4, p["upconv3"])
    att3 = attention_gate(up3, conv3, p["att3"])
    up3 = double_conv(jnp.concatenate([up3, att3], axis=-1), p["dconv3"])

    up2 = conv_transpose2x2(up3, p["upconv2"])
    att2 = attention_gate(up2, conv2, p["att2"])
    up2 = double_conv(jnp.concatenate([up2, att2], axis=-1), p["dconv2"])

    up1 = conv_transpose2x2(up2, p["upconv1"])
    att1 = attention_gate(up1, conv1, p["att1"])
    up1 = double_conv(jnp.concatenate([up1, att1], axis=-1), p["dconv1"])

    out = conv1x1(up1, p["outconv"])
    return jax.nn.sigmoid(out).transpose(0, 3, 1, 2)     # back to NCHW


if __name__ == "__main__":
    key = jax.random.PRNGKey(0)
    k_x, k_p = jax.random.split(key)
    # small input consistent with the module: batch=2, in_channels=3, 16x16 spatial
    x = jax.random.normal(k_x, (2, 3, 16, 16), jnp.float32)
    params = prepare_params(init_params(k_p, in_channels=3, out_channels=3))

    fwd = jax.jit(improved_unet_forward)
    out = jax.block_until_ready(fwd(x, params))

    assert out.shape == (2, 3, 16, 16), out.shape
    assert bool(jnp.all(jnp.isfinite(out)))
    assert bool(jnp.all((out >= 0.0) & (out <= 1.0)))    # sigmoid range
    print("KERNEL_OK")
</pallas_src>

<mosaic_0001>
module attributes {stable_mosaic.version = 11 : i64} {
  func.func @_matmul_bias_kernel(%arg0: i32, %arg1: i32, %arg2: i32, %arg3: memref<256x27xbf16, #tpu.memory_space<vmem>>, %arg4: memref<27x128xbf16, #tpu.memory_space<vmem>>, %arg5: memref<1x128xf32, #tpu.memory_space<vmem>>, %arg6: memref<256x128xf32, #tpu.memory_space<vmem>>) attributes {dimension_semantics = [#tpu.dimension_semantics<parallel>, #tpu.dimension_semantics<parallel>, #tpu.dimension_semantics<arbitrary>], iteration_bounds = array<i64: 2, 1, 1>, scalar_prefetch = 0 : i64, scratch_operands = 0 : i64, tpu.core_type = #tpu.core_type<tc>, window_params = [{transform_indices = @transform_0, window_bounds = array<i64: 256, 27>}, {transform_indices = @transform_1, window_bounds = array<i64: 27, 128>}, {transform_indices = @transform_2, window_bounds = array<i64: 1, 128>}, {transform_indices = @transform_3, window_bounds = array<i64: 256, 128>}]} {
    %c0 = arith.constant 0 : index
    %c0_0 = arith.constant 0 : index
    %0 = vector.load %arg3[%c0, %c0_0] : memref<256x27xbf16, #tpu.memory_space<vmem>>, vector<256x27xbf16>
    %c0_1 = arith.constant 0 : index
    %c0_2 = arith.constant 0 : index
    %1 = vector.load %arg4[%c0_1, %c0_2] : memref<27x128xbf16, #tpu.memory_space<vmem>>, vector<27x128xbf16>
    %cst = arith.constant dense<0.000000e+00> : vector<256x128xf32>
    %2 = tpu.matmul %0, %1, %cst {dimension_numbers = #tpu.dot_dimension_numbers<[1], [0], [0], [1], [0, 0, 1, 1], [], []>} : vector<256x27xbf16>, vector<27x128xbf16>, vector<256x128xf32> -> vector<256x128xf32>
    %c0_i32 = arith.constant 0 : i32
    %3 = arith.cmpi eq, %arg2, %c0_i32 : i32
    %4 = arith.extui %3 : i1 to i32
    %c0_i32_3 = arith.constant 0 : i32
    %5 = arith.cmpi ne, %4, %c0_i32_3 : i32
    scf.if %5 {
      %c0_6 = arith.constant 0 : index
      %c0_7 = arith.constant 0 : index
      %9 = vector.load %arg5[%c0_6, %c0_7] : memref<1x128xf32, #tpu.memory_space<vmem>>, vector<1x128xf32>
      %10 = vector.broadcast %9 : vector<1x128xf32> to vector<256x128xf32>
      %11 = arith.addf %2, %10 : vector<256x128xf32>
      %c0_8 = arith.constant 0 : index
      %c0_9 = arith.constant 0 : index
      %12 = vector.load %arg6[%c0_8, %c0_9] : memref<256x128xf32, #tpu.memory_space<vmem>>, vector<256x128xf32>
      tpu.vector_store %arg6[%c0_8, %c0_9], %11 {strides = array<i32>} : memref<256x128xf32, #tpu.memory_space<vmem>>, vector<256x128xf32>,
    } else {
    }
    %c0_i32_4 = arith.constant 0 : i32
    %6 = arith.cmpi ne, %arg2, %c0_i32_4 : i32
    %7 = arith.extui %6 : i1 to i32
    %c0_i32_5 = arith.constant 0 : i32
    %8 = arith.cmpi ne, %7, %c0_i32_5 : i32
    scf.if %8 {
      %c0_6 = arith.constant 0 : index
      %c0_7 = arith.constant 0 : index
      %9 = vector.load %arg6[%c0_6, %c0_7] : memref<256x128xf32, #tpu.memory_space<vmem>>, vector<256x128xf32>
      %10 = arith.addf %9, %2 : vector<256x128xf32>
      %c0_8 = arith.constant 0 : index
      %c0_9 = arith.constant 0 : index
      %11 = vector.load %arg6[%c0_8, %c0_9] : memref<256x128xf32, #tpu.memory_space<vmem>>, vector<256x128xf32>
      tpu.vector_store %arg6[%c0_8, %c0_9], %10 {strides = array<i32>} : memref<256x128xf32, #tpu.memory_space<vmem>>, vector<256x128xf32>,
    } else {
    }
    return
  }
  func.func @transform_0(%arg0: i32, %arg1: i32, %arg2: i32) -> (i32, i32) {
    %c0_i32 = arith.constant 0 : i32
    return %arg0, %arg2 : i32, i32
  }
  func.func @transform_1(%arg0: i32, %arg1: i32, %arg2: i32) -> (i32, i32) {
    %c0_i32 = arith.constant 0 : i32
    return %arg2, %arg1 : i32, i32
  }
  func.func @transform_2(%arg0: i32, %arg1: i32, %arg2: i32) -> (i32, i32) {
    %c0_i32 = arith.constant 0 : i32
    %c0_i32_0 = arith.constant 0 : i32
    return %c0_i32, %arg1 : i32, i32
  }
  func.func @transform_3(%arg0: i32, %arg1: i32, %arg2: i32) -> (i32, i32) {
    %c0_i32 = arith.constant 0 : i32
    return %arg0, %arg1 : i32, i32
  }
}

module attributes {stable_mosaic.version = 11 : i64} {
  func.func @_inorm_act_rows_kernel(%arg0: i32, %arg1: memref<256x128xf32, #tpu.memory_space<vmem>>, %arg2: memref<256x128xf32, #tpu.memory_space<vmem>>) attributes {dimension_semantics = [#tpu.dimension_semantics<parallel>], iteration_bounds = array<i64: 1>, scalar_prefetch = 0 : i64, scratch_operands = 0 : i64, tpu.core_type = #tpu.core_type<tc>, window_params = [{transform_indices = @transform_0, window_bounds = array<i64: 256, 128>}, {transform_indices = @transform_1, window_bounds = array<i64: 256, 128>}]} {
    %c0 = arith.constant 0 : index
    %c0_0 = arith.constant 0 : index
    %0 = vector.load %arg1[%c0, %c0_0] : memref<256x128xf32, #tpu.memory_space<vmem>>, vector<256x128xf32>
    %cst = arith.constant dense<0.000000e+00> : vector<128xf32>
    %1 = vector.multi_reduction <add>, %0, %cst [0] : vector<256x128xf32> to vector<128xf32>
    %2 = vector.shape_cast %1 : vector<128xf32> to vector<1x128xf32>
    %cst_1 = arith.constant 2.560000e+02 : f32
    %3 = vector.broadcast %cst_1 : f32 to vector<1x128xf32>
    %4 = arith.divf %2, %3 : vector<1x128xf32>
    %5 = vector.broadcast %4 : vector<1x128xf32> to vector<256x128xf32>
    %6 = arith.subf %0, %5 : vector<256x128xf32>
    %7 = arith.mulf %6, %6 : vector<256x128xf32>
    %cst_2 = arith.constant dense<0.000000e+00> : vector<128xf32>
    %8 = vector.multi_reduction <add>, %7, %cst_2 [0] : vector<256x128xf32> to vector<128xf32>
    %9 = vector.shape_cast %8 : vector<128xf32> to vector<1x128xf32>
    %cst_3 = arith.constant 2.560000e+02 : f32
    %10 = vector.broadcast %cst_3 : f32 to vector<1x128xf32>
    %11 = arith.divf %9, %10 : vector<1x128xf32>
    %12 = vector.broadcast %4 : vector<1x128xf32> to vector<256x128xf32>
    %13 = arith.subf %0, %12 : vector<256x128xf32>
    %cst_4 = arith.constant 9.99999974E-6 : f32
    %14 = vector.broadcast %cst_4 : f32 to vector<1x128xf32>
    %15 = arith.addf %11, %14 : vector<1x128xf32>
    %16 = math.rsqrt %15 : vector<1x128xf32>
    %17 = vector.broadcast %16 : vector<1x128xf32> to vector<256x128xf32>
    %18 = arith.mulf %13, %17 : vector<256x128xf32>
    %cst_5 = arith.constant 0.000000e+00 : f32
    %19 = vector.broadcast %cst_5 : f32 to vector<256x128xf32>
    %20 = arith.cmpf ogt, %18, %19 : vector<256x128xf32>
    %cst_6 = arith.constant 2.000000e-01 : f32
    %21 = vector.broadcast %cst_6 : f32 to vector<256x128xf32>
    %22 = arith.mulf %21, %18 : vector<256x128xf32>
    %23 = arith.select %20, %18, %22 : vector<256x128xi1>, vector<256x128xf32>
    %c0_7 = arith.constant 0 : index
    %c0_8 = arith.constant 0 : index
    %24 = vector.load %arg2[%c0_7, %c0_8] : memref<256x128xf32, #tpu.memory_space<vmem>>, vector<256x128xf32>
    tpu.vector_store %arg2[%c0_7, %c0_8], %23 {strides = array<i32>} : memref<256x128xf32, #tpu.memory_space<vmem>>, vector<256x128xf32>,
    return
  }
  func.func @transform_0(%arg0: i32) -> (i32, i32) {
    %c0_i32 = arith.constant 0 : i32
    %c0_i32_0 = arith.constant 0 : i32
    return %c0_i32, %arg0 : i32, i32
  }
  func.func @transform_1(%arg0: i32) -> (i32, i32) {
    %c0_i32 = arith.constant 0 : i32
    %c0_i32_0 = arith.constant 0 : i32
    return %c0_i32, %arg0 : i32, i32
  }
}

module attributes {stable_mosaic.version = 11 : i64} {
  func.func @_matmul_bias_kernel(%arg0: i32, %arg1: i32, %arg2: i32, %arg3: memref<256x576xbf16, #tpu.memory_space<vmem>>, %arg4: memref<576x128xbf16, #tpu.memory_space<vmem>>, %arg5: memref<1x128xf32, #tpu.memory_space<vmem>>, %arg6: memref<256x128xf32, #tpu.memory_space<vmem>>) attributes {dimension_semantics = [#tpu.dimension_semantics<parallel>, #tpu.dimension_semantics<parallel>, #tpu.dimension_semantics<arbitrary>], iteration_bounds = array<i64: 2, 1, 1>, scalar_prefetch = 0 : i64, scratch_operands = 0 : i64, tpu.core_type = #tpu.core_type<tc>, window_params = [{transform_indices = @transform_0, window_bounds = array<i64: 256, 576>}, {transform_indices = @transform_1, window_bounds = array<i64: 576, 128>}, {transform_indices = @transform_2, window_bounds = array<i64: 1, 128>}, {transform_indices = @transform_3, window_bounds = array<i64: 256, 128>}]} {
    %c0 = arith.constant 0 : index
    %c0_0 = arith.constant 0 : index
    %0 = vector.load %arg3[%c0, %c0_0] : memref<256x576xbf16, #tpu.memory_space<vmem>>, vector<256x576xbf16>
    %c0_1 = arith.constant 0 : index
    %c0_2 = arith.constant 0 : index
    %1 = vector.load %arg4[%c0_1, %c0_2] : memref<576x128xbf16, #tpu.memory_space<vmem>>, vector<576x128xbf16>
    %cst = arith.constant dense<0.000000e+00> : vector<256x128xf32>
    %2 = tpu.matmul %0, %1, %cst {dimension_numbers = #tpu.dot_dimension_numbers<[1], [0], [0], [1], [0, 0, 1, 1], [], []>} : vector<256x576xbf16>, vector<576x128xbf16>, vector<256x128xf32> -> vector<256x128xf32>
    %c0_i32 = arith.constant 0 : i32
    %3 = arith.cmpi eq, %arg2, %c0_i32 : i32
    %4 = arith.extui %3 : i1 to i32
    %c0_i32_3 = arith.constant 0 : i32
    %5 = arith.cmpi ne, %4, %c0_i32_3 : i32
    scf.if %5 {
      %c0_6 = arith.constant 0 : index
      %c0_7 = arith.constant 0 : index
      %9 = vector.load %arg5[%c0_6, %c0_7] : memref<1x128xf32, #tpu.memory_space<vmem>>, vector<1x128xf32>
      %10 = vector.broadcast %9 : vector<1x128xf32> to vector<256x128xf32>
      %11 = arith.addf %2, %10 : vector<256x128xf32>
      %c0_8 = arith.constant 0 : index
      %c0_9 = arith.constant 0 : index
      %12 = vector.load %arg6[%c0_8, %c0_9] : memref<256x128xf32, #tpu.memory_space<vmem>>, vector<256x128xf32>
      tpu.vector_store %arg6[%c0_8, %c0_9], %11 {strides = array<i32>} : memref<256x128xf32, #tpu.memory_space<vmem>>, vector<256x128xf32>,
    } else {
    }
    %c0_i32_4 = arith.constant 0 : i32
    %6 = arith.cmpi ne, %arg2, %c0_i32_4 : i32
    %7 = arith.extui %6 : i1 to i32
    %c0_i32_5 = arith.constant 0 : i32
    %8 = arith.cmpi ne, %7, %c0_i32_5 : i32
    scf.if %8 {
      %c0_6 = arith.constant 0 : index
      %c0_7 = arith.constant 0 : index
      %9 = vector.load %arg6[%c0_6, %c0_7] : memref<256x128xf32, #tpu.memory_space<vmem>>, vector<256x128xf32>
      %10 = arith.addf %9, %2 : vector<256x128xf32>
      %c0_8 = arith.constant 0 : index
      %c0_9 = arith.constant 0 : index
      %11 = vector.load %arg6[%c0_8, %c0_9] : memref<256x128xf32, #tpu.memory_space<vmem>>, vector<256x128xf32>
      tpu.vector_store %arg6[%c0_8, %c0_9], %10 {strides = array<i32>} : memref<256x128xf32, #tpu.memory_space<vmem>>, vector<256x128xf32>,
    } else {
    }
    return
  }
  func.func @transform_0(%arg0: i32, %arg1: i32, %arg2: i32) -> (i32, i32) {
    %c0_i32 = arith.constant 0 : i32
    return %arg0, %arg2 : i32, i32
  }
  func.func @transform_1(%arg0: i32, %arg1: i32, %arg2: i32) -> (i32, i32) {
    %c0_i32 = arith.constant 0 : i32
    return %arg2, %arg1 : i32, i32
  }
  func.func @transform_2(%arg0: i32, %arg1: i32, %arg2: i32) -> (i32, i32) {
    %c0_i32 = arith.constant 0 : i32
    %c0_i32_0 = arith.constant 0 : i32
    return %c0_i32, %arg1 : i32, i32
  }
  func.func @transform_3(%arg0: i32, %arg1: i32, %arg2: i32) -> (i32, i32) {
    %c0_i32 = arith.constant 0 : i32
    return %arg0, %arg1 : i32, i32
  }
}

module attributes {stable_mosaic.version = 11 : i64} {
  func.func @_inorm_act_rows_kernel(%arg0: i32, %arg1: memref<256x128xf32, #tpu.memory_space<vmem>>, %arg2: memref<256x128xf32, #tpu.memory_space<vmem>>) attributes {dimension_semantics = [#tpu.dimension_semantics<parallel>], iteration_bounds = array<i64: 1>, scalar_prefetch = 0 : i64, scratch_operands = 0 : i64, tpu.core_type = #tpu.core_type<tc>, window_params = [{transform_indices = @transform_0, window_bounds = array<i64: 256, 128>}, {transform_indices = @transform_1, window_bounds = array<i64: 256, 128>}]} {
    %c0 = arith.constant 0 : index
    %c0_0 = arith.constant 0 : index
    %0 = vector.load %arg1[%c0, %c0_0] : memref<256x128xf32, #tpu.memory_space<vmem>>, vector<256x128xf32>
    %cst = arith.constant dense<0.000000e+00> : vector<128xf32>
    %1 = vector.multi_reduction <add>, %0, %cst [0] : vector<256x128xf32> to vector<128xf32>
    %2 = vector.shape_cast %1 : vector<128xf32> to vector<1x128xf32>
    %cst_1 = arith.constant 2.560000e+02 : f32
    %3 = vector.broadcast %cst_1 : f32 to vector<1x128xf32>
    %4 = arith.divf %2, %3 : vector<1x128xf32>
    %5 = vector.broadcast %4 : vector<1x128xf32> to vector<256x128xf32>
    %6 = arith.subf %0, %5 : vector<256x128xf32>
    %7 = arith.mulf %6, %6 : vector<256x128xf32>
    %cst_2 = arith.constant dense<0.000000e+00> : vector<128xf32>
    %8 = vector.multi_reduction <add>, %7, %cst_2 [0] : vector<256x128xf32> to vector<128xf32>
    %9 = vector.shape_cast %8 : vector<128xf32> to vector<1x128xf32>
    %cst_3 = arith.constant 2.560000e+02 : f32
    %10 = vector.broadcast %cst_3 : f32 to vector<1x128xf32>
    %11 = arith.divf %9, %10 : vector<1x128xf32>
    %12 = vector.broadcast %4 : vector<1x128xf32> to vector<256x128xf32>
    %13 = arith.subf %0, %12 : vector<256x128xf32>
    %cst_4 = arith.constant 9.99999974E-6 : f32
    %14 = vector.broadcast %cst_4 : f32 to vector<1x128xf32>
    %15 = arith.addf %11, %14 : vector<1x128xf32>
    %16 = math.rsqrt %15 : vector<1x128xf32>
    %17 = vector.broadcast %16 : vector<1x128xf32> to vector<256x128xf32>
    %18 = arith.mulf %13, %17 : vector<256x128xf32>
    %c0_5 = arith.constant 0 : index
    %c0_6 = arith.constant 0 : index
    %19 = vector.load %arg2[%c0_5, %c0_6] : memref<256x128xf32, #tpu.memory_space<vmem>>, vector<256x128xf32>
    tpu.vector_store %arg2[%c0_5, %c0_6], %18 {strides = array<i32>} : memref<256x128xf32, #tpu.memory_space<vmem>>, vector<256x128xf32>,
    return
  }
  func.func @transform_0(%arg0: i32) -> (i32, i32) {
    %c0_i32 = arith.constant 0 : i32
    %c0_i32_0 = arith.constant 0 : i32
    return %c0_i32, %arg0 : i32, i32
  }
  func.func @transform_1(%arg0: i32) -> (i32, i32) {
    %c0_i32 = arith.constant 0 : i32
    %c0_i32_0 = arith.constant 0 : i32
    return %c0_i32, %arg0 : i32, i32
  }
}

module attributes {stable_mosaic.version = 11 : i64} {
  func.func @_inorm_act_batch_kernel(%arg0: i32, %arg1: i32, %arg2: memref<1x64x128xf32, #tpu.memory_space<vmem>>, %arg3: memref<1x64x128xf32, #tpu.memory_space<vmem>>) attributes {dimension_semantics = [#tpu.dimension_semantics<parallel>, #tpu.dimension_semantics<parallel>], iteration_bounds = array<i64: 2, 1>, scalar_prefetch = 0 : i64, scratch_operands = 0 : i64, tpu.core_type = #tpu.core_type<tc>, window_params = [{transform_indices = @transform_0, window_bounds = array<i64: 1, 64, 128>}, {transform_indices = @transform_1, window_bounds = array<i64: 1, 64, 128>}]} {
    %c0 = arith.constant 0 : index
    %c0_0 = arith.constant 0 : index
    %c0_1 = arith.constant 0 : index
    %0 = vector.load %arg2[%c0, %c0_0, %c0_1] : memref<1x64x128xf32, #tpu.memory_space<vmem>>, vector<1x64x128xf32>
    %1 = vector.shape_cast %0 : vector<1x64x128xf32> to vector<64x128xf32>
    %cst = arith.constant dense<0.000000e+00> : vector<128xf32>
    %2 = vector.multi_reduction <add>, %1, %cst [0] : vector<64x128xf32> to vector<128xf32>
    %3 = vector.shape_cast %2 : vector<128xf32> to vector<1x128xf32>
    %cst_2 = arith.constant 6.400000e+01 : f32
    %4 = vector.broadcast %cst_2 : f32 to vector<1x128xf32>
    %5 = arith.divf %3, %4 : vector<1x128xf32>
    %6 = vector.broadcast %5 : vector<1x128xf32> to vector<64x128xf32>
    %7 = arith.subf %1, %6 : vector<64x128xf32>
    %8 = arith.mulf %7, %7 : vector<64x128xf32>
    %cst_3 = arith.constant dense<0.000000e+00> : vector<128xf32>
    %9 = vector.multi_reduction <add>, %8, %cst_3 [0] : vector<64x128xf32> to vector<128xf32>
    %10 = vector.shape_cast %9 : vector<128xf32> to vector<1x128xf32>
    %cst_4 = arith.constant 6.400000e+01 : f32
    %11 = vector.broadcast %cst_4 : f32 to vector<1x128xf32>
    %12 = arith.divf %10, %11 : vector<1x128xf32>
    %13 = vector.broadcast %5 : vector<1x128xf32> to vector<64x128xf32>
    %14 = arith.subf %1, %13 : vector<64x128xf32>
    %cst_5 = arith.constant 9.99999974E-6 : f32
    %15 = vector.broadcast %cst_5 : f32 to vector<1x128xf32>
    %16 = arith.addf %12, %15 : vector<1x128xf32>
    %17 = math.rsqrt %16 : vector<1x128xf32>
    %18 = vector.broadcast %17 : vector<1x128xf32> to vector<64x128xf32>
    %19 = arith.mulf %14, %18 : vector<64x128xf32>
    %cst_6 = arith.constant 0.000000e+00 : f32
    %20 = vector.broadcast %cst_6 : f32 to vector<64x128xf32>
    %21 = arith.cmpf ogt, %19, %20 : vector<64x128xf32>
    %cst_7 = arith.constant 2.000000e-01 : f32
    %22 = vector.broadcast %cst_7 : f32 to vector<64x128xf32>
    %23 = arith.mulf %22, %19 : vector<64x128xf32>
    %24 = arith.select %21, %19, %23 : vector<64x128xi1>, vector<64x128xf32>
    %c0_8 = arith.constant 0 : index
    %c0_9 = arith.constant 0 : index
    %c0_10 = arith.constant 0 : index
    %25 = vector.load %arg3[%c0_8, %c0_9, %c0_10] : memref<1x64x128xf32, #tpu.memory_space<vmem>>, vector<1x64x128xf32>
    %26 = vector.shape_cast %25 : vector<1x64x128xf32> to vector<64x128xf32>
    %27 = vector.shape_cast %24 : vector<64x128xf32> to vector<1x64x128xf32>
    tpu.vector_store %arg3[%c0_8, %c0_9, %c0_10], %27 {strides = array<i32>} : memref<1x64x128xf32, #tpu.memory_space<vmem>>, vector<1x64x128xf32>,
    return
  }
  func.func @transform_0(%arg0: i32, %arg1: i32) -> (i32, i32, i32) {
    %c0_i32 = arith.constant 0 : i32
    %c0_i32_0 = arith.constant 0 : i32
    return %arg0, %c0_i32, %arg1 : i32, i32, i32
  }
  func.func @transform_1(%arg0: i32, %arg1: i32) -> (i32, i32, i32) {
    %c0_i32 = arith.constant 0 : i32
    %c0_i32_0 = arith.constant 0 : i32
    return %arg0, %c0_i32, %arg1 : i32, i32, i32
  }
}

module attributes {stable_mosaic.version = 11 : i64} {
  func.func @_matmul_bias_kernel(%arg0: i32, %arg1: i32, %arg2: i32, %arg3: memref<128x576xbf16, #tpu.memory_space<vmem>>, %arg4: memref<576x128xbf16, #tpu.memory_space<vmem>>, %arg5: memref<1x128xf32, #tpu.memory_space<vmem>>, %arg6: memref<128x128xf32, #tpu.memory_space<vmem>>) attributes {dimension_semantics = [#tpu.dimension_semantics<parallel>, #tpu.dimension_semantics<parallel>, #tpu.dimension_semantics<arbitrary>], iteration_bounds = array<i64: 1, 1, 1>, scalar_prefetch = 0 : i64, scratch_operands = 0 : i64, tpu.core_type = #tpu.core_type<tc>, window_params = [{transform_indices = @transform_0, window_bounds = array<i64: 128, 576>}, {transform_indices = @transform_1, window_bounds = array<i64: 576, 128>}, {transform_indices = @transform_2, window_bounds = array<i64: 1, 128>}, {transform_indices = @transform_3, window_bounds = array<i64: 128, 128>}]} {
    %c0 = arith.constant 0 : index
    %c0_0 = arith.constant 0 : index
    %0 = vector.load %arg3[%c0, %c0_0] : memref<128x576xbf16, #tpu.memory_space<vmem>>, vector<128x576xbf16>
    %c0_1 = arith.constant 0 : index
    %c0_2 = arith.constant 0 : index
    %1 = vector.load %arg4[%c0_1, %c0_2] : memref<576x128xbf16, #tpu.memory_space<vmem>>, vector<576x128xbf16>
    %cst = arith.constant dense<0.000000e+00> : vector<128x128xf32>
    %2 = tpu.matmul %0, %1, %cst {dimension_numbers = #tpu.dot_dimension_numbers<[1], [0], [0], [1], [0, 0, 1, 1], [], []>} : vector<128x576xbf16>, vector<576x128xbf16>, vector<128x128xf32> -> vector<128x128xf32>
    %c0_i32 = arith.constant 0 : i32
    %3 = arith.cmpi eq, %arg2, %c0_i32 : i32
    %4 = arith.extui %3 : i1 to i32
    %c0_i32_3 = arith.constant 0 : i32
    %5 = arith.cmpi ne, %4, %c0_i32_3 : i32
    scf.if %5 {
      %c0_6 = arith.constant 0 : index
      %c0_7 = arith.constant 0 : index
      %9 = vector.load %arg5[%c0_6, %c0_7] : memref<1x128xf32, #tpu.memory_space<vmem>>, vector<1x128xf32>
      %10 = vector.broadcast %9 : vector<1x128xf32> to vector<128x128xf32>
      %11 = arith.addf %2, %10 : vector<128x128xf32>
      %c0_8 = arith.constant 0 : index
      %c0_9 = arith.constant 0 : index
      %12 = vector.load %arg6[%c0_8, %c0_9] : memref<128x128xf32, #tpu.memory_space<vmem>>, vector<128x128xf32>
      tpu.vector_store %arg6[%c0_8, %c0_9], %11 {strides = array<i32>} : memref<128x128xf32, #tpu.memory_space<vmem>>, vector<128x128xf32>,
    } else {
    }
    %c0_i32_4 = arith.constant 0 : i32
    %6 = arith.cmpi ne, %arg2, %c0_i32_4 : i32
    %7 = arith.extui %6 : i1 to i32
    %c0_i32_5 = arith.constant 0 : i32
    %8 = arith.cmpi ne, %7, %c0_i32_5 : i32
    scf.if %8 {
      %c0_6 = arith.constant 0 : index
      %c0_7 = arith.constant 0 : index
      %9 = vector.load %arg6[%c0_6, %c0_7] : memref<128x128xf32, #tpu.memory_space<vmem>>, vector<128x128xf32>
      %10 = arith.addf %9, %2 : vector<128x128xf32>
      %c0_8 = arith.constant 0 : index
      %c0_9 = arith.constant 0 : index
      %11 = vector.load %arg6[%c0_8, %c0_9] : memref<128x128xf32, #tpu.memory_space<vmem>>, vector<128x128xf32>
      tpu.vector_store %arg6[%c0_8, %c0_9], %10 {strides = array<i32>} : memref<128x128xf32, #tpu.memory_space<vmem>>, vector<128x128xf32>,
    } else {
    }
    return
  }
  func.func @transform_0(%arg0: i32, %arg1: i32, %arg2: i32) -> (i32, i32) {
    %c0_i32 = arith.constant 0 : i32
    return %arg0, %arg2 : i32, i32
  }
  func.func @transform_1(%arg0: i32, %arg1: i32, %arg2: i32) -> (i32, i32) {
    %c0_i32 = arith.constant 0 : i32
    return %arg2, %arg1 : i32, i32
  }
  func.func @transform_2(%arg0: i32, %arg1: i32, %arg2: i32) -> (i32, i32) {
    %c0_i32 = arith.constant 0 : i32
    %c0_i32_0 = arith.constant 0 : i32
    return %c0_i32, %arg1 : i32, i32
  }
  func.func @transform_3(%arg0: i32, %arg1: i32, %arg2: i32) -> (i32, i32) {
    %c0_i32 = arith.constant 0 : i32
    return %arg0, %arg1 : i32, i32
  }
}

module attributes {stable_mosaic.version = 11 : i64} {
  func.func @_matmul_bias_kernel(%arg0: i32, %arg1: i32, %arg2: i32, %arg3: memref<128x384xbf16, #tpu.memory_space<vmem>>, %arg4: memref<384x128xbf16, #tpu.memory_space<vmem>>, %arg5: memref<1x128xf32, #tpu.memory_space<vmem>>, %arg6: memref<128x128xf32, #tpu.memory_space<vmem>>) attributes {dimension_semantics = [#tpu.dimension_semantics<parallel>, #tpu.dimension_semantics<parallel>, #tpu.dimension_semantics<arbitrary>], iteration_bounds = array<i64: 1, 1, 3>, scalar_prefetch = 0 : i64, scratch_operands = 0 : i64, tpu.core_type = #tpu.core_type<tc>, window_params = [{transform_indices = @transform_0, window_bounds = array<i64: 128, 384>}, {transform_indices = @transform_1, window_bounds = array<i64: 384, 128>}, {transform_indices = @transform_2, window_bounds = array<i64: 1, 128>}, {transform_indices = @transform_3, window_bounds = array<i64: 128, 128>}]} {
    %c0 = arith.constant 0 : index
    %c0_0 = arith.constant 0 : index
    %0 = vector.load %arg3[%c0, %c0_0] : memref<128x384xbf16, #tpu.memory_space<vmem>>, vector<128x384xbf16>
    %c0_1 = arith.constant 0 : index
    %c0_2 = arith.constant 0 : index
    %1 = vector.load %arg4[%c0_1, %c0_2] : memref<384x128xbf16, #tpu.memory_space<vmem>>, vector<384x128xbf16>
    %cst = arith.constant dense<0.000000e+00> : vector<128x128xf32>
    %2 = tpu.matmul %0, %1, %cst {dimension_numbers = #tpu.dot_dimension_numbers<[1], [0], [0], [1], [0, 0, 1, 1], [], []>} : vector<128x384xbf16>, vector<384x128xbf16>, vector<128x128xf32> -> vector<128x128xf32>
    %c0_i32 = arith.constant 0 : i32
    %3 = arith.cmpi eq, %arg2, %c0_i32 : i32
    %4 = arith.extui %3 : i1 to i32
    %c0_i32_3 = arith.constant 0 : i32
    %5 = arith.cmpi ne, %4, %c0_i32_3 : i32
    scf.if %5 {
      %c0_6 = arith.constant 0 : index
      %c0_7 = arith.constant 0 : index
      %9 = vector.load %arg5[%c0_6, %c0_7] : memref<1x128xf32, #tpu.memory_space<vmem>>, vector<1x128xf32>
      %10 = vector.broadcast %9 : vector<1x128xf32> to vector<128x128xf32>
      %11 = arith.addf %2, %10 : vector<128x128xf32>
      %c0_8 = arith.constant 0 : index
      %c0_9 = arith.constant 0 : index
      %12 = vector.load %arg6[%c0_8, %c0_9] : memref<128x128xf32, #tpu.memory_space<vmem>>, vector<128x128xf32>
      tpu.vector_store %arg6[%c0_8, %c0_9], %11 {strides = array<i32>} : memref<128x128xf32, #tpu.memory_space<vmem>>, vector<128x128xf32>,
    } else {
    }
    %c0_i32_4 = arith.constant 0 : i32
    %6 = arith.cmpi ne, %arg2, %c0_i32_4 : i32
    %7 = arith.extui %6 : i1 to i32
    %c0_i32_5 = arith.constant 0 : i32
    %8 = arith.cmpi ne, %7, %c0_i32_5 : i32
    scf.if %8 {
      %c0_6 = arith.constant 0 : index
      %c0_7 = arith.constant 0 : index
      %9 = vector.load %arg6[%c0_6, %c0_7] : memref<128x128xf32, #tpu.memory_space<vmem>>, vector<128x128xf32>
      %10 = arith.addf %9, %2 : vector<128x128xf32>
      %c0_8 = arith.constant 0 : index
      %c0_9 = arith.constant 0 : index
      %11 = vector.load %arg6[%c0_8, %c0_9] : memref<128x128xf32, #tpu.memory_space<vmem>>, vector<128x128xf32>
      tpu.vector_store %arg6[%c0_8, %c0_9], %10 {strides = array<i32>} : memref<128x128xf32, #tpu.memory_space<vmem>>, vector<128x128xf32>,
    } else {
    }
    return
  }
  func.func @transform_0(%arg0: i32, %arg1: i32, %arg2: i32) -> (i32, i32) {
    %c0_i32 = arith.constant 0 : i32
    return %arg0, %arg2 : i32, i32
  }
  func.func @transform_1(%arg0: i32, %arg1: i32, %arg2: i32) -> (i32, i32) {
    %c0_i32 = arith.constant 0 : i32
    return %arg2, %arg1 : i32, i32
  }
  func.func @transform_2(%arg0: i32, %arg1: i32, %arg2: i32) -> (i32, i32) {
    %c0_i32 = arith.constant 0 : i32
    %c0_i32_0 = arith.constant 0 : i32
    return %c0_i32, %arg1 : i32, i32
  }
  func.func @transform_3(%arg0: i32, %arg1: i32, %arg2: i32) -> (i32, i32) {
    %c0_i32 = arith.constant 0 : i32
    return %arg0, %arg1 : i32, i32
  }
}

module attributes {stable_mosaic.version = 11 : i64} {
  func.func @_inorm_act_batch_kernel(%arg0: i32, %arg1: i32, %arg2: memref<1x64x128xf32, #tpu.memory_space<vmem>>, %arg3: memref<1x64x128xf32, #tpu.memory_space<vmem>>) attributes {dimension_semantics = [#tpu.dimension_semantics<parallel>, #tpu.dimension_semantics<parallel>], iteration_bounds = array<i64: 2, 1>, scalar_prefetch = 0 : i64, scratch_operands = 0 : i64, tpu.core_type = #tpu.core_type<tc>, window_params = [{transform_indices = @transform_0, window_bounds = array<i64: 1, 64, 128>}, {transform_indices = @transform_1, window_bounds = array<i64: 1, 64, 128>}]} {
    %c0 = arith.constant 0 : index
    %c0_0 = arith.constant 0 : index
    %c0_1 = arith.constant 0 : index
    %0 = vector.load %arg2[%c0, %c0_0, %c0_1] : memref<1x64x128xf32, #tpu.memory_space<vmem>>, vector<1x64x128xf32>
    %1 = vector.shape_cast %0 : vector<1x64x128xf32> to vector<64x128xf32>
    %cst = arith.constant dense<0.000000e+00> : vector<128xf32>
    %2 = vector.multi_reduction <add>, %1, %cst [0] : vector<64x128xf32> to vector<128xf32>
    %3 = vector.shape_cast %2 : vector<128xf32> to vector<1x128xf32>
    %cst_2 = arith.constant 6.400000e+01 : f32
    %4 = vector.broadcast %cst_2 : f32 to vector<1x128xf32>
    %5 = arith.divf %3, %4 : vector<1x128xf32>
    %6 = vector.broadcast %5 : vector<1x128xf32> to vector<64x128xf32>
    %7 = arith.subf %1, %6 : vector<64x128xf32>
    %8 = arith.mulf %7, %7 : vector<64x128xf32>
    %cst_3 = arith.constant dense<0.000000e+00> : vector<128xf32>
    %9 = vector.multi_reduction <add>, %8, %cst_3 [0] : vector<64x128xf32> to vector<128xf32>
    %10 = vector.shape_cast %9 : vector<128xf32> to vector<1x128xf32>
    %cst_4 = arith.constant 6.400000e+01 : f32
    %11 = vector.broadcast %cst_4 : f32 to vector<1x128xf32>
    %12 = arith.divf %10, %11 : vector<1x128xf32>
    %13 = vector.broadcast %5 : vector<1x128xf32> to vector<64x128xf32>
    %14 = arith.subf %1, %13 : vector<64x128xf32>
    %cst_5 = arith.constant 9.99999974E-6 : f32
    %15 = vector.broadcast %cst_5 : f32 to vector<1x128xf32>
    %16 = arith.addf %12, %15 : vector<1x128xf32>
    %17 = math.rsqrt %16 : vector<1x128xf32>
    %18 = vector.broadcast %17 : vector<1x128xf32> to vector<64x128xf32>
    %19 = arith.mulf %14, %18 : vector<64x128xf32>
    %c0_6 = arith.constant 0 : index
    %c0_7 = arith.constant 0 : index
    %c0_8 = arith.constant 0 : index
    %20 = vector.load %arg3[%c0_6, %c0_7, %c0_8] : memref<1x64x128xf32, #tpu.memory_space<vmem>>, vector<1x64x128xf32>
    %21 = vector.shape_cast %20 : vector<1x64x128xf32> to vector<64x128xf32>
    %22 = vector.shape_cast %19 : vector<64x128xf32> to vector<1x64x128xf32>
    tpu.vector_store %arg3[%c0_6, %c0_7, %c0_8], %22 {strides = array<i32>} : memref<1x64x128xf32, #tpu.memory_space<vmem>>, vector<1x64x128xf32>,
    return
  }
  func.func @transform_0(%arg0: i32, %arg1: i32) -> (i32, i32, i32) {
    %c0_i32 = arith.constant 0 : i32
    %c0_i32_0 = arith.constant 0 : i32
    return %arg0, %c0_i32, %arg1 : i32, i32, i32
  }
  func.func @transform_1(%arg0: i32, %arg1: i32) -> (i32, i32, i32) {
    %c0_i32 = arith.constant 0 : i32
    %c0_i32_0 = arith.constant 0 : i32
    return %arg0, %c0_i32, %arg1 : i32, i32, i32
  }
}

module attributes {stable_mosaic.version = 11 : i64} {
  func.func @_matmul_bias_kernel(%arg0: i32, %arg1: i32, %arg2: i32, %arg3: memref<128x128xbf16, #tpu.memory_space<vmem>>, %arg4: memref<128x128xbf16, #tpu.memory_space<vmem>>, %arg5: memref<1x128xf32, #tpu.memory_space<vmem>>, %arg6: memref<128x128xf32, #tpu.memory_space<vmem>>) attributes {dimension_semantics = [#tpu.dimension_semantics<parallel>, #tpu.dimension_semantics<parallel>, #tpu.dimension_semantics<arbitrary>], iteration_bounds = array<i64: 1, 1, 1>, scalar_prefetch = 0 : i64, scratch_operands = 0 : i64, tpu.core_type = #tpu.core_type<tc>, window_params = [{transform_indices = @transform_0, window_bounds = array<i64: 128, 128>}, {transform_indices = @transform_1, window_bounds = array<i64: 128, 128>}, {transform_indices = @transform_2, window_bounds = array<i64: 1, 128>}, {transform_indices = @transform_3, window_bounds = array<i64: 128, 128>}]} {
    %c0 = arith.constant 0 : index
    %c0_0 = arith.constant 0 : index
    %0 = vector.load %arg3[%c0, %c0_0] : memref<128x128xbf16, #tpu.memory_space<vmem>>, vector<128x128xbf16>
    %c0_1 = arith.constant 0 : index
    %c0_2 = arith.constant 0 : index
    %1 = vector.load %arg4[%c0_1, %c0_2] : memref<128x128xbf16, #tpu.memory_space<vmem>>, vector<128x128xbf16>
    %cst = arith.constant dense<0.000000e+00> : vector<128x128xf32>
    %2 = tpu.matmul %0, %1, %cst {dimension_numbers = #tpu.dot_dimension_numbers<[1], [0], [0], [1], [0, 0, 1, 1], [], []>} : vector<128x128xbf16>, vector<128x128xbf16>, vector<128x128xf32> -> vector<128x128xf32>
    %c0_i32 = arith.constant 0 : i32
    %3 = arith.cmpi eq, %arg2, %c0_i32 : i32
    %4 = arith.extui %3 : i1 to i32
    %c0_i32_3 = arith.constant 0 : i32
    %5 = arith.cmpi ne, %4, %c0_i32_3 : i32
    scf.if %5 {
      %c0_6 = arith.constant 0 : index
      %c0_7 = arith.constant 0 : index
      %9 = vector.load %arg5[%c0_6, %c0_7] : memref<1x128xf32, #tpu.memory_space<vmem>>, vector<1x128xf32>
      %10 = vector.broadcast %9 : vector<1x128xf32> to vector<128x128xf32>
      %11 = arith.addf %2, %10 : vector<128x128xf32>
      %c0_8 = arith.constant 0 : index
      %c0_9 = arith.constant 0 : index
      %12 = vector.load %arg6[%c0_8, %c0_9] : memref<128x128xf32, #tpu.memory_space<vmem>>, vector<128x128xf32>
      tpu.vector_store %arg6[%c0_8, %c0_9], %11 {strides = array<i32>} : memref<128x128xf32, #tpu.memory_space<vmem>>, vector<128x128xf32>,
    } else {
    }
    %c0_i32_4 = arith.constant 0 : i32
    %6 = arith.cmpi ne, %arg2, %c0_i32_4 : i32
    %7 = arith.extui %6 : i1 to i32
    %c0_i32_5 = arith.constant 0 : i32
    %8 = arith.cmpi ne, %7, %c0_i32_5 : i32
    scf.if %8 {
      %c0_6 = arith.constant 0 : index
      %c0_7 = arith.constant 0 : index
      %9 = vector.load %arg6[%c0_6, %c0_7] : memref<128x128xf32, #tpu.memory_space<vmem>>, vector<128x128xf32>
      %10 = arith.addf %9, %2 : vector<128x128xf32>
      %c0_8 = arith.constant 0 : index
      %c0_9 = arith.constant 0 : index
      %11 = vector.load %arg6[%c0_8, %c0_9] : memref<128x128xf32, #tpu.memory_space<vmem>>, vector<128x128xf32>
      tpu.vector_store %arg6[%c0_8, %c0_9], %10 {strides = array<i32>} : memref<128x128xf32, #tpu.memory_space<vmem>>, vector<128x128xf32>,
    } else {
    }
    return
  }
  func.func @transform_0(%arg0: i32, %arg1: i32, %arg2: i32) -> (i32, i32) {
    %c0_i32 = arith.constant 0 : i32
    return %arg0, %arg2 : i32, i32
  }
  func.func @transform_1(%arg0: i32, %arg1: i32, %arg2: i32) -> (i32, i32) {
    %c0_i32 = arith.constant 0 : i32
    return %arg2, %arg1 : i32, i32
  }
  func.func @transform_2(%arg0: i32, %arg1: i32, %arg2: i32) -> (i32, i32) {
    %c0_i32 = arith.constant 0 : i32
    %c0_i32_0 = arith.constant 0 : i32
    return %c0_i32, %arg1 : i32, i32
  }
  func.func @transform_3(%arg0: i32, %arg1: i32, %arg2: i32) -> (i32, i32) {
    %c0_i32 = arith.constant 0 : i32
    return %arg0, %arg1 : i32, i32
  }
}

module attributes {stable_mosaic.version = 11 : i64} {
  func.func @_inorm_act_rows_kernel(%arg0: i32, %arg1: memref<64x128xf32, #tpu.memory_space<vmem>>, %arg2: memref<64x128xf32, #tpu.memory_space<vmem>>) attributes {dimension_semantics = [#tpu.dimension_semantics<parallel>], iteration_bounds = array<i64: 1>, scalar_prefetch = 0 : i64, scratch_operands = 0 : i64, tpu.core_type = #tpu.core_type<tc>, window_params = [{transform_indices = @transform_0, window_bounds = array<i64: 64, 128>}, {transform_indices = @transform_1, window_bounds = array<i64: 64, 128>}]} {
    %c0 = arith.constant 0 : index
    %c0_0 = arith.constant 0 : index
    %0 = vector.load %arg1[%c0, %c0_0] : memref<64x128xf32, #tpu.memory_space<vmem>>, vector<64x128xf32>
    %cst = arith.constant dense<0.000000e+00> : vector<128xf32>
    %1 = vector.multi_reduction <add>, %0, %cst [0] : vector<64x128xf32> to vector<128xf32>
    %2 = vector.shape_cast %1 : vector<128xf32> to vector<1x128xf32>
    %cst_1 = arith.constant 6.400000e+01 : f32
    %3 = vector.broadcast %cst_1 : f32 to vector<1x128xf32>
    %4 = arith.divf %2, %3 : vector<1x128xf32>
    %5 = vector.broadcast %4 : vector<1x128xf32> to vector<64x128xf32>
    %6 = arith.subf %0, %5 : vector<64x128xf32>
    %7 = arith.mulf %6, %6 : vector<64x128xf32>
    %cst_2 = arith.constant dense<0.000000e+00> : vector<128xf32>
    %8 = vector.multi_reduction <add>, %7, %cst_2 [0] : vector<64x128xf32> to vector<128xf32>
    %9 = vector.shape_cast %8 : vector<128xf32> to vector<1x128xf32>
    %cst_3 = arith.constant 6.400000e+01 : f32
    %10 = vector.broadcast %cst_3 : f32 to vector<1x128xf32>
    %11 = arith.divf %9, %10 : vector<1x128xf32>
    %12 = vector.broadcast %4 : vector<1x128xf32> to vector<64x128xf32>
    %13 = arith.subf %0, %12 : vector<64x128xf32>
    %cst_4 = arith.constant 9.99999974E-6 : f32
    %14 = vector.broadcast %cst_4 : f32 to vector<1x128xf32>
    %15 = arith.addf %11, %14 : vector<1x128xf32>
    %16 = math.rsqrt %15 : vector<1x128xf32>
    %17 = vector.broadcast %16 : vector<1x128xf32> to vector<64x128xf32>
    %18 = arith.mulf %13, %17 : vector<64x128xf32>
    %c0_5 = arith.constant 0 : index
    %c0_6 = arith.constant 0 : index
    %19 = vector.load %arg2[%c0_5, %c0_6] : memref<64x128xf32, #tpu.memory_space<vmem>>, vector<64x128xf32>
    tpu.vector_store %arg2[%c0_5, %c0_6], %18 {strides = array<i32>} : memref<64x128xf32, #tpu.memory_space<vmem>>, vector<64x128xf32>,
    return
  }
  func.func @transform_0(%arg0: i32) -> (i32, i32) {
    %c0_i32 = arith.constant 0 : i32
    %c0_i32_0 = arith.constant 0 : i32
    return %c0_i32, %arg0 : i32, i32
  }
  func.func @transform_1(%arg0: i32) -> (i32, i32) {
    %c0_i32 = arith.constant 0 : i32
    %c0_i32_0 = arith.constant 0 : i32
    return %c0_i32, %arg0 : i32, i32
  }
}

module attributes {stable_mosaic.version = 11 : i64} {
  func.func @_matmul_bias_kernel(%arg0: i32, %arg1: i32, %arg2: i32, %arg3: memref<128x128xbf16, #tpu.memory_space<vmem>>, %arg4: memref<128x128xbf16, #tpu.memory_space<vmem>>, %arg5: memref<1x128xf32, #tpu.memory_space<vmem>>, %arg6: memref<128x128xf32, #tpu.memory_space<vmem>>) attributes {dimension_semantics = [#tpu.dimension_semantics<parallel>, #tpu.dimension_semantics<parallel>, #tpu.dimension_semantics<arbitrary>], iteration_bounds = array<i64: 1, 1, 1>, scalar_prefetch = 0 : i64, scratch_operands = 0 : i64, tpu.core_type = #tpu.core_type<tc>, window_params = [{transform_indices = @transform_0, window_bounds = array<i64: 128, 128>}, {transform_indices = @transform_1, window_bounds = array<i64: 128, 128>}, {transform_indices = @transform_2, window_bounds = array<i64: 1, 128>}, {transform_indices = @transform_3, window_bounds = array<i64: 128, 128>}]} {
    %c0 = arith.constant 0 : index
    %c0_0 = arith.constant 0 : index
    %0 = vector.load %arg3[%c0, %c0_0] : memref<128x128xbf16, #tpu.memory_space<vmem>>, vector<128x128xbf16>
    %c0_1 = arith.constant 0 : index
    %c0_2 = arith.constant 0 : index
    %1 = vector.load %arg4[%c0_1, %c0_2] : memref<128x128xbf16, #tpu.memory_space<vmem>>, vector<128x128xbf16>
    %cst = arith.constant dense<0.000000e+00> : vector<128x128xf32>
    %2 = tpu.matmul %0, %1, %cst {dimension_numbers = #tpu.dot_dimension_numbers<[1], [0], [0], [1], [0, 0, 1, 1], [], []>} : vector<128x128xbf16>, vector<128x128xbf16>, vector<128x128xf32> -> vector<128x128xf32>
    %c0_i32 = arith.constant 0 : i32
    %3 = arith.cmpi eq, %arg2, %c0_i32 : i32
    %4 = arith.extui %3 : i1 to i32
    %c0_i32_3 = arith.constant 0 : i32
    %5 = arith.cmpi ne, %4, %c0_i32_3 : i32
    scf.if %5 {
      %c0_6 = arith.constant 0 : index
      %c0_7 = arith.constant 0 : index
      %9 = vector.load %arg5[%c0_6, %c0_7] : memref<1x128xf32, #tpu.memory_space<vmem>>, vector<1x128xf32>
      %10 = vector.broadcast %9 : vector<1x128xf32> to vector<128x128xf32>
      %11 = arith.addf %2, %10 : vector<128x128xf32>
      %c0_8 = arith.constant 0 : index
      %c0_9 = arith.constant 0 : index
      %12 = vector.load %arg6[%c0_8, %c0_9] : memref<128x128xf32, #tpu.memory_space<vmem>>, vector<128x128xf32>
      tpu.vector_store %arg6[%c0_8, %c0_9], %11 {strides = array<i32>} : memref<128x128xf32, #tpu.memory_space<vmem>>, vector<128x128xf32>,
    } else {
    }
    %c0_i32_4 = arith.constant 0 : i32
    %6 = arith.cmpi ne, %arg2, %c0_i32_4 : i32
    %7 = arith.extui %6 : i1 to i32
    %c0_i32_5 = arith.constant 0 : i32
    %8 = arith.cmpi ne, %7, %c0_i32_5 : i32
    scf.if %8 {
      %c0_6 = arith.constant 0 : index
      %c0_7 = arith.constant 0 : index
      %9 = vector.load %arg6[%c0_6, %c0_7] : memref<128x128xf32, #tpu.memory_space<vmem>>, vector<128x128xf32>
      %10 = arith.addf %9, %2 : vector<128x128xf32>
      %c0_8 = arith.constant 0 : index
      %c0_9 = arith.constant 0 : index
      %11 = vector.load %arg6[%c0_8, %c0_9] : memref<128x128xf32, #tpu.memory_space<vmem>>, vector<128x128xf32>
      tpu.vector_store %arg6[%c0_8, %c0_9], %10 {strides = array<i32>} : memref<128x128xf32, #tpu.memory_space<vmem>>, vector<128x128xf32>,
    } else {
    }
    return
  }
  func.func @transform_0(%arg0: i32, %arg1: i32, %arg2: i32) -> (i32, i32) {
    %c0_i32 = arith.constant 0 : i32
    return %arg0, %arg2 : i32, i32
  }
  func.func @transform_1(%arg0: i32, %arg1: i32, %arg2: i32) -> (i32, i32) {
    %c0_i32 = arith.constant 0 : i32
    return %arg2, %arg1 : i32, i32
  }
  func.func @transform_2(%arg0: i32, %arg1: i32, %arg2: i32) -> (i32, i32) {
    %c0_i32 = arith.constant 0 : i32
    %c0_i32_0 = arith.constant 0 : i32
    return %c0_i32, %arg1 : i32, i32
  }
  func.func @transform_3(%arg0: i32, %arg1: i32, %arg2: i32) -> (i32, i32) {
    %c0_i32 = arith.constant 0 : i32
    return %arg0, %arg1 : i32, i32
  }
}

module attributes {stable_mosaic.version = 11 : i64} {
  func.func @_matmul_bias_kernel(%arg0: i32, %arg1: i32, %arg2: i32, %arg3: memref<128x768xbf16, #tpu.memory_space<vmem>>, %arg4: memref<768x128xbf16, #tpu.memory_space<vmem>>, %arg5: memref<1x128xf32, #tpu.memory_space<vmem>>, %arg6: memref<128x128xf32, #tpu.memory_space<vmem>>) attributes {dimension_semantics = [#tpu.dimension_semantics<parallel>, #tpu.dimension_semantics<parallel>, #tpu.dimension_semantics<arbitrary>], iteration_bounds = array<i64: 1, 1, 3>, scalar_prefetch = 0 : i64, scratch_operands = 0 : i64, tpu.core_type = #tpu.core_type<tc>, window_params = [{transform_indices = @transform_0, window_bounds = array<i64: 128, 768>}, {transform_indices = @transform_1, window_bounds = array<i64: 768, 128>}, {transform_indices = @transform_2, window_bounds = array<i64: 1, 128>}, {transform_indices = @transform_3, window_bounds = array<i64: 128, 128>}]} {
    %c0 = arith.constant 0 : index
    %c0_0 = arith.constant 0 : index
    %0 = vector.load %arg3[%c0, %c0_0] : memref<128x768xbf16, #tpu.memory_space<vmem>>, vector<128x768xbf16>
    %c0_1 = arith.constant 0 : index
    %c0_2 = arith.constant 0 : index
    %1 = vector.load %arg4[%c0_1, %c0_2] : memref<768x128xbf16, #tpu.memory_space<vmem>>, vector<768x128xbf16>
    %cst = arith.constant dense<0.000000e+00> : vector<128x128xf32>
    %2 = tpu.matmul %0, %1, %cst {dimension_numbers = #tpu.dot_dimension_numbers<[1], [0], [0], [1], [0, 0, 1, 1], [], []>} : vector<128x768xbf16>, vector<768x128xbf16>, vector<128x128xf32> -> vector<128x128xf32>
    %c0_i32 = arith.constant 0 : i32
    %3 = arith.cmpi eq, %arg2, %c0_i32 : i32
    %4 = arith.extui %3 : i1 to i32
    %c0_i32_3 = arith.constant 0 : i32
    %5 = arith.cmpi ne, %4, %c0_i32_3 : i32
    scf.if %5 {
      %c0_6 = arith.constant 0 : index
      %c0_7 = arith.constant 0 : index
      %9 = vector.load %arg5[%c0_6, %c0_7] : memref<1x128xf32, #tpu.memory_space<vmem>>, vector<1x128xf32>
      %10 = vector.broadcast %9 : vector<1x128xf32> to vector<128x128xf32>
      %11 = arith.addf %2, %10 : vector<128x128xf32>
      %c0_8 = arith.constant 0 : index
      %c0_9 = arith.constant 0 : index
      %12 = vector.load %arg6[%c0_8, %c0_9] : memref<128x128xf32, #tpu.memory_space<vmem>>, vector<128x128xf32>
      tpu.vector_store %arg6[%c0_8, %c0_9], %11 {strides = array<i32>} : memref<128x128xf32, #tpu.memory_space<vmem>>, vector<128x128xf32>,
    } else {
    }
    %c0_i32_4 = arith.constant 0 : i32
    %6 = arith.cmpi ne, %arg2, %c0_i32_4 : i32
    %7 = arith.extui %6 : i1 to i32
    %c0_i32_5 = arith.constant 0 : i32
    %8 = arith.cmpi ne, %7, %c0_i32_5 : i32
    scf.if %8 {
      %c0_6 = arith.constant 0 : index
      %c0_7 = arith.constant 0 : index
      %9 = vector.load %arg6[%c0_6, %c0_7] : memref<128x128xf32, #tpu.memory_space<vmem>>, vector<128x128xf32>
      %10 = arith.addf %9, %2 : vector<128x128xf32>
      %c0_8 = arith.constant 0 : index
      %c0_9 = arith.constant 0 : index
      %11 = vector.load %arg6[%c0_8, %c0_9] : memref<128x128xf32, #tpu.memory_space<vmem>>, vector<128x128xf32>
      tpu.vector_store %arg6[%c0_8, %c0_9], %10 {strides = array<i32>} : memref<128x128xf32, #tpu.memory_space<vmem>>, vector<128x128xf32>,
    } else {
    }
    return
  }
  func.func @transform_0(%arg0: i32, %arg1: i32, %arg2: i32) -> (i32, i32) {
    %c0_i32 = arith.constant 0 : i32
    return %arg0, %arg2 : i32, i32
  }
  func.func @transform_1(%arg0: i32, %arg1: i32, %arg2: i32) -> (i32, i32) {
    %c0_i32 = arith.constant 0 : i32
    return %arg2, %arg1 : i32, i32
  }
  func.func @transform_2(%arg0: i32, %arg1: i32, %arg2: i32) -> (i32, i32) {
    %c0_i32 = arith.constant 0 : i32
    %c0_i32_0 = arith.constant 0 : i32
    return %c0_i32, %arg1 : i32, i32
  }
  func.func @transform_3(%arg0: i32, %arg1: i32, %arg2: i32) -> (i32, i32) {
    %c0_i32 = arith.constant 0 : i32
    return %arg0, %arg1 : i32, i32
  }
}

module attributes {stable_mosaic.version = 11 : i64} {
  func.func @_matmul_bias_kernel(%arg0: i32, %arg1: i32, %arg2: i32, %arg3: memref<128x384xbf16, #tpu.memory_space<vmem>>, %arg4: memref<384x128xbf16, #tpu.memory_space<vmem>>, %arg5: memref<1x128xf32, #tpu.memory_space<vmem>>, %arg6: memref<128x128xf32, #tpu.memory_space<vmem>>) attributes {dimension_semantics = [#tpu.dimension_semantics<parallel>, #tpu.dimension_semantics<parallel>, #tpu.dimension_semantics<arbitrary>], iteration_bounds = array<i64: 1, 1, 3>, scalar_prefetch = 0 : i64, scratch_operands = 0 : i64, tpu.core_type = #tpu.core_type<tc>, window_params = [{transform_indices = @transform_0, window_bounds = array<i64: 128, 384>}, {transform_indices = @transform_1, window_bounds = array<i64: 384, 128>}, {transform_indices = @transform_2, window_bounds = array<i64: 1, 128>}, {transform_indices = @transform_3, window_bounds = array<i64: 128, 128>}]} {
    %c0 = arith.constant 0 : index
    %c0_0 = arith.constant 0 : index
    %0 = vector.load %arg3[%c0, %c0_0] : memref<128x384xbf16, #tpu.memory_space<vmem>>, vector<128x384xbf16>
    %c0_1 = arith.constant 0 : index
    %c0_2 = arith.constant 0 : index
    %1 = vector.load %arg4[%c0_1, %c0_2] : memref<384x128xbf16, #tpu.memory_space<vmem>>, vector<384x128xbf16>
    %cst = arith.constant dense<0.000000e+00> : vector<128x128xf32>
    %2 = tpu.matmul %0, %1, %cst {dimension_numbers = #tpu.dot_dimension_numbers<[1], [0], [0], [1], [0, 0, 1, 1], [], []>} : vector<128x384xbf16>, vector<384x128xbf16>, vector<128x128xf32> -> vector<128x128xf32>
    %c0_i32 = arith.constant 0 : i32
    %3 = arith.cmpi eq, %arg2, %c0_i32 : i32
    %4 = arith.extui %3 : i1 to i32
    %c0_i32_3 = arith.constant 0 : i32
    %5 = arith.cmpi ne, %4, %c0_i32_3 : i32
    scf.if %5 {
      %c0_6 = arith.constant 0 : index
      %c0_7 = arith.constant 0 : index
      %9 = vector.load %arg5[%c0_6, %c0_7] : memref<1x128xf32, #tpu.memory_space<vmem>>, vector<1x128xf32>
      %10 = vector.broadcast %9 : vector<1x128xf32> to vector<128x128xf32>
      %11 = arith.addf %2, %10 : vector<128x128xf32>
      %c0_8 = arith.constant 0 : index
      %c0_9 = arith.constant 0 : index
      %12 = vector.load %arg6[%c0_8, %c0_9] : memref<128x128xf32, #tpu.memory_space<vmem>>, vector<128x128xf32>
      tpu.vector_store %arg6[%c0_8, %c0_9], %11 {strides = array<i32>} : memref<128x128xf32, #tpu.memory_space<vmem>>, vector<128x128xf32>,
    } else {
    }
    %c0_i32_4 = arith.constant 0 : i32
    %6 = arith.cmpi ne, %arg2, %c0_i32_4 : i32
    %7 = arith.extui %6 : i1 to i32
    %c0_i32_5 = arith.constant 0 : i32
    %8 = arith.cmpi ne, %7, %c0_i32_5 : i32
    scf.if %8 {
      %c0_6 = arith.constant 0 : index
      %c0_7 = arith.constant 0 : index
      %9 = vector.load %arg6[%c0_6, %c0_7] : memref<128x128xf32, #tpu.memory_space<vmem>>, vector<128x128xf32>
      %10 = arith.addf %9, %2 : vector<128x128xf32>
      %c0_8 = arith.constant 0 : index
      %c0_9 = arith.constant 0 : index
      %11 = vector.load %arg6[%c0_8, %c0_9] : memref<128x128xf32, #tpu.memory_space<vmem>>, vector<128x128xf32>
      tpu.vector_store %arg6[%c0_8, %c0_9], %10 {strides = array<i32>} : memref<128x128xf32, #tpu.memory_space<vmem>>, vector<128x128xf32>,
    } else {
    }
    return
  }
  func.func @transform_0(%arg0: i32, %arg1: i32, %arg2: i32) -> (i32, i32) {
    %c0_i32 = arith.constant 0 : i32
    return %arg0, %arg2 : i32, i32
  }
  func.func @transform_1(%arg0: i32, %arg1: i32, %arg2: i32) -> (i32, i32) {
    %c0_i32 = arith.constant 0 : i32
    return %arg2, %arg1 : i32, i32
  }
  func.func @transform_2(%arg0: i32, %arg1: i32, %arg2: i32) -> (i32, i32) {
    %c0_i32 = arith.constant 0 : i32
    %c0_i32_0 = arith.constant 0 : i32
    return %c0_i32, %arg1 : i32, i32
  }
  func.func @transform_3(%arg0: i32, %arg1: i32, %arg2: i32) -> (i32, i32) {
    %c0_i32 = arith.constant 0 : i32
    return %arg0, %arg1 : i32, i32
  }
}

module attributes {stable_mosaic.version = 11 : i64} {
  func.func @_matmul_bias_kernel(%arg0: i32, %arg1: i32, %arg2: i32, %arg3: memref<128x128xbf16, #tpu.memory_space<vmem>>, %arg4: memref<128x128xbf16, #tpu.memory_space<vmem>>, %arg5: memref<1x128xf32, #tpu.memory_space<vmem>>, %arg6: memref<128x128xf32, #tpu.memory_space<vmem>>) attributes {dimension_semantics = [#tpu.dimension_semantics<parallel>, #tpu.dimension_semantics<parallel>, #tpu.dimension_semantics<arbitrary>], iteration_bounds = array<i64: 1, 2, 1>, scalar_prefetch = 0 : i64, scratch_operands = 0 : i64, tpu.core_type = #tpu.core_type<tc>, window_params = [{transform_indices = @transform_0, window_bounds = array<i64: 128, 128>}, {transform_indices = @transform_1, window_bounds = array<i64: 128, 128>}, {transform_indices = @transform_2, window_bounds = array<i64: 1, 128>}, {transform_indices = @transform_3, window_bounds = array<i64: 128, 128>}]} {
    %c0 = arith.constant 0 : index
    %c0_0 = arith.constant 0 : index
    %0 = vector.load %arg3[%c0, %c0_0] : memref<128x128xbf16, #tpu.memory_space<vmem>>, vector<128x128xbf16>
    %c0_1 = arith.constant 0 : index
    %c0_2 = arith.constant 0 : index
    %1 = vector.load %arg4[%c0_1, %c0_2] : memref<128x128xbf16, #tpu.memory_space<vmem>>, vector<128x128xbf16>
    %cst = arith.constant dense<0.000000e+00> : vector<128x128xf32>
    %2 = tpu.matmul %0, %1, %cst {dimension_numbers = #tpu.dot_dimension_numbers<[1], [0], [0], [1], [0, 0, 1, 1], [], []>} : vector<128x128xbf16>, vector<128x128xbf16>, vector<128x128xf32> -> vector<128x128xf32>
    %c0_i32 = arith.constant 0 : i32
    %3 = arith.cmpi eq, %arg2, %c0_i32 : i32
    %4 = arith.extui %3 : i1 to i32
    %c0_i32_3 = arith.constant 0 : i32
    %5 = arith.cmpi ne, %4, %c0_i32_3 : i32
    scf.if %5 {
      %c0_6 = arith.constant 0 : index
      %c0_7 = arith.constant 0 : index
      %9 = vector.load %arg5[%c0_6, %c0_7] : memref<1x128xf32, #tpu.memory_space<vmem>>, vector<1x128xf32>
      %10 = vector.broadcast %9 : vector<1x128xf32> to vector<128x128xf32>
      %11 = arith.addf %2, %10 : vector<128x128xf32>
      %c0_8 = arith.constant 0 : index
      %c0_9 = arith.constant 0 : index
      %12 = vector.load %arg6[%c0_8, %c0_9] : memref<128x128xf32, #tpu.memory_space<vmem>>, vector<128x128xf32>
      tpu.vector_store %arg6[%c0_8, %c0_9], %11 {strides = array<i32>} : memref<128x128xf32, #tpu.memory_space<vmem>>, vector<128x128xf32>,
    } else {
    }
    %c0_i32_4 = arith.constant 0 : i32
    %6 = arith.cmpi ne, %arg2, %c0_i32_4 : i32
    %7 = arith.extui %6 : i1 to i32
    %c0_i32_5 = arith.constant 0 : i32
    %8 = arith.cmpi ne, %7, %c0_i32_5 : i32
    scf.if %8 {
      %c0_6 = arith.constant 0 : index
      %c0_7 = arith.constant 0 : index
      %9 = vector.load %arg6[%c0_6, %c0_7] : memref<128x128xf32, #tpu.memory_space<vmem>>, vector<128x128xf32>
      %10 = arith.addf %9, %2 : vector<128x128xf32>
      %c0_8 = arith.constant 0 : index
      %c0_9 = arith.constant 0 : index
      %11 = vector.load %arg6[%c0_8, %c0_9] : memref<128x128xf32, #tpu.memory_space<vmem>>, vector<128x128xf32>
      tpu.vector_store %arg6[%c0_8, %c0_9], %10 {strides = array<i32>} : memref<128x128xf32, #tpu.memory_space<vmem>>, vector<128x128xf32>,
    } else {
    }
    return
  }
  func.func @transform_0(%arg0: i32, %arg1: i32, %arg2: i32) -> (i32, i32) {
    %c0_i32 = arith.constant 0 : i32
    return %arg0, %arg2 : i32, i32
  }
  func.func @transform_1(%arg0: i32, %arg1: i32, %arg2: i32) -> (i32, i32) {
    %c0_i32 = arith.constant 0 : i32
    return %arg2, %arg1 : i32, i32
  }
  func.func @transform_2(%arg0: i32, %arg1: i32, %arg2: i32) -> (i32, i32) {
    %c0_i32 = arith.constant 0 : i32
    %c0_i32_0 = arith.constant 0 : i32
    return %c0_i32, %arg1 : i32, i32
  }
  func.func @transform_3(%arg0: i32, %arg1: i32, %arg2: i32) -> (i32, i32) {
    %c0_i32 = arith.constant 0 : i32
    return %arg0, %arg1 : i32, i32
  }
}

module attributes {stable_mosaic.version = 11 : i64} {
  func.func @_matmul_bias_kernel(%arg0: i32, %arg1: i32, %arg2: i32, %arg3: memref<256x1152xbf16, #tpu.memory_space<vmem>>, %arg4: memref<1152x128xbf16, #tpu.memory_space<vmem>>, %arg5: memref<1x128xf32, #tpu.memory_space<vmem>>, %arg6: memref<256x128xf32, #tpu.memory_space<vmem>>) attributes {dimension_semantics = [#tpu.dimension_semantics<parallel>, #tpu.dimension_semantics<parallel>, #tpu.dimension_semantics<arbitrary>], iteration_bounds = array<i64: 2, 1, 1>, scalar_prefetch = 0 : i64, scratch_operands = 0 : i64, tpu.core_type = #tpu.core_type<tc>, window_params = [{transform_indices = @transform_0, window_bounds = array<i64: 256, 1152>}, {transform_indices = @transform_1, window_bounds = array<i64: 1152, 128>}, {transform_indices = @transform_2, window_bounds = array<i64: 1, 128>}, {transform_indices = @transform_3, window_bounds = array<i64: 256, 128>}]} {
    %c0 = arith.constant 0 : index
    %c0_0 = arith.constant 0 : index
    %0 = vector.load %arg3[%c0, %c0_0] : memref<256x1152xbf16, #tpu.memory_space<vmem>>, vector<256x1152xbf16>
    %c0_1 = arith.constant 0 : index
    %c0_2 = arith.constant 0 : index
    %1 = vector.load %arg4[%c0_1, %c0_2] : memref<1152x128xbf16, #tpu.memory_space<vmem>>, vector<1152x128xbf16>
    %cst = arith.constant dense<0.000000e+00> : vector<256x128xf32>
    %2 = tpu.matmul %0, %1, %cst {dimension_numbers = #tpu.dot_dimension_numbers<[1], [0], [0], [1], [0, 0, 1, 1], [], []>} : vector<256x1152xbf16>, vector<1152x128xbf16>, vector<256x128xf32> -> vector<256x128xf32>
    %c0_i32 = arith.constant 0 : i32
    %3 = arith.cmpi eq, %arg2, %c0_i32 : i32
    %4 = arith.extui %3 : i1 to i32
    %c0_i32_3 = arith.constant 0 : i32
    %5 = arith.cmpi ne, %4, %c0_i32_3 : i32
    scf.if %5 {
      %c0_6 = arith.constant 0 : index
      %c0_7 = arith.constant 0 : index
      %9 = vector.load %arg5[%c0_6, %c0_7] : memref<1x128xf32, #tpu.memory_space<vmem>>, vector<1x128xf32>
      %10 = vector.broadcast %9 : vector<1x128xf32> to vector<256x128xf32>
      %11 = arith.addf %2, %10 : vector<256x128xf32>
      %c0_8 = arith.constant 0 : index
      %c0_9 = arith.constant 0 : index
      %12 = vector.load %arg6[%c0_8, %c0_9] : memref<256x128xf32, #tpu.memory_space<vmem>>, vector<256x128xf32>
      tpu.vector_store %arg6[%c0_8, %c0_9], %11 {strides = array<i32>} : memref<256x128xf32, #tpu.memory_space<vmem>>, vector<256x128xf32>,
    } else {
    }
    %c0_i32_4 = arith.constant 0 : i32
    %6 = arith.cmpi ne, %arg2, %c0_i32_4 : i32
    %7 = arith.extui %6 : i1 to i32
    %c0_i32_5 = arith.constant 0 : i32
    %8 = arith.cmpi ne, %7, %c0_i32_5 : i32
    scf.if %8 {
      %c0_6 = arith.constant 0 : index
      %c0_7 = arith.constant 0 : index
      %9 = vector.load %arg6[%c0_6, %c0_7] : memref<256x128xf32, #tpu.memory_space<vmem>>, vector<256x128xf32>
      %10 = arith.addf %9, %2 : vector<256x128xf32>
      %c0_8 = arith.constant 0 : index
      %c0_9 = arith.constant 0 : index
      %11 = vector.load %arg6[%c0_8, %c0_9] : memref<256x128xf32, #tpu.memory_space<vmem>>, vector<256x128xf32>
      tpu.vector_store %arg6[%c0_8, %c0_9], %10 {strides = array<i32>} : memref<256x128xf32, #tpu.memory_space<vmem>>, vector<256x128xf32>,
    } else {
    }
    return
  }
  func.func @transform_0(%arg0: i32, %arg1: i32, %arg2: i32) -> (i32, i32) {
    %c0_i32 = arith.constant 0 : i32
    return %arg0, %arg2 : i32, i32
  }
  func.func @transform_1(%arg0: i32, %arg1: i32, %arg2: i32) -> (i32, i32) {
    %c0_i32 = arith.constant 0 : i32
    return %arg2, %arg1 : i32, i32
  }
  func.func @transform_2(%arg0: i32, %arg1: i32, %arg2: i32) -> (i32, i32) {
    %c0_i32 = arith.constant 0 : i32
    %c0_i32_0 = arith.constant 0 : i32
    return %c0_i32, %arg1 : i32, i32
  }
  func.func @transform_3(%arg0: i32, %arg1: i32, %arg2: i32) -> (i32, i32) {
    %c0_i32 = arith.constant 0 : i32
    return %arg0, %arg1 : i32, i32
  }
}

</mosaic_0001>

<bundles_post_ra>
// kernel: improved_unet_forward.30
= control target key start
LH: loop header
LB: loop body
LE: loop exit
PB: predicated region body
PF: predicated region fallthrough
CT: control target
= control target key end

     0   :  { %v367_v56 = vmov 256.0   ;;  %s930_s0 = inlined_call_operand.vmem [shape: f32[256,128], index: 0, kind: input, shape index: {}]   ;;  %s931_s1 = inlined_call_operand.vmem [shape: f32[256,128], index: 1, kind: output, shape index: {}]  }
   0x1   :  { %v381_v0 = vld [vmem:[%s930_s0] sm:$0xff]  ;;  %v386_v1 = vld [vmem:[%s930_s0 + $0x8] sm:$0xff]  ;;  %v391_v2 = vld [vmem:[%s930_s0 + $0x10] sm:$0xff]  ;;  %363 = vrcp.f32 %v367_v56 }
   0x2   :  { %v40_v3 = vadd.f32 %v386_v1, %v381_v0  ;;  %v398_v4 = vld [vmem:[%s930_s0 + $0x18] sm:$0xff]  ;;  %v404_v6 = vld [vmem:[%s930_s0 + $0x20] sm:$0xff]  ;;  %v410_v8 = vld [vmem:[%s930_s0 + $0x28] sm:$0xff] }
   0x3   :  { %v416_v10 = vld [vmem:[%s930_s0 + $0x30] sm:$0xff]  ;;  %v422_v12 = vld [vmem:[%s930_s0 + $0x38] sm:$0xff]  ;;  %v428_v14 = vld [vmem:[%s930_s0 + $0x40] sm:$0xff] }
   0x4   :  { %v41_v5 = vadd.f32 %v40_v3, %v391_v2  ;;  %v434_v16 = vld [vmem:[%s930_s0 + $0x48] sm:$0xff]  ;;  %v440_v18 = vld [vmem:[%s930_s0 + $0x50] sm:$0xff]  ;;  %v446_v20 = vld [vmem:[%s930_s0 + $0x58] sm:$0xff] }
   0x5   :  { %v452_v22 = vld [vmem:[%s930_s0 + $0x60] sm:$0xff]  ;;  %v458_v24 = vld [vmem:[%s930_s0 + $0x68] sm:$0xff]  ;;  %v464_v26 = vld [vmem:[%s930_s0 + $0x70] sm:$0xff] }
   0x6   :  { %v42_v7 = vadd.f32 %v41_v5, %v398_v4  ;;  %v470_v28 = vld [vmem:[%s930_s0 + $0x78] sm:$0xff]  ;;  %v476_v30 = vld [vmem:[%s930_s0 + $0x80] sm:$0xff]  ;;  %v482_v32 = vld [vmem:[%s930_s0 + $0x88] sm:$0xff] }
   0x7   :  { %v488_v34 = vld [vmem:[%s930_s0 + $0x90] sm:$0xff]  ;;  %v494_v36 = vld [vmem:[%s930_s0 + $0x98] sm:$0xff]  ;;  %v500_v38 = vld [vmem:[%s930_s0 + $0xa0] sm:$0xff]  ;;  %v364_v62 = vpop.eup %363 }
   0x8   :  { %v43_v9 = vadd.f32 %v42_v7, %v404_v6  ;;  %v506_v40 = vld [vmem:[%s930_s0 + $0xa8] sm:$0xff]  ;;  %v512_v42 = vld [vmem:[%s930_s0 + $0xb0] sm:$0xff]  ;;  %v518_v44 = vld [vmem:[%s930_s0 + $0xb8] sm:$0xff]  ;;  %v78_v5 = vmul.f32 256.0, %v364_v62  ;;  %vm82_vm0 = vweird.f32 %v364_v62 }
   0x9   :  { %v524_v46 = vld [vmem:[%s930_s0 + $0xc0] sm:$0xff]  ;;  %v530_v48 = vld [vmem:[%s930_s0 + $0xc8] sm:$0xff]  ;;  %v536_v50 = vld [vmem:[%s930_s0 + $0xd0] sm:$0xff] }
   0xa   :  { %v44_v11 = vadd.f32 %v43_v9, %v410_v8  ;;  %v542_v52 = vld [vmem:[%s930_s0 + $0xd8] sm:$0xff]  ;;  %v548_v54 = vld [vmem:[%s930_s0 + $0xe0] sm:$0xff]  ;;  %v554_v57 = vld [vmem:[%s930_s0 + $0xe8] sm:$0xff] }
   0xb   :  { %v560_v59 = vld [vmem:[%s930_s0 + $0xf0] sm:$0xff]  ;;  %v566_v61 = vld [vmem:[%s930_s0 + $0xf8] sm:$0xff] }
   0xc   :  { %v45_v13 = vadd.f32 %v44_v11, %v416_v10  ;;  %v79_v11 = vsub.f32 1.0, %v78_v5 }
   0xe   :  { %v46_v15 = vadd.f32 %v45_v13, %v422_v12 }
  0x10   :  { %v47_v17 = vadd.f32 %v46_v15, %v428_v14 }
  0x12   :  { %v48_v19 = vadd.f32 %v47_v17, %v434_v16  ;;  %v80_v17 = vmul.f32 %v364_v62, %v79_v11 }
  0x14   :  { %v49_v21 = vadd.f32 %v48_v19, %v440_v18 }
  0x16   :  { %v50_v23 = vadd.f32 %v49_v21, %v446_v20  ;;  %v81_v21 = vadd.f32 %v364_v62, %v80_v17 }
  0x18   :  { %v51_v25 = vadd.f32 %v50_v23, %v452_v22 }
  0x1a   :  { %v52_v27 = vadd.f32 %v51_v25, %v458_v24  ;;  %v570_v25 = vsel %vm82_vm0, %v364_v62, %v81_v21 }
  0x1c   :  { %v53_v29 = vadd.f32 %v52_v27, %v464_v26 }
  0x1e   :  { %v54_v31 = vadd.f32 %v53_v29, %v470_v28 }
  0x20   :  { %v55_v33 = vadd.f32 %v54_v31, %v476_v30 }
  0x22   :  { %v56_v35 = vadd.f32 %v55_v33, %v482_v32 }
  0x24   :  { %v57_v37 = vadd.f32 %v56_v35, %v488_v34 }
  0x26   :  { %v58_v39 = vadd.f32 %v57_v37, %v494_v36 }
  0x28   :  { %v59_v41 = vadd.f32 %v58_v39, %v500_v38 }
  0x2a   :  { %v60_v43 = vadd.f32 %v59_v41, %v506_v40 }
  0x2c   :  { %v61_v45 = vadd.f32 %v60_v43, %v512_v42 }
  0x2e   :  { %v62_v47 = vadd.f32 %v61_v45, %v518_v44 }
  0x30   :  { %v63_v49 = vadd.f32 %v62_v47, %v524_v46 }
  0x32   :  { %v64_v51 = vadd.f32 %v63_v49, %v530_v48 }
  0x34   :  { %v65_v53 = vadd.f32 %v64_v51, %v536_v50 }
  0x36   :  { %v66_v55 = vadd.f32 %v65_v53, %v542_v52 }
  0x38   :  { %v67_v58 = vadd.f32 %v66_v55, %v548_v54 }
  0x3a   :  { %v68_v60 = vadd.f32 %v67_v58, %v554_v57 }
  0x3c   :  { %v69_v63 = vadd.f32 %v68_v60, %v560_v59 }
  0x3e   :  { %v70_v3 = vadd.f32 %v69_v63, %v566_v61 }
  0x40   :  { %v71_v7 = vrot.slane %v70_v3, 4 }
  0x42   :  { %v72_v9 = vadd.f32 %v71_v7, %v70_v3 }
  0x44   :  { %v73_v13 = vrot.slane %v72_v9, 2 }
  0x46   :  { %v74_v15 = vadd.f32 %v73_v13, %v72_v9 }
  0x48   :  { %v75_v19 = vrot.slane %v74_v15, 1 }
  0x4a   :  { %v76_v23 = vadd.f32 %v75_v19, %v74_v15 }
  0x4c   :  { %v573_v27 = vmul.f32 %v570_v25, %v76_v23 }
  0x4e   :  { %v577_v29 = vsub.f32 %v381_v0, %v573_v27  ;;  %v581_v31 = vsub.f32 %v386_v1, %v573_v27  ;;  %v585_v33 = vsub.f32 %v391_v2, %v573_v27  ;;  %v589_v35 = vsub.f32 %v398_v4, %v573_v27 }
  0x4f   :  { %v597_v0 = vsub.f32 %v404_v6, %v573_v27  ;;  %v603_v2 = vsub.f32 %v410_v8, %v573_v27  ;;  %v609_v43 = vsub.f32 %v416_v10, %v573_v27  ;;  %v615_v47 = vsub.f32 %v422_v12, %v573_v27 }
  0x50   :  { %v117_v37 = vmul.f32 %v577_v29, %v577_v29  ;;  %v118_v39 = vmul.f32 %v581_v31, %v581_v31  ;;  %v119_v1 = vmul.f32 %v585_v33, %v585_v33  ;;  %v120_v4 = vmul.f32 %v589_v35, %v589_v35 }
  0x51   :  { %v121_v45 = vmul.f32 %v597_v0, %v597_v0  ;;  %v122_v8 = vmul.f32 %v603_v2, %v603_v2  ;;  %v621_v51 = vsub.f32 %v428_v14, %v573_v27  ;;  %v123_v10 = vmul.f32 %v609_v43, %v609_v43 }
  0x52   :  { %v149_v41 = vadd.f32 %v118_v39, %v117_v37  ;;  %v627_v55 = vsub.f32 %v434_v16, %v573_v27  ;;  %v124_v12 = vmul.f32 %v615_v47, %v615_v47  ;;  %v633_v58 = vsub.f32 %v440_v18, %v573_v27 }
  0x53   :  { %v125_v14 = vmul.f32 %v621_v51, %v621_v51  ;;  %v639_v62 = vsub.f32 %v446_v20, %v573_v27  ;;  %v645_v3 = vsub.f32 %v452_v22, %v573_v27  ;;  %v651_v7 = vsub.f32 %v458_v24, %v573_v27 }
  0x54   :  { %v150_v6 = vadd.f32 %v149_v41, %v119_v1  ;;  %v126_v16 = vmul.f32 %v627_v55, %v627_v55  ;;  %v127_v18 = vmul.f32 %v633_v58, %v633_v58  ;;  %v657_v11 = vsub.f32 %v464_v26, %v573_v27 }
  0x55   :  { %v128_v20 = vmul.f32 %v639_v62, %v639_v62  ;;  %v129_v22 = vmul.f32 %v645_v3, %v645_v3  ;;  %v663_v15 = vsub.f32 %v470_v28, %v573_v27  ;;  %v130_v24 = vmul.f32 %v651_v7, %v651_v7 }
  0x56   :  { %v151_v49 = vadd.f32 %v150_v6, %v120_v4  ;;  %v669_v19 = vsub.f32 %v476_v30, %v573_v27  ;;  %v131_v26 = vmul.f32 %v657_v11, %v657_v11  ;;  %v675_v23 = vsub.f32 %v482_v32, %v573_v27 }
  0x57   :  { %v132_v28 = vmul.f32 %v663_v15, %v663_v15  ;;  %v681_v39 = vsub.f32 %v488_v34, %v573_v27  ;;  %v687_v4 = vsub.f32 %v494_v36, %v573_v27 }
  0x58   :  { %v152_v53 = vadd.f32 %v151_v49, %v121_v45  ;;  %v133_v30 = vmul.f32 %v669_v19, %v669_v19  ;;  %v134_v32 = vmul.f32 %v675_v23, %v675_v23  ;;  %v693_v45 = vsub.f32 %v500_v38, %v573_v27 }
  0x59   :  { %v135_v34 = vmul.f32 %v681_v39, %v681_v39  ;;  %v136_v36 = vmul.f32 %v687_v4, %v687_v4 }
  0x5a   :  { %v153_v56 = vadd.f32 %v152_v53, %v122_v8  ;;  %v699_v8 = vsub.f32 %v506_v40, %v573_v27  ;;  %v137_v38 = vmul.f32 %v693_v45, %v693_v45 }
  0x5c   :  { %v154_v60 = vadd.f32 %v153_v56, %v123_v10  ;;  %v705_v10 = vsub.f32 %v512_v42, %v573_v27  ;;  %v138_v40 = vmul.f32 %v699_v8, %v699_v8 }
  0x5e   :  { %v155_v63 = vadd.f32 %v154_v60, %v124_v12  ;;  %v711_v12 = vsub.f32 %v518_v44, %v573_v27  ;;  %v139_v42 = vmul.f32 %v705_v10, %v705_v10 }
  0x60   :  { %v156_v5 = vadd.f32 %v155_v63, %v125_v14  ;;  %v717_v14 = vsub.f32 %v524_v46, %v573_v27  ;;  %v140_v44 = vmul.f32 %v711_v12, %v711_v12 }
  0x62   :  { %v157_v9 = vadd.f32 %v156_v5, %v126_v16  ;;  %v723_v16 = vsub.f32 %v530_v48, %v573_v27  ;;  %v141_v46 = vmul.f32 %v717_v14, %v717_v14 }
  0x64   :  { %v158_v13 = vadd.f32 %v157_v9, %v127_v18  ;;  %v729_v18 = vsub.f32 %v536_v50, %v573_v27  ;;  %v142_v48 = vmul.f32 %v723_v16, %v723_v16 }
  0x66   :  { %v159_v17 = vadd.f32 %v158_v13, %v128_v20  ;;  %v735_v20 = vsub.f32 %v542_v52, %v573_v27  ;;  %v143_v50 = vmul.f32 %v729_v18, %v729_v18 }
  0x68   :  { %v160_v21 = vadd.f32 %v159_v17, %v129_v22  ;;  %v741_v22 = vsub.f32 %v548_v54, %v573_v27  ;;  %v144_v52 = vmul.f32 %v735_v20, %v735_v20 }
  0x6a   :  { %v161_v37 = vadd.f32 %v160_v21, %v130_v24  ;;  %v747_v24 = vsub.f32 %v554_v57, %v573_v27  ;;  %v145_v54 = vmul.f32 %v741_v22, %v741_v22 }
  0x6c   :  { %v162_v1 = vadd.f32 %v161_v37, %v131_v26  ;;  %v753_v26 = vsub.f32 %v560_v59, %v573_v27  ;;  %v146_v57 = vmul.f32 %v747_v24, %v747_v24 }
  0x6e   :  { %v163_v41 = vadd.f32 %v162_v1, %v132_v28  ;;  %v759_v28 = vsub.f32 %v566_v61, %v573_v27 }
  0x70   :  { %v164_v6 = vadd.f32 %v163_v41, %v133_v30  ;;  %v147_v30 = vmul.f32 %v753_v26, %v753_v26  ;;  %v148_v59 = vmul.f32 %v759_v28, %v759_v28 }
  0x72   :  { %v165_v49 = vadd.f32 %v164_v6, %v134_v32 }
  0x74   :  { %v166_v53 = vadd.f32 %v165_v49, %v135_v34 }
  0x76   :  { %v167_v56 = vadd.f32 %v166_v53, %v136_v36 }
  0x78   :  { %v168_v60 = vadd.f32 %v167_v56, %v137_v38 }
  0x7a   :  { %v169_v63 = vadd.f32 %v168_v60, %v138_v40 }
  0x7c   :  { %v170_v5 = vadd.f32 %v169_v63, %v139_v42 }
  0x7e   :  { %v171_v9 = vadd.f32 %v170_v5, %v140_v44 }
  0x80   :  { %v172_v13 = vadd.f32 %v171_v9, %v141_v46 }
  0x82   :  { %v173_v17 = vadd.f32 %v172_v13, %v142_v48 }
  0x84   :  { %v174_v21 = vadd.f32 %v173_v17, %v143_v50 }
  0x86   :  { %v175_v37 = vadd.f32 %v174_v21, %v144_v52 }
  0x88   :  { %v176_v1 = vadd.f32 %v175_v37, %v145_v54 }
  0x8a   :  { %v177_v32 = vadd.f32 %v176_v1, %v146_v57 }
  0x8c   :  { %v178_v41 = vadd.f32 %v177_v32, %v147_v30 }
  0x8e   :  { %v179_v34 = vadd.f32 %v178_v41, %v148_v59 }
  0x90   :  { %v180_v6 = vrot.slane %v179_v34, 4 }
  0x92   :  { %v181_v36 = vadd.f32 %v180_v6, %v179_v34 }
  0x94   :  { %v182_v49 = vrot.slane %v181_v36, 2 }
  0x96   :  { %v183_v38 = vadd.f32 %v182_v49, %v181_v36 }
  0x98   :  { %v184_v61 = vrot.slane %v183_v38, 1 }
  0x9a   :  { %v185_v27 = vadd.f32 %v184_v61, %v183_v38 }
  0x9c   :  { %v186_v53 = vmul.f32 %v185_v27, %v570_v25 }
  0x9e   :  { %v187_v40 = vadd.f32 1e-05, %v186_v53 }
  0xa0   :  { %365 = vrsqrt.f32 %v187_v40  ;;  %vm194_vm1 = vweird.f32 %v187_v40 }
  0xa6   :  { %v366_v56 = vpop.eup %365 }
  0xa7   :  { %v189_v42 = vmul.f32 %v366_v56, %v187_v40  ;;  %vm195_vm2 = vweird.f32 %v366_v56 }
  0xa8   :  { %vm196_vm3 = vmor %vm194_vm1, %vm195_vm2 }
  0xa9   :  { %v190_v60 = vmul.f32 %v366_v56, %v189_v42 }
  0xab   :  { %v191_v44 = vmul.f32 0.5, %v190_v60 }
  0xad   :  { %v192_v63 = vsub.f32 1.5, %v191_v44 }
  0xaf   :  { %v193_v46 = vmul.f32 %v366_v56, %v192_v63 }
  0xb1   :  { %v768_v5 = vsel %vm196_vm3, %v366_v56, %v193_v46 }
  0xb2   :  { %v198_v48 = vmul.f32 %v768_v5, %v577_v29  ;;  %v199_v9 = vmul.f32 %v768_v5, %v581_v31  ;;  %v200_v25 = vmul.f32 %v768_v5, %v585_v33  ;;  %v201_v50 = vmul.f32 %v768_v5, %v589_v35 }
  0xb3   :  { %v202_v13 = vmul.f32 %v768_v5, %v597_v0  ;;  %v203_v52 = vmul.f32 %v768_v5, %v603_v2  ;;  %v204_v17 = vmul.f32 %v768_v5, %v609_v43  ;;  %v205_v29 = vmul.f32 %v768_v5, %v615_v47 }
  0xb4   :  { %vm230_vm4 = vcmp.gt.f32.partialorder %v198_v48, 0.0  ;;  %v262_v31 = vmul.f32 0.2, %v198_v48  ;;  %vm231_vm5 = vcmp.gt.f32.partialorder %v199_v9, 0.0  ;;  %v263_v54 = vmul.f32 0.2, %v199_v9 }
  0xb5   :  { %vm232_vm6 = vcmp.gt.f32.partialorder %v200_v25, 0.0  ;;  %v264_v33 = vmul.f32 0.2, %v200_v25  ;;  %vm233_vm7 = vcmp.gt.f32.partialorder %v201_v50, 0.0  ;;  %v265_v35 = vmul.f32 0.2, %v201_v50 }
  0xb6   :  { %v294_v21 = vsel %vm230_vm4, %v198_v48, %v262_v31  ;;  %v295_v57 = vsel %vm231_vm5, %v199_v9, %v263_v54  ;;  %vm234_vm8 = vcmp.gt.f32.partialorder %v202_v13, 0.0  ;;  %v266_v0 = vmul.f32 0.2, %v202_v13 }
  0xb7   :  { %326 = vst [vmem:[%s931_s1] sm:$0xff] %v294_v21  ;;  %v296_v2 = vsel %vm232_vm6, %v200_v25, %v264_v33  ;;  %v297_v43 = vsel %vm233_vm7, %v201_v50, %v265_v35  ;;  %vm235_vm9 = vcmp.gt.f32.partialorder %v203_v52, 0.0  ;;  %v267_v47 = vmul.f32 0.2, %v203_v52 }
  0xb8   :  { %327 = vst [vmem:[%s931_s1 + $0x8] sm:$0xff] %v295_v57  ;;  %v298_v37 = vsel %vm234_vm8, %v202_v13, %v266_v0  ;;  %vm236_vm10 = vcmp.gt.f32.partialorder %v204_v17, 0.0  ;;  %v268_v30 = vmul.f32 0.2, %v204_v17  ;;  %vm237_vm11 = vcmp.gt.f32.partialorder %v205_v29, 0.0 }
  0xb9   :  { %328 = vst [vmem:[%s931_s1 + $0x10] sm:$0xff] %v296_v2  ;;  %v299_v1 = vsel %vm235_vm9, %v203_v52, %v267_v47  ;;  %v269_v59 = vmul.f32 0.2, %v205_v29  ;;  %v206_v32 = vmul.f32 %v768_v5, %v621_v51  ;;  %v207_v41 = vmul.f32 %v768_v5, %v627_v55 }
  0xba   :  { %329 = vst [vmem:[%s931_s1 + $0x18] sm:$0xff] %v297_v43  ;;  %v300_v34 = vsel %vm236_vm10, %v204_v17, %v268_v30  ;;  %v208_v6 = vmul.f32 %v768_v5, %v633_v58  ;;  %v209_v36 = vmul.f32 %v768_v5, %v639_v62  ;;  %v210_v49 = vmul.f32 %v768_v5, %v645_v3 }
  0xbb   :  { %330 = vst [vmem:[%s931_s1 + $0x20] sm:$0xff] %v298_v37  ;;  %v301_v51 = vsel %vm237_vm11, %v205_v29, %v269_v59  ;;  %vm238_vm12 = vcmp.gt.f32.partialorder %v206_v32, 0.0  ;;  %v270_v55 = vmul.f32 0.2, %v206_v32  ;;  %vm239_vm13 = vcmp.gt.f32.partialorder %v207_v41, 0.0 }
  0xbc   :  { %331 = vst [vmem:[%s931_s1 + $0x28] sm:$0xff] %v299_v1  ;;  %v271_v38 = vmul.f32 0.2, %v207_v41  ;;  %vm240_vm14 = vcmp.gt.f32.partialorder %v208_v6, 0.0  ;;  %v272_v58 = vmul.f32 0.2, %v208_v6  ;;  %v211_v62 = vmul.f32 %v768_v5, %v651_v7 }
  0xbd   :  { %332 = vst [vmem:[%s931_s1 + $0x30] sm:$0xff] %v300_v34  ;;  %v302_v3 = vsel %vm238_vm12, %v206_v32, %v270_v55  ;;  %vm241_vm15 = vcmp.gt.f32.partialorder %v209_v36, 0.0  ;;  %v273_v61 = vmul.f32 0.2, %v209_v36  ;;  %vm242_vm0 = vcmp.gt.f32.partialorder %v210_v49, 0.0 }
  0xbe   :  { %333 = vst [vmem:[%s931_s1 + $0x38] sm:$0xff] %v301_v51  ;;  %v303_v27 = vsel %vm239_vm13, %v207_v41, %v271_v38  ;;  %v304_v53 = vsel %vm240_vm14, %v208_v6, %v272_v58  ;;  %v274_v40 = vmul.f32 0.2, %v210_v49  ;;  %vm243_vm1 = vcmp.gt.f32.partialorder %v211_v62, 0.0 }
  0xbf   :  { %334 = vst [vmem:[%s931_s1 + $0x40] sm:$0xff] %v302_v3  ;;  %v305_v7 = vsel %vm241_vm15, %v209_v36, %v273_v61  ;;  %v275_v56 = vmul.f32 0.2, %v211_v62  ;;  %v212_v42 = vmul.f32 %v768_v5, %v657_v11  ;;  %v213_v60 = vmul.f32 %v768_v5, %v663_v15 }
  0xc0   :  { %335 = vst [vmem:[%s931_s1 + $0x48] sm:$0xff] %v303_v27  ;;  %v306_v44 = vsel %vm242_vm0, %v210_v49, %v274_v40  ;;  %v214_v63 = vmul.f32 %v768_v5, %v669_v19  ;;  %v215_v46 = vmul.f32 %v768_v5, %v675_v23  ;;  %v216_v48 = vmul.f32 %v768_v5, %v681_v39 }
  0xc1   :  { %336 = vst [vmem:[%s931_s1 + $0x50] sm:$0xff] %v304_v53  ;;  %v307_v11 = vsel %vm243_vm1, %v211_v62, %v275_v56  ;;  %vm244_vm2 = vcmp.gt.f32.partialorder %v212_v42, 0.0  ;;  %v276_v15 = vmul.f32 0.2, %v212_v42  ;;  %vm245_vm3 = vcmp.gt.f32.partialorder %v213_v60, 0.0 }
  0xc2   :  { %337 = vst [vmem:[%s931_s1 + $0x58] sm:$0xff] %v305_v7  ;;  %v277_v9 = vmul.f32 0.2, %v213_v60  ;;  %vm246_vm4 = vcmp.gt.f32.partialorder %v214_v63, 0.0  ;;  %v278_v19 = vmul.f32 0.2, %v214_v63  ;;  %v217_v23 = vmul.f32 %v768_v5, %v687_v4 }
  0xc3   :  { %338 = vst [vmem:[%s931_s1 + $0x60] sm:$0xff] %v306_v44  ;;  %v308_v39 = vsel %vm244_vm2, %v212_v42, %v276_v15  ;;  %vm247_vm5 = vcmp.gt.f32.partialorder %v215_v46, 0.0  ;;  %v279_v25 = vmul.f32 0.2, %v215_v46  ;;  %vm248_vm6 = vcmp.gt.f32.partialorder %v216_v48, 0.0 }
  0xc4   :  { %339 = vst [vmem:[%s931_s1 + $0x68] sm:$0xff] %v307_v11  ;;  %v309_v50 = vsel %vm245_vm3, %v213_v60, %v277_v9  ;;  %v310_v13 = vsel %vm246_vm4, %v214_v63, %v278_v19  ;;  %v280_v52 = vmul.f32 0.2, %v216_v48  ;;  %vm249_vm7 = vcmp.gt.f32.partialorder %v217_v23, 0.0 }
  0xc5   :  { %340 = vst [vmem:[%s931_s1 + $0x70] sm:$0xff] %v308_v39  ;;  %v311_v4 = vsel %vm247_vm5, %v215_v46, %v279_v25  ;;  %v281_v17 = vmul.f32 0.2, %v217_v23  ;;  %v218_v29 = vmul.f32 %v768_v5, %v693_v45  ;;  %v219_v31 = vmul.f32 %v768_v5, %v699_v8 }
  0xc6   :  { %341 = vst [vmem:[%s931_s1 + $0x78] sm:$0xff] %v309_v50  ;;  %v312_v54 = vsel %vm248_vm6, %v216_v48, %v280_v52  ;;  %v220_v33 = vmul.f32 %v768_v5, %v705_v10  ;;  %v221_v35 = vmul.f32 %v768_v5, %v711_v12  ;;  %v222_v21 = vmul.f32 %v768_v5, %v717_v14 }
  0xc7   :  { %342 = vst [vmem:[%s931_s1 + $0x80] sm:$0xff] %v310_v13  ;;  %v313_v45 = vsel %vm249_vm7, %v217_v23, %v281_v17  ;;  %vm250_vm8 = vcmp.gt.f32.partialorder %v218_v29, 0.0  ;;  %v282_v8 = vmul.f32 0.2, %v218_v29  ;;  %vm251_vm9 = vcmp.gt.f32.partialorder %v219_v31, 0.0 }
  0xc8   :  { %343 = vst [vmem:[%s931_s1 + $0x88] sm:$0xff] %v311_v4  ;;  %v283_v57 = vmul.f32 0.2, %v219_v31  ;;  %vm252_vm10 = vcmp.gt.f32.partialorder %v220_v33, 0.0  ;;  %v284_v10 = vmul.f32 0.2, %v220_v33  ;;  %v223_v12 = vmul.f32 %v768_v5, %v723_v16 }
  0xc9   :  { %344 = vst [vmem:[%s931_s1 + $0x90] sm:$0xff] %v312_v54  ;;  %v314_v14 = vsel %vm250_vm8, %v218_v29, %v282_v8  ;;  %vm253_vm11 = vcmp.gt.f32.partialorder %v221_v35, 0.0  ;;  %v285_v0 = vmul.f32 0.2, %v221_v35  ;;  %vm254_vm12 = vcmp.gt.f32.partialorder %v222_v21, 0.0 }
  0xca   :  { %345 = vst [vmem:[%s931_s1 + $0x98] sm:$0xff] %v313_v45  ;;  %v315_v2 = vsel %vm251_vm9, %v219_v31, %v283_v57  ;;  %v316_v43 = vsel %vm252_vm10, %v220_v33, %v284_v10  ;;  %v286_v47 = vmul.f32 0.2, %v222_v21  ;;  %vm255_vm13 = vcmp.gt.f32.partialorder %v223_v12, 0.0 }
  0xcb   :  { %346 = vst [vmem:[%s931_s1 + $0xa0] sm:$0xff] %v314_v14  ;;  %v317_v16 = vsel %vm253_vm11, %v221_v35, %v285_v0  ;;  %v287_v37 = vmul.f32 0.2, %v223_v12  ;;  %v224_v30 = vmul.f32 %v768_v5, %v729_v18  ;;  %v225_v1 = vmul.f32 %v768_v5, %v735_v20 }
  0xcc   :  { %347 = vst [vmem:[%s931_s1 + $0xa8] sm:$0xff] %v315_v2  ;;  %v318_v59 = vsel %vm254_vm12, %v222_v21, %v286_v47  ;;  %v226_v32 = vmul.f32 %v768_v5, %v741_v22  ;;  %v227_v41 = vmul.f32 %v768_v5, %v747_v24  ;;  %v228_v34 = vmul.f32 %v768_v5, %v753_v26 }
  0xcd   :  { %348 = vst [vmem:[%s931_s1 + $0xb0] sm:$0xff] %v316_v43  ;;  %v319_v18 = vsel %vm255_vm13, %v223_v12, %v287_v37  ;;  %vm256_vm14 = vcmp.gt.f32.partialorder %v224_v30, 0.0  ;;  %v288_v20 = vmul.f32 0.2, %v224_v30  ;;  %vm257_vm15 = vcmp.gt.f32.partialorder %v225_v1, 0.0 }
  0xce   :  { %349 = vst [vmem:[%s931_s1 + $0xb8] sm:$0xff] %v317_v16  ;;  %v289_v6 = vmul.f32 0.2, %v225_v1  ;;  %vm258_vm0 = vcmp.gt.f32.partialorder %v226_v32, 0.0  ;;  %v290_v22 = vmul.f32 0.2, %v226_v32  ;;  %v229_v24 = vmul.f32 %v768_v5, %v759_v28 }
  0xcf   :  { %350 = vst [vmem:[%s931_s1 + $0xc0] sm:$0xff] %v318_v59  ;;  %v320_v26 = vsel %vm256_vm14, %v224_v30, %v288_v20  ;;  %vm259_vm1 = vcmp.gt.f32.partialorder %v227_v41, 0.0  ;;  %v291_v36 = vmul.f32 0.2, %v227_v41  ;;  %vm260_vm2 = vcmp.gt.f32.partialorder %v228_v34, 0.0 }
  0xd0   :  { %351 = vst [vmem:[%s931_s1 + $0xc8] sm:$0xff] %v319_v18  ;;  %v321_v49 = vsel %vm257_vm15, %v225_v1, %v289_v6  ;;  %v322_v51 = vsel %vm258_vm0, %v226_v32, %v290_v22  ;;  %v292_v55 = vmul.f32 0.2, %v228_v34  ;;  %vm261_vm3 = vcmp.gt.f32.partialorder %v229_v24, 0.0 }
  0xd1   :  { %352 = vst [vmem:[%s931_s1 + $0xd0] sm:$0xff] %v320_v26  ;;  %v323_v28 = vsel %vm259_vm1, %v227_v41, %v291_v36  ;;  %v293_v5 = vmul.f32 0.2, %v229_v24 }
  0xd2   :  { %353 = vst [vmem:[%s931_s1 + $0xd8] sm:$0xff] %v321_v49  ;;  %v324_v38 = vsel %vm260_vm2, %v228_v34, %v292_v55 }
  0xd3   :  { %354 = vst [vmem:[%s931_s1 + $0xe0] sm:$0xff] %v322_v51  ;;  %v325_v58 = vsel %vm261_vm3, %v229_v24, %v293_v5 }
  0xd4   :  { %355 = vst [vmem:[%s931_s1 + $0xe8] sm:$0xff] %v323_v28 }
  0xd5   :  { %356 = vst [vmem:[%s931_s1 + $0xf0] sm:$0xff] %v324_v38 }
  0xd6   :  { %357 = vst [vmem:[%s931_s1 + $0xf8] sm:$0xff] %v325_v58 }

// kernel: improved_unet_forward.29
= control target key start
LH: loop header
LB: loop body
LE: loop exit
PB: predicated region body
PF: predicated region fallthrough
CT: control target
= control target key end

     0   :  { %8 = vsyncpa [#allocation3], 0  ;;  %s1056_s12 = smov 0   ;;  %s1058_s13 = smov 0   ;;  %s1205_s0 = inlined_call_operand.vmem [shape: bf16[512,27], index: 0, kind: input, shape index: {}]   ;;  %s1206_s1 = inlined_call_operand.hbm [shape: bf16[27,128], index: 1, kind: input, shape index: {}]   ;;  %s1207_s2 = inlined_call_operand.vmem [shape: f32[1,128], index: 2, kind: input, shape index: {}]   ;;  %s1208_s3 = inlined_call_operand.vmem [shape: f32[512,128], index: 3, kind: output, shape index: {}]  }
   0x1   :  { %s1060_s14 = smov 0  }
   0x2 LB: > { %s809_s15 = sadd.s32 4294967295, %s1030_s14   ;;  %s33_s16 = sadd.s32 1, %s1026_s13  ;;  %s1030_s14 = sphi %s1060_s14, %s14_s14   ;;  %s1026_s13 = sphi %s1058_s13, %s1210_s13   ;;  %s1022_s12 = sphi %s1056_s12, %s1209_s12  }
   0x3   : > { %p35_p0 = scmp.ge.s32.totalorder %s33_s16, 2  ;;  %p811_p1 = scmp.ge.s32.totalorder %s1030_s14, 1 }
   0x4   : > { %p148_p2 = scmp.lt.s32.totalorder %s1030_s14, 3  ;;  %p943_p4 = scmp.eq.s32.totalorder %s809_s15, 0 }
   0x5   : > { %s1212_s16 = smov (%p35_p0, %s33_s16), 0  ;;  %s163_s19 = sshll.u32 %s1206_s1, 4  ;;  %s164_s19 = int_to_ptr.hbm [resolvable:$true] %s163_s19 }
   0x6   : > { %p149_p3 = pnand %p811_p1, %p148_p2  ;;  %s1032_s20 = smov [#allocation2]  }
   0x7   : > { %s165_s21 = sshll.u32 %s1032_s20, 4  ;;  %s1033_s22 = smov 64   ;;  %s166_s21 = int_to_ptr.vmem [resolvable:$true] %s165_s21 }
   0x8   : > { %p939_p5 = pneg %p149_p3  ;;  %s1034_s23 = smov 4  }
   0x9   : > { %199 = sbr.rel (%p149_p3) target bundleno = 221 (0xdd), region = 32 }
   0xa   : > { %p940_p6 = pnand %p943_p4, %p939_p5 }
   0xc   : > { %942 = dma.hbm_to_vmem [thread:$0]  (!%p940_p6), %s164_s19, 256, %s166_s21, [#allocation3], %s1033_s22, %s1033_s22, %s1034_s23  }
   0xe   : > { %1017 = dma.done.wait (%p943_p4), [#allocation3], 256  }
   0xf   : > { %1019 = vsyncadd (%p943_p4), [#allocation3], 4294967040  ;;  %s817_s24 = sshll.u32 %s1022_s12, 5  ;;  %vm432_vm0 = vcmask 1044480   ;;  %vm433_vm1 = vcmask 1045504   ;;  %v1035_v0 = vmov 65535  }
  0x10   : > { %p234_p7 = scmp.lt.s32.totalorder %s817_s24, 63  ;;  %v434_v1 = vsel %vm432_vm0, 4294967295, %v1035_v0  ;;  %v891_v2 = vld [vmem:[#allocation2 + $0x8] sm:$0xf]  ;;  %v928_v3 = vld [vmem:[#allocation2 + $0x8] sm:$0x30] }
  0x11   : > { %v435_v4 = vsel %vm433_vm1, %v434_v1, 0  ;;  %v892_v5 = vor.u32 %v928_v3, %v891_v2  ;;  %v927_v7 = vld [vmem:[#allocation2] sm:$0xff]  ;;  %vm383_vm2 = vcmask 220160  }
  0x12   : > { %s1214_s24 = smov (!%p234_p7, %s817_s24), 63  ;;  %v1125_v24 = vld [vmem:[%s1207_s2] ss:$0 sm:$0xff] }
  0x13   : > { %s818_s25 = sshll.u32 %s1214_s24, 2  ;;  %v437_v6 = vand.u32 %v892_v5, %v435_v4  ;;  %s820_s29 = sshll.u32 %s1214_s24, 3 }
  0x14   : > { %s1087_s28 = scalar_lea.vmem %s1205_s0, %s818_s25  ;;  %s1130_s7 = scalar_lea.vmem %s1208_s3, %s820_s29 }
  0x15   : > { %445 = vmatpush.bf16.msra.mxu0 %v437_v6  ;;  %929 = vmatpush.bf16.msra.mxu1 %v437_v6  ;;  %v911_v8 = vld [vmem:[%s1087_s28] sm:$0xff]  ;;  %v912_v12 = vld [vmem:[%s1087_s28 + $0x8] sm:$0xff]  ;;  %v913_v16 = vld [vmem:[%s1087_s28 + $0x10] sm:$0xff] }
  0x16   : > { %930 = vmatpush.bf16.msra.mxu2 %v437_v6  ;;  %931 = vmatpush.bf16.msra.mxu3 %v437_v6  ;;  %v915_v9 = vld [vmem:[%s1087_s28 + $0x20] sm:$0xff]  ;;  %v916_v13 = vld [vmem:[%s1087_s28 + $0x28] sm:$0xff]  ;;  %v917_v17 = vld [vmem:[%s1087_s28 + $0x30] sm:$0xff] }
  0x17   : > { %v919_v10 = vld [vmem:[%s1087_s28 + $0x40] sm:$0xff]  ;;  %v920_v14 = vld [vmem:[%s1087_s28 + $0x48] sm:$0xff]  ;;  %v921_v18 = vld [vmem:[%s1087_s28 + $0x50] sm:$0xff] }
  0x18   : > { %v923_v11 = vld [vmem:[%s1087_s28 + $0x60] sm:$0xff]  ;;  %v924_v15 = vld [vmem:[%s1087_s28 + $0x68] sm:$0xff]  ;;  %v925_v19 = vld [vmem:[%s1087_s28 + $0x70] sm:$0xff] }
  0x19   : > { %446 = vmatpush.bf16.msra.mxu0 %v927_v7  ;;  %932 = vmatpush.bf16.msra.mxu1 %v927_v7  ;;  %v914_v20 = vld [vmem:[%s1087_s28 + $0x18] sm:$0xff] }
  0x1a   : > { %933 = vmatpush.bf16.msra.mxu2 %v927_v7  ;;  %934 = vmatpush.bf16.msra.mxu3 %v927_v7  ;;  %v918_v21 = vld [vmem:[%s1087_s28 + $0x38] sm:$0xff] }
  0x1b   : > { %v922_v22 = vld [vmem:[%s1087_s28 + $0x58] sm:$0xff] }
  0x1c   : > { %893 = vmatmul.msk.bf16.vlgmr.msra.gmra.mxu0 %vm383_vm2, %v911_v8  ;;  %897 = vmatmul.msk.bf16.vlgmr.msra.gmra.mxu1 %vm383_vm2, %v915_v9  ;;  %v926_v23 = vld [vmem:[%s1087_s28 + $0x78] sm:$0xff] }
  0x1d   : > { %901 = vmatmul.msk.bf16.vlgmr.msra.gmra.mxu2 %vm383_vm2, %v919_v10  ;;  %905 = vmatmul.msk.bf16.vlgmr.msra.gmra.mxu3 %vm383_vm2, %v923_v11 }
  0x2c   : > { %894 = vmatmul.msk.bf16.gmra.mxu0 %vm383_vm2, %v912_v12  ;;  %898 = vmatmul.msk.bf16.gmra.mxu1 %vm383_vm2, %v916_v13 }
  0x2d   : > { %902 = vmatmul.msk.bf16.gmra.mxu2 %vm383_vm2, %v920_v14  ;;  %906 = vmatmul.msk.bf16.gmra.mxu3 %vm383_vm2, %v924_v15 }
  0x3c   : > { %895 = vmatmul.msk.bf16.gmra.mxu0 %vm383_vm2, %v913_v16  ;;  %899 = vmatmul.msk.bf16.gmra.mxu1 %vm383_vm2, %v917_v17 }
  0x3d   : > { %903 = vmatmul.msk.bf16.gmra.mxu2 %vm383_vm2, %v921_v18  ;;  %907 = vmatmul.msk.bf16.gmra.mxu3 %vm383_vm2, %v925_v19 }
  0x4c   : > { %896 = vmatmul.msk.bf16.gmra.mxu0 %vm383_vm2, %v914_v20  ;;  %900 = vmatmul.msk.bf16.gmra.mxu1 %vm383_vm2, %v918_v21 }
  0x4d   : > { %904 = vmatmul.msk.bf16.gmra.mxu2 %vm383_vm2, %v922_v22  ;;  %908 = vmatmul.msk.bf16.gmra.mxu3 %vm383_vm2, %v926_v23 }
  0x99   : > { %v448_v25 = vpop.f32.mrf.mxu0  ;;  %v468_v26 = vpop.f32.mrf.mxu1 }
  0x9a   : > { %v536_v27 = vadd.f32 %v1125_v24, %v448_v25  ;;  %v544_v28 = vadd.f32 %v1125_v24, %v468_v26 }
  0x9c   : > { %568 = vst [vmem:[%s1130_s7] sm:$0xff] %v536_v27 }
  0x9d   : > { %576 = vst [vmem:[%s1130_s7 + $0x40] sm:$0xff] %v544_v28 }
  0xa0   : > { %v488_v29 = vpop.f32.mrf.mxu2  ;;  %v508_v30 = vpop.f32.mrf.mxu3 }
  0xa1   : > { %v552_v31 = vadd.f32 %v1125_v24, %v488_v29  ;;  %v560_v32 = vadd.f32 %v1125_v24, %v508_v30  ;;  %v450_v33 = vpop.f32.mrf.mxu0  ;;  %v470_v34 = vpop.f32.mrf.mxu1 }
  0xa2   : > { %v537_v35 = vadd.f32 %v1125_v24, %v450_v33  ;;  %v545_v36 = vadd.f32 %v1125_v24, %v470_v34 }
  0xa3   : > { %584 = vst [vmem:[%s1130_s7 + $0x80] sm:$0xff] %v552_v31 }
  0xa4   : > { %592 = vst [vmem:[%s1130_s7 + $0xc0] sm:$0xff] %v560_v32 }
  0xa5   : > { %569 = vst [vmem:[%s1130_s7 + $0x8] sm:$0xff] %v537_v35 }
  0xa6   : > { %577 = vst [vmem:[%s1130_s7 + $0x48] sm:$0xff] %v545_v36 }
  0xa8   : > { %v490_v37 = vpop.f32.mrf.mxu2  ;;  %v510_v38 = vpop.f32.mrf.mxu3 }
  0xa9   : > { %v553_v39 = vadd.f32 %v1125_v24, %v490_v37  ;;  %v561_v40 = vadd.f32 %v1125_v24, %v510_v38  ;;  %v453_v41 = vpop.f32.mrf.mxu0  ;;  %v473_v42 = vpop.f32.mrf.mxu1 }
  0xaa   : > { %v538_v43 = vadd.f32 %v1125_v24, %v453_v41  ;;  %v546_v44 = vadd.f32 %v1125_v24, %v473_v42 }
  0xab   : > { %585 = vst [vmem:[%s1130_s7 + $0x88] sm:$0xff] %v553_v39 }
  0xac   : > { %593 = vst [vmem:[%s1130_s7 + $0xc8] sm:$0xff] %v561_v40 }
  0xad   : > { %570 = vst [vmem:[%s1130_s7 + $0x10] sm:$0xff] %v538_v43 }
  0xae   : > { %578 = vst [vmem:[%s1130_s7 + $0x50] sm:$0xff] %v546_v44 }
  0xb0   : > { %v493_v45 = vpop.f32.mrf.mxu2  ;;  %v513_v46 = vpop.f32.mrf.mxu3 }
  0xb1   : > { %v554_v47 = vadd.f32 %v1125_v24, %v493_v45  ;;  %v562_v48 = vadd.f32 %v1125_v24, %v513_v46  ;;  %v455_v49 = vpop.f32.mrf.mxu0  ;;  %v475_v50 = vpop.f32.mrf.mxu1 }
  0xb2   : > { %v539_v51 = vadd.f32 %v1125_v24, %v455_v49  ;;  %v547_v52 = vadd.f32 %v1125_v24, %v475_v50 }
  0xb3   : > { %586 = vst [vmem:[%s1130_s7 + $0x90] sm:$0xff] %v554_v47 }
  0xb4   : > { %594 = vst [vmem:[%s1130_s7 + $0xd0] sm:$0xff] %v562_v48 }
  0xb5   : > { %571 = vst [vmem:[%s1130_s7 + $0x18] sm:$0xff] %v539_v51 }
  0xb6   : > { %579 = vst [vmem:[%s1130_s7 + $0x58] sm:$0xff] %v547_v52 }
  0xb8   : > { %v495_v53 = vpop.f32.mrf.mxu2  ;;  %v515_v54 = vpop.f32.mrf.mxu3 }
  0xb9   : > { %v555_v55 = vadd.f32 %v1125_v24, %v495_v53  ;;  %v563_v56 = vadd.f32 %v1125_v24, %v515_v54  ;;  %v458_v57 = vpop.f32.mrf.mxu0  ;;  %v478_v58 = vpop.f32.mrf.mxu1 }
  0xba   : > { %v540_v59 = vadd.f32 %v1125_v24, %v458_v57  ;;  %v548_v60 = vadd.f32 %v1125_v24, %v478_v58 }
  0xbb   : > { %587 = vst [vmem:[%s1130_s7 + $0x98] sm:$0xff] %v555_v55 }
  0xbc   : > { %595 = vst [vmem:[%s1130_s7 + $0xd8] sm:$0xff] %v563_v56 }
  0xbd   : > { %572 = vst [vmem:[%s1130_s7 + $0x20] sm:$0xff] %v540_v59 }
  0xbe   : > { %580 = vst [vmem:[%s1130_s7 + $0x60] sm:$0xff] %v548_v60 }
  0xc0   : > { %v498_v61 = vpop.f32.mrf.mxu2  ;;  %v518_v62 = vpop.f32.mrf.mxu3 }
  0xc1   : > { %v556_v63 = vadd.f32 %v1125_v24, %v498_v61  ;;  %v564_v0 = vadd.f32 %v1125_v24, %v518_v62  ;;  %v460_v1 = vpop.f32.mrf.mxu0  ;;  %v480_v2 = vpop.f32.mrf.mxu1 }
  0xc2   : > { %v541_v3 = vadd.f32 %v1125_v24, %v460_v1  ;;  %v549_v4 = vadd.f32 %v1125_v24, %v480_v2 }
  0xc3   : > { %588 = vst [vmem:[%s1130_s7 + $0xa0] sm:$0xff] %v556_v63 }
  0xc4   : > { %596 = vst [vmem:[%s1130_s7 + $0xe0] sm:$0xff] %v564_v0 }
  0xc5   : > { %573 = vst [vmem:[%s1130_s7 + $0x28] sm:$0xff] %v541_v3 }
  0xc6   : > { %581 = vst [vmem:[%s1130_s7 + $0x68] sm:$0xff] %v549_v4 }
  0xc8   : > { %v500_v5 = vpop.f32.mrf.mxu2  ;;  %v520_v6 = vpop.f32.mrf.mxu3 }
  0xc9   : > { %v557_v7 = vadd.f32 %v1125_v24, %v500_v5  ;;  %v565_v8 = vadd.f32 %v1125_v24, %v520_v6  ;;  %v463_v9 = vpop.f32.mrf.mxu0  ;;  %v483_v10 = vpop.f32.mrf.mxu1 }
  0xca   : > { %v542_v11 = vadd.f32 %v1125_v24, %v463_v9  ;;  %v550_v12 = vadd.f32 %v1125_v24, %v483_v10 }
  0xcb   : > { %589 = vst [vmem:[%s1130_s7 + $0xa8] sm:$0xff] %v557_v7 }
  0xcc   : > { %597 = vst [vmem:[%s1130_s7 + $0xe8] sm:$0xff] %v565_v8 }
  0xcd   : > { %574 = vst [vmem:[%s1130_s7 + $0x30] sm:$0xff] %v542_v11 }
  0xce   : > { %582 = vst [vmem:[%s1130_s7 + $0x70] sm:$0xff] %v550_v12 }
  0xd0   : > { %v503_v13 = vpop.f32.mrf.mxu2  ;;  %v523_v14 = vpop.f32.mrf.mxu3 }
  0xd1   : > { %v558_v15 = vadd.f32 %v1125_v24, %v503_v13  ;;  %v566_v16 = vadd.f32 %v1125_v24, %v523_v14  ;;  %v465_v17 = vpop.f32.mrf.mxu0  ;;  %v485_v18 = vpop.f32.mrf.mxu1 }
  0xd2   : > { %v543_v19 = vadd.f32 %v1125_v24, %v465_v17  ;;  %v551_v20 = vadd.f32 %v1125_v24, %v485_v18 }
  0xd3   : > { %590 = vst [vmem:[%s1130_s7 + $0xb0] sm:$0xff] %v558_v15 }
  0xd4   : > { %598 = vst [vmem:[%s1130_s7 + $0xf0] sm:$0xff] %v566_v16 }
  0xd5   : > { %575 = vst [vmem:[%s1130_s7 + $0x38] sm:$0xff] %v543_v19 }
  0xd6   : > { %583 = vst [vmem:[%s1130_s7 + $0x78] sm:$0xff] %v551_v20 }
  0xd8   : > { %v505_v21 = vpop.f32.mrf.mxu2  ;;  %v525_v22 = vpop.f32.mrf.mxu3 }
  0xd9   : > { %v559_v23 = vadd.f32 %v1125_v24, %v505_v21  ;;  %v567_v25 = vadd.f32 %v1125_v24, %v525_v22 }
  0xdb   : > { %591 = vst [vmem:[%s1130_s7 + $0xb8] sm:$0xff] %v559_v23 }
  0xdc   : > { %599 = vst [vmem:[%s1130_s7 + $0xf8] sm:$0xff] %v567_v25 }
  0xdd PF: > { %s14_s14 = sadd.s32 1, %s1030_s14   ;;  %s1209_s12 = smov %s1026_s13 }
  0xde   : > { %p11_p8 = scmp.ge.s32.totalorder %s14_s14, 4   ;;  %s1210_s13 = smov %s1212_s16 }
  0xe0   :  { %13 = sbr.rel (!%p11_p8) target bundleno = 2 (0x2), region = 79 }
  0xe5   :  { %728 = vsyncpa [#allocation3], 1 }
  0xe6   :  { %730 = vsyncpa [#allocation3 + $0x1], 1 }

// kernel: improved_unet_forward.36
= control target key start
LH: loop header
LB: loop body
LE: loop exit
PB: predicated region body
PF: predicated region fallthrough
CT: control target
= control target key end

     0   :  { %v271_v56 = vmov 256.0   ;;  %s800_s0 = inlined_call_operand.vmem [shape: f32[256,128], index: 0, kind: input, shape index: {}]   ;;  %s801_s1 = inlined_call_operand.vmem [shape: f32[256,128], index: 1, kind: output, shape index: {}]  }
   0x1   :  { %v285_v0 = vld [vmem:[%s800_s0] sm:$0xff]  ;;  %v290_v1 = vld [vmem:[%s800_s0 + $0x8] sm:$0xff]  ;;  %v295_v2 = vld [vmem:[%s800_s0 + $0x10] sm:$0xff]  ;;  %267 = vrcp.f32 %v271_v56 }
   0x2   :  { %v40_v3 = vadd.f32 %v290_v1, %v285_v0  ;;  %v302_v4 = vld [vmem:[%s800_s0 + $0x18] sm:$0xff]  ;;  %v308_v6 = vld [vmem:[%s800_s0 + $0x20] sm:$0xff]  ;;  %v314_v8 = vld [vmem:[%s800_s0 + $0x28] sm:$0xff] }
   0x3   :  { %v320_v10 = vld [vmem:[%s800_s0 + $0x30] sm:$0xff]  ;;  %v326_v12 = vld [vmem:[%s800_s0 + $0x38] sm:$0xff]  ;;  %v332_v14 = vld [vmem:[%s800_s0 + $0x40] sm:$0xff] }
   0x4   :  { %v41_v5 = vadd.f32 %v40_v3, %v295_v2  ;;  %v338_v16 = vld [vmem:[%s800_s0 + $0x48] sm:$0xff]  ;;  %v344_v18 = vld [vmem:[%s800_s0 + $0x50] sm:$0xff]  ;;  %v350_v20 = vld [vmem:[%s800_s0 + $0x58] sm:$0xff] }
   0x5   :  { %v356_v22 = vld [vmem:[%s800_s0 + $0x60] sm:$0xff]  ;;  %v362_v24 = vld [vmem:[%s800_s0 + $0x68] sm:$0xff]  ;;  %v368_v26 = vld [vmem:[%s800_s0 + $0x70] sm:$0xff] }
   0x6   :  { %v42_v7 = vadd.f32 %v41_v5, %v302_v4  ;;  %v374_v28 = vld [vmem:[%s800_s0 + $0x78] sm:$0xff]  ;;  %v380_v30 = vld [vmem:[%s800_s0 + $0x80] sm:$0xff]  ;;  %v386_v32 = vld [vmem:[%s800_s0 + $0x88] sm:$0xff] }
   0x7   :  { %v392_v34 = vld [vmem:[%s800_s0 + $0x90] sm:$0xff]  ;;  %v398_v36 = vld [vmem:[%s800_s0 + $0x98] sm:$0xff]  ;;  %v404_v38 = vld [vmem:[%s800_s0 + $0xa0] sm:$0xff]  ;;  %v268_v62 = vpop.eup %267 }
   0x8   :  { %v43_v9 = vadd.f32 %v42_v7, %v308_v6  ;;  %v410_v40 = vld [vmem:[%s800_s0 + $0xa8] sm:$0xff]  ;;  %v416_v42 = vld [vmem:[%s800_s0 + $0xb0] sm:$0xff]  ;;  %v422_v44 = vld [vmem:[%s800_s0 + $0xb8] sm:$0xff]  ;;  %v78_v5 = vmul.f32 256.0, %v268_v62  ;;  %vm82_vm0 = vweird.f32 %v268_v62 }
   0x9   :  { %v428_v46 = vld [vmem:[%s800_s0 + $0xc0] sm:$0xff]  ;;  %v434_v48 = vld [vmem:[%s800_s0 + $0xc8] sm:$0xff]  ;;  %v440_v50 = vld [vmem:[%s800_s0 + $0xd0] sm:$0xff] }
   0xa   :  { %v44_v11 = vadd.f32 %v43_v9, %v314_v8  ;;  %v446_v52 = vld [vmem:[%s800_s0 + $0xd8] sm:$0xff]  ;;  %v452_v54 = vld [vmem:[%s800_s0 + $0xe0] sm:$0xff]  ;;  %v458_v57 = vld [vmem:[%s800_s0 + $0xe8] sm:$0xff] }
   0xb   :  { %v464_v59 = vld [vmem:[%s800_s0 + $0xf0] sm:$0xff]  ;;  %v470_v61 = vld [vmem:[%s800_s0 + $0xf8] sm:$0xff] }
   0xc   :  { %v45_v13 = vadd.f32 %v44_v11, %v320_v10  ;;  %v79_v11 = vsub.f32 1.0, %v78_v5 }
   0xe   :  { %v46_v15 = vadd.f32 %v45_v13, %v326_v12 }
  0x10   :  { %v47_v17 = vadd.f32 %v46_v15, %v332_v14 }
  0x12   :  { %v48_v19 = vadd.f32 %v47_v17, %v338_v16  ;;  %v80_v17 = vmul.f32 %v268_v62, %v79_v11 }
  0x14   :  { %v49_v21 = vadd.f32 %v48_v19, %v344_v18 }
  0x16   :  { %v50_v23 = vadd.f32 %v49_v21, %v350_v20  ;;  %v81_v21 = vadd.f32 %v268_v62, %v80_v17 }
  0x18   :  { %v51_v25 = vadd.f32 %v50_v23, %v356_v22 }
  0x1a   :  { %v52_v27 = vadd.f32 %v51_v25, %v362_v24  ;;  %v474_v25 = vsel %vm82_vm0, %v268_v62, %v81_v21 }
  0x1c   :  { %v53_v29 = vadd.f32 %v52_v27, %v368_v26 }
  0x1e   :  { %v54_v31 = vadd.f32 %v53_v29, %v374_v28 }
  0x20   :  { %v55_v33 = vadd.f32 %v54_v31, %v380_v30 }
  0x22   :  { %v56_v35 = vadd.f32 %v55_v33, %v386_v32 }
  0x24   :  { %v57_v37 = vadd.f32 %v56_v35, %v392_v34 }
  0x26   :  { %v58_v39 = vadd.f32 %v57_v37, %v398_v36 }
  0x28   :  { %v59_v41 = vadd.f32 %v58_v39, %v404_v38 }
  0x2a   :  { %v60_v43 = vadd.f32 %v59_v41, %v410_v40 }
  0x2c   :  { %v61_v45 = vadd.f32 %v60_v43, %v416_v42 }
  0x2e   :  { %v62_v47 = vadd.f32 %v61_v45, %v422_v44 }
  0x30   :  { %v63_v49 = vadd.f32 %v62_v47, %v428_v46 }
  0x32   :  { %v64_v51 = vadd.f32 %v63_v49, %v434_v48 }
  0x34   :  { %v65_v53 = vadd.f32 %v64_v51, %v440_v50 }
  0x36   :  { %v66_v55 = vadd.f32 %v65_v53, %v446_v52 }
  0x38   :  { %v67_v58 = vadd.f32 %v66_v55, %v452_v54 }
  0x3a   :  { %v68_v60 = vadd.f32 %v67_v58, %v458_v57 }
  0x3c   :  { %v69_v63 = vadd.f32 %v68_v60, %v464_v59 }
  0x3e   :  { %v70_v3 = vadd.f32 %v69_v63, %v470_v61 }
  0x40   :  { %v71_v7 = vrot.slane %v70_v3, 4 }
  0x42   :  { %v72_v9 = vadd.f32 %v71_v7, %v70_v3 }
  0x44   :  { %v73_v13 = vrot.slane %v72_v9, 2 }
  0x46   :  { %v74_v15 = vadd.f32 %v73_v13, %v72_v9 }
  0x48   :  { %v75_v19 = vrot.slane %v74_v15, 1 }
  0x4a   :  { %v76_v23 = vadd.f32 %v75_v19, %v74_v15 }
  0x4c   :  { %v477_v27 = vmul.f32 %v474_v25, %v76_v23 }
  0x4e   :  { %v481_v29 = vsub.f32 %v285_v0, %v477_v27  ;;  %v485_v31 = vsub.f32 %v290_v1, %v477_v27  ;;  %v489_v33 = vsub.f32 %v295_v2, %v477_v27  ;;  %v493_v35 = vsub.f32 %v302_v4, %v477_v27 }
  0x4f   :  { %v501_v0 = vsub.f32 %v308_v6, %v477_v27  ;;  %v507_v2 = vsub.f32 %v314_v8, %v477_v27  ;;  %v513_v43 = vsub.f32 %v320_v10, %v477_v27  ;;  %v519_v47 = vsub.f32 %v326_v12, %v477_v27 }
  0x50   :  { %v117_v37 = vmul.f32 %v481_v29, %v481_v29  ;;  %v118_v39 = vmul.f32 %v485_v31, %v485_v31  ;;  %v119_v1 = vmul.f32 %v489_v33, %v489_v33  ;;  %v120_v4 = vmul.f32 %v493_v35, %v493_v35 }
  0x51   :  { %v121_v45 = vmul.f32 %v501_v0, %v501_v0  ;;  %v122_v8 = vmul.f32 %v507_v2, %v507_v2  ;;  %v525_v51 = vsub.f32 %v332_v14, %v477_v27  ;;  %v123_v10 = vmul.f32 %v513_v43, %v513_v43 }
  0x52   :  { %v149_v41 = vadd.f32 %v118_v39, %v117_v37  ;;  %v531_v55 = vsub.f32 %v338_v16, %v477_v27  ;;  %v124_v12 = vmul.f32 %v519_v47, %v519_v47  ;;  %v537_v58 = vsub.f32 %v344_v18, %v477_v27 }
  0x53   :  { %v125_v14 = vmul.f32 %v525_v51, %v525_v51  ;;  %v543_v62 = vsub.f32 %v350_v20, %v477_v27  ;;  %v549_v3 = vsub.f32 %v356_v22, %v477_v27  ;;  %v555_v7 = vsub.f32 %v362_v24, %v477_v27 }
  0x54   :  { %v150_v6 = vadd.f32 %v149_v41, %v119_v1  ;;  %v126_v16 = vmul.f32 %v531_v55, %v531_v55  ;;  %v127_v18 = vmul.f32 %v537_v58, %v537_v58  ;;  %v561_v11 = vsub.f32 %v368_v26, %v477_v27 }
  0x55   :  { %v128_v20 = vmul.f32 %v543_v62, %v543_v62  ;;  %v129_v22 = vmul.f32 %v549_v3, %v549_v3  ;;  %v567_v15 = vsub.f32 %v374_v28, %v477_v27  ;;  %v130_v24 = vmul.f32 %v555_v7, %v555_v7 }
  0x56   :  { %v151_v49 = vadd.f32 %v150_v6, %v120_v4  ;;  %v573_v19 = vsub.f32 %v380_v30, %v477_v27  ;;  %v131_v26 = vmul.f32 %v561_v11, %v561_v11  ;;  %v579_v23 = vsub.f32 %v386_v32, %v477_v27 }
  0x57   :  { %v132_v28 = vmul.f32 %v567_v15, %v567_v15  ;;  %v585_v39 = vsub.f32 %v392_v34, %v477_v27  ;;  %v591_v4 = vsub.f32 %v398_v36, %v477_v27 }
  0x58   :  { %v152_v53 = vadd.f32 %v151_v49, %v121_v45  ;;  %v133_v30 = vmul.f32 %v573_v19, %v573_v19  ;;  %v134_v32 = vmul.f32 %v579_v23, %v579_v23  ;;  %v597_v45 = vsub.f32 %v404_v38, %v477_v27 }
  0x59   :  { %v135_v34 = vmul.f32 %v585_v39, %v585_v39  ;;  %v136_v36 = vmul.f32 %v591_v4, %v591_v4 }
  0x5a   :  { %v153_v56 = vadd.f32 %v152_v53, %v122_v8  ;;  %v603_v8 = vsub.f32 %v410_v40, %v477_v27  ;;  %v137_v38 = vmul.f32 %v597_v45, %v597_v45 }
  0x5c   :  { %v154_v60 = vadd.f32 %v153_v56, %v123_v10  ;;  %v609_v10 = vsub.f32 %v416_v42, %v477_v27  ;;  %v138_v40 = vmul.f32 %v603_v8, %v603_v8 }
  0x5e   :  { %v155_v63 = vadd.f32 %v154_v60, %v124_v12  ;;  %v615_v12 = vsub.f32 %v422_v44, %v477_v27  ;;  %v139_v42 = vmul.f32 %v609_v10, %v609_v10 }
  0x60   :  { %v156_v5 = vadd.f32 %v155_v63, %v125_v14  ;;  %v621_v14 = vsub.f32 %v428_v46, %v477_v27  ;;  %v140_v44 = vmul.f32 %v615_v12, %v615_v12 }
  0x62   :  { %v157_v9 = vadd.f32 %v156_v5, %v126_v16  ;;  %v627_v16 = vsub.f32 %v434_v48, %v477_v27  ;;  %v141_v46 = vmul.f32 %v621_v14, %v621_v14 }
  0x64   :  { %v158_v13 = vadd.f32 %v157_v9, %v127_v18  ;;  %v633_v18 = vsub.f32 %v440_v50, %v477_v27  ;;  %v142_v48 = vmul.f32 %v627_v16, %v627_v16 }
  0x66   :  { %v159_v17 = vadd.f32 %v158_v13, %v128_v20  ;;  %v639_v20 = vsub.f32 %v446_v52, %v477_v27  ;;  %v143_v50 = vmul.f32 %v633_v18, %v633_v18 }
  0x68   :  { %v160_v21 = vadd.f32 %v159_v17, %v129_v22  ;;  %v645_v22 = vsub.f32 %v452_v54, %v477_v27  ;;  %v144_v52 = vmul.f32 %v639_v20, %v639_v20 }
  0x6a   :  { %v161_v37 = vadd.f32 %v160_v21, %v130_v24  ;;  %v651_v24 = vsub.f32 %v458_v57, %v477_v27  ;;  %v145_v54 = vmul.f32 %v645_v22, %v645_v22 }
  0x6c   :  { %v162_v1 = vadd.f32 %v161_v37, %v131_v26  ;;  %v657_v26 = vsub.f32 %v464_v59, %v477_v27  ;;  %v146_v57 = vmul.f32 %v651_v24, %v651_v24 }
  0x6e   :  { %v163_v41 = vadd.f32 %v162_v1, %v132_v28  ;;  %v663_v28 = vsub.f32 %v470_v61, %v477_v27 }
  0x70   :  { %v164_v6 = vadd.f32 %v163_v41, %v133_v30  ;;  %v147_v30 = vmul.f32 %v657_v26, %v657_v26  ;;  %v148_v59 = vmul.f32 %v663_v28, %v663_v28 }
  0x72   :  { %v165_v49 = vadd.f32 %v164_v6, %v134_v32 }
  0x74   :  { %v166_v53 = vadd.f32 %v165_v49, %v135_v34 }
  0x76   :  { %v167_v56 = vadd.f32 %v166_v53, %v136_v36 }
  0x78   :  { %v168_v60 = vadd.f32 %v167_v56, %v137_v38 }
  0x7a   :  { %v169_v63 = vadd.f32 %v168_v60, %v138_v40 }
  0x7c   :  { %v170_v5 = vadd.f32 %v169_v63, %v139_v42 }
  0x7e   :  { %v171_v9 = vadd.f32 %v170_v5, %v140_v44 }
  0x80   :  { %v172_v13 = vadd.f32 %v171_v9, %v141_v46 }
  0x82   :  { %v173_v17 = vadd.f32 %v172_v13, %v142_v48 }
  0x84   :  { %v174_v21 = vadd.f32 %v173_v17, %v143_v50 }
  0x86   :  { %v175_v37 = vadd.f32 %v174_v21, %v144_v52 }
  0x88   :  { %v176_v1 = vadd.f32 %v175_v37, %v145_v54 }
  0x8a   :  { %v177_v32 = vadd.f32 %v176_v1, %v146_v57 }
  0x8c   :  { %v178_v41 = vadd.f32 %v177_v32, %v147_v30 }
  0x8e   :  { %v179_v34 = vadd.f32 %v178_v41, %v148_v59 }
  0x90   :  { %v180_v6 = vrot.slane %v179_v34, 4 }
  0x92   :  { %v181_v36 = vadd.f32 %v180_v6, %v179_v34 }
  0x94   :  { %v182_v49 = vrot.slane %v181_v36, 2 }
  0x96   :  { %v183_v38 = vadd.f32 %v182_v49, %v181_v36 }
  0x98   :  { %v184_v61 = vrot.slane %v183_v38, 1 }
  0x9a   :  { %v185_v27 = vadd.f32 %v184_v61, %v183_v38 }
  0x9c   :  { %v186_v53 = vmul.f32 %v185_v27, %v474_v25 }
  0x9e   :  { %v187_v40 = vadd.f32 1e-05, %v186_v53 }
  0xa0   :  { %269 = vrsqrt.f32 %v187_v40  ;;  %vm194_vm1 = vweird.f32 %v187_v40 }
  0xa6   :  { %v270_v56 = vpop.eup %269 }
  0xa7   :  { %v189_v42 = vmul.f32 %v270_v56, %v187_v40  ;;  %vm195_vm2 = vweird.f32 %v270_v56 }
  0xa8   :  { %vm196_vm3 = vmor %vm194_vm1, %vm195_vm2 }
  0xa9   :  { %v190_v60 = vmul.f32 %v270_v56, %v189_v42 }
  0xab   :  { %v191_v44 = vmul.f32 0.5, %v190_v60 }
  0xad   :  { %v192_v63 = vsub.f32 1.5, %v191_v44 }
  0xaf   :  { %v193_v46 = vmul.f32 %v270_v56, %v192_v63 }
  0xb1   :  { %v197_v5 = vsel %vm196_vm3, %v270_v56, %v193_v46 }
  0xb2   :  { %v198_v48 = vmul.f32 %v197_v5, %v481_v29  ;;  %v199_v9 = vmul.f32 %v197_v5, %v485_v31  ;;  %v200_v50 = vmul.f32 %v197_v5, %v489_v33  ;;  %v201_v25 = vmul.f32 %v197_v5, %v493_v35 }
  0xb3   :  { %v202_v13 = vmul.f32 %v197_v5, %v501_v0  ;;  %v203_v52 = vmul.f32 %v197_v5, %v507_v2  ;;  %v204_v29 = vmul.f32 %v197_v5, %v513_v43  ;;  %v205_v31 = vmul.f32 %v197_v5, %v519_v47 }
  0xb4   :  { %230 = vst [vmem:[%s801_s1] sm:$0xff] %v198_v48  ;;  %v206_v33 = vmul.f32 %v197_v5, %v525_v51  ;;  %v207_v35 = vmul.f32 %v197_v5, %v531_v55  ;;  %v208_v0 = vmul.f32 %v197_v5, %v537_v58  ;;  %v209_v2 = vmul.f32 %v197_v5, %v543_v62 }
  0xb5   :  { %231 = vst [vmem:[%s801_s1 + $0x8] sm:$0xff] %v199_v9  ;;  %v210_v43 = vmul.f32 %v197_v5, %v549_v3  ;;  %v211_v47 = vmul.f32 %v197_v5, %v555_v7  ;;  %v212_v51 = vmul.f32 %v197_v5, %v561_v11  ;;  %v213_v55 = vmul.f32 %v197_v5, %v567_v15 }
  0xb6   :  { %232 = vst [vmem:[%s801_s1 + $0x10] sm:$0xff] %v200_v50  ;;  %v214_v58 = vmul.f32 %v197_v5, %v573_v19  ;;  %v215_v62 = vmul.f32 %v197_v5, %v579_v23  ;;  %v216_v3 = vmul.f32 %v197_v5, %v585_v39  ;;  %v217_v7 = vmul.f32 %v197_v5, %v591_v4 }
  0xb7   :  { %233 = vst [vmem:[%s801_s1 + $0x18] sm:$0xff] %v201_v25  ;;  %v218_v11 = vmul.f32 %v197_v5, %v597_v45  ;;  %v219_v15 = vmul.f32 %v197_v5, %v603_v8  ;;  %v220_v19 = vmul.f32 %v197_v5, %v609_v10  ;;  %v221_v23 = vmul.f32 %v197_v5, %v615_v12 }
  0xb8   :  { %234 = vst [vmem:[%s801_s1 + $0x20] sm:$0xff] %v202_v13  ;;  %v222_v39 = vmul.f32 %v197_v5, %v621_v14  ;;  %v223_v4 = vmul.f32 %v197_v5, %v627_v16  ;;  %v224_v45 = vmul.f32 %v197_v5, %v633_v18  ;;  %v225_v8 = vmul.f32 %v197_v5, %v639_v20 }
  0xb9   :  { %235 = vst [vmem:[%s801_s1 + $0x28] sm:$0xff] %v203_v52  ;;  %v226_v10 = vmul.f32 %v197_v5, %v645_v22  ;;  %v227_v12 = vmul.f32 %v197_v5, %v651_v24  ;;  %v228_v14 = vmul.f32 %v197_v5, %v657_v26  ;;  %v229_v16 = vmul.f32 %v197_v5, %v663_v28 }
  0xba   :  { %236 = vst [vmem:[%s801_s1 + $0x30] sm:$0xff] %v204_v29 }
  0xbb   :  { %237 = vst [vmem:[%s801_s1 + $0x38] sm:$0xff] %v205_v31 }
  0xbc   :  { %238 = vst [vmem:[%s801_s1 + $0x40] sm:$0xff] %v206_v33 }
  0xbd   :  { %239 = vst [vmem:[%s801_s1 + $0x48] sm:$0xff] %v207_v35 }
  0xbe   :  { %240 = vst [vmem:[%s801_s1 + $0x50] sm:$0xff] %v208_v0 }
  0xbf   :  { %241 = vst [vmem:[%s801_s1 + $0x58] sm:$0xff] %v209_v2 }
  0xc0   :  { %242 = vst [vmem:[%s801_s1 + $0x60] sm:$0xff] %v210_v43 }
  0xc1   :  { %243 = vst [vmem:[%s801_s1 + $0x68] sm:$0xff] %v211_v47 }
  0xc2   :  { %244 = vst [vmem:[%s801_s1 + $0x70] sm:$0xff] %v212_v51 }
  0xc3   :  { %245 = vst [vmem:[%s801_s1 + $0x78] sm:$0xff] %v213_v55 }
  0xc4   :  { %246 = vst [vmem:[%s801_s1 + $0x80] sm:$0xff] %v214_v58 }
  0xc5   :  { %247 = vst [vmem:[%s801_s1 + $0x88] sm:$0xff] %v215_v62 }
  0xc6   :  { %248 = vst [vmem:[%s801_s1 + $0x90] sm:$0xff] %v216_v3 }
  0xc7   :  { %249 = vst [vmem:[%s801_s1 + $0x98] sm:$0xff] %v217_v7 }
  0xc8   :  { %250 = vst [vmem:[%s801_s1 + $0xa0] sm:$0xff] %v218_v11 }
  0xc9   :  { %251 = vst [vmem:[%s801_s1 + $0xa8] sm:$0xff] %v219_v15 }
  0xca   :  { %252 = vst [vmem:[%s801_s1 + $0xb0] sm:$0xff] %v220_v19 }
  0xcb   :  { %253 = vst [vmem:[%s801_s1 + $0xb8] sm:$0xff] %v221_v23 }
  0xcc   :  { %254 = vst [vmem:[%s801_s1 + $0xc0] sm:$0xff] %v222_v39 }
  0xcd   :  { %255 = vst [vmem:[%s801_s1 + $0xc8] sm:$0xff] %v223_v4 }
  0xce   :  { %256 = vst [vmem:[%s801_s1 + $0xd0] sm:$0xff] %v224_v45 }
  0xcf   :  { %257 = vst [vmem:[%s801_s1 + $0xd8] sm:$0xff] %v225_v8 }
  0xd0   :  { %258 = vst [vmem:[%s801_s1 + $0xe0] sm:$0xff] %v226_v10 }
  0xd1   :  { %259 = vst [vmem:[%s801_s1 + $0xe8] sm:$0xff] %v227_v12 }
  0xd2   :  { %260 = vst [vmem:[%s801_s1 + $0xf0] sm:$0xff] %v228_v14 }
  0xd3   :  { %261 = vst [vmem:[%s801_s1 + $0xf8] sm:$0xff] %v229_v16 }

// kernel: improved_unet_forward.31
= control target key start
LH: loop header
LB: loop body
LE: loop exit
PB: predicated region body
PF: predicated region fallthrough
CT: control target
= control target key end

     0   :  { %s2535_s12 = smov 0   ;;  %s2537_s13 = smov 0   ;;  %s3028_s0 = inlined_call_operand.vmem [shape: bf16[512,576], index: 0, kind: input, shape index: {}]   ;;  %s3029_s1 = inlined_call_operand.vmem [shape: bf16[576,128], index: 1, kind: input, shape index: {}]   ;;  %s3030_s2 = inlined_call_operand.vmem [shape: f32[1,128], index: 2, kind: input, shape index: {}]   ;;  %s3031_s3 = inlined_call_operand.vmem [shape: f32[512,128], index: 3, kind: output, shape index: {}]  }
   0x1   :  { %s2539_s14 = smov 0  }
   0x2 LB: > { %s32_s15 = sadd.s32 1, %s2509_s13  ;;  %p1838_p0 = scmp.ge.s32.totalorder %s2513_s14, 1  ;;  %s2513_s14 = sphi %s2539_s14, %s13_s14   ;;  %s2509_s13 = sphi %s2537_s13, %s3033_s13   ;;  %s2505_s12 = sphi %s2535_s12, %s3032_s12  }
   0x3   : > { %p34_p1 = scmp.ge.s32.totalorder %s32_s15, 2  ;;  %p191_p2 = scmp.lt.s32.totalorder %s2513_s14, 3 }
   0x5   : > { %s3035_s15 = smov (%p34_p1, %s32_s15), 0  ;;  %p192_p3 = pnand %p1838_p0, %p191_p2 }
   0x6   : > { %s1839_s22 = sshll.u32 (!%p192_p3), %s2505_s12, 5 }
   0x7   : > { %195 = sbr.rel (%p192_p3) target bundleno = 497 (0x1f1), region = 32  ;;  %p236_p4 = scmp.lt.s32.totalorder (!%p192_p3), %s1839_s22, 63 }
   0xc   : > { %v2412_v0 = vld [vmem:[%s3029_s1 + $0x38] sm:$0xff]  ;;  %v2411_v1 = vld [vmem:[%s3029_s1 + $0x30] sm:$0xff]  ;;  %v2410_v2 = vld [vmem:[%s3029_s1 + $0x28] sm:$0xff]  ;;  %s3037_s22 = smov (!%p236_p4, %s1839_s22), 63  ;;  %vm1052_vm0 = vcmask 523264  }
   0xd   : > { %2441 = vmatpush.bf16.msra.mxu1 %v2412_v0  ;;  %2442 = vmatpush.bf16.msra.mxu2 %v2412_v0  ;;  %v2409_v3 = vld [vmem:[%s3029_s1 + $0x20] sm:$0xff]  ;;  %v2408_v4 = vld [vmem:[%s3029_s1 + $0x18] sm:$0xff]  ;;  %v2407_v5 = vld [vmem:[%s3029_s1 + $0x10] sm:$0xff]  ;;  %s2465_s29 = smul.u32 20, %s3037_s22  ;;  %s1842_s26 = sshll.u32 %s3037_s22, 3 }
   0xe   : > { %2443 = vmatpush.bf16.msra.mxu3 %v2412_v0  ;;  %1101 = vmatpush.bf16.msra.mxu0 %v2412_v0  ;;  %v2406_v6 = vld [vmem:[%s3029_s1 + $0x8] sm:$0xff]  ;;  %v2405_v7 = vld [vmem:[%s3029_s1] sm:$0xff]  ;;  %v2428_v16 = vld [vmem:[%s3029_s1 + $0xb8] sm:$0xff]  ;;  %s2861_s4 = scalar_lea.vmem %s3031_s3, %s1842_s26 }
   0xf   : > { %s2583_s7 = scalar_lea.vmem %s3028_s0, %s2465_s29  ;;  %v2436_v17 = vld [vmem:[%s3029_s1 + $0xf8] sm:$0xff]  ;;  %v2427_v24 = vld [vmem:[%s3029_s1 + $0xb0] sm:$0xff]  ;;  %v2426_v28 = vld [vmem:[%s3029_s1 + $0xa8] sm:$0xff] }
  0x10   : > { %v1925_v8 = vld [vmem:[%s2583_s7 + $0xa0] sm:$0xf]  ;;  %v2347_v9 = vld [vmem:[%s2583_s7 + $0xb0] sm:$0xf0]  ;;  %v2420_v22 = vld [vmem:[%s3029_s1 + $0x78] sm:$0xff] }
  0x11   : > { %2444 = vmatpush.bf16.msra.mxu1 %v2411_v1  ;;  %2445 = vmatpush.bf16.msra.mxu2 %v2411_v1  ;;  %v2005_v10 = vld [vmem:[%s2583_s7 + $0x140] sm:$0xf]  ;;  %v2367_v11 = vld [vmem:[%s2583_s7 + $0x150] sm:$0xf0]  ;;  %v1926_v18 = vor.u32 %v2347_v9, %v1925_v8  ;;  %v2440_v23 = vld [vmem:[%s3029_s1 + $0x118] sm:$0xff] }
  0x12   : > { %2446 = vmatpush.bf16.msra.mxu3 %v2411_v1  ;;  %1102 = vmatpush.bf16.msra.mxu0 %v2411_v1  ;;  %v2085_v12 = vld [vmem:[%s2583_s7 + $0x1e0] sm:$0xf]  ;;  %v2387_v13 = vld [vmem:[%s2583_s7 + $0x1f0] sm:$0xf0]  ;;  %v2006_v19 = vor.u32 %v2367_v11, %v2005_v10  ;;  %v2434_v29 = vld [vmem:[%s3029_s1 + $0xe8] sm:$0xff] }
  0x13   : > { %v1845_v14 = vld [vmem:[%s2583_s7] sm:$0xf]  ;;  %v2327_v15 = vld [vmem:[%s2583_s7 + $0x10] sm:$0xf0]  ;;  %v2086_v20 = vor.u32 %v2387_v13, %v2085_v12  ;;  %v2418_v30 = vld [vmem:[%s3029_s1 + $0x68] sm:$0xff] }
  0x14   : > { %v1846_v21 = vor.u32 %v2327_v15, %v1845_v14  ;;  %v2435_v25 = vld [vmem:[%s3029_s1 + $0xf0] sm:$0xff]  ;;  %v2438_v31 = vld [vmem:[%s3029_s1 + $0x108] sm:$0xff]  ;;  %v2425_v32 = vld [vmem:[%s3029_s1 + $0xa0] sm:$0xff] }
  0x15   : > { %2447 = vmatpush.bf16.msra.mxu1 %v2410_v2  ;;  %2448 = vmatpush.bf16.msra.mxu2 %v2410_v2  ;;  %v2419_v26 = vld [vmem:[%s3029_s1 + $0x70] sm:$0xff]  ;;  %v2433_v33 = vld [vmem:[%s3029_s1 + $0xe0] sm:$0xff]  ;;  %v1945_v34 = vld [vmem:[%s2583_s7 + $0xc8] sm:$0xf] }
  0x16   : > { %2449 = vmatpush.bf16.msra.mxu3 %v2410_v2  ;;  %1103 = vmatpush.bf16.msra.mxu0 %v2410_v2  ;;  %v2439_v27 = vld [vmem:[%s3029_s1 + $0x110] sm:$0xff]  ;;  %v2352_v35 = vld [vmem:[%s2583_s7 + $0xd8] sm:$0xf0]  ;;  %v2025_v36 = vld [vmem:[%s2583_s7 + $0x168] sm:$0xf] }
  0x17   : > { %v2372_v37 = vld [vmem:[%s2583_s7 + $0x178] sm:$0xf0]  ;;  %v2105_v38 = vld [vmem:[%s2583_s7 + $0x208] sm:$0xf]  ;;  %v2417_v42 = vld [vmem:[%s3029_s1 + $0x60] sm:$0xff]  ;;  %v1946_v45 = vor.u32 %v2352_v35, %v1945_v34 }
  0x18   : > { %v2392_v39 = vld [vmem:[%s2583_s7 + $0x218] sm:$0xf0]  ;;  %v1865_v40 = vld [vmem:[%s2583_s7 + $0x28] sm:$0xf]  ;;  %v2026_v46 = vor.u32 %v2372_v37, %v2025_v36  ;;  %v2423_v50 = vld [vmem:[%s3029_s1 + $0x90] sm:$0xff] }
  0x19   : > { %2450 = vmatpush.bf16.msra.mxu1 %v2409_v3  ;;  %2451 = vmatpush.bf16.msra.mxu2 %v2409_v3  ;;  %v2332_v41 = vld [vmem:[%s2583_s7 + $0x38] sm:$0xf0]  ;;  %v2106_v47 = vor.u32 %v2392_v39, %v2105_v38  ;;  %v2431_v51 = vld [vmem:[%s3029_s1 + $0xd0] sm:$0xff]  ;;  %v2437_v53 = vld [vmem:[%s3029_s1 + $0x100] sm:$0xff] }
  0x1a   : > { %2452 = vmatpush.bf16.msra.mxu3 %v2409_v3  ;;  %1104 = vmatpush.bf16.msra.mxu0 %v2409_v3  ;;  %v2424_v43 = vld [vmem:[%s3029_s1 + $0x98] sm:$0xff]  ;;  %v1866_v48 = vor.u32 %v2332_v41, %v1865_v40  ;;  %v2415_v52 = vld [vmem:[%s3029_s1 + $0x50] sm:$0xff]  ;;  %v2422_v54 = vld [vmem:[%s3029_s1 + $0x88] sm:$0xff] }
  0x1b   : > { %v2432_v44 = vld [vmem:[%s3029_s1 + $0xd8] sm:$0xff]  ;;  %v2430_v55 = vld [vmem:[%s3029_s1 + $0xc8] sm:$0xff]  ;;  %v2421_v57 = vld [vmem:[%s3029_s1 + $0x80] sm:$0xff] }
  0x1c   : > { %v2416_v49 = vld [vmem:[%s3029_s1 + $0x58] sm:$0xff]  ;;  %v2414_v56 = vld [vmem:[%s3029_s1 + $0x48] sm:$0xff]  ;;  %v2429_v58 = vld [vmem:[%s3029_s1 + $0xc0] sm:$0xff] }
  0x1d   : > { %2453 = vmatpush.bf16.msra.mxu1 %v2408_v4  ;;  %2454 = vmatpush.bf16.msra.mxu2 %v2408_v4  ;;  %v1965_v59 = vld [vmem:[%s2583_s7 + $0xf0] sm:$0xf]  ;;  %v2357_v60 = vld [vmem:[%s2583_s7 + $0x100] sm:$0xf0]  ;;  %v1985_v8 = vld [vmem:[%s2583_s7 + $0x118] sm:$0xf] }
  0x1e   : > { %2455 = vmatpush.bf16.msra.mxu3 %v2408_v4  ;;  %1105 = vmatpush.bf16.msra.mxu0 %v2408_v4  ;;  %v2045_v61 = vld [vmem:[%s2583_s7 + $0x190] sm:$0xf]  ;;  %v2377_v62 = vld [vmem:[%s2583_s7 + $0x1a0] sm:$0xf0]  ;;  %v1966_v4 = vor.u32 %v2357_v60, %v1965_v59  ;;  %v2362_v9 = vld [vmem:[%s2583_s7 + $0x128] sm:$0xf0] }
  0x1f   : > { %v2125_v63 = vld [vmem:[%s2583_s7 + $0x230] sm:$0xf]  ;;  %v2397_v0 = vld [vmem:[%s2583_s7 + $0x240] sm:$0xf0]  ;;  %v2065_v10 = vld [vmem:[%s2583_s7 + $0x1b8] sm:$0xf] }
  0x20   : > { %v1885_v1 = vld [vmem:[%s2583_s7 + $0x50] sm:$0xf]  ;;  %v2337_v2 = vld [vmem:[%s2583_s7 + $0x60] sm:$0xf0]  ;;  %v2382_v11 = vld [vmem:[%s2583_s7 + $0x1c8] sm:$0xf0] }
  0x21   : > { %2456 = vmatpush.bf16.msra.mxu1 %v2407_v5  ;;  %2457 = vmatpush.bf16.msra.mxu2 %v2407_v5  ;;  %v2413_v3 = vld [vmem:[%s3029_s1 + $0x40] sm:$0xff]  ;;  %v2145_v12 = vld [vmem:[%s2583_s7 + $0x258] sm:$0xf]  ;;  %v2402_v13 = vld [vmem:[%s2583_s7 + $0x268] sm:$0xf0] }
  0x22   : > { %2458 = vmatpush.bf16.msra.mxu3 %v2407_v5  ;;  %1106 = vmatpush.bf16.msra.mxu0 %v2407_v5  ;;  %v2046_v5 = vor.u32 %v2377_v62, %v2045_v61  ;;  %v1905_v14 = vld [vmem:[%s2583_s7 + $0x78] sm:$0xf]  ;;  %v2342_v15 = vld [vmem:[%s2583_s7 + $0x88] sm:$0xf0]  ;;  %v1873_v34 = vld [vmem:[%s2583_s7 + $0x30] sm:$0xf] }
  0x23   : > { %v2333_v35 = vld [vmem:[%s2583_s7 + $0x40] sm:$0xf0]  ;;  %v2331_v36 = vld [vmem:[%s2583_s7 + $0x34] sm:$0xf]  ;;  %v1875_v37 = vld [vmem:[%s2583_s7 + $0x44] sm:$0xf0] }
  0x24   : > { %v1881_v38 = vld [vmem:[%s2583_s7 + $0x38] sm:$0xf]  ;;  %v2334_v39 = vld [vmem:[%s2583_s7 + $0x48] sm:$0xf0]  ;;  %v1874_v41 = vor.u32 %v2333_v35, %v1873_v34  ;;  %v2343_v59 = vld [vmem:[%s2583_s7 + $0x90] sm:$0xf0] }
  0x25   : > { %2459 = vmatpush.bf16.msra.mxu1 %v2406_v6  ;;  %2460 = vmatpush.bf16.msra.mxu2 %v2406_v6  ;;  %v2341_v60 = vld [vmem:[%s2583_s7 + $0x84] sm:$0xf]  ;;  %v1915_v61 = vld [vmem:[%s2583_s7 + $0x94] sm:$0xf0]  ;;  %v1921_v62 = vld [vmem:[%s2583_s7 + $0x88] sm:$0xf] }
  0x26   : > { %2461 = vmatpush.bf16.msra.mxu3 %v2406_v6  ;;  %1107 = vmatpush.bf16.msra.mxu0 %v2406_v6  ;;  %v2126_v6 = vor.u32 %v2397_v0, %v2125_v63  ;;  %v2344_v63 = vld [vmem:[%s2583_s7 + $0x98] sm:$0xf0] }
  0x29   : > { %2462 = vmatpush.bf16.msra.mxu1 %v2405_v7  ;;  %2463 = vmatpush.bf16.msra.mxu2 %v2405_v7 }
  0x2a   : > { %2464 = vmatpush.bf16.msra.mxu3 %v2405_v7  ;;  %1108 = vmatpush.bf16.msra.mxu0 %v2405_v7  ;;  %v1886_v7 = vor.u32 %v2337_v2, %v1885_v1  ;;  %v1918_v2 = vor.u32 %v2341_v60, %v1915_v61 }
  0x2c   : > { %1129 = vmatmul.bf16.vlgmr.msra.gmra.mxu1 %v1926_v18  ;;  %1149 = vmatmul.bf16.vlgmr.msra.gmra.mxu2 %v2006_v19  ;;  %v2146_v18 = vor.u32 %v2402_v13, %v2145_v12  ;;  %v1906_v19 = vor.u32 %v2342_v15, %v1905_v14 }
  0x2d   : > { %1279 = vmatpush.bf16.msrb.mxu2 %v2428_v16  ;;  %1169 = vmatmul.bf16.vlgmr.msra.gmra.mxu3 %v2086_v20  ;;  %v1986_v16 = vor.u32 %v2362_v9, %v1985_v8  ;;  %v2325_v20 = vld [vmem:[%s2583_s7 + $0x4] sm:$0xf]  ;;  %v2346_v8 = vld [vmem:[%s2583_s7 + $0xac] sm:$0xf]  ;;  %v1935_v9 = vld [vmem:[%s2583_s7 + $0xbc] sm:$0xf0] }
  0x2e   : > { %1368 = vmatpush.bf16.msrb.mxu3 %v2436_v17  ;;  %1109 = vmatmul.bf16.vlgmr.msra.gmra.mxu0 %v1846_v21  ;;  %v2066_v17 = vor.u32 %v2382_v11, %v2065_v10  ;;  %v1847_v21 = vld [vmem:[%s2583_s7 + $0x14] sm:$0xf0]  ;;  %v1941_v10 = vld [vmem:[%s2583_s7 + $0xb0] sm:$0xf]  ;;  %v2349_v11 = vld [vmem:[%s2583_s7 + $0xc0] sm:$0xf0]  ;;  %v1938_v15 = vor.u32 %v2346_v8, %v1935_v9 }
  0x2f   : > { %1190 = vmatpush.bf16.msrb.mxu1 %v2420_v22  ;;  %1461 = vmatpush.bf16.msrb.mxu0 %v2440_v23  ;;  %v1853_v22 = vld [vmem:[%s2583_s7 + $0x8] sm:$0xf]  ;;  %v2328_v23 = vld [vmem:[%s2583_s7 + $0x18] sm:$0xf0] }
  0x31   : > { %1280 = vmatpush.bf16.msrb.mxu2 %v2427_v24  ;;  %v2326_v24 = vld [vmem:[%s2583_s7 + $0xc] sm:$0xf] }
  0x32   : > { %1369 = vmatpush.bf16.msrb.mxu3 %v2435_v25  ;;  %v1855_v25 = vld [vmem:[%s2583_s7 + $0x1c] sm:$0xf0] }
  0x33   : > { %1191 = vmatpush.bf16.msrb.mxu1 %v2419_v26  ;;  %1462 = vmatpush.bf16.msrb.mxu0 %v2439_v27  ;;  %v1861_v26 = vld [vmem:[%s2583_s7 + $0x10] sm:$0xf]  ;;  %v2329_v27 = vld [vmem:[%s2583_s7 + $0x20] sm:$0xf0] }
  0x35   : > { %1281 = vmatpush.bf16.msrb.mxu2 %v2426_v28  ;;  %v1850_v28 = vor.u32 %v2325_v20, %v1847_v21 }
  0x36   : > { %1370 = vmatpush.bf16.msrb.mxu3 %v2434_v29  ;;  %v1854_v29 = vor.u32 %v2328_v23, %v1853_v22  ;;  %v2350_v22 = vld [vmem:[%s2583_s7 + $0xcc] sm:$0xf]  ;;  %v1947_v23 = vld [vmem:[%s2583_s7 + $0xdc] sm:$0xf0] }
  0x37   : > { %1192 = vmatpush.bf16.msrb.mxu1 %v2418_v30  ;;  %1463 = vmatpush.bf16.msrb.mxu0 %v2438_v31  ;;  %v1858_v30 = vor.u32 %v2326_v24, %v1855_v25  ;;  %v1862_v31 = vor.u32 %v2329_v27, %v1861_v26  ;;  %v1953_v24 = vld [vmem:[%s2583_s7 + $0xd0] sm:$0xf]  ;;  %v2353_v25 = vld [vmem:[%s2583_s7 + $0xe0] sm:$0xf0]  ;;  %v2351_v26 = vld [vmem:[%s2583_s7 + $0xd4] sm:$0xf] }
  0x38   : > { %v1955_v27 = vld [vmem:[%s2583_s7 + $0xe4] sm:$0xf0] }
  0x39   : > { %1282 = vmatpush.bf16.msrb.mxu2 %v2425_v32  ;;  %v2330_v32 = vld [vmem:[%s2583_s7 + $0x2c] sm:$0xf]  ;;  %v1958_v35 = vor.u32 %v2351_v26, %v1955_v27  ;;  %v2013_v26 = vld [vmem:[%s2583_s7 + $0x148] sm:$0xf]  ;;  %v2368_v27 = vld [vmem:[%s2583_s7 + $0x158] sm:$0xf0] }
  0x3a   : > { %1371 = vmatpush.bf16.msrb.mxu3 %v2433_v33  ;;  %v1867_v33 = vld [vmem:[%s2583_s7 + $0x3c] sm:$0xf0] }
  0x3b   : > { %1193 = vmatpush.bf16.msrb.mxu1 %v2417_v42  ;;  %1464 = vmatpush.bf16.msrb.mxu0 %v2437_v53  ;;  %v1870_v40 = vor.u32 %v2330_v32, %v1867_v33  ;;  %v1878_v42 = vor.u32 %v2331_v36, %v1875_v37  ;;  %v1950_v32 = vor.u32 %v2350_v22, %v1947_v23 }
  0x3c   : > { %1134 = vmatmul.bf16.gmra.mxu1 %v1946_v45  ;;  %1154 = vmatmul.bf16.gmra.mxu2 %v2026_v46  ;;  %v1887_v45 = vld [vmem:[%s2583_s7 + $0x64] sm:$0xf0]  ;;  %v1893_v46 = vld [vmem:[%s2583_s7 + $0x58] sm:$0xf]  ;;  %v1954_v33 = vor.u32 %v2353_v25, %v1953_v24  ;;  %v2365_v24 = vld [vmem:[%s2583_s7 + $0x144] sm:$0xf] }
  0x3d   : > { %1283 = vmatpush.bf16.msrb.mxu2 %v2424_v43  ;;  %1174 = vmatmul.bf16.gmra.mxu3 %v2106_v47  ;;  %v1882_v43 = vor.u32 %v2334_v39, %v1881_v38  ;;  %v2338_v47 = vld [vmem:[%s2583_s7 + $0x68] sm:$0xf0]  ;;  %v2007_v25 = vld [vmem:[%s2583_s7 + $0x154] sm:$0xf0] }
  0x3e   : > { %1372 = vmatpush.bf16.msrb.mxu3 %v2432_v44  ;;  %1114 = vmatmul.bf16.gmra.mxu0 %v1866_v48  ;;  %v2335_v44 = vld [vmem:[%s2583_s7 + $0x54] sm:$0xf]  ;;  %v2336_v48 = vld [vmem:[%s2583_s7 + $0x5c] sm:$0xf]  ;;  %v1894_v53 = vor.u32 %v2338_v47, %v1893_v46  ;;  %v1975_v47 = vld [vmem:[%s2583_s7 + $0x10c] sm:$0xf0] }
  0x3f   : > { %1194 = vmatpush.bf16.msrb.mxu1 %v2416_v49  ;;  %v1895_v49 = vld [vmem:[%s2583_s7 + $0x6c] sm:$0xf0]  ;;  %v2356_v46 = vld [vmem:[%s2583_s7 + $0xfc] sm:$0xf] }
  0x41   : > { %1284 = vmatpush.bf16.msrb.mxu2 %v2423_v50  ;;  %v1901_v50 = vld [vmem:[%s2583_s7 + $0x60] sm:$0xf] }
  0x42   : > { %1373 = vmatpush.bf16.msrb.mxu3 %v2431_v51  ;;  %v2339_v51 = vld [vmem:[%s2583_s7 + $0x70] sm:$0xf0] }
  0x43   : > { %1195 = vmatpush.bf16.msrb.mxu1 %v2415_v52  ;;  %v1890_v52 = vor.u32 %v2335_v44, %v1887_v45  ;;  %v1973_v44 = vld [vmem:[%s2583_s7 + $0xf8] sm:$0xf]  ;;  %v2358_v45 = vld [vmem:[%s2583_s7 + $0x108] sm:$0xf0] }
  0x45   : > { %1285 = vmatpush.bf16.msrb.mxu2 %v2422_v54  ;;  %v1898_v54 = vor.u32 %v2336_v48, %v1895_v49  ;;  %v1981_v48 = vld [vmem:[%s2583_s7 + $0x100] sm:$0xf]  ;;  %v2359_v49 = vld [vmem:[%s2583_s7 + $0x110] sm:$0xf0] }
  0x46   : > { %1374 = vmatpush.bf16.msrb.mxu3 %v2430_v55  ;;  %v1902_v55 = vor.u32 %v2339_v51, %v1901_v50 }
  0x47   : > { %1196 = vmatpush.bf16.msrb.mxu1 %v2414_v56  ;;  %v2340_v56 = vld [vmem:[%s2583_s7 + $0x7c] sm:$0xf] }
  0x49   : > { %1286 = vmatpush.bf16.msrb.mxu2 %v2421_v57  ;;  %v1907_v57 = vld [vmem:[%s2583_s7 + $0x8c] sm:$0xf0] }
  0x4a   : > { %1375 = vmatpush.bf16.msrb.mxu3 %v2429_v58  ;;  %v1913_v58 = vld [vmem:[%s2583_s7 + $0x80] sm:$0xf]  ;;  %v1910_v0 = vor.u32 %v2340_v56, %v1907_v57  ;;  %v1982_v56 = vor.u32 %v2359_v49, %v1981_v48 }
  0x4b   : > { %1197 = vmatpush.bf16.msrb.mxu1 %v2413_v3  ;;  %v1914_v1 = vor.u32 %v2343_v59, %v1913_v58  ;;  %v1922_v3 = vor.u32 %v2344_v63, %v1921_v62  ;;  %v2360_v62 = vld [vmem:[%s2583_s7 + $0x11c] sm:$0xf]  ;;  %v1987_v63 = vld [vmem:[%s2583_s7 + $0x12c] sm:$0xf0] }
  0x4c   : > { %1139 = vmatmul.bf16.gmra.mxu1 %v1966_v4  ;;  %1159 = vmatmul.bf16.gmra.mxu2 %v2046_v5  ;;  %v2345_v4 = vld [vmem:[%s2583_s7 + $0xa4] sm:$0xf]  ;;  %v1927_v5 = vld [vmem:[%s2583_s7 + $0xb4] sm:$0xf0]  ;;  %v1990_v8 = vor.u32 %v2360_v62, %v1987_v63  ;;  %v2854_v62 = vld [vmem:[%s3030_s2] ss:$0 sm:$0xff] }
  0x4d   : > { %1179 = vmatmul.bf16.gmra.mxu3 %v2126_v6  ;;  %v1933_v6 = vld [vmem:[%s2583_s7 + $0xa8] sm:$0xf]  ;;  %v1930_v12 = vor.u32 %v2345_v4, %v1927_v5  ;;  %v2364_v5 = vld [vmem:[%s2583_s7 + $0x138] sm:$0xf0] }
  0x4e   : > { %1119 = vmatmul.bf16.gmra.mxu0 %v1886_v7  ;;  %v2348_v7 = vld [vmem:[%s2583_s7 + $0xb8] sm:$0xf0]  ;;  %v2001_v4 = vld [vmem:[%s2583_s7 + $0x128] sm:$0xf] }
  0x4f   : > { %v1934_v13 = vor.u32 %v2348_v7, %v1933_v6 }
  0x5c   : > { %1144 = vmatmul.bf16.gmra.mxu1 %v1986_v16  ;;  %1164 = vmatmul.bf16.gmra.mxu2 %v2066_v17  ;;  %v1942_v16 = vor.u32 %v2349_v11, %v1941_v10 }
  0x5d   : > { %1184 = vmatmul.bf16.gmra.mxu3 %v2146_v18 }
  0x5e   : > { %1124 = vmatmul.bf16.gmra.mxu0 %v1906_v19 }
  0x6c   : > { %1198 = vmatmul.bf16.vlgmr.msrb.gmra.mxu1 %v1850_v28  ;;  %1287 = vmatmul.bf16.vlgmr.msrb.gmra.mxu2 %v1854_v29  ;;  %v1961_v28 = vld [vmem:[%s2583_s7 + $0xd8] sm:$0xf]  ;;  %v2354_v29 = vld [vmem:[%s2583_s7 + $0xe8] sm:$0xf0] }
  0x6d   : > { %1376 = vmatmul.bf16.vlgmr.msrb.gmra.mxu3 %v1858_v30  ;;  %v1962_v36 = vor.u32 %v2354_v29, %v1961_v28  ;;  %v2366_v28 = vld [vmem:[%s2583_s7 + $0x14c] sm:$0xf]  ;;  %v2015_v29 = vld [vmem:[%s2583_s7 + $0x15c] sm:$0xf0] }
  0x6e   : > { %2307 = vmatmul.msk.bf16.vlgmr.msrb.gmra.mxu0 %vm1052_vm0, %v1862_v31 }
  0x7c   : > { %1203 = vmatmul.bf16.gmra.mxu1 %v1870_v40  ;;  %1292 = vmatmul.bf16.gmra.mxu2 %v1874_v41 }
  0x7d   : > { %1381 = vmatmul.bf16.gmra.mxu3 %v1878_v42  ;;  %v2355_v42 = vld [vmem:[%s2583_s7 + $0xf4] sm:$0xf] }
  0x7e   : > { %2308 = vmatmul.msk.bf16.gmra.mxu0 %vm1052_vm0, %v1882_v43  ;;  %v1967_v43 = vld [vmem:[%s2583_s7 + $0x104] sm:$0xf0] }
  0x8c   : > { %1208 = vmatmul.bf16.gmra.mxu1 %v1890_v52  ;;  %1297 = vmatmul.bf16.gmra.mxu2 %v1894_v53  ;;  %v1970_v52 = vor.u32 %v2355_v42, %v1967_v43  ;;  %v1974_v53 = vor.u32 %v2358_v45, %v1973_v44  ;;  %v2010_v42 = vor.u32 %v2365_v24, %v2007_v25 }
  0x8d   : > { %1386 = vmatmul.bf16.gmra.mxu3 %v1898_v54  ;;  %v2014_v43 = vor.u32 %v2368_v27, %v2013_v26  ;;  %v2018_v45 = vor.u32 %v2366_v28, %v2015_v29 }
  0x8e   : > { %2309 = vmatmul.msk.bf16.gmra.mxu0 %vm1052_vm0, %v1902_v55  ;;  %v1978_v55 = vor.u32 %v2356_v46, %v1975_v47 }
  0x9c   : > { %1213 = vmatmul.bf16.gmra.mxu1 %v1910_v0  ;;  %1302 = vmatmul.bf16.gmra.mxu2 %v1914_v1  ;;  %v1993_v0 = vld [vmem:[%s2583_s7 + $0x120] sm:$0xf]  ;;  %v2363_v1 = vld [vmem:[%s2583_s7 + $0x130] sm:$0xf0] }
  0x9d   : > { %1391 = vmatmul.bf16.gmra.mxu3 %v1918_v2  ;;  %v2361_v2 = vld [vmem:[%s2583_s7 + $0x124] sm:$0xf]  ;;  %v1994_v9 = vor.u32 %v2363_v1, %v1993_v0  ;;  %v2370_v1 = vld [vmem:[%s2583_s7 + $0x16c] sm:$0xf] }
  0x9e   : > { %2310 = vmatmul.msk.bf16.gmra.mxu0 %vm1052_vm0, %v1922_v3  ;;  %v1995_v3 = vld [vmem:[%s2583_s7 + $0x134] sm:$0xf0] }
  0x9f   : > { %v1998_v11 = vor.u32 %v2361_v2, %v1995_v3  ;;  %v2027_v2 = vld [vmem:[%s2583_s7 + $0x17c] sm:$0xf0]  ;;  %v2373_v3 = vld [vmem:[%s2583_s7 + $0x180] sm:$0xf0] }
  0xa0   : > { %v2030_v27 = vor.u32 %v2370_v1, %v2027_v2  ;;  %v2378_v1 = vld [vmem:[%s2583_s7 + $0x1a8] sm:$0xf0]  ;;  %v2376_v2 = vld [vmem:[%s2583_s7 + $0x19c] sm:$0xf] }
  0xa9   : > { %v2748_v14 = vpop.f32.mrf.mxu1 }
  0xab   : > { %v2750_v17 = vpop.f32.mrf.mxu0 }
  0xac   : > { %1218 = vmatmul.bf16.gmra.mxu1 %v1930_v12  ;;  %1307 = vmatmul.bf16.gmra.mxu2 %v1934_v13  ;;  %v2002_v12 = vor.u32 %v2364_v5, %v2001_v4  ;;  %v2371_v4 = vld [vmem:[%s2583_s7 + $0x174] sm:$0xf] }
  0xad   : > { %1396 = vmatmul.bf16.gmra.mxu3 %v1938_v15 }
  0xae   : > { %2311 = vmatmul.msk.bf16.gmra.mxu0 %vm1052_vm0, %v1942_v16 }
  0xaf   : > { %v2753_v18 = vpop.f32.mrf.mxu2 }
  0xb0   : > { %v2755_v19 = vpop.f32.mrf.mxu3 }
  0xb1   : > { %v2757_v20 = vpop.f32.mrf.mxu1 }
  0xb3   : > { %v2759_v21 = vpop.f32.mrf.mxu0 }
  0xb7   : > { %v2769_v30 = vpop.f32.mrf.mxu2 }
  0xb8   : > { %v2771_v31 = vpop.f32.mrf.mxu3 }
  0xb9   : > { %v2773_v34 = vpop.f32.mrf.mxu1 }
  0xbb   : > { %v2775_v37 = vpop.f32.mrf.mxu0 }
  0xbc   : > { %1223 = vmatmul.bf16.gmra.mxu1 %v1950_v32  ;;  %1312 = vmatmul.bf16.gmra.mxu2 %v1954_v33  ;;  %v2021_v32 = vld [vmem:[%s2583_s7 + $0x150] sm:$0xf]  ;;  %v2369_v33 = vld [vmem:[%s2583_s7 + $0x160] sm:$0xf0] }
  0xbd   : > { %1401 = vmatmul.bf16.gmra.mxu3 %v1958_v35  ;;  %v2022_v46 = vor.u32 %v2369_v33, %v2021_v32 }
  0xbe   : > { %2312 = vmatmul.msk.bf16.gmra.mxu0 %vm1052_vm0, %v1962_v36 }
  0xbf   : > { %v2778_v38 = vpop.f32.mrf.mxu2 }
  0xc0   : > { %v2780_v39 = vpop.f32.mrf.mxu3 }
  0xc1   : > { %v2782_v40 = vpop.f32.mrf.mxu1 }
  0xc3   : > { %v2784_v41 = vpop.f32.mrf.mxu0 }
  0xc7   : > { %v2794_v50 = vpop.f32.mrf.mxu2 }
  0xc8   : > { %v2796_v51 = vpop.f32.mrf.mxu3 }
  0xc9   : > { %v2798_v54 = vpop.f32.mrf.mxu1 }
  0xcb   : > { %v2800_v57 = vpop.f32.mrf.mxu0 }
  0xcc   : > { %1228 = vmatmul.bf16.gmra.mxu1 %v1970_v52  ;;  %1317 = vmatmul.bf16.gmra.mxu2 %v1974_v53 }
  0xcd   : > { %1406 = vmatmul.bf16.gmra.mxu3 %v1978_v55 }
  0xce   : > { %2313 = vmatmul.msk.bf16.gmra.mxu0 %vm1052_vm0, %v1982_v56 }
  0xcf   : > { %v2803_v58 = vpop.f32.mrf.mxu2 }
  0xd0   : > { %v2805_v59 = vpop.f32.mrf.mxu3 }
  0xd1   : > { %v2807_v60 = vpop.f32.mrf.mxu1 }
  0xd3   : > { %v2809_v61 = vpop.f32.mrf.mxu0 }
  0xd7   : > { %v2819_v6 = vpop.f32.mrf.mxu2 }
  0xd8   : > { %v2821_v7 = vpop.f32.mrf.mxu3 }
  0xd9   : > { %v2823_v10 = vpop.f32.mrf.mxu1 }
  0xdb   : > { %v2825_v13 = vpop.f32.mrf.mxu0 }
  0xdc   : > { %1233 = vmatmul.bf16.gmra.mxu1 %v1990_v8  ;;  %1322 = vmatmul.bf16.gmra.mxu2 %v1994_v9  ;;  %v2035_v9 = vld [vmem:[%s2583_s7 + $0x184] sm:$0xf0] }
  0xdd   : > { %1411 = vmatmul.bf16.gmra.mxu3 %v1998_v11  ;;  %v2041_v11 = vld [vmem:[%s2583_s7 + $0x178] sm:$0xf]  ;;  %v2038_v32 = vor.u32 %v2371_v4, %v2035_v9  ;;  %v2061_v4 = vld [vmem:[%s2583_s7 + $0x1a0] sm:$0xf] }
  0xde   : > { %2314 = vmatmul.msk.bf16.gmra.mxu0 %vm1052_vm0, %v2002_v12  ;;  %v2374_v12 = vld [vmem:[%s2583_s7 + $0x188] sm:$0xf0] }
  0xdf   : > { %v2828_v15 = vpop.f32.mrf.mxu2  ;;  %v2042_v33 = vor.u32 %v2374_v12, %v2041_v11 }
  0xe0   : > { %v2830_v16 = vpop.f32.mrf.mxu3 }
  0xe1   : > { %v2832_v22 = vpop.f32.mrf.mxu1 }
  0xe3   : > { %v2834_v23 = vpop.f32.mrf.mxu0 }
  0xe7   : > { %v2844_v35 = vpop.f32.mrf.mxu2 }
  0xe8   : > { %v2846_v36 = vpop.f32.mrf.mxu3 }
  0xe9   : > { %v1199_v44 = vpop.f32.mrf.mxu1 }
  0xea   : > { %v1200_v48 = vadd.f32 %v1199_v44, %v2750_v17  ;;  %v2033_v17 = vld [vmem:[%s2583_s7 + $0x170] sm:$0xf] }
  0xeb   : > { %v1466_v47 = vpop.f32.mrf.mxu0  ;;  %v2034_v28 = vor.u32 %v2373_v3, %v2033_v17  ;;  %v2055_v3 = vld [vmem:[%s2583_s7 + $0x1ac] sm:$0xf0] }
  0xec   : > { %1238 = vmatmul.bf16.gmra.mxu1 %v2010_v42  ;;  %1327 = vmatmul.bf16.gmra.mxu2 %v2014_v43 }
  0xed   : > { %1416 = vmatmul.bf16.gmra.mxu3 %v2018_v45 }
  0xee   : > { %2315 = vmatmul.msk.bf16.gmra.mxu0 %vm1052_vm0, %v2022_v46 }
  0xef   : > { %v1288_v49 = vpop.f32.mrf.mxu2 }
  0xf0   : > { %v1289_v52 = vadd.f32 %v1288_v49, %v1200_v48  ;;  %v1377_v53 = vpop.f32.mrf.mxu3 }
  0xf1   : > { %v1201_v55 = vpop.f32.mrf.mxu1 }
  0xf2   : > { %v1378_v56 = vadd.f32 %v1377_v53, %v1289_v52  ;;  %v1202_v8 = vadd.f32 %v1201_v55, %v2759_v21 }
  0xf3   : > { %v1468_v63 = vpop.f32.mrf.mxu0 }
  0xf4   : > { %v1467_v0 = vadd.f32 %v1466_v47, %v1378_v56  ;;  %v2375_v56 = vld [vmem:[%s2583_s7 + $0x194] sm:$0xf] }
  0xf6   : > { %v1554_v5 = vadd.f32 %v2854_v62, %v1467_v0  ;;  %v2053_v0 = vld [vmem:[%s2583_s7 + $0x198] sm:$0xf] }
  0xf7   : > { %v1290_v24 = vpop.f32.mrf.mxu2 }
  0xf8   : > { %1586 = vst [vmem:[%s2861_s4] sm:$0xff] %v1554_v5  ;;  %v1291_v25 = vadd.f32 %v1290_v24, %v1202_v8  ;;  %v1379_v26 = vpop.f32.mrf.mxu3  ;;  %v2379_v5 = vld [vmem:[%s2583_s7 + $0x1b0] sm:$0xf0]  ;;  %v2054_v24 = vor.u32 %v2378_v1, %v2053_v0  ;;  %v2081_v0 = vld [vmem:[%s2583_s7 + $0x1c8] sm:$0xf]  ;;  %v2384_v1 = vld [vmem:[%s2583_s7 + $0x1d8] sm:$0xf0] }
  0xf9   : > { %v1204_v29 = vpop.f32.mrf.mxu1 }
  0xfa   : > { %v1380_v42 = vadd.f32 %v1379_v26, %v1291_v25  ;;  %v1205_v45 = vadd.f32 %v1204_v29, %v2775_v37  ;;  %v2058_v26 = vor.u32 %v2376_v2, %v2055_v3 }
  0xfb   : > { %v1471_v43 = vpop.f32.mrf.mxu0 }
  0xfc   : > { %v1469_v44 = vadd.f32 %v1468_v63, %v1380_v42  ;;  %1243 = vmatmul.bf16.gmra.mxu1 %v2030_v27  ;;  %1332 = vmatmul.bf16.gmra.mxu2 %v2034_v28  ;;  %v2047_v63 = vld [vmem:[%s2583_s7 + $0x1a4] sm:$0xf0]  ;;  %v2062_v27 = vor.u32 %v2379_v5, %v2061_v4 }
  0xfd   : > { %1421 = vmatmul.bf16.gmra.mxu3 %v2038_v32  ;;  %v2050_v12 = vor.u32 %v2375_v56, %v2047_v63  ;;  %v2075_v63 = vld [vmem:[%s2583_s7 + $0x1d4] sm:$0xf0] }
  0xfe   : > { %2316 = vmatmul.msk.bf16.gmra.mxu0 %vm1052_vm0, %v2042_v33  ;;  %v1555_v21 = vadd.f32 %v2854_v62, %v1469_v44 }
  0xff   : > { %v1293_v46 = vpop.f32.mrf.mxu2 }
 0x100   : > { %1587 = vst [vmem:[%s2861_s4 + $0x8] sm:$0xff] %v1555_v21  ;;  %v1294_v47 = vadd.f32 %v1293_v46, %v1205_v45  ;;  %v1382_v48 = vpop.f32.mrf.mxu3 }
 0x101   : > { %v1206_v49 = vpop.f32.mrf.mxu1 }
 0x102   : > { %v1383_v52 = vadd.f32 %v1382_v48, %v1294_v47  ;;  %v1207_v37 = vadd.f32 %v1206_v49, %v2784_v41  ;;  %v2380_v48 = vld [vmem:[%s2583_s7 + $0x1bc] sm:$0xf]  ;;  %v2067_v49 = vld [vmem:[%s2583_s7 + $0x1cc] sm:$0xf0] }
 0x103   : > { %v1473_v53 = vpop.f32.mrf.mxu0  ;;  %v2070_v3 = vor.u32 %v2380_v48, %v2067_v49  ;;  %v2101_v48 = vld [vmem:[%s2583_s7 + $0x1f0] sm:$0xf]  ;;  %v2389_v49 = vld [vmem:[%s2583_s7 + $0x200] sm:$0xf0] }
 0x104   : > { %v1472_v55 = vadd.f32 %v1471_v43, %v1383_v52  ;;  %v2073_v52 = vld [vmem:[%s2583_s7 + $0x1c0] sm:$0xf] }
 0x106   : > { %v1556_v17 = vadd.f32 %v2854_v62, %v1472_v55  ;;  %v2381_v55 = vld [vmem:[%s2583_s7 + $0x1c4] sm:$0xf] }
 0x107   : > { %v1295_v8 = vpop.f32.mrf.mxu2 }
 0x108   : > { %1588 = vst [vmem:[%s2861_s4 + $0x10] sm:$0xff] %v1556_v17  ;;  %v1296_v9 = vadd.f32 %v1295_v8, %v1207_v37  ;;  %v1384_v11 = vpop.f32.mrf.mxu3  ;;  %v2078_v8 = vor.u32 %v2381_v55, %v2075_v63 }
 0x109   : > { %v1209_v25 = vpop.f32.mrf.mxu1 }
 0x10a   : > { %v1385_v28 = vadd.f32 %v1384_v11, %v1296_v9  ;;  %v1210_v33 = vadd.f32 %v1209_v25, %v2800_v57  ;;  %v2082_v9 = vor.u32 %v2384_v1, %v2081_v0  ;;  %v2102_v1 = vor.u32 %v2389_v49, %v2101_v48 }
 0x10b   : > { %v1476_v29 = vpop.f32.mrf.mxu0 }
 0x10c   : > { %v1474_v32 = vadd.f32 %v1473_v53, %v1385_v28  ;;  %1248 = vmatmul.bf16.gmra.mxu1 %v2050_v12  ;;  %1337 = vmatmul.bf16.gmra.mxu2 %v2054_v24  ;;  %v2383_v53 = vld [vmem:[%s2583_s7 + $0x1d0] sm:$0xf0] }
 0x10d   : > { %1426 = vmatmul.bf16.gmra.mxu3 %v2058_v26  ;;  %v2074_v4 = vor.u32 %v2383_v53, %v2073_v52 }
 0x10e   : > { %2317 = vmatmul.msk.bf16.gmra.mxu0 %vm1052_vm0, %v2062_v27  ;;  %v1557_v41 = vadd.f32 %v2854_v62, %v1474_v32 }
 0x10f   : > { %v1298_v42 = vpop.f32.mrf.mxu2 }
 0x110   : > { %1589 = vst [vmem:[%s2861_s4 + $0x18] sm:$0xff] %v1557_v41  ;;  %v1299_v43 = vadd.f32 %v1298_v42, %v1210_v33  ;;  %v1387_v44 = vpop.f32.mrf.mxu3  ;;  %v2385_v42 = vld [vmem:[%s2583_s7 + $0x1e4] sm:$0xf] }
 0x111   : > { %v1211_v21 = vpop.f32.mrf.mxu1 }
 0x112   : > { %v1388_v45 = vadd.f32 %v1387_v44, %v1299_v43  ;;  %v1212_v57 = vadd.f32 %v1211_v21, %v2809_v61  ;;  %v2087_v43 = vld [vmem:[%s2583_s7 + $0x1f4] sm:$0xf0]  ;;  %v2093_v44 = vld [vmem:[%s2583_s7 + $0x1e8] sm:$0xf]  ;;  %v2388_v21 = vld [vmem:[%s2583_s7 + $0x1f8] sm:$0xf0] }
 0x113   : > { %v1478_v46 = vpop.f32.mrf.mxu0 }
 0x114   : > { %v1477_v47 = vadd.f32 %v1476_v29, %v1388_v45  ;;  %v2386_v45 = vld [vmem:[%s2583_s7 + $0x1ec] sm:$0xf] }
 0x116   : > { %v1558_v56 = vadd.f32 %v2854_v62, %v1477_v47  ;;  %v2095_v47 = vld [vmem:[%s2583_s7 + $0x1fc] sm:$0xf0] }
 0x117   : > { %v1300_v2 = vpop.f32.mrf.mxu2  ;;  %v2098_v0 = vor.u32 %v2386_v45, %v2095_v47 }
 0x118   : > { %1590 = vst [vmem:[%s2861_s4 + $0x20] sm:$0xff] %v1558_v56  ;;  %v1301_v17 = vadd.f32 %v1300_v2, %v1212_v57  ;;  %v1389_v37 = vpop.f32.mrf.mxu3  ;;  %v2090_v56 = vor.u32 %v2385_v42, %v2087_v43  ;;  %v2094_v57 = vor.u32 %v2388_v21, %v2093_v44 }
 0x119   : > { %v1214_v5 = vpop.f32.mrf.mxu1 }
 0x11a   : > { %v1390_v11 = vadd.f32 %v1389_v37, %v1301_v17  ;;  %v1215_v25 = vadd.f32 %v1214_v5, %v2825_v13 }
 0x11b   : > { %v1481_v12 = vpop.f32.mrf.mxu0 }
 0x11c   : > { %v1479_v24 = vadd.f32 %v1478_v46, %v1390_v11  ;;  %1253 = vmatmul.bf16.gmra.mxu1 %v2070_v3  ;;  %1342 = vmatmul.bf16.gmra.mxu2 %v2074_v4 }
 0x11d   : > { %1431 = vmatmul.bf16.gmra.mxu3 %v2078_v8 }
 0x11e   : > { %2318 = vmatmul.msk.bf16.gmra.mxu0 %vm1052_vm0, %v2082_v9  ;;  %v1559_v61 = vadd.f32 %v2854_v62, %v1479_v24 }
 0x11f   : > { %v1303_v26 = vpop.f32.mrf.mxu2 }
 0x120   : > { %1591 = vst [vmem:[%s2861_s4 + $0x28] sm:$0xff] %v1559_v61  ;;  %v1304_v27 = vadd.f32 %v1303_v26, %v1215_v25  ;;  %v1392_v28 = vpop.f32.mrf.mxu3  ;;  %v2390_v61 = vld [vmem:[%s2583_s7 + $0x20c] sm:$0xf]  ;;  %v2107_v25 = vld [vmem:[%s2583_s7 + $0x21c] sm:$0xf0] }
 0x121   : > { %v1216_v29 = vpop.f32.mrf.mxu1  ;;  %v2113_v26 = vld [vmem:[%s2583_s7 + $0x210] sm:$0xf]  ;;  %v2110_v21 = vor.u32 %v2390_v61, %v2107_v25 }
 0x122   : > { %v1393_v32 = vadd.f32 %v1392_v28, %v1304_v27  ;;  %v1217_v13 = vadd.f32 %v1216_v29, %v2834_v23  ;;  %v2393_v27 = vld [vmem:[%s2583_s7 + $0x220] sm:$0xf0]  ;;  %v2391_v28 = vld [vmem:[%s2583_s7 + $0x214] sm:$0xf] }
 0x123   : > { %v1483_v41 = vpop.f32.mrf.mxu0  ;;  %v2114_v45 = vor.u32 %v2393_v27, %v2113_v26 }
 0x124   : > { %v1482_v33 = vadd.f32 %v1481_v12, %v1393_v32  ;;  %v2115_v32 = vld [vmem:[%s2583_s7 + $0x224] sm:$0xf0] }
 0x126   : > { %v1560_v46 = vadd.f32 %v2854_v62, %v1482_v33  ;;  %v2394_v33 = vld [vmem:[%s2583_s7 + $0x228] sm:$0xf0] }
 0x127   : > { %v1305_v52 = vpop.f32.mrf.mxu2 }
 0x128   : > { %1592 = vst [vmem:[%s2861_s4 + $0x30] sm:$0xff] %v1560_v46  ;;  %v1306_v53 = vadd.f32 %v1305_v52, %v1217_v13  ;;  %v1394_v55 = vpop.f32.mrf.mxu3  ;;  %v2118_v13 = vor.u32 %v2391_v28, %v2115_v32 }
 0x129   : > { %v1219_v63 = vpop.f32.mrf.mxu1 }
 0x12a   : > { %v1395_v2 = vadd.f32 %v1394_v55, %v1306_v53  ;;  %v1220_v3 = vadd.f32 %v1219_v63, %v2748_v14 }
 0x12b   : > { %v1486_v17 = vpop.f32.mrf.mxu0 }
 0x12c   : > { %v1484_v37 = vadd.f32 %v1483_v41, %v1395_v2  ;;  %1258 = vmatmul.bf16.gmra.mxu1 %v2090_v56  ;;  %1347 = vmatmul.bf16.gmra.mxu2 %v2094_v57  ;;  %v2121_v41 = vld [vmem:[%s2583_s7 + $0x218] sm:$0xf] }
 0x12d   : > { %1436 = vmatmul.bf16.gmra.mxu3 %v2098_v0  ;;  %v2122_v47 = vor.u32 %v2394_v33, %v2121_v41 }
 0x12e   : > { %2319 = vmatmul.msk.bf16.gmra.mxu0 %vm1052_vm0, %v2102_v1  ;;  %v1561_v23 = vadd.f32 %v2854_v62, %v1484_v37  ;;  %v2127_v37 = vld [vmem:[%s2583_s7 + $0x244] sm:$0xf0] }
 0x12f   : > { %v1308_v4 = vpop.f32.mrf.mxu2 }
 0x130   : > { %1593 = vst [vmem:[%s2861_s4 + $0x38] sm:$0xff] %v1561_v23  ;;  %v1309_v5 = vadd.f32 %v1308_v4, %v1220_v3  ;;  %v1397_v8 = vpop.f32.mrf.mxu3  ;;  %v2133_v23 = vld [vmem:[%s2583_s7 + $0x238] sm:$0xf]  ;;  %v2398_v3 = vld [vmem:[%s2583_s7 + $0x248] sm:$0xf0] }
 0x131   : > { %v1221_v9 = vpop.f32.mrf.mxu1  ;;  %v2396_v4 = vld [vmem:[%s2583_s7 + $0x23c] sm:$0xf]  ;;  %v2134_v26 = vor.u32 %v2398_v3, %v2133_v23 }
 0x132   : > { %v1398_v11 = vadd.f32 %v1397_v8, %v1309_v5  ;;  %v1222_v14 = vadd.f32 %v1221_v9, %v2757_v20  ;;  %v2135_v8 = vld [vmem:[%s2583_s7 + $0x24c] sm:$0xf0]  ;;  %v2141_v9 = vld [vmem:[%s2583_s7 + $0x240] sm:$0xf] }
 0x133   : > { %v1488_v12 = vpop.f32.mrf.mxu0  ;;  %v2138_v28 = vor.u32 %v2396_v4, %v2135_v8 }
 0x134   : > { %v1487_v24 = vadd.f32 %v1486_v17, %v1398_v11  ;;  %v2395_v17 = vld [vmem:[%s2583_s7 + $0x234] sm:$0xf] }
 0x135   : > { %v2399_v11 = vld [vmem:[%s2583_s7 + $0x250] sm:$0xf0]  ;;  %v2130_v25 = vor.u32 %v2395_v17, %v2127_v37 }
 0x136   : > { %v1562_v29 = vadd.f32 %v2854_v62, %v1487_v24 }
 0x137   : > { %v1310_v42 = vpop.f32.mrf.mxu2 }
 0x138   : > { %1594 = vst [vmem:[%s2861_s4 + $0x40] sm:$0xff] %v1562_v29  ;;  %v1311_v43 = vadd.f32 %v1310_v42, %v1222_v14  ;;  %v1399_v44 = vpop.f32.mrf.mxu3  ;;  %v2142_v29 = vor.u32 %v2399_v11, %v2141_v9 }
 0x139   : > { %v1224_v46 = vpop.f32.mrf.mxu1 }
 0x13a   : > { %v1400_v48 = vadd.f32 %v1399_v44, %v1311_v43  ;;  %v1225_v53 = vadd.f32 %v1224_v46, %v2773_v34 }
 0x13b   : > { %v1491_v49 = vpop.f32.mrf.mxu0 }
 0x13c   : > { %v1489_v52 = vadd.f32 %v1488_v12, %v1400_v48  ;;  %1263 = vmatmul.bf16.gmra.mxu1 %v2110_v21  ;;  %1352 = vmatmul.bf16.gmra.mxu2 %v2114_v45  ;;  %v2147_v48 = vld [vmem:[%s2583_s7 + $0x26c] sm:$0xf0] }
 0x13d   : > { %1441 = vmatmul.bf16.gmra.mxu3 %v2118_v13 }
 0x13e   : > { %2320 = vmatmul.msk.bf16.gmra.mxu0 %vm1052_vm0, %v2122_v47  ;;  %v1563_v20 = vadd.f32 %v2854_v62, %v1489_v52  ;;  %v2400_v47 = vld [vmem:[%s2583_s7 + $0x25c] sm:$0xf]  ;;  %v2403_v52 = vld [vmem:[%s2583_s7 + $0x270] sm:$0xf0] }
 0x13f   : > { %v1313_v55 = vpop.f32.mrf.mxu2 }
 0x140   : > { %1595 = vst [vmem:[%s2861_s4 + $0x48] sm:$0xff] %v1563_v20  ;;  %v1314_v56 = vadd.f32 %v1313_v55, %v1225_v53  ;;  %v1402_v57 = vpop.f32.mrf.mxu3  ;;  %v2401_v20 = vld [vmem:[%s2583_s7 + $0x264] sm:$0xf]  ;;  %v2155_v55 = vld [vmem:[%s2583_s7 + $0x274] sm:$0xf0] }
 0x141   : > { %v1226_v63 = vpop.f32.mrf.mxu1  ;;  %v2158_v23 = vor.u32 %v2401_v20, %v2155_v55 }
 0x142   : > { %v1403_v0 = vadd.f32 %v1402_v57, %v1314_v56  ;;  %v1227_v34 = vadd.f32 %v1226_v63, %v2782_v40  ;;  %v2161_v56 = vld [vmem:[%s2583_s7 + $0x268] sm:$0xf]  ;;  %v2404_v57 = vld [vmem:[%s2583_s7 + $0x278] sm:$0xf0] }
 0x143   : > { %v1493_v1 = vpop.f32.mrf.mxu0  ;;  %v2162_v3 = vor.u32 %v2404_v57, %v2161_v56 }
 0x144   : > { %v1492_v2 = vadd.f32 %v1491_v49, %v1403_v0  ;;  %v2153_v49 = vld [vmem:[%s2583_s7 + $0x260] sm:$0xf] }
 0x145   : > { %v2154_v17 = vor.u32 %v2403_v52, %v2153_v49 }
 0x146   : > { %v1564_v5 = vadd.f32 %v2854_v62, %v1492_v2  ;;  %v2150_v2 = vor.u32 %v2400_v47, %v2147_v48 }
 0x147   : > { %v1315_v12 = vpop.f32.mrf.mxu2 }
 0x148   : > { %1596 = vst [vmem:[%s2861_s4 + $0x50] sm:$0xff] %v1564_v5  ;;  %v1316_v24 = vadd.f32 %v1315_v12, %v1227_v34  ;;  %v1404_v61 = vpop.f32.mrf.mxu3 }
 0x149   : > { %v1229_v27 = vpop.f32.mrf.mxu1 }
 0x14a   : > { %v1405_v14 = vadd.f32 %v1404_v61, %v1316_v24  ;;  %v1230_v33 = vadd.f32 %v1229_v27, %v2798_v54 }
 0x14b   : > { %v1496_v32 = vpop.f32.mrf.mxu0 }
 0x14c   : > { %v1494_v41 = vadd.f32 %v1493_v1, %v1405_v14  ;;  %1268 = vmatmul.bf16.gmra.mxu1 %v2130_v25  ;;  %1357 = vmatmul.bf16.gmra.mxu2 %v2134_v26 }
 0x14d   : > { %1446 = vmatmul.bf16.gmra.mxu3 %v2138_v28 }
 0x14e   : > { %2321 = vmatmul.msk.bf16.gmra.mxu0 %vm1052_vm0, %v2142_v29  ;;  %v1565_v40 = vadd.f32 %v2854_v62, %v1494_v41 }
 0x14f   : > { %v1318_v42 = vpop.f32.mrf.mxu2 }
 0x150   : > { %1597 = vst [vmem:[%s2861_s4 + $0x58] sm:$0xff] %v1565_v40  ;;  %v1319_v43 = vadd.f32 %v1318_v42, %v1230_v33  ;;  %v1407_v44 = vpop.f32.mrf.mxu3 }
 0x151   : > { %v1231_v21 = vpop.f32.mrf.mxu1 }
 0x152   : > { %v1408_v45 = vadd.f32 %v1407_v44, %v1319_v43  ;;  %v1232_v54 = vadd.f32 %v1231_v21, %v2807_v60 }
 0x153   : > { %v1498_v46 = vpop.f32.mrf.mxu0 }
 0x154   : > { %v1497_v13 = vadd.f32 %v1496_v32, %v1408_v45 }
 0x156   : > { %v1566_v53 = vadd.f32 %v2854_v62, %v1497_v13 }
 0x157   : > { %v1320_v63 = vpop.f32.mrf.mxu2 }
 0x158   : > { %1598 = vst [vmem:[%s2861_s4 + $0x60] sm:$0xff] %v1566_v53  ;;  %v1321_v0 = vadd.f32 %v1320_v63, %v1232_v54  ;;  %v1409_v1 = vpop.f32.mrf.mxu3 }
 0x159   : > { %v1234_v37 = vpop.f32.mrf.mxu1 }
 0x15a   : > { %v1410_v4 = vadd.f32 %v1409_v1, %v1321_v0  ;;  %v1235_v8 = vadd.f32 %v1234_v37, %v2823_v10 }
 0x15b   : > { %v1501_v5 = vpop.f32.mrf.mxu0 }
 0x15c   : > { %v1499_v34 = vadd.f32 %v1498_v46, %v1410_v4  ;;  %1273 = vmatmul.bf16.gmra.mxu1 %v2150_v2  ;;  %1362 = vmatmul.bf16.gmra.mxu2 %v2154_v17 }
 0x15d   : > { %1451 = vmatmul.bf16.gmra.mxu3 %v2158_v23 }
 0x15e   : > { %2322 = vmatmul.msk.bf16.gmra.mxu0 %vm1052_vm0, %v2162_v3  ;;  %v1567_v60 = vadd.f32 %v2854_v62, %v1499_v34 }
 0x15f   : > { %v1323_v9 = vpop.f32.mrf.mxu2 }
 0x160   : > { %1599 = vst [vmem:[%s2861_s4 + $0x68] sm:$0xff] %v1567_v60  ;;  %v1324_v11 = vadd.f32 %v1323_v9, %v1235_v8  ;;  %v1412_v12 = vpop.f32.mrf.mxu3 }
 0x161   : > { %v1236_v24 = vpop.f32.mrf.mxu1 }
 0x162   : > { %v1413_v61 = vadd.f32 %v1412_v12, %v1324_v11  ;;  %v1237_v28 = vadd.f32 %v1236_v24, %v2832_v22 }
 0x163   : > { %v1503_v25 = vpop.f32.mrf.mxu0 }
 0x164   : > { %v1502_v26 = vadd.f32 %v1501_v5, %v1413_v61 }
 0x166   : > { %v1568_v27 = vadd.f32 %v2854_v62, %v1502_v26 }
 0x167   : > { %v1325_v29 = vpop.f32.mrf.mxu2 }
 0x168   : > { %1600 = vst [vmem:[%s2861_s4 + $0x70] sm:$0xff] %v1568_v27  ;;  %v1326_v14 = vadd.f32 %v1325_v29, %v1237_v28  ;;  %v1414_v32 = vpop.f32.mrf.mxu3 }
 0x169   : > { %v1239_v41 = vpop.f32.mrf.mxu1 }
 0x16a   : > { %v1415_v40 = vadd.f32 %v1414_v32, %v1326_v14  ;;  %v1240_v43 = vadd.f32 %v1239_v41, %v2753_v18 }
 0x16b   : > { %v1506_v10 = vpop.f32.mrf.mxu0 }
 0x16c   : > { %v1504_v33 = vadd.f32 %v1503_v25, %v1415_v40 }
 0x16e   : > { %v1569_v42 = vadd.f32 %v2854_v62, %v1504_v33 }
 0x16f   : > { %v1328_v44 = vpop.f32.mrf.mxu2 }
 0x170   : > { %1601 = vst [vmem:[%s2861_s4 + $0x78] sm:$0xff] %v1569_v42  ;;  %v1329_v21 = vadd.f32 %v1328_v44, %v1240_v43  ;;  %v1417_v45 = vpop.f32.mrf.mxu3 }
 0x171   : > { %v1241_v46 = vpop.f32.mrf.mxu1 }
 0x172   : > { %v1418_v13 = vadd.f32 %v1417_v45, %v1329_v21  ;;  %v1242_v49 = vadd.f32 %v1241_v46, %v2769_v30 }
 0x173   : > { %v1508_v22 = vpop.f32.mrf.mxu0 }
 0x174   : > { %v1507_v47 = vadd.f32 %v1506_v10, %v1418_v13 }
 0x176   : > { %v1570_v48 = vadd.f32 %v2854_v62, %v1507_v47 }
 0x177   : > { %v1330_v52 = vpop.f32.mrf.mxu2 }
 0x178   : > { %1602 = vst [vmem:[%s2861_s4 + $0x80] sm:$0xff] %v1570_v48  ;;  %v1331_v20 = vadd.f32 %v1330_v52, %v1242_v49  ;;  %v1419_v53 = vpop.f32.mrf.mxu3 }
 0x179   : > { %v1244_v54 = vpop.f32.mrf.mxu1 }
 0x17a   : > { %v1420_v55 = vadd.f32 %v1419_v53, %v1331_v20  ;;  %v1245_v63 = vadd.f32 %v1244_v54, %v2778_v38 }
 0x17b   : > { %v1511_v18 = vpop.f32.mrf.mxu0 }
 0x17c   : > { %v1509_v56 = vadd.f32 %v1508_v22, %v1420_v55 }
 0x17e   : > { %v1571_v57 = vadd.f32 %v2854_v62, %v1509_v56 }
 0x17f   : > { %v1333_v0 = vpop.f32.mrf.mxu2 }
 0x180   : > { %1603 = vst [vmem:[%s2861_s4 + $0x88] sm:$0xff] %v1571_v57  ;;  %v1334_v1 = vadd.f32 %v1333_v0, %v1245_v63  ;;  %v1422_v2 = vpop.f32.mrf.mxu3 }
 0x181   : > { %v1246_v17 = vpop.f32.mrf.mxu1 }
 0x182   : > { %v1423_v37 = vadd.f32 %v1422_v2, %v1334_v1  ;;  %v1247_v4 = vadd.f32 %v1246_v17, %v2794_v50 }
 0x183   : > { %v1513_v30 = vpop.f32.mrf.mxu0 }
 0x184   : > { %v1512_v23 = vadd.f32 %v1511_v18, %v1423_v37 }
 0x186   : > { %v1572_v3 = vadd.f32 %v2854_v62, %v1512_v23 }
 0x187   : > { %v1335_v5 = vpop.f32.mrf.mxu2 }
 0x188   : > { %1604 = vst [vmem:[%s2861_s4 + $0x90] sm:$0xff] %v1572_v3  ;;  %v1336_v34 = vadd.f32 %v1335_v5, %v1247_v4  ;;  %v1424_v60 = vpop.f32.mrf.mxu3 }
 0x189   : > { %v1249_v8 = vpop.f32.mrf.mxu1 }
 0x18a   : > { %v1425_v9 = vadd.f32 %v1424_v60, %v1336_v34  ;;  %v1250_v24 = vadd.f32 %v1249_v8, %v2803_v58 }
 0x18b   : > { %v1516_v38 = vpop.f32.mrf.mxu0 }
 0x18c   : > { %v1514_v11 = vadd.f32 %v1513_v30, %v1425_v9 }
 0x18e   : > { %v1573_v12 = vadd.f32 %v2854_v62, %v1514_v11 }
 0x18f   : > { %v1338_v61 = vpop.f32.mrf.mxu2 }
 0x190   : > { %1605 = vst [vmem:[%s2861_s4 + $0x98] sm:$0xff] %v1573_v12  ;;  %v1339_v25 = vadd.f32 %v1338_v61, %v1250_v24  ;;  %v1427_v26 = vpop.f32.mrf.mxu3 }
 0x191   : > { %v1251_v27 = vpop.f32.mrf.mxu1 }
 0x192   : > { %v1428_v28 = vadd.f32 %v1427_v26, %v1339_v25  ;;  %v1252_v32 = vadd.f32 %v1251_v27, %v2819_v6 }
 0x193   : > { %v1518_v50 = vpop.f32.mrf.mxu0 }
 0x194   : > { %v1517_v29 = vadd.f32 %v1516_v38, %v1428_v28 }
 0x196   : > { %v1574_v14 = vadd.f32 %v2854_v62, %v1517_v29 }
 0x197   : > { %v1340_v41 = vpop.f32.mrf.mxu2 }
 0x198   : > { %1606 = vst [vmem:[%s2861_s4 + $0xa0] sm:$0xff] %v1574_v14  ;;  %v1341_v40 = vadd.f32 %v1340_v41, %v1252_v32  ;;  %v1429_v10 = vpop.f32.mrf.mxu3 }
 0x199   : > { %v1254_v33 = vpop.f32.mrf.mxu1 }
 0x19a   : > { %v1430_v42 = vadd.f32 %v1429_v10, %v1341_v40  ;;  %v1255_v21 = vadd.f32 %v1254_v33, %v2828_v15 }
 0x19b   : > { %v1521_v58 = vpop.f32.mrf.mxu0 }
 0x19c   : > { %v1519_v43 = vadd.f32 %v1518_v50, %v1430_v42 }
 0x19e   : > { %v1575_v44 = vadd.f32 %v2854_v62, %v1519_v43 }
 0x19f   : > { %v1343_v45 = vpop.f32.mrf.mxu2 }
 0x1a0   : > { %1607 = vst [vmem:[%s2861_s4 + $0xa8] sm:$0xff] %v1575_v44  ;;  %v1344_v46 = vadd.f32 %v1343_v45, %v1255_v21  ;;  %v1432_v13 = vpop.f32.mrf.mxu3 }
 0x1a1   : > { %v1256_v22 = vpop.f32.mrf.mxu1 }
 0x1a2   : > { %v1433_v47 = vadd.f32 %v1432_v13, %v1344_v46  ;;  %v1257_v52 = vadd.f32 %v1256_v22, %v2844_v35 }
 0x1a3   : > { %v1523_v6 = vpop.f32.mrf.mxu0 }
 0x1a4   : > { %v1522_v48 = vadd.f32 %v1521_v58, %v1433_v47 }
 0x1a6   : > { %v1576_v49 = vadd.f32 %v2854_v62, %v1522_v48 }
 0x1a7   : > { %v1345_v20 = vpop.f32.mrf.mxu2 }
 0x1a8   : > { %1608 = vst [vmem:[%s2861_s4 + $0xb0] sm:$0xff] %v1576_v49  ;;  %v1346_v53 = vadd.f32 %v1345_v20, %v1257_v52  ;;  %v1434_v54 = vpop.f32.mrf.mxu3 }
 0x1a9   : > { %v1259_v55 = vpop.f32.mrf.mxu1 }
 0x1aa   : > { %v1435_v18 = vadd.f32 %v1434_v54, %v1346_v53  ;;  %v1260_v63 = vadd.f32 %v1259_v55, %v2755_v19 }
 0x1ab   : > { %v1526_v15 = vpop.f32.mrf.mxu0 }
 0x1ac   : > { %v1524_v56 = vadd.f32 %v1523_v6, %v1435_v18 }
 0x1ae   : > { %v1577_v57 = vadd.f32 %v2854_v62, %v1524_v56 }
 0x1af   : > { %v1348_v0 = vpop.f32.mrf.mxu2 }
 0x1b0   : > { %1609 = vst [vmem:[%s2861_s4 + $0xb8] sm:$0xff] %v1577_v57  ;;  %v1349_v1 = vadd.f32 %v1348_v0, %v1260_v63  ;;  %v1437_v2 = vpop.f32.mrf.mxu3 }
 0x1b1   : > { %v1261_v17 = vpop.f32.mrf.mxu1 }
 0x1b2   : > { %v1438_v37 = vadd.f32 %v1437_v2, %v1349_v1  ;;  %v1262_v3 = vadd.f32 %v1261_v17, %v2771_v31 }
 0x1b3   : > { %v1528_v35 = vpop.f32.mrf.mxu0 }
 0x1b4   : > { %v1527_v30 = vadd.f32 %v1526_v15, %v1438_v37 }
 0x1b6   : > { %v1578_v23 = vadd.f32 %v2854_v62, %v1527_v30 }
 0x1b7   : > { %v1350_v4 = vpop.f32.mrf.mxu2 }
 0x1b8   : > { %1610 = vst [vmem:[%s2861_s4 + $0xc0] sm:$0xff] %v1578_v23  ;;  %v1351_v5 = vadd.f32 %v1350_v4, %v1262_v3  ;;  %v1439_v34 = vpop.f32.mrf.mxu3 }
 0x1b9   : > { %v1264_v60 = vpop.f32.mrf.mxu1 }
 0x1ba   : > { %v1440_v8 = vadd.f32 %v1439_v34, %v1351_v5  ;;  %v1265_v11 = vadd.f32 %v1264_v60, %v2780_v39 }
 0x1bb   : > { %v1531_v19 = vpop.f32.mrf.mxu0 }
 0x1bc   : > { %v1529_v9 = vadd.f32 %v1528_v35, %v1440_v8 }
 0x1be   : > { %v1579_v38 = vadd.f32 %v2854_v62, %v1529_v9 }
 0x1bf   : > { %v1353_v12 = vpop.f32.mrf.mxu2 }
 0x1c0   : > { %1611 = vst [vmem:[%s2861_s4 + $0xc8] sm:$0xff] %v1579_v38  ;;  %v1354_v24 = vadd.f32 %v1353_v12, %v1265_v11  ;;  %v1442_v61 = vpop.f32.mrf.mxu3 }
 0x1c1   : > { %v1266_v25 = vpop.f32.mrf.mxu1 }
 0x1c2   : > { %v1443_v26 = vadd.f32 %v1442_v61, %v1354_v24  ;;  %v1267_v50 = vadd.f32 %v1266_v25, %v2796_v51 }
 0x1c3   : > { %v1533_v31 = vpop.f32.mrf.mxu0 }
 0x1c4   : > { %v1532_v27 = vadd.f32 %v1531_v19, %v1443_v26 }
 0x1c6   : > { %v1580_v28 = vadd.f32 %v2854_v62, %v1532_v27 }
 0x1c7   : > { %v1355_v29 = vpop.f32.mrf.mxu2 }
 0x1c8   : > { %1612 = vst [vmem:[%s2861_s4 + $0xd0] sm:$0xff] %v1580_v28  ;;  %v1356_v14 = vadd.f32 %v1355_v29, %v1267_v50  ;;  %v1444_v32 = vpop.f32.mrf.mxu3 }
 0x1c9   : > { %v1269_v41 = vpop.f32.mrf.mxu1 }
 0x1ca   : > { %v1445_v40 = vadd.f32 %v1444_v32, %v1356_v14  ;;  %v1270_v42 = vadd.f32 %v1269_v41, %v2805_v59 }
 0x1cb   : > { %v1536_v10 = vpop.f32.mrf.mxu0 }
 0x1cc   : > { %v1534_v39 = vadd.f32 %v1533_v31, %v1445_v40 }
 0x1ce   : > { %v1581_v33 = vadd.f32 %v2854_v62, %v1534_v39 }
 0x1cf   : > { %v1358_v58 = vpop.f32.mrf.mxu2 }
 0x1d0   : > { %1613 = vst [vmem:[%s2861_s4 + $0xd8] sm:$0xff] %v1581_v33  ;;  %v1359_v43 = vadd.f32 %v1358_v58, %v1270_v42  ;;  %v1447_v44 = vpop.f32.mrf.mxu3 }
 0x1d1   : > { %v1271_v21 = vpop.f32.mrf.mxu1 }
 0x1d2   : > { %v1448_v51 = vadd.f32 %v1447_v44, %v1359_v43  ;;  %v1272_v13 = vadd.f32 %v1271_v21, %v2821_v7 }
 0x1d3   : > { %v1538_v22 = vpop.f32.mrf.mxu0 }
 0x1d4   : > { %v1537_v45 = vadd.f32 %v1536_v10, %v1448_v51 }
 0x1d6   : > { %v1582_v46 = vadd.f32 %v2854_v62, %v1537_v45 }
 0x1d7   : > { %v1360_v47 = vpop.f32.mrf.mxu2 }
 0x1d8   : > { %1614 = vst [vmem:[%s2861_s4 + $0xe0] sm:$0xff] %v1582_v46  ;;  %v1361_v6 = vadd.f32 %v1360_v47, %v1272_v13  ;;  %v1449_v48 = vpop.f32.mrf.mxu3 }
 0x1d9   : > { %v1274_v49 = vpop.f32.mrf.mxu1 }
 0x1da   : > { %v1450_v59 = vadd.f32 %v1449_v48, %v1361_v6  ;;  %v1275_v53 = vadd.f32 %v1274_v49, %v2830_v16 }
 0x1db   : > { %v1541_v15 = vpop.f32.mrf.mxu0 }
 0x1dc   : > { %v1539_v52 = vadd.f32 %v1538_v22, %v1450_v59 }
 0x1de   : > { %v1583_v20 = vadd.f32 %v2854_v62, %v1539_v52 }
 0x1df   : > { %v1363_v54 = vpop.f32.mrf.mxu2 }
 0x1e0   : > { %1615 = vst [vmem:[%s2861_s4 + $0xe8] sm:$0xff] %v1583_v20  ;;  %v1364_v55 = vadd.f32 %v1363_v54, %v1275_v53  ;;  %v1452_v18 = vpop.f32.mrf.mxu3 }
 0x1e1   : > { %v1276_v56 = vpop.f32.mrf.mxu1 }
 0x1e2   : > { %v1453_v7 = vadd.f32 %v1452_v18, %v1364_v55  ;;  %v1277_v0 = vadd.f32 %v1276_v56, %v2846_v36 }
 0x1e3   : > { %v1543_v35 = vpop.f32.mrf.mxu0 }
 0x1e4   : > { %v1542_v57 = vadd.f32 %v1541_v15, %v1453_v7 }
 0x1e6   : > { %v1584_v63 = vadd.f32 %v2854_v62, %v1542_v57 }
 0x1e7   : > { %v1365_v1 = vpop.f32.mrf.mxu2 }
 0x1e8   : > { %1616 = vst [vmem:[%s2861_s4 + $0xf0] sm:$0xff] %v1584_v63  ;;  %v1366_v2 = vadd.f32 %v1365_v1, %v1277_v0  ;;  %v1454_v17 = vpop.f32.mrf.mxu3 }
 0x1ea   : > { %v1455_v37 = vadd.f32 %v1454_v17, %v1366_v2 }
 0x1ec   : > { %v1544_v16 = vadd.f32 %v1543_v35, %v1455_v37 }
 0x1ee   : > { %v1585_v30 = vadd.f32 %v2854_v62, %v1544_v16 }
 0x1f0   : > { %1617 = vst [vmem:[%s2861_s4 + $0xf8] sm:$0xff] %v1585_v30 }
 0x1f1 PF: > { %s13_s14 = sadd.s32 1, %s2513_s14   ;;  %s3032_s12 = smov %s2509_s13 }
 0x1f2   : > { %p10_p5 = scmp.ge.s32.totalorder %s13_s14, 4   ;;  %s3033_s13 = smov %s3035_s15 }
 0x1f4   :  { %12 = sbr.rel (!%p10_p5) target bundleno = 2 (0x2), region = 76 }

// kernel: improved_unet_forward.38
= control target key start
LH: loop header
LB: loop body
LE: loop exit
PB: predicated region body
PF: predicated region fallthrough
CT: control target
= control target key end

     0   :  { %s418_s6 = smov 0   ;;  %s420_s7 = smov 0   ;;  %s468_s0 = inlined_call_operand.vmem [shape: f32[2,64,128], index: 0, kind: input, shape index: {}]   ;;  %s469_s1 = inlined_call_operand.vmem [shape: f32[2,64,128], index: 1, kind: output, shape index: {}]  }
   0x1   :  { %s422_s8 = smov 0  }
   0x2 LB: > { %s23_s9 = sadd.s32 1, %s401_s7  ;;  %p345_p0 = scmp.ge.s32.totalorder %s405_s8, 1  ;;  %s405_s8 = sphi %s422_s8, %s11_s8   ;;  %s401_s7 = sphi %s420_s7, %s471_s7   ;;  %s397_s6 = sphi %s418_s6, %s470_s6  }
   0x3   : > { %p25_p1 = scmp.ge.s32.totalorder %s23_s9, 2  ;;  %p106_p2 = scmp.lt.s32.totalorder %s405_s8, 3 }
   0x5   : > { %s473_s9 = smov (%p25_p1, %s23_s9), 0  ;;  %p107_p3 = pnand %p345_p0, %p106_p2 }
   0x6   : > { %p132_p4 = scmp.lt.s32.totalorder (!%p107_p3), %s397_s6, 1 }
   0x7   : > { %110 = sbr.rel (%p107_p3) target bundleno = 109 (0x6d), region = 24 }
   0xc   : > { %s475_s6 = smov (!%p132_p4, %s397_s6), 1  ;;  %v407_v0 = vmov 64.0  }
   0xd   : > { %s352_s10 = sshll.u32 %s475_s6, 6  ;;  %379 = vrcp.f32 %v407_v0 }
   0xe   : > { %s139_s13 = scalar_lea.vmem %s468_s0, %s352_s10  ;;  %s449_s16 = scalar_lea.vmem %s469_s1, %s352_s10 }
   0xf   : > { %v148_v1 = vld [vmem:[%s139_s13] sm:$0xff]  ;;  %v149_v2 = vld [vmem:[%s139_s13 + $0x8] sm:$0xff]  ;;  %v150_v3 = vld [vmem:[%s139_s13 + $0x10] sm:$0xff] }
  0x10   : > { %v156_v4 = vadd.f32 %v149_v2, %v148_v1  ;;  %v151_v5 = vld [vmem:[%s139_s13 + $0x18] sm:$0xff]  ;;  %v152_v7 = vld [vmem:[%s139_s13 + $0x20] sm:$0xff]  ;;  %v153_v10 = vld [vmem:[%s139_s13 + $0x28] sm:$0xff] }
  0x11   : > { %v154_v12 = vld [vmem:[%s139_s13 + $0x30] sm:$0xff]  ;;  %v155_v15 = vld [vmem:[%s139_s13 + $0x38] sm:$0xff] }
  0x12   : > { %v157_v6 = vadd.f32 %v156_v4, %v150_v3 }
  0x13   : > { %v380_v8 = vpop.eup %379 }
  0x14   : > { %v158_v9 = vadd.f32 %v157_v6, %v151_v5  ;;  %v170_v13 = vmul.f32 64.0, %v380_v8  ;;  %vm174_vm0 = vweird.f32 %v380_v8 }
  0x16   : > { %v159_v11 = vadd.f32 %v158_v9, %v152_v7  ;;  %v171_v17 = vsub.f32 1.0, %v170_v13 }
  0x18   : > { %v160_v14 = vadd.f32 %v159_v11, %v153_v10  ;;  %v172_v20 = vmul.f32 %v380_v8, %v171_v17 }
  0x1a   : > { %v161_v16 = vadd.f32 %v160_v14, %v154_v12  ;;  %v173_v23 = vadd.f32 %v380_v8, %v172_v20 }
  0x1c   : > { %v162_v18 = vadd.f32 %v161_v16, %v155_v15  ;;  %v175_v26 = vsel %vm174_vm0, %v380_v8, %v173_v23 }
  0x1e   : > { %v163_v19 = vrot.slane %v162_v18, 4 }
  0x20   : > { %v164_v21 = vadd.f32 %v163_v19, %v162_v18 }
  0x22   : > { %v165_v22 = vrot.slane %v164_v21, 2 }
  0x24   : > { %v166_v24 = vadd.f32 %v165_v22, %v164_v21 }
  0x26   : > { %v167_v25 = vrot.slane %v166_v24, 1 }
  0x28   : > { %v168_v27 = vadd.f32 %v167_v25, %v166_v24 }
  0x2a   : > { %v176_v28 = vmul.f32 %v175_v26, %v168_v27 }
  0x2c   : > { %v177_v29 = vsub.f32 %v148_v1, %v176_v28  ;;  %v178_v30 = vsub.f32 %v149_v2, %v176_v28  ;;  %v179_v31 = vsub.f32 %v150_v3, %v176_v28  ;;  %v180_v32 = vsub.f32 %v151_v5, %v176_v28 }
  0x2d   : > { %v181_v33 = vsub.f32 %v152_v7, %v176_v28  ;;  %v182_v37 = vsub.f32 %v153_v10, %v176_v28  ;;  %v183_v40 = vsub.f32 %v154_v12, %v176_v28  ;;  %v184_v43 = vsub.f32 %v155_v15, %v176_v28 }
  0x2e   : > { %v185_v34 = vmul.f32 %v177_v29, %v177_v29  ;;  %v186_v35 = vmul.f32 %v178_v30, %v178_v30  ;;  %v187_v36 = vmul.f32 %v179_v31, %v179_v31  ;;  %v188_v38 = vmul.f32 %v180_v32, %v180_v32 }
  0x2f   : > { %v189_v41 = vmul.f32 %v181_v33, %v181_v33  ;;  %v190_v44 = vmul.f32 %v182_v37, %v182_v37  ;;  %v191_v46 = vmul.f32 %v183_v40, %v183_v40  ;;  %v192_v48 = vmul.f32 %v184_v43, %v184_v43 }
  0x30   : > { %v193_v39 = vadd.f32 %v186_v35, %v185_v34 }
  0x32   : > { %v194_v42 = vadd.f32 %v193_v39, %v187_v36 }
  0x34   : > { %v195_v45 = vadd.f32 %v194_v42, %v188_v38 }
  0x36   : > { %v196_v47 = vadd.f32 %v195_v45, %v189_v41 }
  0x38   : > { %v197_v49 = vadd.f32 %v196_v47, %v190_v44 }
  0x3a   : > { %v198_v50 = vadd.f32 %v197_v49, %v191_v46 }
  0x3c   : > { %v199_v51 = vadd.f32 %v198_v50, %v192_v48 }
  0x3e   : > { %v200_v52 = vrot.slane %v199_v51, 4 }
  0x40   : > { %v201_v53 = vadd.f32 %v200_v52, %v199_v51 }
  0x42   : > { %v202_v54 = vrot.slane %v201_v53, 2 }
  0x44   : > { %v203_v55 = vadd.f32 %v202_v54, %v201_v53 }
  0x46   : > { %v204_v56 = vrot.slane %v203_v55, 1 }
  0x48   : > { %v205_v57 = vadd.f32 %v204_v56, %v203_v55 }
  0x4a   : > { %v206_v58 = vmul.f32 %v205_v57, %v175_v26 }
  0x4c   : > { %v207_v59 = vadd.f32 1e-05, %v206_v58 }
  0x4e   : > { %381 = vrsqrt.f32 %v207_v59  ;;  %vm214_vm1 = vweird.f32 %v207_v59 }
  0x54   : > { %v382_v60 = vpop.eup %381 }
  0x55   : > { %v209_v61 = vmul.f32 %v382_v60, %v207_v59  ;;  %vm215_vm2 = vweird.f32 %v382_v60 }
  0x56   : > { %vm216_vm3 = vmor %vm214_vm1, %vm215_vm2 }
  0x57   : > { %v210_v62 = vmul.f32 %v382_v60, %v209_v61 }
  0x59   : > { %v211_v63 = vmul.f32 0.5, %v210_v62 }
  0x5b   : > { %v212_v0 = vsub.f32 1.5, %v211_v63 }
  0x5d   : > { %v213_v1 = vmul.f32 %v382_v60, %v212_v0 }
  0x5f   : > { %v217_v2 = vsel %vm216_vm3, %v382_v60, %v213_v1 }
  0x60   : > { %v218_v3 = vmul.f32 %v217_v2, %v177_v29  ;;  %v219_v4 = vmul.f32 %v217_v2, %v178_v30  ;;  %v220_v5 = vmul.f32 %v217_v2, %v179_v31  ;;  %v221_v6 = vmul.f32 %v217_v2, %v180_v32 }
  0x61   : > { %v222_v7 = vmul.f32 %v217_v2, %v181_v33  ;;  %v223_v8 = vmul.f32 %v217_v2, %v182_v37  ;;  %v224_v9 = vmul.f32 %v217_v2, %v183_v40  ;;  %v225_v10 = vmul.f32 %v217_v2, %v184_v43 }
  0x62   : > { %vm226_vm4 = vcmp.gt.f32.partialorder %v218_v3, 0.0  ;;  %v234_v11 = vmul.f32 0.2, %v218_v3  ;;  %vm227_vm5 = vcmp.gt.f32.partialorder %v219_v4, 0.0  ;;  %v235_v12 = vmul.f32 0.2, %v219_v4 }
  0x63   : > { %vm228_vm6 = vcmp.gt.f32.partialorder %v220_v5, 0.0  ;;  %v236_v13 = vmul.f32 0.2, %v220_v5  ;;  %vm229_vm7 = vcmp.gt.f32.partialorder %v221_v6, 0.0  ;;  %v237_v14 = vmul.f32 0.2, %v221_v6 }
  0x64   : > { %v242_v15 = vsel %vm226_vm4, %v218_v3, %v234_v11  ;;  %v243_v16 = vsel %vm227_vm5, %v219_v4, %v235_v12  ;;  %vm230_vm8 = vcmp.gt.f32.partialorder %v222_v7, 0.0  ;;  %v238_v17 = vmul.f32 0.2, %v222_v7 }
  0x65   : > { %250 = vst [vmem:[%s449_s16] sm:$0xff] %v242_v15  ;;  %v244_v18 = vsel %vm228_vm6, %v220_v5, %v236_v13  ;;  %v245_v19 = vsel %vm229_vm7, %v221_v6, %v237_v14  ;;  %vm231_vm9 = vcmp.gt.f32.partialorder %v223_v8, 0.0  ;;  %v239_v20 = vmul.f32 0.2, %v223_v8 }
  0x66   : > { %251 = vst [vmem:[%s449_s16 + $0x8] sm:$0xff] %v243_v16  ;;  %v246_v21 = vsel %vm230_vm8, %v222_v7, %v238_v17  ;;  %vm232_vm10 = vcmp.gt.f32.partialorder %v224_v9, 0.0  ;;  %v240_v22 = vmul.f32 0.2, %v224_v9  ;;  %vm233_vm11 = vcmp.gt.f32.partialorder %v225_v10, 0.0 }
  0x67   : > { %252 = vst [vmem:[%s449_s16 + $0x10] sm:$0xff] %v244_v18  ;;  %v247_v23 = vsel %vm231_vm9, %v223_v8, %v239_v20  ;;  %v241_v24 = vmul.f32 0.2, %v225_v10 }
  0x68   : > { %253 = vst [vmem:[%s449_s16 + $0x18] sm:$0xff] %v245_v19  ;;  %v248_v25 = vsel %vm232_vm10, %v224_v9, %v240_v22 }
  0x69   : > { %254 = vst [vmem:[%s449_s16 + $0x20] sm:$0xff] %v246_v21  ;;  %v249_v26 = vsel %vm233_vm11, %v225_v10, %v241_v24 }
  0x6a   : > { %255 = vst [vmem:[%s449_s16 + $0x28] sm:$0xff] %v247_v23 }
  0x6b   : > { %256 = vst [vmem:[%s449_s16 + $0x30] sm:$0xff] %v248_v25 }
  0x6c   : > { %257 = vst [vmem:[%s449_s16 + $0x38] sm:$0xff] %v249_v26 }
  0x6d PF: > { %s11_s8 = sadd.s32 1, %s405_s8   ;;  %s470_s6 = smov %s401_s7 }
  0x6e   : > { %p8_p5 = scmp.ge.s32.totalorder %s11_s8, 4   ;;  %s471_s7 = smov %s473_s9 }
  0x70   :  { %10 = sbr.rel (!%p8_p5) target bundleno = 2 (0x2), region = 54 }

// kernel: improved_unet_forward.37
= control target key start
LH: loop header
LB: loop body
LE: loop exit
PB: predicated region body
PF: predicated region fallthrough
CT: control target
= control target key end

     0   :  { %8 = vsyncpa [#allocation3], 0  ;;  %s1798_s0 = inlined_call_operand.vmem [shape: bf16[128,576], index: 0, kind: input, shape index: {}]   ;;  %s1799_s1 = inlined_call_operand.hbm [shape: bf16[576,128], index: 1, kind: input, shape index: {}]   ;;  %s1800_s2 = inlined_call_operand.hbm [shape: f32[1,128], index: 2, kind: input, shape index: {}]   ;;  %s1801_s3 = inlined_call_operand.vmem [shape: f32[128,128], index: 3, kind: output, shape index: {}]  }
   0x1   :  { %s16_s14 = sshll.u32 %s1799_s1, 4  ;;  %s17_s14 = int_to_ptr.hbm [resolvable:$true] %s16_s14 }
   0x2   :  { %9 = vsyncpa [#allocation5], 0  ;;  %s1418_s15 = smov [#allocation2]   ;;  %s30_s19 = sshll.u32 %s1800_s2, 4  ;;  %s31_s19 = int_to_ptr.hbm [resolvable:$true] %s30_s19 }
   0x3   :  { %s18_s16 = sshll.u32 %s1418_s15, 4  ;;  %s1419_s20 = smov 64   ;;  %s19_s16 = int_to_ptr.vmem [resolvable:$true] %s18_s16 }
   0x4   :  { %s1420_s21 = smov 4   ;;  %s1421_s22 = smov [#allocation4]  }
   0x5   :  { %24 = dma.hbm_to_vmem [thread:$0]  %s17_s14, 4608, %s19_s16, [#allocation3], %s1419_s20, %s1419_s20, %s1420_s21  }
   0x6   :  { %s32_s23 = sshll.u32 %s1421_s22, 4  ;;  %s33_s23 = int_to_ptr.vmem [resolvable:$true] %s32_s23 }
   0x7   :  { %35 = dma.hbm_to_vmem [thread:$0]  %s31_s19, 16, %s33_s23, [#allocation5]  }
   0x8   :  { %1414 = dma.done.wait [#allocation3], 4608  }
   0x9   :  { %1415 = vsyncadd [#allocation3], 4294962688 }
   0xa   :  { %1416 = dma.done.wait [#allocation5], 16  }
   0xb   :  { %1417 = vsyncadd [#allocation5], 4294967280  ;;  %v1308_v0 = vld [vmem:[#allocation2 + $0x38] sm:$0xff]  ;;  %v1307_v1 = vld [vmem:[#allocation2 + $0x30] sm:$0xff]  ;;  %vm581_vm0 = vcmask 523264  }
   0xc   :  { %1337 = vmatpush.bf16.msra.mxu1 %v1308_v0  ;;  %1338 = vmatpush.bf16.msra.mxu2 %v1308_v0  ;;  %v1306_v2 = vld [vmem:[#allocation2 + $0x28] sm:$0xff]  ;;  %v1305_v3 = vld [vmem:[#allocation2 + $0x20] sm:$0xff]  ;;  %v1304_v4 = vld [vmem:[#allocation2 + $0x18] sm:$0xff] }
   0xd   :  { %1339 = vmatpush.bf16.msra.mxu3 %v1308_v0  ;;  %606 = vmatpush.bf16.msra.mxu0 %v1308_v0  ;;  %v1303_v5 = vld [vmem:[#allocation2 + $0x10] sm:$0xff]  ;;  %v1302_v6 = vld [vmem:[#allocation2 + $0x8] sm:$0xff]  ;;  %v1301_v7 = vld [vmem:[#allocation2] sm:$0xff] }
   0xe   :  { %v991_v8 = vld [vmem:[%s1798_s0 + $0x50] sm:$0xf]  ;;  %v1273_v9 = vld [vmem:[%s1798_s0 + $0x60] sm:$0xf0]  ;;  %v1031_v10 = vld [vmem:[%s1798_s0 + $0xa0] sm:$0xf] }
   0xf   :  { %v1283_v11 = vld [vmem:[%s1798_s0 + $0xb0] sm:$0xf0]  ;;  %v1071_v12 = vld [vmem:[%s1798_s0 + $0xf0] sm:$0xf]  ;;  %v1293_v13 = vld [vmem:[%s1798_s0 + $0x100] sm:$0xf0]  ;;  %v992_v18 = vor.u32 %v1273_v9, %v991_v8 }
  0x10   :  { %1340 = vmatpush.bf16.msra.mxu1 %v1307_v1  ;;  %1341 = vmatpush.bf16.msra.mxu2 %v1307_v1  ;;  %v951_v14 = vld [vmem:[%s1798_s0] sm:$0xf]  ;;  %v1263_v15 = vld [vmem:[%s1798_s0 + $0x10] sm:$0xf0]  ;;  %v1324_v16 = vld [vmem:[#allocation2 + $0xb8] sm:$0xff]  ;;  %v1032_v19 = vor.u32 %v1283_v11, %v1031_v10  ;;  %v1072_v20 = vor.u32 %v1293_v13, %v1071_v12 }
  0x11   :  { %1342 = vmatpush.bf16.msra.mxu3 %v1307_v1  ;;  %607 = vmatpush.bf16.msra.mxu0 %v1307_v1  ;;  %v1316_v17 = vld [vmem:[#allocation2 + $0x78] sm:$0xff]  ;;  %v952_v21 = vor.u32 %v1263_v15, %v951_v14  ;;  %v1323_v24 = vld [vmem:[#allocation2 + $0xb0] sm:$0xff]  ;;  %v1322_v28 = vld [vmem:[#allocation2 + $0xa8] sm:$0xff] }
  0x12   :  { %v1332_v22 = vld [vmem:[#allocation2 + $0xf8] sm:$0xff]  ;;  %v1315_v25 = vld [vmem:[#allocation2 + $0x70] sm:$0xff]  ;;  %v1314_v29 = vld [vmem:[#allocation2 + $0x68] sm:$0xff] }
  0x13   :  { %v1336_v23 = vld [vmem:[#allocation2 + $0x118] sm:$0xff]  ;;  %v1331_v26 = vld [vmem:[#allocation2 + $0xf0] sm:$0xff]  ;;  %v1330_v30 = vld [vmem:[#allocation2 + $0xe8] sm:$0xff] }
  0x14   :  { %1343 = vmatpush.bf16.msra.mxu1 %v1306_v2  ;;  %1344 = vmatpush.bf16.msra.mxu2 %v1306_v2  ;;  %v1335_v27 = vld [vmem:[#allocation2 + $0x110] sm:$0xff]  ;;  %v1334_v31 = vld [vmem:[#allocation2 + $0x108] sm:$0xff]  ;;  %v1321_v32 = vld [vmem:[#allocation2 + $0xa0] sm:$0xff] }
  0x15   :  { %1345 = vmatpush.bf16.msra.mxu3 %v1306_v2  ;;  %608 = vmatpush.bf16.msra.mxu0 %v1306_v2  ;;  %v1313_v33 = vld [vmem:[#allocation2 + $0x60] sm:$0xff]  ;;  %v1011_v35 = vld [vmem:[%s1798_s0 + $0x78] sm:$0xf]  ;;  %v1278_v36 = vld [vmem:[%s1798_s0 + $0x88] sm:$0xf0] }
  0x16   :  { %v1329_v34 = vld [vmem:[#allocation2 + $0xe0] sm:$0xff]  ;;  %v1051_v37 = vld [vmem:[%s1798_s0 + $0xc8] sm:$0xf]  ;;  %v1288_v38 = vld [vmem:[%s1798_s0 + $0xd8] sm:$0xf0]  ;;  %v1012_v46 = vor.u32 %v1278_v36, %v1011_v35 }
  0x17   :  { %v1091_v39 = vld [vmem:[%s1798_s0 + $0x118] sm:$0xf]  ;;  %v1298_v40 = vld [vmem:[%s1798_s0 + $0x128] sm:$0xf0]  ;;  %v971_v41 = vld [vmem:[%s1798_s0 + $0x28] sm:$0xf]  ;;  %v1052_v47 = vor.u32 %v1288_v38, %v1051_v37 }
  0x18   :  { %1346 = vmatpush.bf16.msra.mxu1 %v1305_v3  ;;  %1347 = vmatpush.bf16.msra.mxu2 %v1305_v3  ;;  %v1268_v42 = vld [vmem:[%s1798_s0 + $0x38] sm:$0xf0]  ;;  %v1333_v43 = vld [vmem:[#allocation2 + $0x100] sm:$0xff]  ;;  %v1092_v48 = vor.u32 %v1298_v40, %v1091_v39  ;;  %v1319_v51 = vld [vmem:[#allocation2 + $0x90] sm:$0xff] }
  0x19   :  { %1348 = vmatpush.bf16.msra.mxu3 %v1305_v3  ;;  %609 = vmatpush.bf16.msra.mxu0 %v1305_v3  ;;  %v1320_v44 = vld [vmem:[#allocation2 + $0x98] sm:$0xff]  ;;  %v972_v49 = vor.u32 %v1268_v42, %v971_v41  ;;  %v1311_v52 = vld [vmem:[#allocation2 + $0x50] sm:$0xff]  ;;  %v1318_v54 = vld [vmem:[#allocation2 + $0x88] sm:$0xff] }
  0x1a   :  { %v1312_v45 = vld [vmem:[#allocation2 + $0x58] sm:$0xff]  ;;  %v1327_v53 = vld [vmem:[#allocation2 + $0xd0] sm:$0xff]  ;;  %v1310_v55 = vld [vmem:[#allocation2 + $0x48] sm:$0xff] }
  0x1b   :  { %v1328_v50 = vld [vmem:[#allocation2 + $0xd8] sm:$0xff]  ;;  %v1326_v56 = vld [vmem:[#allocation2 + $0xc8] sm:$0xff]  ;;  %v1317_v57 = vld [vmem:[#allocation2 + $0x80] sm:$0xff] }
  0x1c   :  { %1349 = vmatpush.bf16.msra.mxu1 %v1304_v4  ;;  %1350 = vmatpush.bf16.msra.mxu2 %v1304_v4  ;;  %v1309_v58 = vld [vmem:[#allocation2 + $0x40] sm:$0xff]  ;;  %v953_v61 = vld [vmem:[%s1798_s0 + $0x14] sm:$0xf0]  ;;  %v959_v62 = vld [vmem:[%s1798_s0 + $0x8] sm:$0xf] }
  0x1d   :  { %1351 = vmatpush.bf16.msra.mxu3 %v1304_v4  ;;  %610 = vmatpush.bf16.msra.mxu0 %v1304_v4  ;;  %v1325_v59 = vld [vmem:[#allocation2 + $0xc0] sm:$0xff]  ;;  %v1264_v63 = vld [vmem:[%s1798_s0 + $0x18] sm:$0xf0]  ;;  %v1262_v0 = vld [vmem:[%s1798_s0 + $0xc] sm:$0xf] }
  0x1e   :  { %v1261_v60 = vld [vmem:[%s1798_s0 + $0x4] sm:$0xf]  ;;  %v961_v1 = vld [vmem:[%s1798_s0 + $0x1c] sm:$0xf0]  ;;  %v967_v2 = vld [vmem:[%s1798_s0 + $0x10] sm:$0xf] }
  0x1f   :  { %v1265_v3 = vld [vmem:[%s1798_s0 + $0x20] sm:$0xf0]  ;;  %v956_v4 = vor.u32 %v1261_v60, %v953_v61  ;;  %v1266_v8 = vld [vmem:[%s1798_s0 + $0x2c] sm:$0xf]  ;;  %v973_v9 = vld [vmem:[%s1798_s0 + $0x3c] sm:$0xf0] }
  0x20   :  { %1352 = vmatpush.bf16.msra.mxu1 %v1303_v5  ;;  %1353 = vmatpush.bf16.msra.mxu2 %v1303_v5  ;;  %v979_v10 = vld [vmem:[%s1798_s0 + $0x30] sm:$0xf]  ;;  %v1269_v11 = vld [vmem:[%s1798_s0 + $0x40] sm:$0xf0]  ;;  %v1267_v12 = vld [vmem:[%s1798_s0 + $0x34] sm:$0xf] }
  0x21   :  { %1354 = vmatpush.bf16.msra.mxu3 %v1303_v5  ;;  %611 = vmatpush.bf16.msra.mxu0 %v1303_v5  ;;  %v960_v5 = vor.u32 %v1264_v63, %v959_v62  ;;  %v981_v13 = vld [vmem:[%s1798_s0 + $0x44] sm:$0xf0]  ;;  %v987_v14 = vld [vmem:[%s1798_s0 + $0x38] sm:$0xf]  ;;  %v1270_v15 = vld [vmem:[%s1798_s0 + $0x48] sm:$0xf0] }
  0x22   :  { %v1279_v35 = vld [vmem:[%s1798_s0 + $0x90] sm:$0xf0]  ;;  %v1277_v36 = vld [vmem:[%s1798_s0 + $0x84] sm:$0xf]  ;;  %v1021_v37 = vld [vmem:[%s1798_s0 + $0x94] sm:$0xf0] }
  0x23   :  { %v1027_v38 = vld [vmem:[%s1798_s0 + $0x88] sm:$0xf]  ;;  %v1280_v39 = vld [vmem:[%s1798_s0 + $0x98] sm:$0xf0]  ;;  %v1024_v42 = vor.u32 %v1277_v36, %v1021_v37  ;;  %v1287_v60 = vld [vmem:[%s1798_s0 + $0xd4] sm:$0xf] }
  0x24   :  { %1355 = vmatpush.bf16.msra.mxu1 %v1302_v6  ;;  %1356 = vmatpush.bf16.msra.mxu2 %v1302_v6  ;;  %v1061_v61 = vld [vmem:[%s1798_s0 + $0xe4] sm:$0xf0]  ;;  %v1067_v62 = vld [vmem:[%s1798_s0 + $0xd8] sm:$0xf]  ;;  %v1290_v63 = vld [vmem:[%s1798_s0 + $0xe8] sm:$0xf0] }
  0x25   :  { %1357 = vmatpush.bf16.msra.mxu3 %v1302_v6  ;;  %612 = vmatpush.bf16.msra.mxu0 %v1302_v6  ;;  %v964_v6 = vor.u32 %v1262_v0, %v961_v1 }
  0x28   :  { %1358 = vmatpush.bf16.msra.mxu1 %v1301_v7  ;;  %1359 = vmatpush.bf16.msra.mxu2 %v1301_v7 }
  0x29   :  { %1360 = vmatpush.bf16.msra.mxu3 %v1301_v7  ;;  %613 = vmatpush.bf16.msra.mxu0 %v1301_v7  ;;  %v968_v7 = vor.u32 %v1265_v3, %v967_v2  ;;  %v1064_v2 = vor.u32 %v1287_v60, %v1061_v61  ;;  %v1068_v3 = vor.u32 %v1290_v63, %v1067_v62 }
  0x2b   :  { %624 = vmatmul.bf16.vlgmr.msra.gmra.mxu1 %v992_v18  ;;  %634 = vmatmul.bf16.vlgmr.msra.gmra.mxu2 %v1032_v19  ;;  %v984_v18 = vor.u32 %v1267_v12, %v981_v13  ;;  %v988_v19 = vor.u32 %v1270_v15, %v987_v14 }
  0x2c   :  { %704 = vmatpush.bf16.msrb.mxu2 %v1324_v16  ;;  %655 = vmatpush.bf16.msrb.mxu1 %v1316_v17  ;;  %v976_v16 = vor.u32 %v1266_v8, %v973_v9  ;;  %v980_v17 = vor.u32 %v1269_v11, %v979_v10  ;;  %v1292_v8 = vld [vmem:[%s1798_s0 + $0xfc] sm:$0xf]  ;;  %v1081_v9 = vld [vmem:[%s1798_s0 + $0x10c] sm:$0xf0]  ;;  %v1087_v10 = vld [vmem:[%s1798_s0 + $0x100] sm:$0xf] }
  0x2d   :  { %644 = vmatmul.bf16.vlgmr.msra.gmra.mxu3 %v1072_v20  ;;  %614 = vmatmul.bf16.vlgmr.msra.gmra.mxu0 %v952_v21  ;;  %v1271_v20 = vld [vmem:[%s1798_s0 + $0x54] sm:$0xf]  ;;  %v993_v21 = vld [vmem:[%s1798_s0 + $0x64] sm:$0xf0]  ;;  %v1084_v15 = vor.u32 %v1292_v8, %v1081_v9 }
  0x2e   :  { %753 = vmatpush.bf16.msrb.mxu3 %v1332_v22  ;;  %806 = vmatpush.bf16.msrb.mxu0 %v1336_v23  ;;  %v999_v22 = vld [vmem:[%s1798_s0 + $0x58] sm:$0xf]  ;;  %v1274_v23 = vld [vmem:[%s1798_s0 + $0x68] sm:$0xf0]  ;;  %v1295_v11 = vld [vmem:[%s1798_s0 + $0x110] sm:$0xf0] }
  0x30   :  { %705 = vmatpush.bf16.msrb.mxu2 %v1323_v24  ;;  %656 = vmatpush.bf16.msrb.mxu1 %v1315_v25  ;;  %v1272_v24 = vld [vmem:[%s1798_s0 + $0x5c] sm:$0xf]  ;;  %v1001_v25 = vld [vmem:[%s1798_s0 + $0x6c] sm:$0xf0] }
  0x32   :  { %754 = vmatpush.bf16.msrb.mxu3 %v1331_v26  ;;  %807 = vmatpush.bf16.msrb.mxu0 %v1335_v27  ;;  %v1007_v26 = vld [vmem:[%s1798_s0 + $0x60] sm:$0xf]  ;;  %v1275_v27 = vld [vmem:[%s1798_s0 + $0x70] sm:$0xf0] }
  0x34   :  { %706 = vmatpush.bf16.msrb.mxu2 %v1322_v28  ;;  %657 = vmatpush.bf16.msrb.mxu1 %v1314_v29  ;;  %v996_v28 = vor.u32 %v1271_v20, %v993_v21  ;;  %v1000_v29 = vor.u32 %v1274_v23, %v999_v22  ;;  %v1296_v22 = vld [vmem:[%s1798_s0 + $0x11c] sm:$0xf]  ;;  %v1093_v23 = vld [vmem:[%s1798_s0 + $0x12c] sm:$0xf0] }
  0x36   :  { %755 = vmatpush.bf16.msrb.mxu3 %v1330_v30  ;;  %808 = vmatpush.bf16.msrb.mxu0 %v1334_v31  ;;  %v1004_v30 = vor.u32 %v1272_v24, %v1001_v25  ;;  %v1008_v31 = vor.u32 %v1275_v27, %v1007_v26  ;;  %v1099_v24 = vld [vmem:[%s1798_s0 + $0x120] sm:$0xf]  ;;  %v1299_v25 = vld [vmem:[%s1798_s0 + $0x130] sm:$0xf0]  ;;  %v1297_v26 = vld [vmem:[%s1798_s0 + $0x124] sm:$0xf] }
  0x37   :  { %v1101_v27 = vld [vmem:[%s1798_s0 + $0x134] sm:$0xf0] }
  0x38   :  { %707 = vmatpush.bf16.msrb.mxu2 %v1321_v32  ;;  %658 = vmatpush.bf16.msrb.mxu1 %v1313_v33  ;;  %v1276_v32 = vld [vmem:[%s1798_s0 + $0x7c] sm:$0xf]  ;;  %v1013_v33 = vld [vmem:[%s1798_s0 + $0x8c] sm:$0xf0] }
  0x39   :  { %v1016_v40 = vor.u32 %v1276_v32, %v1013_v33  ;;  %v1096_v32 = vor.u32 %v1296_v22, %v1093_v23  ;;  %v1100_v33 = vor.u32 %v1299_v25, %v1099_v24 }
  0x3a   :  { %756 = vmatpush.bf16.msrb.mxu3 %v1329_v34  ;;  %809 = vmatpush.bf16.msrb.mxu0 %v1333_v43  ;;  %v1019_v34 = vld [vmem:[%s1798_s0 + $0x80] sm:$0xf]  ;;  %v1028_v43 = vor.u32 %v1280_v39, %v1027_v38 }
  0x3b   :  { %629 = vmatmul.bf16.gmra.mxu1 %v1012_v46  ;;  %639 = vmatmul.bf16.gmra.mxu2 %v1052_v47  ;;  %v1020_v41 = vor.u32 %v1279_v35, %v1019_v34  ;;  %v1039_v46 = vld [vmem:[%s1798_s0 + $0xa8] sm:$0xf]  ;;  %v1284_v47 = vld [vmem:[%s1798_s0 + $0xb8] sm:$0xf0]  ;;  %v1104_v35 = vor.u32 %v1297_v26, %v1101_v27 }
  0x3c   :  { %708 = vmatpush.bf16.msrb.mxu2 %v1320_v44  ;;  %659 = vmatpush.bf16.msrb.mxu1 %v1312_v45  ;;  %v1281_v44 = vld [vmem:[%s1798_s0 + $0xa4] sm:$0xf]  ;;  %v1033_v45 = vld [vmem:[%s1798_s0 + $0xb4] sm:$0xf0] }
  0x3d   :  { %649 = vmatmul.bf16.gmra.mxu3 %v1092_v48  ;;  %619 = vmatmul.bf16.gmra.mxu0 %v972_v49  ;;  %v1282_v48 = vld [vmem:[%s1798_s0 + $0xac] sm:$0xf]  ;;  %v1041_v49 = vld [vmem:[%s1798_s0 + $0xbc] sm:$0xf0] }
  0x3e   :  { %757 = vmatpush.bf16.msrb.mxu3 %v1328_v50  ;;  %v1047_v50 = vld [vmem:[%s1798_s0 + $0xb0] sm:$0xf] }
  0x40   :  { %709 = vmatpush.bf16.msrb.mxu2 %v1319_v51  ;;  %660 = vmatpush.bf16.msrb.mxu1 %v1311_v52  ;;  %v1285_v51 = vld [vmem:[%s1798_s0 + $0xc0] sm:$0xf0]  ;;  %v1036_v52 = vor.u32 %v1281_v44, %v1033_v45 }
  0x42   :  { %758 = vmatpush.bf16.msrb.mxu3 %v1327_v53  ;;  %v1040_v53 = vor.u32 %v1284_v47, %v1039_v46 }
  0x44   :  { %710 = vmatpush.bf16.msrb.mxu2 %v1318_v54  ;;  %661 = vmatpush.bf16.msrb.mxu1 %v1310_v55  ;;  %v1044_v54 = vor.u32 %v1282_v48, %v1041_v49  ;;  %v1048_v55 = vor.u32 %v1285_v51, %v1047_v50 }
  0x46   :  { %759 = vmatpush.bf16.msrb.mxu3 %v1326_v56  ;;  %v1286_v56 = vld [vmem:[%s1798_s0 + $0xcc] sm:$0xf] }
  0x48   :  { %711 = vmatpush.bf16.msrb.mxu2 %v1317_v57  ;;  %662 = vmatpush.bf16.msrb.mxu1 %v1309_v58  ;;  %v1053_v57 = vld [vmem:[%s1798_s0 + $0xdc] sm:$0xf0]  ;;  %v1059_v58 = vld [vmem:[%s1798_s0 + $0xd0] sm:$0xf] }
  0x49   :  { %v1056_v0 = vor.u32 %v1286_v56, %v1053_v57 }
  0x4a   :  { %760 = vmatpush.bf16.msrb.mxu3 %v1325_v59  ;;  %v1289_v59 = vld [vmem:[%s1798_s0 + $0xe0] sm:$0xf0] }
  0x4b   :  { %663 = vmatmul.bf16.vlgmr.msrb.gmra.mxu1 %v956_v4  ;;  %712 = vmatmul.bf16.vlgmr.msrb.gmra.mxu2 %v960_v5  ;;  %v1060_v1 = vor.u32 %v1289_v59, %v1059_v58  ;;  %v1291_v4 = vld [vmem:[%s1798_s0 + $0xf4] sm:$0xf]  ;;  %v1073_v5 = vld [vmem:[%s1798_s0 + $0x104] sm:$0xf0] }
  0x4c   :  { %v1076_v12 = vor.u32 %v1291_v4, %v1073_v5 }
  0x4d   :  { %761 = vmatmul.bf16.vlgmr.msrb.gmra.mxu3 %v964_v6  ;;  %1253 = vmatmul.msk.bf16.vlgmr.msrb.gmra.mxu0 %vm581_vm0, %v968_v7  ;;  %v1079_v6 = vld [vmem:[%s1798_s0 + $0xf8] sm:$0xf]  ;;  %v1294_v7 = vld [vmem:[%s1798_s0 + $0x108] sm:$0xf0] }
  0x4e   :  { %v1080_v13 = vor.u32 %v1294_v7, %v1079_v6 }
  0x5b   :  { %668 = vmatmul.bf16.gmra.mxu1 %v976_v16  ;;  %717 = vmatmul.bf16.gmra.mxu2 %v980_v17  ;;  %v1088_v16 = vor.u32 %v1295_v11, %v1087_v10 }
  0x5d   :  { %766 = vmatmul.bf16.gmra.mxu3 %v984_v18  ;;  %1254 = vmatmul.msk.bf16.gmra.mxu0 %vm581_vm0, %v988_v19 }
  0x6b   :  { %673 = vmatmul.bf16.gmra.mxu1 %v996_v28  ;;  %722 = vmatmul.bf16.gmra.mxu2 %v1000_v29  ;;  %v1107_v28 = vld [vmem:[%s1798_s0 + $0x128] sm:$0xf]  ;;  %v1300_v29 = vld [vmem:[%s1798_s0 + $0x138] sm:$0xf0] }
  0x6c   :  { %v1108_v36 = vor.u32 %v1300_v29, %v1107_v28 }
  0x6d   :  { %771 = vmatmul.bf16.gmra.mxu3 %v1004_v30  ;;  %1255 = vmatmul.msk.bf16.gmra.mxu0 %vm581_vm0, %v1008_v31 }
  0x7b   :  { %678 = vmatmul.bf16.gmra.mxu1 %v1016_v40  ;;  %727 = vmatmul.bf16.gmra.mxu2 %v1020_v41 }
  0x7d   :  { %776 = vmatmul.bf16.gmra.mxu3 %v1024_v42  ;;  %1256 = vmatmul.msk.bf16.gmra.mxu0 %vm581_vm0, %v1028_v43 }
  0x8b   :  { %683 = vmatmul.bf16.gmra.mxu1 %v1036_v52  ;;  %732 = vmatmul.bf16.gmra.mxu2 %v1040_v53  ;;  %v1720_v52 = vld [vmem:[#allocation4] ss:$0 sm:$0xff] }
  0x8d   :  { %781 = vmatmul.bf16.gmra.mxu3 %v1044_v54  ;;  %1257 = vmatmul.msk.bf16.gmra.mxu0 %vm581_vm0, %v1048_v55 }
  0x9b   :  { %688 = vmatmul.bf16.gmra.mxu1 %v1056_v0  ;;  %737 = vmatmul.bf16.gmra.mxu2 %v1060_v1 }
  0x9d   :  { %786 = vmatmul.bf16.gmra.mxu3 %v1064_v2  ;;  %1258 = vmatmul.msk.bf16.gmra.mxu0 %vm581_vm0, %v1068_v3 }
  0xa8   :  { %v1670_v14 = vpop.f32.mrf.mxu1 }
  0xaa   :  { %v615_v17 = vpop.f32.mrf.mxu0 }
  0xab   :  { %693 = vmatmul.bf16.gmra.mxu1 %v1076_v12  ;;  %742 = vmatmul.bf16.gmra.mxu2 %v1080_v13 }
  0xad   :  { %791 = vmatmul.bf16.gmra.mxu3 %v1084_v15  ;;  %1259 = vmatmul.msk.bf16.gmra.mxu0 %vm581_vm0, %v1088_v16 }
  0xae   :  { %v1673_v18 = vpop.f32.mrf.mxu2 }
  0xb0   :  { %v1675_v19 = vpop.f32.mrf.mxu3  ;;  %v1677_v20 = vpop.f32.mrf.mxu1 }
  0xb2   :  { %v617_v21 = vpop.f32.mrf.mxu0 }
  0xb6   :  { %v1703_v30 = vpop.f32.mrf.mxu2 }
  0xb8   :  { %v1705_v31 = vpop.f32.mrf.mxu3  ;;  %v1707_v34 = vpop.f32.mrf.mxu1 }
  0xba   :  { %v620_v37 = vpop.f32.mrf.mxu0 }
  0xbb   :  { %698 = vmatmul.bf16.gmra.mxu1 %v1096_v32  ;;  %747 = vmatmul.bf16.gmra.mxu2 %v1100_v33 }
  0xbd   :  { %796 = vmatmul.bf16.gmra.mxu3 %v1104_v35  ;;  %1260 = vmatmul.msk.bf16.gmra.mxu0 %vm581_vm0, %v1108_v36 }
  0xbe   :  { %v1710_v38 = vpop.f32.mrf.mxu2 }
  0xc0   :  { %v1712_v39 = vpop.f32.mrf.mxu3  ;;  %v1714_v40 = vpop.f32.mrf.mxu1 }
  0xc2   :  { %v622_v41 = vpop.f32.mrf.mxu0 }
  0xc6   :  { %v1716_v42 = vpop.f32.mrf.mxu2 }
  0xc8   :  { %v1718_v43 = vpop.f32.mrf.mxu3  ;;  %v664_v44 = vpop.f32.mrf.mxu1 }
  0xc9   :  { %v665_v46 = vadd.f32 %v664_v44, %v615_v17 }
  0xca   :  { %v811_v45 = vpop.f32.mrf.mxu0 }
  0xce   :  { %v713_v47 = vpop.f32.mrf.mxu2 }
  0xcf   :  { %v714_v48 = vadd.f32 %v713_v47, %v665_v46 }
  0xd0   :  { %v762_v49 = vpop.f32.mrf.mxu3  ;;  %v666_v50 = vpop.f32.mrf.mxu1 }
  0xd1   :  { %v763_v51 = vadd.f32 %v762_v49, %v714_v48  ;;  %v667_v56 = vadd.f32 %v666_v50, %v617_v21 }
  0xd2   :  { %v813_v53 = vpop.f32.mrf.mxu0 }
  0xd3   :  { %v812_v54 = vadd.f32 %v811_v45, %v763_v51 }
  0xd5   :  { %v859_v55 = vadd.f32 %v1720_v52, %v812_v54 }
  0xd6   :  { %v715_v57 = vpop.f32.mrf.mxu2 }
  0xd7   :  { %875 = vst [vmem:[%s1801_s3] sm:$0xff] %v859_v55  ;;  %v716_v58 = vadd.f32 %v715_v57, %v667_v56 }
  0xd8   :  { %v764_v59 = vpop.f32.mrf.mxu3  ;;  %v669_v60 = vpop.f32.mrf.mxu1 }
  0xd9   :  { %v765_v61 = vadd.f32 %v764_v59, %v716_v58  ;;  %v670_v1 = vadd.f32 %v669_v60, %v620_v37 }
  0xda   :  { %v816_v62 = vpop.f32.mrf.mxu0 }
  0xdb   :  { %v814_v63 = vadd.f32 %v813_v53, %v765_v61 }
  0xdd   :  { %v860_v0 = vadd.f32 %v1720_v52, %v814_v63 }
  0xde   :  { %v718_v2 = vpop.f32.mrf.mxu2 }
  0xdf   :  { %876 = vst [vmem:[%s1801_s3 + $0x8] sm:$0xff] %v860_v0  ;;  %v719_v3 = vadd.f32 %v718_v2, %v670_v1 }
  0xe0   :  { %v767_v4 = vpop.f32.mrf.mxu3  ;;  %v671_v5 = vpop.f32.mrf.mxu1 }
  0xe1   :  { %v768_v6 = vadd.f32 %v767_v4, %v719_v3  ;;  %v672_v10 = vadd.f32 %v671_v5, %v622_v41 }
  0xe2   :  { %v818_v7 = vpop.f32.mrf.mxu0 }
  0xe3   :  { %v817_v8 = vadd.f32 %v816_v62, %v768_v6 }
  0xe5   :  { %v861_v9 = vadd.f32 %v1720_v52, %v817_v8 }
  0xe6   :  { %v720_v11 = vpop.f32.mrf.mxu2 }
  0xe7   :  { %877 = vst [vmem:[%s1801_s3 + $0x10] sm:$0xff] %v861_v9  ;;  %v721_v12 = vadd.f32 %v720_v11, %v672_v10 }
  0xe8   :  { %v769_v13 = vpop.f32.mrf.mxu3  ;;  %v674_v15 = vpop.f32.mrf.mxu1 }
  0xe9   :  { %v770_v16 = vadd.f32 %v769_v13, %v721_v12  ;;  %v675_v23 = vadd.f32 %v674_v15, %v1670_v14 }
  0xea   :  { %v821_v17 = vpop.f32.mrf.mxu0 }
  0xeb   :  { %v819_v21 = vadd.f32 %v818_v7, %v770_v16 }
  0xed   :  { %v862_v22 = vadd.f32 %v1720_v52, %v819_v21 }
  0xee   :  { %v723_v24 = vpop.f32.mrf.mxu2 }
  0xef   :  { %878 = vst [vmem:[%s1801_s3 + $0x18] sm:$0xff] %v862_v22  ;;  %v724_v25 = vadd.f32 %v723_v24, %v675_v23 }
  0xf0   :  { %v772_v26 = vpop.f32.mrf.mxu3  ;;  %v676_v27 = vpop.f32.mrf.mxu1 }
  0xf1   :  { %v773_v28 = vadd.f32 %v772_v26, %v724_v25  ;;  %v677_v35 = vadd.f32 %v676_v27, %v1677_v20 }
  0xf2   :  { %v823_v29 = vpop.f32.mrf.mxu0 }
  0xf3   :  { %v822_v32 = vadd.f32 %v821_v17, %v773_v28 }
  0xf5   :  { %v863_v33 = vadd.f32 %v1720_v52, %v822_v32 }
  0xf6   :  { %v725_v36 = vpop.f32.mrf.mxu2 }
  0xf7   :  { %879 = vst [vmem:[%s1801_s3 + $0x20] sm:$0xff] %v863_v33  ;;  %v726_v14 = vadd.f32 %v725_v36, %v677_v35 }
  0xf8   :  { %v774_v37 = vpop.f32.mrf.mxu3  ;;  %v679_v41 = vpop.f32.mrf.mxu1 }
  0xf9   :  { %v775_v44 = vadd.f32 %v774_v37, %v726_v14  ;;  %v680_v48 = vadd.f32 %v679_v41, %v1707_v34 }
  0xfa   :  { %v826_v45 = vpop.f32.mrf.mxu0 }
  0xfb   :  { %v824_v46 = vadd.f32 %v823_v29, %v775_v44 }
  0xfd   :  { %v864_v47 = vadd.f32 %v1720_v52, %v824_v46 }
  0xfe   :  { %v728_v49 = vpop.f32.mrf.mxu2 }
  0xff   :  { %880 = vst [vmem:[%s1801_s3 + $0x28] sm:$0xff] %v864_v47  ;;  %v729_v20 = vadd.f32 %v728_v49, %v680_v48 }
 0x100   :  { %v777_v50 = vpop.f32.mrf.mxu3  ;;  %v681_v51 = vpop.f32.mrf.mxu1 }
 0x101   :  { %v778_v53 = vadd.f32 %v777_v50, %v729_v20  ;;  %v682_v57 = vadd.f32 %v681_v51, %v1714_v40 }
 0x102   :  { %v828_v54 = vpop.f32.mrf.mxu0 }
 0x103   :  { %v827_v55 = vadd.f32 %v826_v45, %v778_v53 }
 0x105   :  { %v865_v56 = vadd.f32 %v1720_v52, %v827_v55 }
 0x106   :  { %v730_v58 = vpop.f32.mrf.mxu2 }
 0x107   :  { %881 = vst [vmem:[%s1801_s3 + $0x30] sm:$0xff] %v865_v56  ;;  %v731_v34 = vadd.f32 %v730_v58, %v682_v57 }
 0x108   :  { %v779_v59 = vpop.f32.mrf.mxu3  ;;  %v684_v60 = vpop.f32.mrf.mxu1 }
 0x109   :  { %v780_v61 = vadd.f32 %v779_v59, %v731_v34  ;;  %v685_v1 = vadd.f32 %v684_v60, %v1673_v18 }
 0x10a   :  { %v831_v62 = vpop.f32.mrf.mxu0 }
 0x10b   :  { %v829_v63 = vadd.f32 %v828_v54, %v780_v61 }
 0x10d   :  { %v866_v0 = vadd.f32 %v1720_v52, %v829_v63 }
 0x10e   :  { %v733_v2 = vpop.f32.mrf.mxu2 }
 0x10f   :  { %882 = vst [vmem:[%s1801_s3 + $0x38] sm:$0xff] %v866_v0  ;;  %v734_v40 = vadd.f32 %v733_v2, %v685_v1 }
 0x110   :  { %v782_v3 = vpop.f32.mrf.mxu3  ;;  %v686_v4 = vpop.f32.mrf.mxu1 }
 0x111   :  { %v783_v5 = vadd.f32 %v782_v3, %v734_v40  ;;  %v687_v9 = vadd.f32 %v686_v4, %v1703_v30 }
 0x112   :  { %v833_v6 = vpop.f32.mrf.mxu0 }
 0x113   :  { %v832_v7 = vadd.f32 %v831_v62, %v783_v5 }
 0x115   :  { %v867_v8 = vadd.f32 %v1720_v52, %v832_v7 }
 0x116   :  { %v735_v10 = vpop.f32.mrf.mxu2 }
 0x117   :  { %883 = vst [vmem:[%s1801_s3 + $0x40] sm:$0xff] %v867_v8  ;;  %v736_v18 = vadd.f32 %v735_v10, %v687_v9 }
 0x118   :  { %v784_v11 = vpop.f32.mrf.mxu3  ;;  %v689_v12 = vpop.f32.mrf.mxu1 }
 0x119   :  { %v785_v13 = vadd.f32 %v784_v11, %v736_v18  ;;  %v690_v21 = vadd.f32 %v689_v12, %v1710_v38 }
 0x11a   :  { %v836_v15 = vpop.f32.mrf.mxu0 }
 0x11b   :  { %v834_v16 = vadd.f32 %v833_v6, %v785_v13 }
 0x11d   :  { %v868_v17 = vadd.f32 %v1720_v52, %v834_v16 }
 0x11e   :  { %v738_v22 = vpop.f32.mrf.mxu2 }
 0x11f   :  { %884 = vst [vmem:[%s1801_s3 + $0x48] sm:$0xff] %v868_v17  ;;  %v739_v30 = vadd.f32 %v738_v22, %v690_v21 }
 0x120   :  { %v787_v23 = vpop.f32.mrf.mxu3  ;;  %v691_v24 = vpop.f32.mrf.mxu1 }
 0x121   :  { %v788_v25 = vadd.f32 %v787_v23, %v739_v30  ;;  %v692_v29 = vadd.f32 %v691_v24, %v1716_v42 }
 0x122   :  { %v838_v26 = vpop.f32.mrf.mxu0 }
 0x123   :  { %v837_v27 = vadd.f32 %v836_v15, %v788_v25 }
 0x125   :  { %v869_v28 = vadd.f32 %v1720_v52, %v837_v27 }
 0x126   :  { %v740_v32 = vpop.f32.mrf.mxu2 }
 0x127   :  { %885 = vst [vmem:[%s1801_s3 + $0x50] sm:$0xff] %v869_v28  ;;  %v741_v38 = vadd.f32 %v740_v32, %v692_v29 }
 0x128   :  { %v789_v33 = vpop.f32.mrf.mxu3  ;;  %v694_v35 = vpop.f32.mrf.mxu1 }
 0x129   :  { %v790_v36 = vadd.f32 %v789_v33, %v741_v38  ;;  %v695_v44 = vadd.f32 %v694_v35, %v1675_v19 }
 0x12a   :  { %v841_v37 = vpop.f32.mrf.mxu0 }
 0x12b   :  { %v839_v14 = vadd.f32 %v838_v26, %v790_v36 }
 0x12d   :  { %v870_v41 = vadd.f32 %v1720_v52, %v839_v14 }
 0x12e   :  { %v743_v45 = vpop.f32.mrf.mxu2 }
 0x12f   :  { %886 = vst [vmem:[%s1801_s3 + $0x58] sm:$0xff] %v870_v41  ;;  %v744_v42 = vadd.f32 %v743_v45, %v695_v44 }
 0x130   :  { %v792_v46 = vpop.f32.mrf.mxu3  ;;  %v696_v47 = vpop.f32.mrf.mxu1 }
 0x131   :  { %v793_v48 = vadd.f32 %v792_v46, %v744_v42  ;;  %v697_v50 = vadd.f32 %v696_v47, %v1705_v31 }
 0x132   :  { %v843_v51 = vpop.f32.mrf.mxu0 }
 0x133   :  { %v842_v49 = vadd.f32 %v841_v37, %v793_v48 }
 0x135   :  { %v871_v20 = vadd.f32 %v1720_v52, %v842_v49 }
 0x136   :  { %v745_v53 = vpop.f32.mrf.mxu2 }
 0x137   :  { %887 = vst [vmem:[%s1801_s3 + $0x60] sm:$0xff] %v871_v20  ;;  %v746_v19 = vadd.f32 %v745_v53, %v697_v50 }
 0x138   :  { %v794_v54 = vpop.f32.mrf.mxu3  ;;  %v699_v55 = vpop.f32.mrf.mxu1 }
 0x139   :  { %v795_v56 = vadd.f32 %v794_v54, %v746_v19  ;;  %v700_v34 = vadd.f32 %v699_v55, %v1712_v39 }
 0x13a   :  { %v846_v61 = vpop.f32.mrf.mxu0 }
 0x13b   :  { %v844_v57 = vadd.f32 %v843_v51, %v795_v56 }
 0x13d   :  { %v872_v58 = vadd.f32 %v1720_v52, %v844_v57 }
 0x13e   :  { %v748_v59 = vpop.f32.mrf.mxu2 }
 0x13f   :  { %888 = vst [vmem:[%s1801_s3 + $0x68] sm:$0xff] %v872_v58  ;;  %v749_v31 = vadd.f32 %v748_v59, %v700_v34 }
 0x140   :  { %v797_v60 = vpop.f32.mrf.mxu3  ;;  %v701_v63 = vpop.f32.mrf.mxu1 }
 0x141   :  { %v798_v62 = vadd.f32 %v797_v60, %v749_v31  ;;  %v702_v2 = vadd.f32 %v701_v63, %v1718_v43 }
 0x142   :  { %v848_v5 = vpop.f32.mrf.mxu0 }
 0x143   :  { %v847_v0 = vadd.f32 %v846_v61, %v798_v62 }
 0x145   :  { %v873_v1 = vadd.f32 %v1720_v52, %v847_v0 }
 0x146   :  { %v750_v40 = vpop.f32.mrf.mxu2 }
 0x147   :  { %889 = vst [vmem:[%s1801_s3 + $0x70] sm:$0xff] %v873_v1  ;;  %v751_v39 = vadd.f32 %v750_v40, %v702_v2 }
 0x148   :  { %v799_v3 = vpop.f32.mrf.mxu3 }
 0x149   :  { %v800_v4 = vadd.f32 %v799_v3, %v751_v39 }
 0x14b   :  { %v849_v6 = vadd.f32 %v848_v5, %v800_v4 }
 0x14d   :  { %v874_v7 = vadd.f32 %v1720_v52, %v849_v6 }
 0x14f   :  { %890 = vst [vmem:[%s1801_s3 + $0x78] sm:$0xff] %v874_v7 }
 0x150   :  { %947 = vsyncpa [#allocation3], 1 }
 0x151   :  { %948 = vsyncpa [#allocation5], 1 }

// kernel: mul.185
= control target key start
LH: loop header
LB: loop body
LE: loop exit
PB: predicated region body
PF: predicated region fallthrough
CT: control target
= control target key end

     0   :  { %s118_s0 = inlined_call_operand.vmem [shape: f32[2,128], index: 0, kind: input, shape index: {}]   ;;  %s119_s1 = inlined_call_operand.vmem [shape: f32[2,8,8,128], index: 1, kind: output, shape index: {}]  }
   0x1   :  { %v4_v0 = vld [vmem:[%s118_s0] ss:$0 sm:$0xff]  ;;  %v38_v1 = vld [vmem:[%s118_s0 + $0x1] ss:$0 sm:$0xff] }
   0x2   :  { %5 = vst [vmem:[%s119_s1] sm:$0xff] %v4_v0 }
   0x3   :  { %39 = vst [vmem:[%s119_s1 + $0x40] sm:$0xff] %v38_v1 }
   0x4   :  { %40 = vst [vmem:[%s119_s1 + $0x8] sm:$0xff] %v4_v0 }
   0x5   :  { %41 = vst [vmem:[%s119_s1 + $0x48] sm:$0xff] %v38_v1 }
   0x6   :  { %42 = vst [vmem:[%s119_s1 + $0x10] sm:$0xff] %v4_v0 }
   0x7   :  { %43 = vst [vmem:[%s119_s1 + $0x50] sm:$0xff] %v38_v1 }
   0x8   :  { %44 = vst [vmem:[%s119_s1 + $0x18] sm:$0xff] %v4_v0 }
   0x9   :  { %45 = vst [vmem:[%s119_s1 + $0x58] sm:$0xff] %v38_v1 }
   0xa   :  { %46 = vst [vmem:[%s119_s1 + $0x20] sm:$0xff] %v4_v0 }
   0xb   :  { %47 = vst [vmem:[%s119_s1 + $0x60] sm:$0xff] %v38_v1 }
   0xc   :  { %48 = vst [vmem:[%s119_s1 + $0x28] sm:$0xff] %v4_v0 }
   0xd   :  { %49 = vst [vmem:[%s119_s1 + $0x68] sm:$0xff] %v38_v1 }
   0xe   :  { %50 = vst [vmem:[%s119_s1 + $0x30] sm:$0xff] %v4_v0 }
   0xf   :  { %51 = vst [vmem:[%s119_s1 + $0x70] sm:$0xff] %v38_v1 }
  0x10   :  { %52 = vst [vmem:[%s119_s1 + $0x38] sm:$0xff] %v4_v0 }
  0x11   :  { %53 = vst [vmem:[%s119_s1 + $0x78] sm:$0xff] %v38_v1 }

// kernel: improved_unet_forward.39
= control target key start
LH: loop header
LB: loop body
LE: loop exit
PB: predicated region body
PF: predicated region fallthrough
CT: control target
= control target key end

     0   :  { %8 = vsyncpa [#allocation4], 0  ;;  %s1519_s12 = smov 0   ;;  %s1521_s13 = smov 0   ;;  %s2006_s0 = inlined_call_operand.vmem [shape: bf16[128,1152], index: 0, kind: input, shape index: {}]   ;;  %s2007_s1 = inlined_call_operand.vmem [shape: bf16[1152,128], index: 1, kind: input, shape index: {}]   ;;  %s2008_s2 = inlined_call_operand.hbm [shape: f32[1,128], index: 2, kind: input, shape index: {}]   ;;  %s2009_s3 = inlined_call_operand.vmem [shape: f32[128,128], index: 3, kind: output, shape index: {}]  }
   0x1   :  { %s1523_s14 = smov 0   ;;  %s1525_s15 = smov 0  }
   0x2   :  { %s1527_s16 = smov 0  }
   0x3 LB: > { %s1059_s17 = sadd.s32 4294967295, %s1496_s16   ;;  %s26_s18 = sadd.s32 1, %s1492_s15  ;;  %s1496_s16 = sphi %s1527_s16, %s14_s16   ;;  %s1492_s15 = sphi %s1525_s15, %s2016_s15   ;;  %s1488_s14 = sphi %s1523_s14, %s2015_s14   ;;  %s1484_s13 = sphi %s1521_s13, %s2014_s13   ;;  %s1480_s12 = sphi %s1519_s12, %s2013_s12  }
   0x4   : > { %p27_p0 = scmp.ge.s32.totalorder %s26_s18, 3  ;;  %s42_s19 = sadd.s32 1, %s1484_s13 }
   0x5   : > { %p49_p1 = scmp.ne.s32.totalorder %s1484_s13, %s1480_s12  ;;  %p50_p2 = scmp.eq.s32.totalorder %s1496_s16, 0 }
   0x6   : > { %s2018_s18 = smov (%p27_p0, %s26_s18), 0  ;;  %p1060_p4 = scmp.ge.s32.totalorder %s1496_s16, 1 }
   0x7   : > { %p1552_p3 = por %p50_p2, %p49_p1  ;;  %s38_s21 = ssub.s32 %s1492_s15, %s2018_s18 }
   0x8   : > { %p148_p5 = scmp.lt.s32.totalorder %s1496_s16, 4  ;;  %p40_p6 = scmp.eq.s32.totalorder %s38_s21, 0 }
   0x9   : > { %p1564_p8 = scmp.eq.s32.totalorder %s1059_s17, 0  ;;  %s161_s27 = sshll.u32 %s2008_s2, 4  ;;  %s162_s27 = int_to_ptr.hbm [resolvable:$true] %s161_s27 }
   0xa   : > { %p1560_p7 = pnand %p1060_p4, %p148_p5  ;;  %s1498_s28 = smov [#allocation3]  }
   0xb   : > { %s1569_s24 = scalar_select %p40_p6, %s1484_s13, %s42_s19  }
   0xc   : > { %p1376_p9 = pneg %p1560_p7  ;;  %s163_s29 = sshll.u32 %s1498_s28, 4  ;;  %s164_s29 = int_to_ptr.vmem [resolvable:$true] %s163_s29 }
   0xd   : > { %p1062_p11 = scmp.ge.s32.totalorder %s1496_s16, 3 }
   0xe   : > { %p1377_p10 = pnand %p1564_p8, %p1376_p9 }
   0xf   : > { %170 = sbr.rel (%p1062_p11) target bundleno = 57 (0x39), region = 20 }
  0x10   : > { %1379 = dma.hbm_to_vmem [thread:$0]  (!%p1377_p10), %s162_s27, 16, %s164_s29, [#allocation4]  }
  0x14   : > { %173 = sbr.rel (!%p1552_p3) target bundleno = 57 (0x39), region = 24  ;;  %s175_s30 = sand.u32 (%p1552_p3), 1, %s1484_s13  }
  0x15   : > { %s1297_s4 = smul.u32 (%p1552_p3), 12, %s1492_s15 }
  0x16   : > { %s1370_s5 = smul.u32 (%p1552_p3), 192, %s175_s30 }
  0x17   : > { %s1586_s8 = scalar_lea.vmem (%p1552_p3), %s2006_s0, %s1297_s4 }
  0x18   : > { %v198_v0 = vld [vmem:[%s1586_s8] sm:$0xff] (%p1552_p3)  ;;  %v202_v2 = vld [vmem:[%s1586_s8 + $0x48] sm:$0xff] (%p1552_p3)  ;;  %s1591_s9 = scalar_lea.vmem (%p1552_p3), [#allocation2], %s1370_s5  ;;  %v206_v4 = vld [vmem:[%s1586_s8 + $0x90] sm:$0xff] (%p1552_p3) }
  0x19   : > { %v200_v1 = vld [vmem:[%s1586_s8 + $0x24] sm:$0xff]  ;;  %199 = vst [vmem:[%s1591_s9] sm:$0xff] %v198_v0  ;;  %v204_v3 = vld [vmem:[%s1586_s8 + $0x6c] sm:$0xff]  ;;  %v208_v5 = vld [vmem:[%s1586_s8 + $0xb4] sm:$0xff] }
  0x1a   : > { %201 = vst [vmem:[%s1591_s9 + $0xc] sm:$0xff] %v200_v1  ;;  %v210_v6 = vld [vmem:[%s1586_s8 + $0xd8] sm:$0xff]  ;;  %v214_v8 = vld [vmem:[%s1586_s8 + $0x120] sm:$0xff]  ;;  %v218_v10 = vld [vmem:[%s1586_s8 + $0x168] sm:$0xff] }
  0x1b   : > { %203 = vst [vmem:[%s1591_s9 + $0x18] sm:$0xff] %v202_v2  ;;  %v212_v7 = vld [vmem:[%s1586_s8 + $0xfc] sm:$0xff]  ;;  %v216_v9 = vld [vmem:[%s1586_s8 + $0x144] sm:$0xff]  ;;  %v220_v11 = vld [vmem:[%s1586_s8 + $0x18c] sm:$0xff] }
  0x1c   : > { %205 = vst [vmem:[%s1591_s9 + $0x24] sm:$0xff] %v204_v3  ;;  %v222_v12 = vld [vmem:[%s1586_s8 + $0x1b0] sm:$0xff]  ;;  %v226_v14 = vld [vmem:[%s1586_s8 + $0x1f8] sm:$0xff]  ;;  %v1064_v16 = vld [vmem:[%s1586_s8 + $0x8] sm:$0xf] }
  0x1d   : > { %207 = vst [vmem:[%s1591_s9 + $0x30] sm:$0xff] %v206_v4  ;;  %v224_v13 = vld [vmem:[%s1586_s8 + $0x1d4] sm:$0xff]  ;;  %v228_v15 = vld [vmem:[%s1586_s8 + $0x21c] sm:$0xff]  ;;  %v1066_v17 = vld [vmem:[%s1586_s8 + $0x2c] sm:$0xf] }
  0x1e   : > { %209 = vst [vmem:[%s1591_s9 + $0x3c] sm:$0xff] %v208_v5  ;;  %v1068_v18 = vld [vmem:[%s1586_s8 + $0x50] sm:$0xf]  ;;  %v1070_v19 = vld [vmem:[%s1586_s8 + $0x74] sm:$0xf] }
  0x1f   : > { %211 = vst [vmem:[%s1591_s9 + $0x48] sm:$0xff] %v210_v6  ;;  %v1072_v20 = vld [vmem:[%s1586_s8 + $0x98] sm:$0xf]  ;;  %v1074_v21 = vld [vmem:[%s1586_s8 + $0xbc] sm:$0xf] }
  0x20   : > { %213 = vst [vmem:[%s1591_s9 + $0x54] sm:$0xff] %v212_v7  ;;  %v1076_v22 = vld [vmem:[%s1586_s8 + $0xe0] sm:$0xf]  ;;  %v1078_v23 = vld [vmem:[%s1586_s8 + $0x104] sm:$0xf] }
  0x21   : > { %215 = vst [vmem:[%s1591_s9 + $0x60] sm:$0xff] %v214_v8  ;;  %v1080_v24 = vld [vmem:[%s1586_s8 + $0x128] sm:$0xf]  ;;  %v1082_v25 = vld [vmem:[%s1586_s8 + $0x14c] sm:$0xf] }
  0x22   : > { %217 = vst [vmem:[%s1591_s9 + $0x6c] sm:$0xff] %v216_v9  ;;  %v1084_v26 = vld [vmem:[%s1586_s8 + $0x170] sm:$0xf]  ;;  %v1086_v27 = vld [vmem:[%s1586_s8 + $0x194] sm:$0xf] }
  0x23   : > { %219 = vst [vmem:[%s1591_s9 + $0x78] sm:$0xff] %v218_v10  ;;  %v1088_v28 = vld [vmem:[%s1586_s8 + $0x1b8] sm:$0xf]  ;;  %v1090_v29 = vld [vmem:[%s1586_s8 + $0x1dc] sm:$0xf] }
  0x24   : > { %221 = vst [vmem:[%s1591_s9 + $0x84] sm:$0xff] %v220_v11  ;;  %v1092_v30 = vld [vmem:[%s1586_s8 + $0x200] sm:$0xf]  ;;  %v1094_v31 = vld [vmem:[%s1586_s8 + $0x224] sm:$0xf] }
  0x25   : > { %223 = vst [vmem:[%s1591_s9 + $0x90] sm:$0xff] %v222_v12 }
  0x26   : > { %225 = vst [vmem:[%s1591_s9 + $0x9c] sm:$0xff] %v224_v13 }
  0x27   : > { %227 = vst [vmem:[%s1591_s9 + $0xa8] sm:$0xff] %v226_v14 }
  0x28   : > { %229 = vst [vmem:[%s1591_s9 + $0xb4] sm:$0xff] %v228_v15 }
  0x29   : > { %1065 = vst [vmem:[%s1591_s9 + $0x8] sm:$0xf] %v1064_v16 }
  0x2a   : > { %1067 = vst [vmem:[%s1591_s9 + $0x14] sm:$0xf] %v1066_v17 }
  0x2b   : > { %1069 = vst [vmem:[%s1591_s9 + $0x20] sm:$0xf] %v1068_v18 }
  0x2c   : > { %1071 = vst [vmem:[%s1591_s9 + $0x2c] sm:$0xf] %v1070_v19 }
  0x2d   : > { %1073 = vst [vmem:[%s1591_s9 + $0x38] sm:$0xf] %v1072_v20 }
  0x2e   : > { %1075 = vst [vmem:[%s1591_s9 + $0x44] sm:$0xf] %v1074_v21 }
  0x2f   : > { %1077 = vst [vmem:[%s1591_s9 + $0x50] sm:$0xf] %v1076_v22 }
  0x30   : > { %1079 = vst [vmem:[%s1591_s9 + $0x5c] sm:$0xf] %v1078_v23 }
  0x31   : > { %1081 = vst [vmem:[%s1591_s9 + $0x68] sm:$0xf] %v1080_v24 }
  0x32   : > { %1083 = vst [vmem:[%s1591_s9 + $0x74] sm:$0xf] %v1082_v25 }
  0x33   : > { %1085 = vst [vmem:[%s1591_s9 + $0x80] sm:$0xf] %v1084_v26 }
  0x34   : > { %1087 = vst [vmem:[%s1591_s9 + $0x8c] sm:$0xf] %v1086_v27 }
  0x35   : > { %1089 = vst [vmem:[%s1591_s9 + $0x98] sm:$0xf] %v1088_v28 }
  0x36   : > { %1091 = vst [vmem:[%s1591_s9 + $0xa4] sm:$0xf] %v1090_v29 }
  0x37   : > { %1093 = vst [vmem:[%s1591_s9 + $0xb0] sm:$0xf] %v1092_v30 }
  0x38   : > { %1095 = vst [vmem:[%s1591_s9 + $0xbc] sm:$0xf] %v1094_v31 }
  0x39 PF: > { %290 = sbr.rel (%p1560_p7) target bundleno = 370 (0x172), region = 54  ;;  %s293_s10 = sand.u32 (!%p1560_p7), 1, %s1480_s12  }
  0x3a   : > { %s1371_s11 = smul.u32 (!%p1560_p7), 192, %s293_s10 }
  0x3c   : > { %s1657_s17 = scalar_lea.vmem (!%p1560_p7), [#allocation2], %s1371_s11 }
  0x3e   : > { %1475 = dma.done.wait (%p1564_p8), [#allocation4], 16  }
  0x3f   : > { %1477 = vsyncadd (%p1564_p8), [#allocation4], 4294967280  ;;  %s334_s19 = smul.u32 48, %s1488_s14  ;;  %v1101_v53 = vld [vmem:[%s1657_s17] sm:$0xf]  ;;  %p1291_p13 = scmp.ne.s32.totalorder %s1488_s14, 0 }
  0x40   : > { %v1299_v54 = vld [vmem:[%s1657_s17 + $0x8] sm:$0xf0]  ;;  %v1173_v57 = vld [vmem:[%s1657_s17 + $0x90] sm:$0xf]  ;;  %v1317_v59 = vld [vmem:[%s1657_s17 + $0x98] sm:$0xf0] }
  0x41   : > { %p335_p12 = scmp.lt.s32.totalorder %s334_s19, 143  ;;  %v1298_v60 = vld [vmem:[%s1657_s17 + $0x4] sm:$0xf]  ;;  %v1103_v61 = vld [vmem:[%s1657_s17 + $0xc] sm:$0xf0]  ;;  %v1102_v0 = vor.u32 %v1299_v54, %v1101_v53  ;;  %v1174_v1 = vor.u32 %v1317_v59, %v1173_v57 }
  0x42   : > { %v1109_v62 = vld [vmem:[%s1657_s17 + $0x8] sm:$0xf]  ;;  %v1300_v63 = vld [vmem:[%s1657_s17 + $0x10] sm:$0xf0]  ;;  %v1106_v2 = vor.u32 %v1298_v60, %v1103_v61  ;;  %v1113_v4 = vld [vmem:[%s1657_s17 + $0x18] sm:$0xf] }
  0x43   : > { %s2020_s19 = smov (!%p335_p12, %s334_s19), 143  ;;  %v1110_v3 = vor.u32 %v1300_v63, %v1109_v62  ;;  %v1302_v5 = vld [vmem:[%s1657_s17 + $0x20] sm:$0xf0]  ;;  %v1185_v6 = vld [vmem:[%s1657_s17 + $0xa8] sm:$0xf] }
  0x44   : > { %s1098_s20 = sshll.u32 %s2020_s19, 2  ;;  %v1320_v7 = vld [vmem:[%s1657_s17 + $0xb0] sm:$0xf0]  ;;  %v1301_v8 = vld [vmem:[%s1657_s17 + $0x1c] sm:$0xf]  ;;  %v1114_v12 = vor.u32 %v1302_v5, %v1113_v4 }
  0x45   : > { %s1667_s22 = scalar_lea.vmem %s2007_s1, %s1098_s20  ;;  %v1115_v9 = vld [vmem:[%s1657_s17 + $0x24] sm:$0xf0]  ;;  %v1121_v10 = vld [vmem:[%s1657_s17 + $0x20] sm:$0xf]  ;;  %v1303_v11 = vld [vmem:[%s1657_s17 + $0x28] sm:$0xf0]  ;;  %v1186_v13 = vor.u32 %v1320_v7, %v1185_v6 }
  0x46   : > { %v1329_v32 = vld [vmem:[%s1667_s22 + $0x38] sm:$0xff]  ;;  %v1328_v35 = vld [vmem:[%s1667_s22 + $0x30] sm:$0xff]  ;;  %v1327_v38 = vld [vmem:[%s1667_s22 + $0x28] sm:$0xff]  ;;  %v1118_v14 = vor.u32 %v1301_v8, %v1115_v9  ;;  %v1122_v15 = vor.u32 %v1303_v11, %v1121_v10 }
  0x47   : > { %v1671_v33 = vld [vmem:[%s1667_s22 + $0x78] sm:$0xff]  ;;  %704 = vmatpush.bf16.msra.mxu0 %v1329_v32  ;;  %1346 = vmatpush.bf16.msra.mxu3 %v1329_v32  ;;  %v1680_v36 = vld [vmem:[%s1667_s22 + $0x70] sm:$0xff]  ;;  %v1335_v39 = vld [vmem:[%s1667_s22 + $0x68] sm:$0xff] }
  0x48   : > { %v1674_v34 = vld [vmem:[%s1667_s22 + $0xb8] sm:$0xff]  ;;  %753 = vmatpush.bf16.msra.mxu1 %v1671_v33  ;;  %v1683_v37 = vld [vmem:[%s1667_s22 + $0xb0] sm:$0xff]  ;;  %v1690_v40 = vld [vmem:[%s1667_s22 + $0xa8] sm:$0xff] }
  0x49   : > { %802 = vmatpush.bf16.msra.mxu2 %v1674_v34  ;;  %v1326_v41 = vld [vmem:[%s1667_s22 + $0x20] sm:$0xff]  ;;  %v1325_v44 = vld [vmem:[%s1667_s22 + $0x18] sm:$0xff]  ;;  %v1324_v47 = vld [vmem:[%s1667_s22 + $0x10] sm:$0xff] }
  0x4a   : > { %v1334_v42 = vld [vmem:[%s1667_s22 + $0x60] sm:$0xff]  ;;  %v1333_v45 = vld [vmem:[%s1667_s22 + $0x58] sm:$0xff]  ;;  %v1332_v48 = vld [vmem:[%s1667_s22 + $0x50] sm:$0xff] }
  0x4b   : > { %705 = vmatpush.bf16.msra.mxu0 %v1328_v35  ;;  %1347 = vmatpush.bf16.msra.mxu3 %v1328_v35  ;;  %v1696_v43 = vld [vmem:[%s1667_s22 + $0xa0] sm:$0xff]  ;;  %v1702_v46 = vld [vmem:[%s1667_s22 + $0x98] sm:$0xff]  ;;  %v1708_v49 = vld [vmem:[%s1667_s22 + $0x90] sm:$0xff] }
  0x4c   : > { %754 = vmatpush.bf16.msra.mxu1 %v1680_v36  ;;  %v1323_v50 = vld [vmem:[%s1667_s22 + $0x8] sm:$0xff]  ;;  %v1322_v55 = vld [vmem:[%s1667_s22] sm:$0xff]  ;;  %v1125_v16 = vld [vmem:[%s1657_s17 + $0x30] sm:$0xf] }
  0x4d   : > { %803 = vmatpush.bf16.msra.mxu2 %v1683_v37  ;;  %v1331_v51 = vld [vmem:[%s1667_s22 + $0x48] sm:$0xff]  ;;  %v1330_v56 = vld [vmem:[%s1667_s22 + $0x40] sm:$0xff]  ;;  %v1305_v17 = vld [vmem:[%s1657_s17 + $0x38] sm:$0xf0] }
  0x4e   : > { %v1714_v52 = vld [vmem:[%s1667_s22 + $0x88] sm:$0xff]  ;;  %v1722_v58 = vld [vmem:[%s1667_s22 + $0x80] sm:$0xff]  ;;  %v1304_v18 = vld [vmem:[%s1657_s17 + $0x34] sm:$0xf]  ;;  %v1126_v24 = vor.u32 %v1305_v17, %v1125_v16 }
  0x4f   : > { %706 = vmatpush.bf16.msra.mxu0 %v1327_v38  ;;  %1348 = vmatpush.bf16.msra.mxu3 %v1327_v38  ;;  %v1316_v19 = vld [vmem:[%s1657_s17 + $0x94] sm:$0xf]  ;;  %v1175_v20 = vld [vmem:[%s1657_s17 + $0x9c] sm:$0xf0]  ;;  %v1133_v22 = vld [vmem:[%s1657_s17 + $0x38] sm:$0xf] }
  0x50   : > { %755 = vmatpush.bf16.msra.mxu1 %v1335_v39  ;;  %v1127_v21 = vld [vmem:[%s1657_s17 + $0x3c] sm:$0xf0]  ;;  %v1306_v23 = vld [vmem:[%s1657_s17 + $0x40] sm:$0xf0]  ;;  %v1178_v25 = vor.u32 %v1316_v19, %v1175_v20  ;;  %v1137_v28 = vld [vmem:[%s1657_s17 + $0x48] sm:$0xf] }
  0x51   : > { %804 = vmatpush.bf16.msra.mxu2 %v1690_v40  ;;  %v1130_v26 = vor.u32 %v1304_v18, %v1127_v21  ;;  %v1134_v27 = vor.u32 %v1306_v23, %v1133_v22  ;;  %v1308_v29 = vld [vmem:[%s1657_s17 + $0x50] sm:$0xf0]  ;;  %v1307_v30 = vld [vmem:[%s1657_s17 + $0x4c] sm:$0xf]  ;;  %v1187_v32 = vld [vmem:[%s1657_s17 + $0xb4] sm:$0xf0] }
  0x52   : > { %v1319_v31 = vld [vmem:[%s1657_s17 + $0xac] sm:$0xf]  ;;  %v1309_v35 = vld [vmem:[%s1657_s17 + $0x58] sm:$0xf0]  ;;  %v1314_v53 = vld [vmem:[%s1657_s17 + $0x80] sm:$0xf0] }
  0x53   : > { %707 = vmatpush.bf16.msra.mxu0 %v1326_v41  ;;  %1349 = vmatpush.bf16.msra.mxu3 %v1326_v41  ;;  %v1190_v38 = vor.u32 %v1319_v31, %v1187_v32  ;;  %v1311_v41 = vld [vmem:[%s1657_s17 + $0x68] sm:$0xf0]  ;;  %v1313_v54 = vld [vmem:[%s1657_s17 + $0x7c] sm:$0xf]  ;;  %v1163_v57 = vld [vmem:[%s1657_s17 + $0x84] sm:$0xf0] }
  0x54   : > { %756 = vmatpush.bf16.msra.mxu1 %v1334_v42  ;;  %v1315_v59 = vld [vmem:[%s1657_s17 + $0x88] sm:$0xf0]  ;;  %v1166_v62 = vor.u32 %v1313_v54, %v1163_v57 }
  0x55   : > { %805 = vmatpush.bf16.msra.mxu2 %v1696_v43 }
  0x57   : > { %708 = vmatpush.bf16.msra.mxu0 %v1325_v44  ;;  %1350 = vmatpush.bf16.msra.mxu3 %v1325_v44  ;;  %v1318_v44 = vld [vmem:[%s1657_s17 + $0xa0] sm:$0xf0] }
  0x58   : > { %757 = vmatpush.bf16.msra.mxu1 %v1333_v45 }
  0x59   : > { %806 = vmatpush.bf16.msra.mxu2 %v1702_v46 }
  0x5b   : > { %709 = vmatpush.bf16.msra.mxu0 %v1324_v47  ;;  %1351 = vmatpush.bf16.msra.mxu3 %v1324_v47  ;;  %v1312_v47 = vld [vmem:[%s1657_s17 + $0x70] sm:$0xf0] }
  0x5c   : > { %758 = vmatpush.bf16.msra.mxu1 %v1332_v48 }
  0x5d   : > { %807 = vmatpush.bf16.msra.mxu2 %v1708_v49 }
  0x5f   : > { %710 = vmatpush.bf16.msra.mxu0 %v1323_v50  ;;  %1352 = vmatpush.bf16.msra.mxu3 %v1323_v50 }
  0x60   : > { %759 = vmatpush.bf16.msra.mxu1 %v1331_v51 }
  0x61   : > { %808 = vmatpush.bf16.msra.mxu2 %v1714_v52 }
  0x63   : > { %711 = vmatpush.bf16.msra.mxu0 %v1322_v55  ;;  %1353 = vmatpush.bf16.msra.mxu3 %v1322_v55  ;;  %v1193_v55 = vld [vmem:[%s1657_s17 + $0xb0] sm:$0xf] }
  0x64   : > { %760 = vmatpush.bf16.msra.mxu1 %v1330_v56 }
  0x65   : > { %809 = vmatpush.bf16.msra.mxu2 %v1722_v58 }
  0x66   : > { %712 = vmatmul.bf16.vlgmr.msra.gmra.mxu0 %v1102_v0  ;;  %742 = vmatmul.bf16.vlgmr.msra.gmra.mxu3 %v1174_v1 }
  0x67   : > { %1354 = vmatpush.bf16.msrb.mxu3 %v1671_v33  ;;  %761 = vmatmul.bf16.vlgmr.msra.gmra.mxu1 %v1106_v2  ;;  %v1139_v33 = vld [vmem:[%s1657_s17 + $0x54] sm:$0xf0] }
  0x68   : > { %810 = vmatmul.bf16.vlgmr.msra.gmra.mxu2 %v1110_v3 }
  0x6b   : > { %1355 = vmatpush.bf16.msrb.mxu3 %v1680_v36  ;;  %v1138_v36 = vor.u32 %v1308_v29, %v1137_v28 }
  0x6f   : > { %1356 = vmatpush.bf16.msrb.mxu3 %v1335_v39 }
  0x73   : > { %1357 = vmatpush.bf16.msrb.mxu3 %v1334_v42  ;;  %v1310_v42 = vld [vmem:[%s1657_s17 + $0x64] sm:$0xf] }
  0x76   : > { %717 = vmatmul.bf16.gmra.mxu0 %v1114_v12  ;;  %747 = vmatmul.bf16.gmra.mxu3 %v1186_v13 }
  0x77   : > { %1358 = vmatpush.bf16.msrb.mxu3 %v1333_v45  ;;  %766 = vmatmul.bf16.gmra.mxu1 %v1118_v14  ;;  %v1151_v45 = vld [vmem:[%s1657_s17 + $0x6c] sm:$0xf0] }
  0x78   : > { %815 = vmatmul.bf16.gmra.mxu2 %v1122_v15  ;;  %v1154_v50 = vor.u32 %v1310_v42, %v1151_v45 }
  0x7b   : > { %1359 = vmatpush.bf16.msrb.mxu3 %v1332_v48 }
  0x7f   : > { %1360 = vmatpush.bf16.msrb.mxu3 %v1331_v51 }
  0x83   : > { %1361 = vmatpush.bf16.msrb.mxu3 %v1330_v56  ;;  %v1321_v56 = vld [vmem:[%s1657_s17 + $0xb8] sm:$0xf0] }
  0x84   : > { %v1194_v61 = vor.u32 %v1321_v56, %v1193_v55 }
  0x86   : > { %722 = vmatmul.bf16.gmra.mxu0 %v1126_v24  ;;  %791 = vmatmul.bf16.vlgmr.msrb.gmra.mxu3 %v1178_v25 }
  0x87   : > { %1362 = vmatpush.bf16.msra.mxu3 %v1674_v34  ;;  %771 = vmatmul.bf16.gmra.mxu1 %v1130_v26  ;;  %v1145_v34 = vld [vmem:[%s1657_s17 + $0x50] sm:$0xf] }
  0x88   : > { %820 = vmatmul.bf16.gmra.mxu2 %v1134_v27  ;;  %v1146_v39 = vor.u32 %v1309_v35, %v1145_v34 }
  0x8b   : > { %1363 = vmatpush.bf16.msra.mxu3 %v1683_v37  ;;  %v1142_v37 = vor.u32 %v1307_v30, %v1139_v33 }
  0x8f   : > { %1364 = vmatpush.bf16.msra.mxu3 %v1690_v40  ;;  %v1149_v40 = vld [vmem:[%s1657_s17 + $0x60] sm:$0xf] }
  0x90   : > { %v1150_v48 = vor.u32 %v1311_v41, %v1149_v40 }
  0x93   : > { %1365 = vmatpush.bf16.msra.mxu3 %v1696_v43  ;;  %v1181_v43 = vld [vmem:[%s1657_s17 + $0x98] sm:$0xf] }
  0x96   : > { %727 = vmatmul.bf16.gmra.mxu0 %v1138_v36  ;;  %796 = vmatmul.bf16.gmra.mxu3 %v1190_v38 }
  0x97   : > { %1366 = vmatpush.bf16.msra.mxu3 %v1702_v46  ;;  %776 = vmatmul.bf16.gmra.mxu1 %v1142_v37  ;;  %v1157_v46 = vld [vmem:[%s1657_s17 + $0x68] sm:$0xf] }
  0x98   : > { %825 = vmatmul.bf16.gmra.mxu2 %v1146_v39  ;;  %v1158_v51 = vor.u32 %v1312_v47, %v1157_v46 }
  0x9b   : > { %1367 = vmatpush.bf16.msra.mxu3 %v1708_v49  ;;  %v1182_v49 = vor.u32 %v1318_v44, %v1181_v43 }
  0x9f   : > { %1368 = vmatpush.bf16.msra.mxu3 %v1714_v52  ;;  %v1161_v52 = vld [vmem:[%s1657_s17 + $0x78] sm:$0xf] }
  0xa0   : > { %v1162_v60 = vor.u32 %v1314_v53, %v1161_v52 }
  0xa3   : > { %1369 = vmatpush.bf16.msra.mxu3 %v1722_v58  ;;  %v1169_v58 = vld [vmem:[%s1657_s17 + $0x80] sm:$0xf] }
  0xa4   : > { %v1170_v63 = vor.u32 %v1315_v59, %v1169_v58 }
  0xa6   : > { %732 = vmatmul.bf16.gmra.mxu0 %v1150_v48  ;;  %840 = vmatmul.bf16.vlgmr.msra.gmra.mxu3 %v1182_v49 }
  0xa7   : > { %781 = vmatmul.bf16.gmra.mxu1 %v1154_v50 }
  0xa8   : > { %830 = vmatmul.bf16.gmra.mxu2 %v1158_v51 }
  0xb6   : > { %737 = vmatmul.bf16.gmra.mxu0 %v1162_v60  ;;  %845 = vmatmul.bf16.gmra.mxu3 %v1194_v61 }
  0xb7   : > { %786 = vmatmul.bf16.gmra.mxu1 %v1166_v62 }
  0xb8   : > { %835 = vmatmul.bf16.gmra.mxu2 %v1170_v63 }
  0xe3   : > { %v713_v0 = vpop.f32.mrf.mxu0 }
  0xe4   : > { %v762_v1 = vpop.f32.mrf.mxu1 }
  0xe5   : > { %v763_v2 = vadd.f32 %v762_v1, %v713_v0 }
  0xe9   : > { %v743_v3 = vpop.f32.mrf.mxu3 }
  0xeb   : > { %v811_v4 = vpop.f32.mrf.mxu2  ;;  %v715_v6 = vpop.f32.mrf.mxu0 }
  0xec   : > { %v1781_v5 = vadd.f32 %v811_v4, %v763_v2  ;;  %v764_v7 = vpop.f32.mrf.mxu1 }
  0xed   : > { %v765_v8 = vadd.f32 %v764_v7, %v715_v6 }
  0xf1   : > { %v745_v9 = vpop.f32.mrf.mxu3 }
  0xf3   : > { %v813_v10 = vpop.f32.mrf.mxu2  ;;  %v718_v12 = vpop.f32.mrf.mxu0 }
  0xf4   : > { %v1783_v11 = vadd.f32 %v813_v10, %v765_v8  ;;  %v767_v13 = vpop.f32.mrf.mxu1 }
  0xf5   : > { %v768_v14 = vadd.f32 %v767_v13, %v718_v12 }
  0xf9   : > { %v748_v15 = vpop.f32.mrf.mxu3 }
  0xfb   : > { %v816_v16 = vpop.f32.mrf.mxu2  ;;  %v720_v18 = vpop.f32.mrf.mxu0 }
  0xfc   : > { %v1785_v17 = vadd.f32 %v816_v16, %v768_v14  ;;  %v769_v19 = vpop.f32.mrf.mxu1 }
  0xfd   : > { %v770_v20 = vadd.f32 %v769_v19, %v720_v18 }
 0x101   : > { %v750_v21 = vpop.f32.mrf.mxu3 }
 0x103   : > { %v818_v22 = vpop.f32.mrf.mxu2  ;;  %v723_v24 = vpop.f32.mrf.mxu0 }
 0x104   : > { %v1787_v23 = vadd.f32 %v818_v22, %v770_v20  ;;  %v772_v25 = vpop.f32.mrf.mxu1 }
 0x105   : > { %v773_v26 = vadd.f32 %v772_v25, %v723_v24 }
 0x109   : > { %v792_v27 = vpop.f32.mrf.mxu3 }
 0x10a   : > { %v793_v51 = vadd.f32 %v792_v27, %v743_v3 }
 0x10b   : > { %v821_v28 = vpop.f32.mrf.mxu2  ;;  %v725_v30 = vpop.f32.mrf.mxu0 }
 0x10c   : > { %v1789_v29 = vadd.f32 %v821_v28, %v773_v26  ;;  %v774_v31 = vpop.f32.mrf.mxu1 }
 0x10d   : > { %v775_v32 = vadd.f32 %v774_v31, %v725_v30 }
 0x111   : > { %v794_v33 = vpop.f32.mrf.mxu3 }
 0x112   : > { %v795_v58 = vadd.f32 %v794_v33, %v745_v9 }
 0x113   : > { %v823_v34 = vpop.f32.mrf.mxu2  ;;  %v728_v36 = vpop.f32.mrf.mxu0 }
 0x114   : > { %v1791_v35 = vadd.f32 %v823_v34, %v775_v32  ;;  %v777_v38 = vpop.f32.mrf.mxu1 }
 0x115   : > { %v778_v37 = vadd.f32 %v777_v38, %v728_v36 }
 0x119   : > { %v797_v39 = vpop.f32.mrf.mxu3 }
 0x11a   : > { %v798_v3 = vadd.f32 %v797_v39, %v748_v15 }
 0x11b   : > { %v826_v40 = vpop.f32.mrf.mxu2  ;;  %v730_v42 = vpop.f32.mrf.mxu0 }
 0x11c   : > { %v1793_v41 = vadd.f32 %v826_v40, %v778_v37  ;;  %v779_v43 = vpop.f32.mrf.mxu1 }
 0x11d   : > { %v780_v44 = vadd.f32 %v779_v43, %v730_v42 }
 0x121   : > { %v799_v45 = vpop.f32.mrf.mxu3 }
 0x122   : > { %v800_v9 = vadd.f32 %v799_v45, %v750_v21 }
 0x123   : > { %v828_v46 = vpop.f32.mrf.mxu2  ;;  %v733_v48 = vpop.f32.mrf.mxu0 }
 0x124   : > { %v1795_v47 = vadd.f32 %v828_v46, %v780_v44  ;;  %v782_v49 = vpop.f32.mrf.mxu1 }
 0x125   : > { %v783_v50 = vadd.f32 %v782_v49, %v733_v48 }
 0x129   : > { %v841_v52 = vpop.f32.mrf.mxu3 }
 0x12a   : > { %v1797_v54 = vadd.f32 %v841_v52, %v793_v51 }
 0x12b   : > { %v831_v53 = vpop.f32.mrf.mxu2  ;;  %v735_v56 = vpop.f32.mrf.mxu0 }
 0x12c   : > { %v1799_v55 = vadd.f32 %v831_v53, %v783_v50  ;;  %v784_v57 = vpop.f32.mrf.mxu1 }
 0x12d   : > { %v785_v59 = vadd.f32 %v784_v57, %v735_v56 }
 0x131   : > { %v843_v60 = vpop.f32.mrf.mxu3 }
 0x132   : > { %v1801_v62 = vadd.f32 %v843_v60, %v795_v58 }
 0x133   : > { %v833_v61 = vpop.f32.mrf.mxu2  ;;  %v738_v0 = vpop.f32.mrf.mxu0 }
 0x134   : > { %v1803_v63 = vadd.f32 %v833_v61, %v785_v59  ;;  %v787_v1 = vpop.f32.mrf.mxu1 }
 0x135   : > { %v788_v2 = vadd.f32 %v787_v1, %v738_v0 }
 0x139   : > { %v846_v4 = vpop.f32.mrf.mxu3 }
 0x13a   : > { %v1805_v7 = vadd.f32 %v846_v4, %v798_v3 }
 0x13b   : > { %v836_v6 = vpop.f32.mrf.mxu2  ;;  %v740_v10 = vpop.f32.mrf.mxu0 }
 0x13c   : > { %v1807_v8 = vadd.f32 %v836_v6, %v788_v2  ;;  %v789_v12 = vpop.f32.mrf.mxu1 }
 0x13d   : > { %v790_v13 = vadd.f32 %v789_v12, %v740_v10 }
 0x140   : > { %854 = sbr.rel (%p1291_p13) target bundleno = 344 (0x158), region = 66 }
 0x141   : > { %v848_v14 = vpop.f32.mrf.mxu3 }
 0x142   : > { %v1809_v18 = vadd.f32 %v848_v14, %v800_v9 }
 0x143   : > { %v838_v16 = vpop.f32.mrf.mxu2 }
 0x144   : > { %v1811_v19 = vadd.f32 %v838_v16, %v790_v13 }
 0x145   : > { %v1423_v15 = vld [vmem:[#allocation3] ss:$0 sm:$0xff] }
 0x146   : > { %v859_v20 = vadd.f32 %v1423_v15, %v1781_v5  ;;  %v860_v22 = vadd.f32 %v1423_v15, %v1783_v11  ;;  %v861_v24 = vadd.f32 %v1423_v15, %v1785_v17  ;;  %v862_v25 = vadd.f32 %v1423_v15, %v1787_v23 }
 0x147   : > { %v863_v21 = vadd.f32 %v1423_v15, %v1789_v29  ;;  %v864_v26 = vadd.f32 %v1423_v15, %v1791_v35  ;;  %v865_v27 = vadd.f32 %v1423_v15, %v1793_v41  ;;  %v866_v28 = vadd.f32 %v1423_v15, %v1795_v47 }
 0x148   : > { %875 = vst [vmem:[%s2009_s3] sm:$0xff] %v859_v20  ;;  %v867_v30 = vadd.f32 %v1423_v15, %v1799_v55  ;;  %v868_v31 = vadd.f32 %v1423_v15, %v1803_v63  ;;  %v869_v32 = vadd.f32 %v1423_v15, %v1807_v8  ;;  %v870_v33 = vadd.f32 %v1423_v15, %v1811_v19 }
 0x149   : > { %876 = vst [vmem:[%s2009_s3 + $0x8] sm:$0xff] %v860_v22  ;;  %v871_v34 = vadd.f32 %v1423_v15, %v1797_v54  ;;  %v872_v36 = vadd.f32 %v1423_v15, %v1801_v62  ;;  %v873_v38 = vadd.f32 %v1423_v15, %v1805_v7  ;;  %v874_v37 = vadd.f32 %v1423_v15, %v1809_v18 }
 0x14a   : > { %877 = vst [vmem:[%s2009_s3 + $0x10] sm:$0xff] %v861_v24 }
 0x14b   : > { %878 = vst [vmem:[%s2009_s3 + $0x18] sm:$0xff] %v862_v25 }
 0x14c   : > { %879 = vst [vmem:[%s2009_s3 + $0x20] sm:$0xff] %v863_v21 }
 0x14d   : > { %880 = vst [vmem:[%s2009_s3 + $0x28] sm:$0xff] %v864_v26 }
 0x14e   : > { %881 = vst [vmem:[%s2009_s3 + $0x30] sm:$0xff] %v865_v27 }
 0x14f   : > { %882 = vst [vmem:[%s2009_s3 + $0x38] sm:$0xff] %v866_v28 }
 0x150   : > { %883 = vst [vmem:[%s2009_s3 + $0x40] sm:$0xff] %v867_v30 }
 0x151   : > { %884 = vst [vmem:[%s2009_s3 + $0x48] sm:$0xff] %v868_v31 }
 0x152   : > { %885 = vst [vmem:[%s2009_s3 + $0x50] sm:$0xff] %v869_v32 }
 0x153   : > { %886 = vst [vmem:[%s2009_s3 + $0x58] sm:$0xff] %v870_v33 }
 0x154   : > { %887 = vst [vmem:[%s2009_s3 + $0x60] sm:$0xff] %v871_v34 }
 0x155   : > { %888 = vst [vmem:[%s2009_s3 + $0x68] sm:$0xff] %v872_v36 }
 0x156   : > { %889 = vst [vmem:[%s2009_s3 + $0x70] sm:$0xff] %v873_v38 }
 0x157   : > { %890 = vst [vmem:[%s2009_s3 + $0x78] sm:$0xff] %v874_v37 }
 0x158 PF: > { %p1292_p0 = scmp.eq.s32.totalorder %s1488_s14, 0 }
 0x15a   : > { %894 = sbr.rel (%p1292_p0) target bundleno = 370 (0x172), region = 70 }
 0x15f   : > { %v895_v39 = vld [vmem:[%s2009_s3] sm:$0xff]  ;;  %v896_v40 = vld [vmem:[%s2009_s3 + $0x8] sm:$0xff]  ;;  %v897_v42 = vld [vmem:[%s2009_s3 + $0x10] sm:$0xff] }
 0x160   : > { %v911_v43 = vadd.f32 %v895_v39, %v1781_v5  ;;  %v912_v44 = vadd.f32 %v896_v40, %v1783_v11  ;;  %v913_v45 = vadd.f32 %v897_v42, %v1785_v17  ;;  %v898_v46 = vld [vmem:[%s2009_s3 + $0x18] sm:$0xff]  ;;  %v899_v48 = vld [vmem:[%s2009_s3 + $0x20] sm:$0xff]  ;;  %v900_v49 = vld [vmem:[%s2009_s3 + $0x28] sm:$0xff] }
 0x161   : > { %v914_v50 = vadd.f32 %v898_v46, %v1787_v23  ;;  %v901_v5 = vld [vmem:[%s2009_s3 + $0x30] sm:$0xff]  ;;  %v915_v11 = vadd.f32 %v899_v48, %v1789_v29  ;;  %v902_v17 = vld [vmem:[%s2009_s3 + $0x38] sm:$0xff]  ;;  %v916_v23 = vadd.f32 %v900_v49, %v1791_v35  ;;  %v903_v51 = vld [vmem:[%s2009_s3 + $0x40] sm:$0xff] }
 0x162   : > { %927 = vst [vmem:[%s2009_s3] sm:$0xff] %v911_v43  ;;  %v917_v29 = vadd.f32 %v901_v5, %v1793_v41  ;;  %v904_v52 = vld [vmem:[%s2009_s3 + $0x48] sm:$0xff]  ;;  %v918_v35 = vadd.f32 %v902_v17, %v1795_v47  ;;  %v905_v53 = vld [vmem:[%s2009_s3 + $0x50] sm:$0xff]  ;;  %v919_v41 = vadd.f32 %v903_v51, %v1799_v55  ;;  %v906_v56 = vld [vmem:[%s2009_s3 + $0x58] sm:$0xff] }
 0x163   : > { %928 = vst [vmem:[%s2009_s3 + $0x8] sm:$0xff] %v912_v44  ;;  %v920_v47 = vadd.f32 %v904_v52, %v1803_v63  ;;  %v907_v57 = vld [vmem:[%s2009_s3 + $0x60] sm:$0xff]  ;;  %v921_v55 = vadd.f32 %v905_v53, %v1807_v8  ;;  %v908_v58 = vld [vmem:[%s2009_s3 + $0x68] sm:$0xff]  ;;  %v922_v59 = vadd.f32 %v906_v56, %v1811_v19  ;;  %v909_v60 = vld [vmem:[%s2009_s3 + $0x70] sm:$0xff] }
 0x164   : > { %929 = vst [vmem:[%s2009_s3 + $0x10] sm:$0xff] %v913_v45  ;;  %v923_v61 = vadd.f32 %v907_v57, %v1797_v54  ;;  %v910_v63 = vld [vmem:[%s2009_s3 + $0x78] sm:$0xff]  ;;  %v924_v0 = vadd.f32 %v908_v58, %v1801_v62  ;;  %v925_v1 = vadd.f32 %v909_v60, %v1805_v7 }
 0x165   : > { %930 = vst [vmem:[%s2009_s3 + $0x18] sm:$0xff] %v914_v50  ;;  %v926_v54 = vadd.f32 %v910_v63, %v1809_v18 }
 0x166   : > { %931 = vst [vmem:[%s2009_s3 + $0x20] sm:$0xff] %v915_v11 }
 0x167   : > { %932 = vst [vmem:[%s2009_s3 + $0x28] sm:$0xff] %v916_v23 }
 0x168   : > { %933 = vst [vmem:[%s2009_s3 + $0x30] sm:$0xff] %v917_v29 }
 0x169   : > { %934 = vst [vmem:[%s2009_s3 + $0x38] sm:$0xff] %v918_v35 }
 0x16a   : > { %935 = vst [vmem:[%s2009_s3 + $0x40] sm:$0xff] %v919_v41 }
 0x16b   : > { %936 = vst [vmem:[%s2009_s3 + $0x48] sm:$0xff] %v920_v47 }
 0x16c   : > { %937 = vst [vmem:[%s2009_s3 + $0x50] sm:$0xff] %v921_v55 }
 0x16d   : > { %938 = vst [vmem:[%s2009_s3 + $0x58] sm:$0xff] %v922_v59 }
 0x16e   : > { %939 = vst [vmem:[%s2009_s3 + $0x60] sm:$0xff] %v923_v61 }
 0x16f   : > { %940 = vst [vmem:[%s2009_s3 + $0x68] sm:$0xff] %v924_v0 }
 0x170   : > { %941 = vst [vmem:[%s2009_s3 + $0x70] sm:$0xff] %v925_v1 }
 0x171   : > { %942 = vst [vmem:[%s2009_s3 + $0x78] sm:$0xff] %v926_v54 }
 0x172 PF: > { %s14_s16 = sadd.s32 1, %s1496_s16   ;;  %s2013_s12 = smov %s1484_s13 }
 0x173   : > { %p11_p1 = scmp.ge.s32.totalorder %s14_s16, 5   ;;  %s2014_s13 = smov %s1569_s24 }
 0x174   : > { %s2015_s14 = smov %s1492_s15  ;;  %s2016_s15 = smov %s2018_s18 }
 0x175   :  { %13 = sbr.rel (!%p11_p1) target bundleno = 3 (0x3), region = 116 }
 0x17a   :  { %971 = vsyncpa [#allocation4], 1 }
 0x17b   :  { %973 = vsyncpa [#allocation4 + $0x1], 1 }

// kernel: improved_unet_forward.44
= control target key start
LH: loop header
LB: loop body
LE: loop exit
PB: predicated region body
PF: predicated region fallthrough
CT: control target
= control target key end

     0   :  { %s394_s6 = smov 0   ;;  %s396_s7 = smov 0   ;;  %s434_s0 = inlined_call_operand.vmem [shape: f32[2,64,128], index: 0, kind: input, shape index: {}]   ;;  %s435_s1 = inlined_call_operand.vmem [shape: f32[2,64,128], index: 1, kind: output, shape index: {}]  }
   0x1   :  { %s398_s8 = smov 0  }
   0x2 LB: > { %s23_s9 = sadd.s32 1, %s377_s7  ;;  %p321_p0 = scmp.ge.s32.totalorder %s381_s8, 1  ;;  %s381_s8 = sphi %s398_s8, %s11_s8   ;;  %s377_s7 = sphi %s396_s7, %s437_s7   ;;  %s373_s6 = sphi %s394_s6, %s436_s6  }
   0x3   : > { %p25_p1 = scmp.ge.s32.totalorder %s23_s9, 2  ;;  %p106_p2 = scmp.lt.s32.totalorder %s381_s8, 3 }
   0x5   : > { %s439_s9 = smov (%p25_p1, %s23_s9), 0  ;;  %p107_p3 = pnand %p321_p0, %p106_p2 }
   0x6   : > { %p132_p4 = scmp.lt.s32.totalorder (!%p107_p3), %s373_s6, 1 }
   0x7   : > { %110 = sbr.rel (%p107_p3) target bundleno = 106 (0x6a), region = 24 }
   0xc   : > { %s441_s6 = smov (!%p132_p4, %s373_s6), 1  ;;  %v383_v0 = vmov 64.0  }
   0xd   : > { %s328_s10 = sshll.u32 %s441_s6, 6  ;;  %355 = vrcp.f32 %v383_v0 }
   0xe   : > { %s139_s13 = scalar_lea.vmem %s434_s0, %s328_s10  ;;  %s147_s16 = scalar_lea.vmem %s435_s1, %s328_s10 }
   0xf   : > { %v148_v1 = vld [vmem:[%s139_s13] sm:$0xff]  ;;  %v149_v2 = vld [vmem:[%s139_s13 + $0x8] sm:$0xff]  ;;  %v150_v3 = vld [vmem:[%s139_s13 + $0x10] sm:$0xff] }
  0x10   : > { %v156_v4 = vadd.f32 %v149_v2, %v148_v1  ;;  %v151_v5 = vld [vmem:[%s139_s13 + $0x18] sm:$0xff]  ;;  %v152_v7 = vld [vmem:[%s139_s13 + $0x20] sm:$0xff]  ;;  %v153_v10 = vld [vmem:[%s139_s13 + $0x28] sm:$0xff] }
  0x11   : > { %v154_v12 = vld [vmem:[%s139_s13 + $0x30] sm:$0xff]  ;;  %v155_v15 = vld [vmem:[%s139_s13 + $0x38] sm:$0xff] }
  0x12   : > { %v157_v6 = vadd.f32 %v156_v4, %v150_v3 }
  0x13   : > { %v356_v8 = vpop.eup %355 }
  0x14   : > { %v158_v9 = vadd.f32 %v157_v6, %v151_v5  ;;  %v170_v13 = vmul.f32 64.0, %v356_v8  ;;  %vm174_vm0 = vweird.f32 %v356_v8 }
  0x16   : > { %v159_v11 = vadd.f32 %v158_v9, %v152_v7  ;;  %v171_v17 = vsub.f32 1.0, %v170_v13 }
  0x18   : > { %v160_v14 = vadd.f32 %v159_v11, %v153_v10  ;;  %v172_v20 = vmul.f32 %v356_v8, %v171_v17 }
  0x1a   : > { %v161_v16 = vadd.f32 %v160_v14, %v154_v12  ;;  %v173_v23 = vadd.f32 %v356_v8, %v172_v20 }
  0x1c   : > { %v162_v18 = vadd.f32 %v161_v16, %v155_v15  ;;  %v175_v26 = vsel %vm174_vm0, %v356_v8, %v173_v23 }
  0x1e   : > { %v163_v19 = vrot.slane %v162_v18, 4 }
  0x20   : > { %v164_v21 = vadd.f32 %v163_v19, %v162_v18 }
  0x22   : > { %v165_v22 = vrot.slane %v164_v21, 2 }
  0x24   : > { %v166_v24 = vadd.f32 %v165_v22, %v164_v21 }
  0x26   : > { %v167_v25 = vrot.slane %v166_v24, 1 }
  0x28   : > { %v168_v27 = vadd.f32 %v167_v25, %v166_v24 }
  0x2a   : > { %v176_v28 = vmul.f32 %v175_v26, %v168_v27 }
  0x2c   : > { %v177_v29 = vsub.f32 %v148_v1, %v176_v28  ;;  %v178_v30 = vsub.f32 %v149_v2, %v176_v28  ;;  %v179_v31 = vsub.f32 %v150_v3, %v176_v28  ;;  %v180_v32 = vsub.f32 %v151_v5, %v176_v28 }
  0x2d   : > { %v181_v33 = vsub.f32 %v152_v7, %v176_v28  ;;  %v182_v37 = vsub.f32 %v153_v10, %v176_v28  ;;  %v183_v40 = vsub.f32 %v154_v12, %v176_v28  ;;  %v184_v43 = vsub.f32 %v155_v15, %v176_v28 }
  0x2e   : > { %v185_v34 = vmul.f32 %v177_v29, %v177_v29  ;;  %v186_v35 = vmul.f32 %v178_v30, %v178_v30  ;;  %v187_v36 = vmul.f32 %v179_v31, %v179_v31  ;;  %v188_v38 = vmul.f32 %v180_v32, %v180_v32 }
  0x2f   : > { %v189_v41 = vmul.f32 %v181_v33, %v181_v33  ;;  %v190_v44 = vmul.f32 %v182_v37, %v182_v37  ;;  %v191_v46 = vmul.f32 %v183_v40, %v183_v40  ;;  %v192_v48 = vmul.f32 %v184_v43, %v184_v43 }
  0x30   : > { %v193_v39 = vadd.f32 %v186_v35, %v185_v34 }
  0x32   : > { %v194_v42 = vadd.f32 %v193_v39, %v187_v36 }
  0x34   : > { %v195_v45 = vadd.f32 %v194_v42, %v188_v38 }
  0x36   : > { %v196_v47 = vadd.f32 %v195_v45, %v189_v41 }
  0x38   : > { %v197_v49 = vadd.f32 %v196_v47, %v190_v44 }
  0x3a   : > { %v198_v50 = vadd.f32 %v197_v49, %v191_v46 }
  0x3c   : > { %v199_v51 = vadd.f32 %v198_v50, %v192_v48 }
  0x3e   : > { %v200_v52 = vrot.slane %v199_v51, 4 }
  0x40   : > { %v201_v53 = vadd.f32 %v200_v52, %v199_v51 }
  0x42   : > { %v202_v54 = vrot.slane %v201_v53, 2 }
  0x44   : > { %v203_v55 = vadd.f32 %v202_v54, %v201_v53 }
  0x46   : > { %v204_v56 = vrot.slane %v203_v55, 1 }
  0x48   : > { %v205_v57 = vadd.f32 %v204_v56, %v203_v55 }
  0x4a   : > { %v206_v58 = vmul.f32 %v205_v57, %v175_v26 }
  0x4c   : > { %v207_v59 = vadd.f32 1e-05, %v206_v58 }
  0x4e   : > { %357 = vrsqrt.f32 %v207_v59  ;;  %vm214_vm1 = vweird.f32 %v207_v59 }
  0x54   : > { %v358_v60 = vpop.eup %357 }
  0x55   : > { %v209_v61 = vmul.f32 %v358_v60, %v207_v59  ;;  %vm215_vm2 = vweird.f32 %v358_v60 }
  0x56   : > { %vm216_vm3 = vmor %vm214_vm1, %vm215_vm2 }
  0x57   : > { %v210_v62 = vmul.f32 %v358_v60, %v209_v61 }
  0x59   : > { %v211_v63 = vmul.f32 0.5, %v210_v62 }
  0x5b   : > { %v212_v0 = vsub.f32 1.5, %v211_v63 }
  0x5d   : > { %v213_v1 = vmul.f32 %v358_v60, %v212_v0 }
  0x5f   : > { %v217_v2 = vsel %vm216_vm3, %v358_v60, %v213_v1 }
  0x60   : > { %v218_v3 = vmul.f32 %v217_v2, %v177_v29  ;;  %v219_v4 = vmul.f32 %v217_v2, %v178_v30  ;;  %v220_v5 = vmul.f32 %v217_v2, %v179_v31  ;;  %v221_v6 = vmul.f32 %v217_v2, %v180_v32 }
  0x61   : > { %v222_v7 = vmul.f32 %v217_v2, %v181_v33  ;;  %v223_v8 = vmul.f32 %v217_v2, %v182_v37  ;;  %v224_v9 = vmul.f32 %v217_v2, %v183_v40  ;;  %v225_v10 = vmul.f32 %v217_v2, %v184_v43 }
  0x62   : > { %226 = vst [vmem:[%s147_s16] sm:$0xff] %v218_v3 }
  0x63   : > { %227 = vst [vmem:[%s147_s16 + $0x8] sm:$0xff] %v219_v4 }
  0x64   : > { %228 = vst [vmem:[%s147_s16 + $0x10] sm:$0xff] %v220_v5 }
  0x65   : > { %229 = vst [vmem:[%s147_s16 + $0x18] sm:$0xff] %v221_v6 }
  0x66   : > { %230 = vst [vmem:[%s147_s16 + $0x20] sm:$0xff] %v222_v7 }
  0x67   : > { %231 = vst [vmem:[%s147_s16 + $0x28] sm:$0xff] %v223_v8 }
  0x68   : > { %232 = vst [vmem:[%s147_s16 + $0x30] sm:$0xff] %v224_v9 }
  0x69   : > { %233 = vst [vmem:[%s147_s16 + $0x38] sm:$0xff] %v225_v10 }
  0x6a PF: > { %s11_s8 = sadd.s32 1, %s381_s8   ;;  %s436_s6 = smov %s377_s7 }
  0x6b   : > { %p8_p5 = scmp.ge.s32.totalorder %s11_s8, 4   ;;  %s437_s7 = smov %s439_s9 }
  0x6d   :  { %10 = sbr.rel (!%p8_p5) target bundleno = 2 (0x2), region = 54 }

// kernel: improved_unet_forward.48
= control target key start
LH: loop header
LB: loop body
LE: loop exit
PB: predicated region body
PF: predicated region fallthrough
CT: control target
= control target key end

     0   :  { %v103_v3 = vmov 64.0   ;;  %s162_s0 = inlined_call_operand.vmem [shape: f32[64,128], index: 0, kind: input, shape index: {}]   ;;  %s163_s1 = inlined_call_operand.vmem [shape: f32[64,128], index: 1, kind: output, shape index: {}]  }
   0x1   :  { %v8_v0 = vld [vmem:[%s162_s0] sm:$0xff]  ;;  %v9_v1 = vld [vmem:[%s162_s0 + $0x8] sm:$0xff]  ;;  %v10_v2 = vld [vmem:[%s162_s0 + $0x10] sm:$0xff]  ;;  %99 = vrcp.f32 %v103_v3 }
   0x2   :  { %v16_v4 = vadd.f32 %v9_v1, %v8_v0  ;;  %v11_v5 = vld [vmem:[%s162_s0 + $0x18] sm:$0xff]  ;;  %v12_v7 = vld [vmem:[%s162_s0 + $0x20] sm:$0xff]  ;;  %v13_v10 = vld [vmem:[%s162_s0 + $0x28] sm:$0xff] }
   0x3   :  { %v14_v12 = vld [vmem:[%s162_s0 + $0x30] sm:$0xff]  ;;  %v15_v15 = vld [vmem:[%s162_s0 + $0x38] sm:$0xff] }
   0x4   :  { %v17_v6 = vadd.f32 %v16_v4, %v10_v2 }
   0x6   :  { %v18_v8 = vadd.f32 %v17_v6, %v11_v5 }
   0x7   :  { %v100_v9 = vpop.eup %99 }
   0x8   :  { %v19_v11 = vadd.f32 %v18_v8, %v12_v7  ;;  %v30_v13 = vmul.f32 64.0, %v100_v9  ;;  %vm34_vm0 = vweird.f32 %v100_v9 }
   0xa   :  { %v20_v14 = vadd.f32 %v19_v11, %v13_v10  ;;  %v31_v17 = vsub.f32 1.0, %v30_v13 }
   0xc   :  { %v21_v16 = vadd.f32 %v20_v14, %v14_v12  ;;  %v32_v20 = vmul.f32 %v100_v9, %v31_v17 }
   0xe   :  { %v22_v18 = vadd.f32 %v21_v16, %v15_v15  ;;  %v33_v23 = vadd.f32 %v100_v9, %v32_v20 }
  0x10   :  { %v23_v19 = vrot.slane %v22_v18, 4  ;;  %v35_v26 = vsel %vm34_vm0, %v100_v9, %v33_v23 }
  0x12   :  { %v24_v21 = vadd.f32 %v23_v19, %v22_v18 }
  0x14   :  { %v25_v22 = vrot.slane %v24_v21, 2 }
  0x16   :  { %v26_v24 = vadd.f32 %v25_v22, %v24_v21 }
  0x18   :  { %v27_v25 = vrot.slane %v26_v24, 1 }
  0x1a   :  { %v28_v27 = vadd.f32 %v27_v25, %v26_v24 }
  0x1c   :  { %v36_v28 = vmul.f32 %v35_v26, %v28_v27 }
  0x1e   :  { %v37_v29 = vsub.f32 %v8_v0, %v36_v28  ;;  %v38_v30 = vsub.f32 %v9_v1, %v36_v28  ;;  %v39_v31 = vsub.f32 %v10_v2, %v36_v28  ;;  %v40_v32 = vsub.f32 %v11_v5, %v36_v28 }
  0x1f   :  { %v41_v33 = vsub.f32 %v12_v7, %v36_v28  ;;  %v42_v37 = vsub.f32 %v13_v10, %v36_v28  ;;  %v43_v40 = vsub.f32 %v14_v12, %v36_v28  ;;  %v44_v43 = vsub.f32 %v15_v15, %v36_v28 }
  0x20   :  { %v45_v34 = vmul.f32 %v37_v29, %v37_v29  ;;  %v46_v35 = vmul.f32 %v38_v30, %v38_v30  ;;  %v47_v36 = vmul.f32 %v39_v31, %v39_v31  ;;  %v48_v38 = vmul.f32 %v40_v32, %v40_v32 }
  0x21   :  { %v49_v41 = vmul.f32 %v41_v33, %v41_v33  ;;  %v50_v44 = vmul.f32 %v42_v37, %v42_v37  ;;  %v51_v46 = vmul.f32 %v43_v40, %v43_v40  ;;  %v52_v48 = vmul.f32 %v44_v43, %v44_v43 }
  0x22   :  { %v53_v39 = vadd.f32 %v46_v35, %v45_v34 }
  0x24   :  { %v54_v42 = vadd.f32 %v53_v39, %v47_v36 }
  0x26   :  { %v55_v45 = vadd.f32 %v54_v42, %v48_v38 }
  0x28   :  { %v56_v47 = vadd.f32 %v55_v45, %v49_v41 }
  0x2a   :  { %v57_v49 = vadd.f32 %v56_v47, %v50_v44 }
  0x2c   :  { %v58_v50 = vadd.f32 %v57_v49, %v51_v46 }
  0x2e   :  { %v59_v51 = vadd.f32 %v58_v50, %v52_v48 }
  0x30   :  { %v60_v52 = vrot.slane %v59_v51, 4 }
  0x32   :  { %v61_v53 = vadd.f32 %v60_v52, %v59_v51 }
  0x34   :  { %v62_v54 = vrot.slane %v61_v53, 2 }
  0x36   :  { %v63_v55 = vadd.f32 %v62_v54, %v61_v53 }
  0x38   :  { %v64_v56 = vrot.slane %v63_v55, 1 }
  0x3a   :  { %v65_v57 = vadd.f32 %v64_v56, %v63_v55 }
  0x3c   :  { %v66_v58 = vmul.f32 %v65_v57, %v35_v26 }
  0x3e   :  { %v67_v59 = vadd.f32 1e-05, %v66_v58 }
  0x40   :  { %101 = vrsqrt.f32 %v67_v59  ;;  %vm74_vm1 = vweird.f32 %v67_v59 }
  0x46   :  { %v102_v60 = vpop.eup %101 }
  0x47   :  { %v69_v61 = vmul.f32 %v102_v60, %v67_v59  ;;  %vm75_vm2 = vweird.f32 %v102_v60 }
  0x48   :  { %vm76_vm3 = vmor %vm74_vm1, %vm75_vm2 }
  0x49   :  { %v70_v62 = vmul.f32 %v102_v60, %v69_v61 }
  0x4b   :  { %v71_v63 = vmul.f32 0.5, %v70_v62 }
  0x4d   :  { %v72_v0 = vsub.f32 1.5, %v71_v63 }
  0x4f   :  { %v73_v1 = vmul.f32 %v102_v60, %v72_v0 }
  0x51   :  { %v77_v2 = vsel %vm76_vm3, %v102_v60, %v73_v1 }
  0x52   :  { %v78_v3 = vmul.f32 %v77_v2, %v37_v29  ;;  %v79_v4 = vmul.f32 %v77_v2, %v38_v30  ;;  %v80_v5 = vmul.f32 %v77_v2, %v39_v31  ;;  %v81_v6 = vmul.f32 %v77_v2, %v40_v32 }
  0x53   :  { %v82_v7 = vmul.f32 %v77_v2, %v41_v33  ;;  %v83_v8 = vmul.f32 %v77_v2, %v42_v37  ;;  %v84_v9 = vmul.f32 %v77_v2, %v43_v40  ;;  %v85_v10 = vmul.f32 %v77_v2, %v44_v43 }
  0x54   :  { %86 = vst [vmem:[%s163_s1] sm:$0xff] %v78_v3 }
  0x55   :  { %87 = vst [vmem:[%s163_s1 + $0x8] sm:$0xff] %v79_v4 }
  0x56   :  { %88 = vst [vmem:[%s163_s1 + $0x10] sm:$0xff] %v80_v5 }
  0x57   :  { %89 = vst [vmem:[%s163_s1 + $0x18] sm:$0xff] %v81_v6 }
  0x58   :  { %90 = vst [vmem:[%s163_s1 + $0x20] sm:$0xff] %v82_v7 }
  0x59   :  { %91 = vst [vmem:[%s163_s1 + $0x28] sm:$0xff] %v83_v8 }
  0x5a   :  { %92 = vst [vmem:[%s163_s1 + $0x30] sm:$0xff] %v84_v9 }
  0x5b   :  { %93 = vst [vmem:[%s163_s1 + $0x38] sm:$0xff] %v85_v10 }

// kernel: improved_unet_forward.47
= control target key start
LH: loop header
LB: loop body
LE: loop exit
PB: predicated region body
PF: predicated region fallthrough
CT: control target
= control target key end

     0   :  { %8 = vsyncpa [#allocation3], 0  ;;  %s438_s15 = smov [#allocation2]   ;;  %s439_s17 = smov 64   ;;  %s539_s0 = inlined_call_operand.vmem [shape: bf16[128,128], index: 0, kind: input, shape index: {}]   ;;  %s540_s1 = inlined_call_operand.hbm [shape: bf16[128,128], index: 1, kind: input, shape index: {}]   ;;  %s541_s2 = inlined_call_operand.vmem [shape: f32[1,128], index: 2, kind: input, shape index: {}]   ;;  %s542_s3 = inlined_call_operand.vmem [shape: f32[128,128], index: 3, kind: output, shape index: {}]  }
   0x1   :  { %s15_s14 = sshll.u32 %s540_s1, 4  ;;  %s17_s16 = sshll.u32 %s438_s15, 4  ;;  %s16_s14 = int_to_ptr.hbm [resolvable:$true] %s15_s14  ;;  %s18_s16 = int_to_ptr.vmem [resolvable:$true] %s17_s16 }
   0x2   :  { %s440_s18 = smov 4  }
   0x3   :  { %23 = dma.hbm_to_vmem [thread:$0]  %s16_s14, 1024, %s18_s16, [#allocation3], %s439_s17, %s439_s17, %s440_s18  }
   0x4   :  { %436 = dma.done.wait [#allocation3], 1024  }
   0x5   :  { %437 = vsyncadd [#allocation3], 4294966272  ;;  %v383_v0 = vld [vmem:[#allocation2 + $0x38] sm:$0xff]  ;;  %v382_v1 = vld [vmem:[#allocation2 + $0x30] sm:$0xff] }
   0x6   :  { %158 = vmatpush.bf16.msra.mxu0 %v383_v0  ;;  %384 = vmatpush.bf16.msra.mxu1 %v383_v0  ;;  %v381_v2 = vld [vmem:[#allocation2 + $0x28] sm:$0xff]  ;;  %v380_v3 = vld [vmem:[#allocation2 + $0x20] sm:$0xff]  ;;  %v379_v4 = vld [vmem:[#allocation2 + $0x18] sm:$0xff] }
   0x7   :  { %385 = vmatpush.bf16.msra.mxu2 %v383_v0  ;;  %386 = vmatpush.bf16.msra.mxu3 %v383_v0  ;;  %v378_v5 = vld [vmem:[#allocation2 + $0x10] sm:$0xff]  ;;  %v377_v6 = vld [vmem:[#allocation2 + $0x8] sm:$0xff]  ;;  %v376_v7 = vld [vmem:[#allocation2] sm:$0xff] }
   0x8   :  { %v368_v8 = vld [vmem:[%s539_s0] sm:$0xff]  ;;  %v370_v9 = vld [vmem:[%s539_s0 + $0x10] sm:$0xff]  ;;  %v369_v12 = vld [vmem:[%s539_s0 + $0x8] sm:$0xff] }
   0x9   :  { %v372_v10 = vld [vmem:[%s539_s0 + $0x20] sm:$0xff]  ;;  %v374_v11 = vld [vmem:[%s539_s0 + $0x30] sm:$0xff]  ;;  %v371_v13 = vld [vmem:[%s539_s0 + $0x18] sm:$0xff] }
   0xa   :  { %159 = vmatpush.bf16.msra.mxu0 %v382_v1  ;;  %387 = vmatpush.bf16.msra.mxu1 %v382_v1  ;;  %v373_v14 = vld [vmem:[%s539_s0 + $0x28] sm:$0xff]  ;;  %v375_v15 = vld [vmem:[%s539_s0 + $0x38] sm:$0xff]  ;;  %v411_v16 = vld [vmem:[%s541_s2] ss:$0 sm:$0xff] }
   0xb   :  { %388 = vmatpush.bf16.msra.mxu2 %v382_v1  ;;  %389 = vmatpush.bf16.msra.mxu3 %v382_v1 }
   0xe   :  { %160 = vmatpush.bf16.msra.mxu0 %v381_v2  ;;  %390 = vmatpush.bf16.msra.mxu1 %v381_v2 }
   0xf   :  { %391 = vmatpush.bf16.msra.mxu2 %v381_v2  ;;  %392 = vmatpush.bf16.msra.mxu3 %v381_v2 }
  0x12   :  { %161 = vmatpush.bf16.msra.mxu0 %v380_v3  ;;  %393 = vmatpush.bf16.msra.mxu1 %v380_v3 }
  0x13   :  { %394 = vmatpush.bf16.msra.mxu2 %v380_v3  ;;  %395 = vmatpush.bf16.msra.mxu3 %v380_v3 }
  0x16   :  { %162 = vmatpush.bf16.msra.mxu0 %v379_v4  ;;  %396 = vmatpush.bf16.msra.mxu1 %v379_v4 }
  0x17   :  { %397 = vmatpush.bf16.msra.mxu2 %v379_v4  ;;  %398 = vmatpush.bf16.msra.mxu3 %v379_v4 }
  0x1a   :  { %163 = vmatpush.bf16.msra.mxu0 %v378_v5  ;;  %399 = vmatpush.bf16.msra.mxu1 %v378_v5 }
  0x1b   :  { %400 = vmatpush.bf16.msra.mxu2 %v378_v5  ;;  %401 = vmatpush.bf16.msra.mxu3 %v378_v5 }
  0x1e   :  { %164 = vmatpush.bf16.msra.mxu0 %v377_v6  ;;  %402 = vmatpush.bf16.msra.mxu1 %v377_v6 }
  0x1f   :  { %403 = vmatpush.bf16.msra.mxu2 %v377_v6  ;;  %404 = vmatpush.bf16.msra.mxu3 %v377_v6 }
  0x22   :  { %165 = vmatpush.bf16.msra.mxu0 %v376_v7  ;;  %405 = vmatpush.bf16.msra.mxu1 %v376_v7 }
  0x23   :  { %406 = vmatpush.bf16.msra.mxu2 %v376_v7  ;;  %407 = vmatpush.bf16.msra.mxu3 %v376_v7 }
  0x25   :  { %166 = vmatmul.bf16.vlgmr.msra.gmra.mxu0 %v368_v8  ;;  %176 = vmatmul.bf16.vlgmr.msra.gmra.mxu1 %v370_v9 }
  0x26   :  { %186 = vmatmul.bf16.vlgmr.msra.gmra.mxu2 %v372_v10  ;;  %196 = vmatmul.bf16.vlgmr.msra.gmra.mxu3 %v374_v11 }
  0x35   :  { %171 = vmatmul.bf16.gmra.mxu0 %v369_v12  ;;  %181 = vmatmul.bf16.gmra.mxu1 %v371_v13 }
  0x36   :  { %191 = vmatmul.bf16.gmra.mxu2 %v373_v14  ;;  %201 = vmatmul.bf16.gmra.mxu3 %v375_v15 }
  0xa2   :  { %v167_v17 = vpop.f32.mrf.mxu0  ;;  %v177_v18 = vpop.f32.mrf.mxu1 }
  0xa3   :  { %v215_v19 = vadd.f32 %v411_v16, %v167_v17  ;;  %v219_v20 = vadd.f32 %v411_v16, %v177_v18 }
  0xa5   :  { %231 = vst [vmem:[%s542_s3] sm:$0xff] %v215_v19 }
  0xa6   :  { %235 = vst [vmem:[%s542_s3 + $0x20] sm:$0xff] %v219_v20 }
  0xa9   :  { %v187_v21 = vpop.f32.mrf.mxu2  ;;  %v197_v22 = vpop.f32.mrf.mxu3 }
  0xaa   :  { %v223_v23 = vadd.f32 %v411_v16, %v187_v21  ;;  %v227_v24 = vadd.f32 %v411_v16, %v197_v22  ;;  %v169_v25 = vpop.f32.mrf.mxu0  ;;  %v179_v26 = vpop.f32.mrf.mxu1 }
  0xab   :  { %v216_v27 = vadd.f32 %v411_v16, %v169_v25  ;;  %v220_v28 = vadd.f32 %v411_v16, %v179_v26 }
  0xac   :  { %239 = vst [vmem:[%s542_s3 + $0x40] sm:$0xff] %v223_v23 }
  0xad   :  { %243 = vst [vmem:[%s542_s3 + $0x60] sm:$0xff] %v227_v24 }
  0xae   :  { %232 = vst [vmem:[%s542_s3 + $0x8] sm:$0xff] %v216_v27 }
  0xaf   :  { %236 = vst [vmem:[%s542_s3 + $0x28] sm:$0xff] %v220_v28 }
  0xb1   :  { %v189_v29 = vpop.f32.mrf.mxu2  ;;  %v199_v30 = vpop.f32.mrf.mxu3 }
  0xb2   :  { %v224_v31 = vadd.f32 %v411_v16, %v189_v29  ;;  %v228_v32 = vadd.f32 %v411_v16, %v199_v30  ;;  %v172_v33 = vpop.f32.mrf.mxu0  ;;  %v182_v34 = vpop.f32.mrf.mxu1 }
  0xb3   :  { %v217_v35 = vadd.f32 %v411_v16, %v172_v33  ;;  %v221_v36 = vadd.f32 %v411_v16, %v182_v34 }
  0xb4   :  { %240 = vst [vmem:[%s542_s3 + $0x48] sm:$0xff] %v224_v31 }
  0xb5   :  { %244 = vst [vmem:[%s542_s3 + $0x68] sm:$0xff] %v228_v32 }
  0xb6   :  { %233 = vst [vmem:[%s542_s3 + $0x10] sm:$0xff] %v217_v35 }
  0xb7   :  { %237 = vst [vmem:[%s542_s3 + $0x30] sm:$0xff] %v221_v36 }
  0xb9   :  { %v192_v37 = vpop.f32.mrf.mxu2  ;;  %v202_v38 = vpop.f32.mrf.mxu3 }
  0xba   :  { %v225_v39 = vadd.f32 %v411_v16, %v192_v37  ;;  %v229_v40 = vadd.f32 %v411_v16, %v202_v38  ;;  %v174_v41 = vpop.f32.mrf.mxu0  ;;  %v184_v42 = vpop.f32.mrf.mxu1 }
  0xbb   :  { %v218_v43 = vadd.f32 %v411_v16, %v174_v41  ;;  %v222_v44 = vadd.f32 %v411_v16, %v184_v42 }
  0xbc   :  { %241 = vst [vmem:[%s542_s3 + $0x50] sm:$0xff] %v225_v39 }
  0xbd   :  { %245 = vst [vmem:[%s542_s3 + $0x70] sm:$0xff] %v229_v40 }
  0xbe   :  { %234 = vst [vmem:[%s542_s3 + $0x18] sm:$0xff] %v218_v43 }
  0xbf   :  { %238 = vst [vmem:[%s542_s3 + $0x38] sm:$0xff] %v222_v44 }
  0xc1   :  { %v194_v45 = vpop.f32.mrf.mxu2  ;;  %v204_v46 = vpop.f32.mrf.mxu3 }
  0xc2   :  { %v226_v47 = vadd.f32 %v411_v16, %v194_v45  ;;  %v230_v48 = vadd.f32 %v411_v16, %v204_v46 }
  0xc4   :  { %242 = vst [vmem:[%s542_s3 + $0x58] sm:$0xff] %v226_v47 }
  0xc5   :  { %246 = vst [vmem:[%s542_s3 + $0x78] sm:$0xff] %v230_v48 }
  0xc6   :  { %303 = vsyncpa [#allocation3], 1 }

// kernel: mul.239
= control target key start
LH: loop header
LB: loop body
LE: loop exit
PB: predicated region body
PF: predicated region fallthrough
CT: control target
= control target key end

     0   :  { %s160_s0 = inlined_call_operand.vmem [shape: f32[2,512], index: 0, kind: input, shape index: {}]   ;;  %s161_s1 = inlined_call_operand.vmem [shape: f32[2,2,2,512], index: 1, kind: output, shape index: {}]  }
   0x1   :  { %v4_v0 = vld [vmem:[%s160_s0] ss:$0 sm:$0xff]  ;;  %v56_v1 = vld [vmem:[%s160_s0 + $0x1] ss:$0 sm:$0xff]  ;;  %v60_v2 = vld [vmem:[%s160_s0 + $0x2] ss:$0 sm:$0xff] }
   0x2   :  { %5 = vst [vmem:[%s161_s1] sm:$0x3] %v4_v0  ;;  %v62_v3 = vld [vmem:[%s160_s0 + $0x3] ss:$0 sm:$0xff]  ;;  %v66_v4 = vld [vmem:[%s160_s0 + $0x4] ss:$0 sm:$0xff] }
   0x3   :  { %57 = vst [vmem:[%s161_s1 + $0x10] sm:$0x3] %v56_v1  ;;  %v68_v5 = vld [vmem:[%s160_s0 + $0x5] ss:$0 sm:$0xff]  ;;  %v72_v6 = vld [vmem:[%s160_s0 + $0x6] ss:$0 sm:$0xff] }
   0x4   :  { %58 = vst [vmem:[%s161_s1 + $0x8] sm:$0x3] %v4_v0  ;;  %v74_v7 = vld [vmem:[%s160_s0 + $0x7] ss:$0 sm:$0xff] }
   0x5   :  { %59 = vst [vmem:[%s161_s1 + $0x18] sm:$0x3] %v56_v1 }
   0x6   :  { %61 = vst [vmem:[%s161_s1 + $0x2] sm:$0x3] %v60_v2 }
   0x7   :  { %63 = vst [vmem:[%s161_s1 + $0x12] sm:$0x3] %v62_v3 }
   0x8   :  { %64 = vst [vmem:[%s161_s1 + $0xa] sm:$0x3] %v60_v2 }
   0x9   :  { %65 = vst [vmem:[%s161_s1 + $0x1a] sm:$0x3] %v62_v3 }
   0xa   :  { %67 = vst [vmem:[%s161_s1 + $0x4] sm:$0x3] %v66_v4 }
   0xb   :  { %69 = vst [vmem:[%s161_s1 + $0x14] sm:$0x3] %v68_v5 }
   0xc   :  { %70 = vst [vmem:[%s161_s1 + $0xc] sm:$0x3] %v66_v4 }
   0xd   :  { %71 = vst [vmem:[%s161_s1 + $0x1c] sm:$0x3] %v68_v5 }
   0xe   :  { %73 = vst [vmem:[%s161_s1 + $0x6] sm:$0x3] %v72_v6 }
   0xf   :  { %75 = vst [vmem:[%s161_s1 + $0x16] sm:$0x3] %v74_v7 }
  0x10   :  { %76 = vst [vmem:[%s161_s1 + $0xe] sm:$0x3] %v72_v6 }
  0x11   :  { %77 = vst [vmem:[%s161_s1 + $0x1e] sm:$0x3] %v74_v7 }

// kernel: mul.212
= control target key start
LH: loop header
LB: loop body
LE: loop exit
PB: predicated region body
PF: predicated region fallthrough
CT: control target
= control target key end

     0   :  { %s132_s0 = inlined_call_operand.vmem [shape: f32[2,256], index: 0, kind: input, shape index: {}]   ;;  %s133_s1 = inlined_call_operand.vmem [shape: f32[2,4,4,256], index: 1, kind: output, shape index: {}]  }
   0x1   :  { %v4_v0 = vld [vmem:[%s132_s0] ss:$0 sm:$0xff]  ;;  %v44_v1 = vld [vmem:[%s132_s0 + $0x1] ss:$0 sm:$0xff]  ;;  %v52_v2 = vld [vmem:[%s132_s0 + $0x2] ss:$0 sm:$0xff] }
   0x2   :  { %5 = vst [vmem:[%s133_s1] sm:$0xf] %v4_v0  ;;  %v54_v3 = vld [vmem:[%s132_s0 + $0x3] ss:$0 sm:$0xff] }
   0x3   :  { %45 = vst [vmem:[%s133_s1 + $0x20] sm:$0xf] %v44_v1 }
   0x4   :  { %46 = vst [vmem:[%s133_s1 + $0x8] sm:$0xf] %v4_v0 }
   0x5   :  { %47 = vst [vmem:[%s133_s1 + $0x28] sm:$0xf] %v44_v1 }
   0x6   :  { %48 = vst [vmem:[%s133_s1 + $0x10] sm:$0xf] %v4_v0 }
   0x7   :  { %49 = vst [vmem:[%s133_s1 + $0x30] sm:$0xf] %v44_v1 }
   0x8   :  { %50 = vst [vmem:[%s133_s1 + $0x18] sm:$0xf] %v4_v0 }
   0x9   :  { %51 = vst [vmem:[%s133_s1 + $0x38] sm:$0xf] %v44_v1 }
   0xa   :  { %53 = vst [vmem:[%s133_s1 + $0x4] sm:$0xf] %v52_v2 }
   0xb   :  { %55 = vst [vmem:[%s133_s1 + $0x24] sm:$0xf] %v54_v3 }
   0xc   :  { %56 = vst [vmem:[%s133_s1 + $0xc] sm:$0xf] %v52_v2 }
   0xd   :  { %57 = vst [vmem:[%s133_s1 + $0x2c] sm:$0xf] %v54_v3 }
   0xe   :  { %58 = vst [vmem:[%s133_s1 + $0x14] sm:$0xf] %v52_v2 }
   0xf   :  { %59 = vst [vmem:[%s133_s1 + $0x34] sm:$0xf] %v54_v3 }
  0x10   :  { %60 = vst [vmem:[%s133_s1 + $0x1c] sm:$0xf] %v52_v2 }
  0x11   :  { %61 = vst [vmem:[%s133_s1 + $0x3c] sm:$0xf] %v54_v3 }

// kernel: improved_unet_forward.45
= control target key start
LH: loop header
LB: loop body
LE: loop exit
PB: predicated region body
PF: predicated region fallthrough
CT: control target
= control target key end

     0   :  { %s511_s1 = inlined_call_operand.vmem [shape: bf16[128,128], index: 1, kind: input, shape index: {}]   ;;  %s512_s2 = inlined_call_operand.vmem [shape: f32[1,128], index: 2, kind: input, shape index: {}]   ;;  %s513_s0 = inlined_call_operand.vmem [shape: bf16[128,128], index: 0, kind: input, shape index: {}]   ;;  %s514_s3 = inlined_call_operand.vmem [shape: f32[128,128], index: 3, kind: output, shape index: {}]  }
   0x1   :  { %v366_v0 = vld [vmem:[%s511_s1 + $0x38] sm:$0xff]  ;;  %v365_v1 = vld [vmem:[%s511_s1 + $0x30] sm:$0xff]  ;;  %v364_v2 = vld [vmem:[%s511_s1 + $0x28] sm:$0xff] }
   0x2   :  { %142 = vmatpush.bf16.msra.mxu0 %v366_v0  ;;  %367 = vmatpush.bf16.msra.mxu1 %v366_v0  ;;  %v363_v3 = vld [vmem:[%s511_s1 + $0x20] sm:$0xff]  ;;  %v362_v4 = vld [vmem:[%s511_s1 + $0x18] sm:$0xff]  ;;  %v361_v5 = vld [vmem:[%s511_s1 + $0x10] sm:$0xff] }
   0x3   :  { %368 = vmatpush.bf16.msra.mxu2 %v366_v0  ;;  %369 = vmatpush.bf16.msra.mxu3 %v366_v0  ;;  %v360_v6 = vld [vmem:[%s511_s1 + $0x8] sm:$0xff]  ;;  %v359_v7 = vld [vmem:[%s511_s1] sm:$0xff]  ;;  %v353_v9 = vld [vmem:[%s513_s0 + $0x10] sm:$0xff] }
   0x4   :  { %v351_v8 = vld [vmem:[%s513_s0] sm:$0xff]  ;;  %v357_v11 = vld [vmem:[%s513_s0 + $0x30] sm:$0xff]  ;;  %v352_v12 = vld [vmem:[%s513_s0 + $0x8] sm:$0xff] }
   0x5   :  { %v355_v10 = vld [vmem:[%s513_s0 + $0x20] sm:$0xff]  ;;  %v354_v13 = vld [vmem:[%s513_s0 + $0x18] sm:$0xff]  ;;  %v356_v14 = vld [vmem:[%s513_s0 + $0x28] sm:$0xff] }
   0x6   :  { %143 = vmatpush.bf16.msra.mxu0 %v365_v1  ;;  %370 = vmatpush.bf16.msra.mxu1 %v365_v1  ;;  %v358_v15 = vld [vmem:[%s513_s0 + $0x38] sm:$0xff]  ;;  %v391_v16 = vld [vmem:[%s512_s2] ss:$0 sm:$0xff] }
   0x7   :  { %371 = vmatpush.bf16.msra.mxu2 %v365_v1  ;;  %372 = vmatpush.bf16.msra.mxu3 %v365_v1 }
   0xa   :  { %144 = vmatpush.bf16.msra.mxu0 %v364_v2  ;;  %373 = vmatpush.bf16.msra.mxu1 %v364_v2 }
   0xb   :  { %374 = vmatpush.bf16.msra.mxu2 %v364_v2  ;;  %375 = vmatpush.bf16.msra.mxu3 %v364_v2 }
   0xe   :  { %145 = vmatpush.bf16.msra.mxu0 %v363_v3  ;;  %376 = vmatpush.bf16.msra.mxu1 %v363_v3 }
   0xf   :  { %377 = vmatpush.bf16.msra.mxu2 %v363_v3  ;;  %378 = vmatpush.bf16.msra.mxu3 %v363_v3 }
  0x12   :  { %146 = vmatpush.bf16.msra.mxu0 %v362_v4  ;;  %379 = vmatpush.bf16.msra.mxu1 %v362_v4 }
  0x13   :  { %380 = vmatpush.bf16.msra.mxu2 %v362_v4  ;;  %381 = vmatpush.bf16.msra.mxu3 %v362_v4 }
  0x16   :  { %147 = vmatpush.bf16.msra.mxu0 %v361_v5  ;;  %382 = vmatpush.bf16.msra.mxu1 %v361_v5 }
  0x17   :  { %383 = vmatpush.bf16.msra.mxu2 %v361_v5  ;;  %384 = vmatpush.bf16.msra.mxu3 %v361_v5 }
  0x1a   :  { %148 = vmatpush.bf16.msra.mxu0 %v360_v6  ;;  %385 = vmatpush.bf16.msra.mxu1 %v360_v6 }
  0x1b   :  { %386 = vmatpush.bf16.msra.mxu2 %v360_v6  ;;  %387 = vmatpush.bf16.msra.mxu3 %v360_v6 }
  0x1e   :  { %149 = vmatpush.bf16.msra.mxu0 %v359_v7  ;;  %388 = vmatpush.bf16.msra.mxu1 %v359_v7 }
  0x1f   :  { %389 = vmatpush.bf16.msra.mxu2 %v359_v7  ;;  %390 = vmatpush.bf16.msra.mxu3 %v359_v7 }
  0x21   :  { %150 = vmatmul.bf16.vlgmr.msra.gmra.mxu0 %v351_v8  ;;  %160 = vmatmul.bf16.vlgmr.msra.gmra.mxu1 %v353_v9 }
  0x22   :  { %170 = vmatmul.bf16.vlgmr.msra.gmra.mxu2 %v355_v10  ;;  %180 = vmatmul.bf16.vlgmr.msra.gmra.mxu3 %v357_v11 }
  0x31   :  { %155 = vmatmul.bf16.gmra.mxu0 %v352_v12  ;;  %165 = vmatmul.bf16.gmra.mxu1 %v354_v13 }
  0x32   :  { %175 = vmatmul.bf16.gmra.mxu2 %v356_v14  ;;  %185 = vmatmul.bf16.gmra.mxu3 %v358_v15 }
  0x9e   :  { %v151_v17 = vpop.f32.mrf.mxu0  ;;  %v161_v18 = vpop.f32.mrf.mxu1 }
  0x9f   :  { %v199_v19 = vadd.f32 %v391_v16, %v151_v17  ;;  %v203_v20 = vadd.f32 %v391_v16, %v161_v18 }
  0xa1   :  { %215 = vst [vmem:[%s514_s3] sm:$0xff] %v199_v19 }
  0xa2   :  { %219 = vst [vmem:[%s514_s3 + $0x20] sm:$0xff] %v203_v20 }
  0xa5   :  { %v171_v21 = vpop.f32.mrf.mxu2  ;;  %v181_v22 = vpop.f32.mrf.mxu3 }
  0xa6   :  { %v207_v23 = vadd.f32 %v391_v16, %v171_v21  ;;  %v211_v24 = vadd.f32 %v391_v16, %v181_v22  ;;  %v153_v25 = vpop.f32.mrf.mxu0  ;;  %v163_v26 = vpop.f32.mrf.mxu1 }
  0xa7   :  { %v200_v27 = vadd.f32 %v391_v16, %v153_v25  ;;  %v204_v28 = vadd.f32 %v391_v16, %v163_v26 }
  0xa8   :  { %223 = vst [vmem:[%s514_s3 + $0x40] sm:$0xff] %v207_v23 }
  0xa9   :  { %227 = vst [vmem:[%s514_s3 + $0x60] sm:$0xff] %v211_v24 }
  0xaa   :  { %216 = vst [vmem:[%s514_s3 + $0x8] sm:$0xff] %v200_v27 }
  0xab   :  { %220 = vst [vmem:[%s514_s3 + $0x28] sm:$0xff] %v204_v28 }
  0xad   :  { %v173_v29 = vpop.f32.mrf.mxu2  ;;  %v183_v30 = vpop.f32.mrf.mxu3 }
  0xae   :  { %v208_v31 = vadd.f32 %v391_v16, %v173_v29  ;;  %v212_v32 = vadd.f32 %v391_v16, %v183_v30  ;;  %v156_v33 = vpop.f32.mrf.mxu0  ;;  %v166_v34 = vpop.f32.mrf.mxu1 }
  0xaf   :  { %v201_v35 = vadd.f32 %v391_v16, %v156_v33  ;;  %v205_v36 = vadd.f32 %v391_v16, %v166_v34 }
  0xb0   :  { %224 = vst [vmem:[%s514_s3 + $0x48] sm:$0xff] %v208_v31 }
  0xb1   :  { %228 = vst [vmem:[%s514_s3 + $0x68] sm:$0xff] %v212_v32 }
  0xb2   :  { %217 = vst [vmem:[%s514_s3 + $0x10] sm:$0xff] %v201_v35 }
  0xb3   :  { %221 = vst [vmem:[%s514_s3 + $0x30] sm:$0xff] %v205_v36 }
  0xb5   :  { %v176_v37 = vpop.f32.mrf.mxu2  ;;  %v186_v38 = vpop.f32.mrf.mxu3 }
  0xb6   :  { %v209_v39 = vadd.f32 %v391_v16, %v176_v37  ;;  %v213_v40 = vadd.f32 %v391_v16, %v186_v38  ;;  %v158_v41 = vpop.f32.mrf.mxu0  ;;  %v168_v42 = vpop.f32.mrf.mxu1 }
  0xb7   :  { %v202_v43 = vadd.f32 %v391_v16, %v158_v41  ;;  %v206_v44 = vadd.f32 %v391_v16, %v168_v42 }
  0xb8   :  { %225 = vst [vmem:[%s514_s3 + $0x50] sm:$0xff] %v209_v39 }
  0xb9   :  { %229 = vst [vmem:[%s514_s3 + $0x70] sm:$0xff] %v213_v40 }
  0xba   :  { %218 = vst [vmem:[%s514_s3 + $0x18] sm:$0xff] %v202_v43 }
  0xbb   :  { %222 = vst [vmem:[%s514_s3 + $0x38] sm:$0xff] %v206_v44 }
  0xbd   :  { %v178_v45 = vpop.f32.mrf.mxu2  ;;  %v188_v46 = vpop.f32.mrf.mxu3 }
  0xbe   :  { %v210_v47 = vadd.f32 %v391_v16, %v178_v45  ;;  %v214_v48 = vadd.f32 %v391_v16, %v188_v46 }
  0xc0   :  { %226 = vst [vmem:[%s514_s3 + $0x58] sm:$0xff] %v210_v47 }
  0xc1   :  { %230 = vst [vmem:[%s514_s3 + $0x78] sm:$0xff] %v214_v48 }

// kernel: improved_unet_forward.49
= control target key start
LH: loop header
LB: loop body
LE: loop exit
PB: predicated region body
PF: predicated region fallthrough
CT: control target
= control target key end

     0   :  { %s2149_s12 = smov 0   ;;  %s2151_s13 = smov 0   ;;  %s2723_s0 = inlined_call_operand.vmem [shape: bf16[128,2304], index: 0, kind: input, shape index: {}]   ;;  %s2724_s1 = inlined_call_operand.vmem [shape: bf16[2304,128], index: 1, kind: input, shape index: {}]   ;;  %s2725_s2 = inlined_call_operand.vmem [shape: f32[1,128], index: 2, kind: input, shape index: {}]   ;;  %s2726_s3 = inlined_call_operand.vmem [shape: f32[128,128], index: 3, kind: output, shape index: {}]  }
   0x1   :  { %s2153_s14 = smov 0   ;;  %s2155_s15 = smov 0  }
   0x2   :  { %s2157_s16 = smov 0  }
   0x3 LB: > { %s25_s17 = sadd.s32 1, %s2123_s15  ;;  %p48_p1 = scmp.ne.s32.totalorder %s2115_s13, %s2111_s12  ;;  %s2127_s16 = sphi %s2157_s16, %s13_s16   ;;  %s2123_s15 = sphi %s2155_s15, %s2730_s15   ;;  %s2119_s14 = sphi %s2153_s14, %s2729_s14   ;;  %s2115_s13 = sphi %s2151_s13, %s2728_s13   ;;  %s2111_s12 = sphi %s2149_s12, %s2727_s12  }
   0x4   : > { %p26_p0 = scmp.ge.s32.totalorder %s25_s17, 3  ;;  %p49_p2 = scmp.eq.s32.totalorder %s2127_s16, 0 }
   0x5   : > { %s41_s19 = sadd.s32 1, %s2115_s13  ;;  %p1539_p5 = scmp.ge.s32.totalorder %s2127_s16, 3 }
   0x6   : > { %s2732_s17 = smov (%p26_p0, %s25_s17), 0  ;;  %p50_p3 = por %p49_p2, %p48_p1 }
   0x7   : > { %s37_s18 = ssub.s32 %s2123_s15, %s2732_s17  ;;  %162 = sbr.rel (%p1539_p5) target bundleno = 65 (0x41), region = 20 }
   0x8   : > { %p39_p4 = scmp.eq.s32.totalorder %s37_s18, 0 }
   0xa   : > { %s2184_s20 = scalar_select %p39_p4, %s2115_s13, %s41_s19  }
   0xc   : > { %165 = sbr.rel (!%p50_p3) target bundleno = 65 (0x41), region = 24  ;;  %s167_s21 = sand.u32 (%p50_p3), 1, %s2115_s13  }
   0xd   : > { %s1933_s22 = smul.u32 (%p50_p3), 24, %s2123_s15 }
   0xe   : > { %s2046_s23 = smul.u32 (%p50_p3), 384, %s167_s21 }
   0xf   : > { %s2192_s26 = scalar_lea.vmem (%p50_p3), %s2723_s0, %s1933_s22 }
  0x10   : > { %v188_v0 = vld [vmem:[%s2192_s26] sm:$0xff] (%p50_p3)  ;;  %v190_v1 = vld [vmem:[%s2192_s26 + $0x8] sm:$0xff] (%p50_p3)  ;;  %v192_v2 = vld [vmem:[%s2192_s26 + $0x10] sm:$0xff] (%p50_p3)  ;;  %s2197_s27 = scalar_lea.vmem (%p50_p3), [#allocation2], %s2046_s23 }
  0x11   : > { %189 = vst [vmem:[%s2197_s27] sm:$0xff] %v188_v0  ;;  %v194_v3 = vld [vmem:[%s2192_s26 + $0x48] sm:$0xff]  ;;  %v196_v4 = vld [vmem:[%s2192_s26 + $0x50] sm:$0xff]  ;;  %v198_v5 = vld [vmem:[%s2192_s26 + $0x58] sm:$0xff] }
  0x12   : > { %191 = vst [vmem:[%s2197_s27 + $0x8] sm:$0xff] %v190_v1  ;;  %v200_v6 = vld [vmem:[%s2192_s26 + $0x90] sm:$0xff]  ;;  %v202_v7 = vld [vmem:[%s2192_s26 + $0x98] sm:$0xff]  ;;  %v204_v8 = vld [vmem:[%s2192_s26 + $0xa0] sm:$0xff] }
  0x13   : > { %193 = vst [vmem:[%s2197_s27 + $0x10] sm:$0xff] %v192_v2  ;;  %v206_v9 = vld [vmem:[%s2192_s26 + $0xd8] sm:$0xff]  ;;  %v208_v10 = vld [vmem:[%s2192_s26 + $0xe0] sm:$0xff]  ;;  %v210_v11 = vld [vmem:[%s2192_s26 + $0xe8] sm:$0xff] }
  0x14   : > { %195 = vst [vmem:[%s2197_s27 + $0x18] sm:$0xff] %v194_v3  ;;  %v212_v12 = vld [vmem:[%s2192_s26 + $0x120] sm:$0xff]  ;;  %v214_v13 = vld [vmem:[%s2192_s26 + $0x128] sm:$0xff]  ;;  %v216_v14 = vld [vmem:[%s2192_s26 + $0x130] sm:$0xff] }
  0x15   : > { %197 = vst [vmem:[%s2197_s27 + $0x20] sm:$0xff] %v196_v4  ;;  %v218_v15 = vld [vmem:[%s2192_s26 + $0x168] sm:$0xff]  ;;  %v220_v16 = vld [vmem:[%s2192_s26 + $0x170] sm:$0xff]  ;;  %v222_v17 = vld [vmem:[%s2192_s26 + $0x178] sm:$0xff] }
  0x16   : > { %199 = vst [vmem:[%s2197_s27 + $0x28] sm:$0xff] %v198_v5  ;;  %v224_v18 = vld [vmem:[%s2192_s26 + $0x1b0] sm:$0xff]  ;;  %v226_v19 = vld [vmem:[%s2192_s26 + $0x1b8] sm:$0xff]  ;;  %v228_v20 = vld [vmem:[%s2192_s26 + $0x1c0] sm:$0xff] }
  0x17   : > { %201 = vst [vmem:[%s2197_s27 + $0x30] sm:$0xff] %v200_v6  ;;  %v230_v21 = vld [vmem:[%s2192_s26 + $0x1f8] sm:$0xff]  ;;  %v232_v22 = vld [vmem:[%s2192_s26 + $0x200] sm:$0xff]  ;;  %v234_v23 = vld [vmem:[%s2192_s26 + $0x208] sm:$0xff] }
  0x18   : > { %203 = vst [vmem:[%s2197_s27 + $0x38] sm:$0xff] %v202_v7  ;;  %v236_v24 = vld [vmem:[%s2192_s26 + $0x240] sm:$0xff]  ;;  %v238_v25 = vld [vmem:[%s2192_s26 + $0x248] sm:$0xff]  ;;  %v240_v26 = vld [vmem:[%s2192_s26 + $0x250] sm:$0xff] }
  0x19   : > { %205 = vst [vmem:[%s2197_s27 + $0x40] sm:$0xff] %v204_v8  ;;  %v242_v27 = vld [vmem:[%s2192_s26 + $0x288] sm:$0xff]  ;;  %v244_v28 = vld [vmem:[%s2192_s26 + $0x290] sm:$0xff]  ;;  %v246_v29 = vld [vmem:[%s2192_s26 + $0x298] sm:$0xff] }
  0x1a   : > { %207 = vst [vmem:[%s2197_s27 + $0x48] sm:$0xff] %v206_v9  ;;  %v248_v30 = vld [vmem:[%s2192_s26 + $0x2d0] sm:$0xff]  ;;  %v250_v31 = vld [vmem:[%s2192_s26 + $0x2d8] sm:$0xff]  ;;  %v252_v32 = vld [vmem:[%s2192_s26 + $0x2e0] sm:$0xff] }
  0x1b   : > { %209 = vst [vmem:[%s2197_s27 + $0x50] sm:$0xff] %v208_v10  ;;  %v254_v33 = vld [vmem:[%s2192_s26 + $0x318] sm:$0xff]  ;;  %v256_v34 = vld [vmem:[%s2192_s26 + $0x320] sm:$0xff]  ;;  %v258_v35 = vld [vmem:[%s2192_s26 + $0x328] sm:$0xff] }
  0x1c   : > { %211 = vst [vmem:[%s2197_s27 + $0x58] sm:$0xff] %v210_v11  ;;  %v260_v36 = vld [vmem:[%s2192_s26 + $0x360] sm:$0xff]  ;;  %v262_v37 = vld [vmem:[%s2192_s26 + $0x368] sm:$0xff]  ;;  %v264_v38 = vld [vmem:[%s2192_s26 + $0x370] sm:$0xff] }
  0x1d   : > { %213 = vst [vmem:[%s2197_s27 + $0x60] sm:$0xff] %v212_v12  ;;  %v266_v39 = vld [vmem:[%s2192_s26 + $0x3a8] sm:$0xff]  ;;  %v268_v40 = vld [vmem:[%s2192_s26 + $0x3b0] sm:$0xff]  ;;  %v270_v41 = vld [vmem:[%s2192_s26 + $0x3b8] sm:$0xff] }
  0x1e   : > { %215 = vst [vmem:[%s2197_s27 + $0x68] sm:$0xff] %v214_v13  ;;  %v272_v42 = vld [vmem:[%s2192_s26 + $0x3f0] sm:$0xff]  ;;  %v274_v43 = vld [vmem:[%s2192_s26 + $0x3f8] sm:$0xff]  ;;  %v276_v44 = vld [vmem:[%s2192_s26 + $0x400] sm:$0xff] }
  0x1f   : > { %217 = vst [vmem:[%s2197_s27 + $0x70] sm:$0xff] %v216_v14  ;;  %v278_v45 = vld [vmem:[%s2192_s26 + $0x438] sm:$0xff]  ;;  %v280_v46 = vld [vmem:[%s2192_s26 + $0x440] sm:$0xff]  ;;  %v282_v47 = vld [vmem:[%s2192_s26 + $0x448] sm:$0xff] }
  0x20   : > { %219 = vst [vmem:[%s2197_s27 + $0x78] sm:$0xff] %v218_v15 }
  0x21   : > { %221 = vst [vmem:[%s2197_s27 + $0x80] sm:$0xff] %v220_v16 }
  0x22   : > { %223 = vst [vmem:[%s2197_s27 + $0x88] sm:$0xff] %v222_v17 }
  0x23   : > { %225 = vst [vmem:[%s2197_s27 + $0x90] sm:$0xff] %v224_v18 }
  0x24   : > { %227 = vst [vmem:[%s2197_s27 + $0x98] sm:$0xff] %v226_v19 }
  0x25   : > { %229 = vst [vmem:[%s2197_s27 + $0xa0] sm:$0xff] %v228_v20 }
  0x26   : > { %231 = vst [vmem:[%s2197_s27 + $0xa8] sm:$0xff] %v230_v21 }
  0x27   : > { %233 = vst [vmem:[%s2197_s27 + $0xb0] sm:$0xff] %v232_v22 }
  0x28   : > { %235 = vst [vmem:[%s2197_s27 + $0xb8] sm:$0xff] %v234_v23 }
  0x29   : > { %237 = vst [vmem:[%s2197_s27 + $0xc0] sm:$0xff] %v236_v24 }
  0x2a   : > { %239 = vst [vmem:[%s2197_s27 + $0xc8] sm:$0xff] %v238_v25 }
  0x2b   : > { %241 = vst [vmem:[%s2197_s27 + $0xd0] sm:$0xff] %v240_v26 }
  0x2c   : > { %243 = vst [vmem:[%s2197_s27 + $0xd8] sm:$0xff] %v242_v27 }
  0x2d   : > { %245 = vst [vmem:[%s2197_s27 + $0xe0] sm:$0xff] %v244_v28 }
  0x2e   : > { %247 = vst [vmem:[%s2197_s27 + $0xe8] sm:$0xff] %v246_v29 }
  0x2f   : > { %249 = vst [vmem:[%s2197_s27 + $0xf0] sm:$0xff] %v248_v30 }
  0x30   : > { %251 = vst [vmem:[%s2197_s27 + $0xf8] sm:$0xff] %v250_v31 }
  0x31   : > { %253 = vst [vmem:[%s2197_s27 + $0x100] sm:$0xff] %v252_v32 }
  0x32   : > { %255 = vst [vmem:[%s2197_s27 + $0x108] sm:$0xff] %v254_v33 }
  0x33   : > { %257 = vst [vmem:[%s2197_s27 + $0x110] sm:$0xff] %v256_v34 }
  0x34   : > { %259 = vst [vmem:[%s2197_s27 + $0x118] sm:$0xff] %v258_v35 }
  0x35   : > { %261 = vst [vmem:[%s2197_s27 + $0x120] sm:$0xff] %v260_v36 }
  0x36   : > { %263 = vst [vmem:[%s2197_s27 + $0x128] sm:$0xff] %v262_v37 }
  0x37   : > { %265 = vst [vmem:[%s2197_s27 + $0x130] sm:$0xff] %v264_v38 }
  0x38   : > { %267 = vst [vmem:[%s2197_s27 + $0x138] sm:$0xff] %v266_v39 }
  0x39   : > { %269 = vst [vmem:[%s2197_s27 + $0x140] sm:$0xff] %v268_v40 }
  0x3a   : > { %271 = vst [vmem:[%s2197_s27 + $0x148] sm:$0xff] %v270_v41 }
  0x3b   : > { %273 = vst [vmem:[%s2197_s27 + $0x150] sm:$0xff] %v272_v42 }
  0x3c   : > { %275 = vst [vmem:[%s2197_s27 + $0x158] sm:$0xff] %v274_v43 }
  0x3d   : > { %277 = vst [vmem:[%s2197_s27 + $0x160] sm:$0xff] %v276_v44 }
  0x3e   : > { %279 = vst [vmem:[%s2197_s27 + $0x168] sm:$0xff] %v278_v45 }
  0x3f   : > { %281 = vst [vmem:[%s2197_s27 + $0x170] sm:$0xff] %v280_v46 }
  0x40   : > { %283 = vst [vmem:[%s2197_s27 + $0x178] sm:$0xff] %v282_v47 }
  0x41 PF: > { %p1541_p6 = scmp.ge.s32.totalorder %s2127_s16, 1  ;;  %p300_p7 = scmp.lt.s32.totalorder %s2127_s16, 4 }
  0x43   : > { %p301_p8 = pnand %p1541_p6, %p300_p7 }
  0x44   : > { %s346_s28 = smul.u32 (!%p301_p8), 96, %s2119_s14  ;;  %s307_s6 = sand.u32 (!%p301_p8), 1, %s2111_s12  }
  0x45   : > { %304 = sbr.rel (%p301_p8) target bundleno = 477 (0x1dd), region = 51  ;;  %p1927_p10 = scmp.ne.s32.totalorder (!%p301_p8), %s2119_s14, 0 }
  0x46   : > { %p347_p9 = scmp.lt.s32.totalorder (!%p301_p8), %s346_s28, 287  ;;  %s2047_s7 = smul.u32 (!%p301_p8), 384, %s307_s6 }
  0x48   : > { %s2315_s8 = scalar_lea.vmem (!%p301_p8), [#allocation2], %s2047_s7 }
  0x4a   : > { %s2734_s28 = smov (!%p347_p9, %s346_s28), 287  ;;  %v1641_v62 = vld [vmem:[%s2315_s8 + $0xc0] sm:$0xf]  ;;  %v1961_v63 = vld [vmem:[%s2315_s8 + $0xd4] sm:$0xf0] }
  0x4b   : > { %s1542_s29 = sshll.u32 %s2734_s28, 2  ;;  %v1958_v0 = vld [vmem:[%s2315_s8 + $0xc4] sm:$0xf]  ;;  %v1643_v1 = vld [vmem:[%s2315_s8 + $0xd8] sm:$0xf0]  ;;  %v1642_v10 = vor.u32 %v1961_v63, %v1641_v62 }
  0x4c   : > { %s2298_s5 = scalar_lea.vmem %s2724_s1, %s1542_s29  ;;  %v1545_v4 = vld [vmem:[%s2315_s8] sm:$0xf]  ;;  %v1937_v5 = vld [vmem:[%s2315_s8 + $0x14] sm:$0xf0]  ;;  %v1934_v6 = vld [vmem:[%s2315_s8 + $0x4] sm:$0xf]  ;;  %v1646_v11 = vor.u32 %v1958_v0, %v1643_v1 }
  0x4d   : > { %v1989_v48 = vld [vmem:[%s2298_s5 + $0x38] sm:$0xff]  ;;  %v1988_v50 = vld [vmem:[%s2298_s5 + $0x30] sm:$0xff]  ;;  %v1987_v52 = vld [vmem:[%s2298_s5 + $0x28] sm:$0xff]  ;;  %v1546_v12 = vor.u32 %v1937_v5, %v1545_v4 }
  0x4e   : > { %v1997_v49 = vld [vmem:[%s2298_s5 + $0x78] sm:$0xff]  ;;  %2030 = vmatpush.bf16.msra.mxu2 %v1989_v48  ;;  %v1996_v51 = vld [vmem:[%s2298_s5 + $0x70] sm:$0xff]  ;;  %1039 = vmatpush.bf16.msra.mxu0 %v1989_v48  ;;  %v1995_v53 = vld [vmem:[%s2298_s5 + $0x68] sm:$0xff] }
  0x4f   : > { %2038 = vmatpush.bf16.msra.mxu3 %v1997_v49  ;;  %1088 = vmatpush.bf16.msra.mxu1 %v1997_v49  ;;  %v1986_v54 = vld [vmem:[%s2298_s5 + $0x20] sm:$0xff]  ;;  %v1985_v56 = vld [vmem:[%s2298_s5 + $0x18] sm:$0xff]  ;;  %v1984_v58 = vld [vmem:[%s2298_s5 + $0x10] sm:$0xff] }
  0x50   : > { %v1994_v55 = vld [vmem:[%s2298_s5 + $0x60] sm:$0xff]  ;;  %v1993_v57 = vld [vmem:[%s2298_s5 + $0x58] sm:$0xff]  ;;  %v1992_v59 = vld [vmem:[%s2298_s5 + $0x50] sm:$0xff] }
  0x51   : > { %v1983_v60 = vld [vmem:[%s2298_s5 + $0x8] sm:$0xff]  ;;  %v1982_v2 = vld [vmem:[%s2298_s5] sm:$0xff]  ;;  %v1547_v7 = vld [vmem:[%s2315_s8 + $0x18] sm:$0xf0] }
  0x52   : > { %2031 = vmatpush.bf16.msra.mxu2 %v1988_v50  ;;  %1040 = vmatpush.bf16.msra.mxu0 %v1988_v50  ;;  %v1991_v61 = vld [vmem:[%s2298_s5 + $0x48] sm:$0xff]  ;;  %v1990_v3 = vld [vmem:[%s2298_s5 + $0x40] sm:$0xff]  ;;  %v2005_v8 = vld [vmem:[%s2298_s5 + $0xb8] sm:$0xff]  ;;  %v1550_v13 = vor.u32 %v1934_v6, %v1547_v7 }
  0x53   : > { %2039 = vmatpush.bf16.msra.mxu3 %v1996_v51  ;;  %1089 = vmatpush.bf16.msra.mxu1 %v1996_v51  ;;  %v2013_v9 = vld [vmem:[%s2298_s5 + $0xf8] sm:$0xff]  ;;  %v2004_v16 = vld [vmem:[%s2298_s5 + $0xb0] sm:$0xff]  ;;  %v2003_v20 = vld [vmem:[%s2298_s5 + $0xa8] sm:$0xff] }
  0x54   : > { %v2021_v14 = vld [vmem:[%s2298_s5 + $0x138] sm:$0xff]  ;;  %v2012_v17 = vld [vmem:[%s2298_s5 + $0xf0] sm:$0xff]  ;;  %v2011_v21 = vld [vmem:[%s2298_s5 + $0xe8] sm:$0xff] }
  0x55   : > { %v2029_v15 = vld [vmem:[%s2298_s5 + $0x178] sm:$0xff]  ;;  %v2020_v18 = vld [vmem:[%s2298_s5 + $0x130] sm:$0xff]  ;;  %v2019_v22 = vld [vmem:[%s2298_s5 + $0x128] sm:$0xff] }
  0x56   : > { %2032 = vmatpush.bf16.msra.mxu2 %v1987_v52  ;;  %1041 = vmatpush.bf16.msra.mxu0 %v1987_v52  ;;  %v2028_v19 = vld [vmem:[%s2298_s5 + $0x170] sm:$0xff]  ;;  %v2027_v23 = vld [vmem:[%s2298_s5 + $0x168] sm:$0xff]  ;;  %v2002_v25 = vld [vmem:[%s2298_s5 + $0xa0] sm:$0xff] }
  0x57   : > { %2040 = vmatpush.bf16.msra.mxu3 %v1995_v53  ;;  %1090 = vmatpush.bf16.msra.mxu1 %v1995_v53  ;;  %v1665_v24 = vld [vmem:[%s2315_s8 + $0xf0] sm:$0xf]  ;;  %v2010_v26 = vld [vmem:[%s2298_s5 + $0xe0] sm:$0xff]  ;;  %v1967_v27 = vld [vmem:[%s2315_s8 + $0x104] sm:$0xf0] }
  0x58   : > { %v1964_v28 = vld [vmem:[%s2315_s8 + $0xf4] sm:$0xf]  ;;  %v1667_v29 = vld [vmem:[%s2315_s8 + $0x108] sm:$0xf0]  ;;  %v1569_v30 = vld [vmem:[%s2315_s8 + $0x30] sm:$0xf]  ;;  %v1666_v38 = vor.u32 %v1967_v27, %v1665_v24 }
  0x59   : > { %v1943_v31 = vld [vmem:[%s2315_s8 + $0x44] sm:$0xf0]  ;;  %v1940_v32 = vld [vmem:[%s2315_s8 + $0x34] sm:$0xf]  ;;  %v1571_v33 = vld [vmem:[%s2315_s8 + $0x48] sm:$0xf0]  ;;  %v1670_v39 = vor.u32 %v1964_v28, %v1667_v29 }
  0x5a   : > { %2033 = vmatpush.bf16.msra.mxu2 %v1986_v54  ;;  %1042 = vmatpush.bf16.msra.mxu0 %v1986_v54  ;;  %v2018_v34 = vld [vmem:[%s2298_s5 + $0x120] sm:$0xff]  ;;  %v2001_v36 = vld [vmem:[%s2298_s5 + $0x98] sm:$0xff]  ;;  %v1570_v40 = vor.u32 %v1943_v31, %v1569_v30  ;;  %v1574_v41 = vor.u32 %v1940_v32, %v1571_v33  ;;  %v2000_v44 = vld [vmem:[%s2298_s5 + $0x90] sm:$0xff] }
  0x5b   : > { %2041 = vmatpush.bf16.msra.mxu3 %v1994_v55  ;;  %1091 = vmatpush.bf16.msra.mxu1 %v1994_v55  ;;  %v2026_v35 = vld [vmem:[%s2298_s5 + $0x160] sm:$0xff]  ;;  %v2009_v37 = vld [vmem:[%s2298_s5 + $0xd8] sm:$0xff]  ;;  %v2008_v45 = vld [vmem:[%s2298_s5 + $0xd0] sm:$0xff] }
  0x5c   : > { %v2017_v42 = vld [vmem:[%s2298_s5 + $0x118] sm:$0xff]  ;;  %v2016_v46 = vld [vmem:[%s2298_s5 + $0x110] sm:$0xff]  ;;  %v1999_v48 = vld [vmem:[%s2298_s5 + $0x88] sm:$0xff] }
  0x5d   : > { %v2025_v43 = vld [vmem:[%s2298_s5 + $0x158] sm:$0xff]  ;;  %v2024_v47 = vld [vmem:[%s2298_s5 + $0x150] sm:$0xff]  ;;  %v2007_v49 = vld [vmem:[%s2298_s5 + $0xc8] sm:$0xff] }
  0x5e   : > { %2034 = vmatpush.bf16.msra.mxu2 %v1985_v56  ;;  %1043 = vmatpush.bf16.msra.mxu0 %v1985_v56  ;;  %v2015_v50 = vld [vmem:[%s2298_s5 + $0x108] sm:$0xff]  ;;  %v1998_v52 = vld [vmem:[%s2298_s5 + $0x80] sm:$0xff]  ;;  %v1973_v55 = vld [vmem:[%s2315_s8 + $0x134] sm:$0xf0] }
  0x5f   : > { %2042 = vmatpush.bf16.msra.mxu3 %v1993_v57  ;;  %1092 = vmatpush.bf16.msra.mxu1 %v1993_v57  ;;  %v2023_v51 = vld [vmem:[%s2298_s5 + $0x148] sm:$0xff]  ;;  %v2006_v53 = vld [vmem:[%s2298_s5 + $0xc0] sm:$0xff]  ;;  %v1691_v57 = vld [vmem:[%s2315_s8 + $0x138] sm:$0xf0] }
  0x60   : > { %v1689_v54 = vld [vmem:[%s2315_s8 + $0x120] sm:$0xf]  ;;  %v1970_v56 = vld [vmem:[%s2315_s8 + $0x124] sm:$0xf]  ;;  %v1713_v4 = vld [vmem:[%s2315_s8 + $0x150] sm:$0xf] }
  0x61   : > { %v2014_v62 = vld [vmem:[%s2298_s5 + $0x100] sm:$0xff]  ;;  %v1690_v63 = vor.u32 %v1973_v55, %v1689_v54  ;;  %v1694_v0 = vor.u32 %v1970_v56, %v1691_v57  ;;  %v1979_v5 = vld [vmem:[%s2315_s8 + $0x164] sm:$0xf0]  ;;  %v1976_v6 = vld [vmem:[%s2315_s8 + $0x154] sm:$0xf] }
  0x62   : > { %2035 = vmatpush.bf16.msra.mxu2 %v1984_v58  ;;  %1044 = vmatpush.bf16.msra.mxu0 %v1984_v58  ;;  %v1593_v58 = vld [vmem:[%s2315_s8 + $0x60] sm:$0xf]  ;;  %v1715_v7 = vld [vmem:[%s2315_s8 + $0x168] sm:$0xf0]  ;;  %v1577_v28 = vld [vmem:[%s2315_s8 + $0x38] sm:$0xf] }
  0x63   : > { %2043 = vmatpush.bf16.msra.mxu3 %v1992_v59  ;;  %1093 = vmatpush.bf16.msra.mxu1 %v1992_v59  ;;  %v1949_v59 = vld [vmem:[%s2315_s8 + $0x74] sm:$0xf0]  ;;  %v1944_v29 = vld [vmem:[%s2315_s8 + $0x4c] sm:$0xf0]  ;;  %v1941_v30 = vld [vmem:[%s2315_s8 + $0x3c] sm:$0xf] }
  0x64   : > { %v1594_v1 = vor.u32 %v1949_v59, %v1593_v58  ;;  %v1579_v31 = vld [vmem:[%s2315_s8 + $0x50] sm:$0xf0]  ;;  %v1585_v32 = vld [vmem:[%s2315_s8 + $0x40] sm:$0xf]  ;;  %v1945_v33 = vld [vmem:[%s2315_s8 + $0x54] sm:$0xf0] }
  0x65   : > { %v1953_v54 = vld [vmem:[%s2315_s8 + $0x9c] sm:$0xf]  ;;  %v1627_v55 = vld [vmem:[%s2315_s8 + $0xb0] sm:$0xf0]  ;;  %v1633_v56 = vld [vmem:[%s2315_s8 + $0xa0] sm:$0xf] }
  0x66   : > { %2036 = vmatpush.bf16.msra.mxu2 %v1983_v60  ;;  %1045 = vmatpush.bf16.msra.mxu0 %v1983_v60  ;;  %v1946_v60 = vld [vmem:[%s2315_s8 + $0x64] sm:$0xf]  ;;  %v1957_v57 = vld [vmem:[%s2315_s8 + $0xb4] sm:$0xf0]  ;;  %v1635_v59 = vld [vmem:[%s2315_s8 + $0xb8] sm:$0xf0] }
  0x67   : > { %2044 = vmatpush.bf16.msra.mxu3 %v1991_v61  ;;  %1094 = vmatpush.bf16.msra.mxu1 %v1991_v61  ;;  %v1595_v61 = vld [vmem:[%s2315_s8 + $0x78] sm:$0xf0]  ;;  %v1954_v58 = vld [vmem:[%s2315_s8 + $0xa4] sm:$0xf] }
  0x6a   : > { %2037 = vmatpush.bf16.msra.mxu2 %v1982_v2  ;;  %1046 = vmatpush.bf16.msra.mxu0 %v1982_v2  ;;  %v1598_v2 = vor.u32 %v1946_v60, %v1595_v61  ;;  %v1630_v61 = vor.u32 %v1953_v54, %v1627_v55 }
  0x6b   : > { %2045 = vmatpush.bf16.msra.mxu3 %v1990_v3  ;;  %1095 = vmatpush.bf16.msra.mxu1 %v1990_v3  ;;  %v2022_v3 = vld [vmem:[%s2298_s5 + $0x140] sm:$0xff] }
  0x6d   : > { %1067 = vmatmul.bf16.vlgmr.msra.gmra.mxu2 %v1642_v10  ;;  %1047 = vmatmul.bf16.vlgmr.msra.gmra.mxu0 %v1546_v12  ;;  %v1952_v10 = vld [vmem:[%s2315_s8 + $0x94] sm:$0xf]  ;;  %v1714_v12 = vor.u32 %v1979_v5, %v1713_v4  ;;  %v1657_v4 = vld [vmem:[%s2315_s8 + $0xd0] sm:$0xf]  ;;  %v1963_v5 = vld [vmem:[%s2315_s8 + $0xe4] sm:$0xf0] }
  0x6e   : > { %1137 = vmatpush.bf16.msrb.mxu2 %v2005_v8  ;;  %1116 = vmatmul.bf16.vlgmr.msra.gmra.mxu3 %v1646_v11  ;;  %v1617_v8 = vld [vmem:[%s2315_s8 + $0x90] sm:$0xf]  ;;  %v1619_v11 = vld [vmem:[%s2315_s8 + $0xa8] sm:$0xf0] }
  0x6f   : > { %1186 = vmatpush.bf16.msrb.mxu3 %v2013_v9  ;;  %1096 = vmatmul.bf16.vlgmr.msra.gmra.mxu1 %v1550_v13  ;;  %v1955_v9 = vld [vmem:[%s2315_s8 + $0xa4] sm:$0xf0]  ;;  %v1718_v13 = vor.u32 %v1976_v6, %v1715_v7  ;;  %v1960_v6 = vld [vmem:[%s2315_s8 + $0xd4] sm:$0xf]  ;;  %v1659_v7 = vld [vmem:[%s2315_s8 + $0xe8] sm:$0xf0] }
  0x70   : > { %1235 = vmatpush.bf16.msrb.mxu0 %v2021_v14  ;;  %1284 = vmatpush.bf16.msrb.mxu1 %v2029_v15  ;;  %v1618_v14 = vor.u32 %v1955_v9, %v1617_v8  ;;  %v1622_v15 = vor.u32 %v1952_v10, %v1619_v11  ;;  %v1658_v10 = vor.u32 %v1963_v5, %v1657_v4  ;;  %v1721_v5 = vld [vmem:[%s2315_s8 + $0x158] sm:$0xf] }
  0x71   : > { %v1662_v11 = vor.u32 %v1960_v6, %v1659_v7  ;;  %v1980_v6 = vld [vmem:[%s2315_s8 + $0x16c] sm:$0xf0]  ;;  %v1977_v7 = vld [vmem:[%s2315_s8 + $0x15c] sm:$0xf] }
  0x72   : > { %1138 = vmatpush.bf16.msrb.mxu2 %v2004_v16  ;;  %v1553_v16 = vld [vmem:[%s2315_s8 + $0x8] sm:$0xf] }
  0x73   : > { %1187 = vmatpush.bf16.msrb.mxu3 %v2012_v17  ;;  %v1938_v17 = vld [vmem:[%s2315_s8 + $0x1c] sm:$0xf0] }
  0x74   : > { %1236 = vmatpush.bf16.msrb.mxu0 %v2020_v18  ;;  %1285 = vmatpush.bf16.msrb.mxu1 %v2028_v19  ;;  %v1935_v18 = vld [vmem:[%s2315_s8 + $0xc] sm:$0xf]  ;;  %v1555_v19 = vld [vmem:[%s2315_s8 + $0x20] sm:$0xf0]  ;;  %v1554_v24 = vor.u32 %v1938_v17, %v1553_v16 }
  0x76   : > { %1139 = vmatpush.bf16.msrb.mxu2 %v2003_v20  ;;  %v1561_v20 = vld [vmem:[%s2315_s8 + $0x10] sm:$0xf] }
  0x77   : > { %1188 = vmatpush.bf16.msrb.mxu3 %v2011_v21  ;;  %v1939_v21 = vld [vmem:[%s2315_s8 + $0x24] sm:$0xf0] }
  0x78   : > { %1237 = vmatpush.bf16.msrb.mxu0 %v2019_v22  ;;  %1286 = vmatpush.bf16.msrb.mxu1 %v2027_v23  ;;  %v1936_v22 = vld [vmem:[%s2315_s8 + $0x14] sm:$0xf]  ;;  %v1563_v23 = vld [vmem:[%s2315_s8 + $0x28] sm:$0xf0] }
  0x79   : > { %v1566_v27 = vor.u32 %v1936_v22, %v1563_v23  ;;  %v1968_v22 = vld [vmem:[%s2315_s8 + $0x10c] sm:$0xf0]  ;;  %v1965_v23 = vld [vmem:[%s2315_s8 + $0xfc] sm:$0xf] }
  0x7a   : > { %1140 = vmatpush.bf16.msrb.mxu2 %v2002_v25  ;;  %v1558_v25 = vor.u32 %v1935_v18, %v1555_v19 }
  0x7b   : > { %1189 = vmatpush.bf16.msrb.mxu3 %v2010_v26  ;;  %v1562_v26 = vor.u32 %v1939_v21, %v1561_v20  ;;  %v1673_v21 = vld [vmem:[%s2315_s8 + $0xf8] sm:$0xf] }
  0x7c   : > { %1238 = vmatpush.bf16.msrb.mxu0 %v2018_v34  ;;  %1287 = vmatpush.bf16.msrb.mxu1 %v2026_v35  ;;  %v1942_v34 = vld [vmem:[%s2315_s8 + $0x44] sm:$0xf]  ;;  %v1587_v35 = vld [vmem:[%s2315_s8 + $0x58] sm:$0xf0] }
  0x7d   : > { %1072 = vmatmul.bf16.gmra.mxu2 %v1666_v38  ;;  %1052 = vmatmul.bf16.gmra.mxu0 %v1570_v40  ;;  %v1586_v38 = vor.u32 %v1945_v33, %v1585_v32  ;;  %v1601_v40 = vld [vmem:[%s2315_s8 + $0x68] sm:$0xf]  ;;  %v1674_v32 = vor.u32 %v1968_v22, %v1673_v21 }
  0x7e   : > { %1141 = vmatpush.bf16.msrb.mxu2 %v2001_v36  ;;  %1121 = vmatmul.bf16.gmra.mxu3 %v1670_v39  ;;  %v1578_v36 = vor.u32 %v1944_v29, %v1577_v28  ;;  %v1590_v39 = vor.u32 %v1942_v34, %v1587_v35  ;;  %v1683_v28 = vld [vmem:[%s2315_s8 + $0x118] sm:$0xf0] }
  0x7f   : > { %1190 = vmatpush.bf16.msrb.mxu3 %v2009_v37  ;;  %1101 = vmatmul.bf16.gmra.mxu1 %v1574_v41  ;;  %v1582_v37 = vor.u32 %v1941_v30, %v1579_v31  ;;  %v1950_v41 = vld [vmem:[%s2315_s8 + $0x7c] sm:$0xf0] }
  0x80   : > { %1239 = vmatpush.bf16.msrb.mxu0 %v2017_v42  ;;  %1288 = vmatpush.bf16.msrb.mxu1 %v2025_v43  ;;  %v1947_v42 = vld [vmem:[%s2315_s8 + $0x6c] sm:$0xf]  ;;  %v1603_v43 = vld [vmem:[%s2315_s8 + $0x80] sm:$0xf0] }
  0x82   : > { %1142 = vmatpush.bf16.msrb.mxu2 %v2000_v44  ;;  %v1609_v44 = vld [vmem:[%s2315_s8 + $0x70] sm:$0xf] }
  0x83   : > { %1191 = vmatpush.bf16.msrb.mxu3 %v2008_v45  ;;  %v1951_v45 = vld [vmem:[%s2315_s8 + $0x84] sm:$0xf0] }
  0x84   : > { %1240 = vmatpush.bf16.msrb.mxu0 %v2016_v46  ;;  %1289 = vmatpush.bf16.msrb.mxu1 %v2024_v47  ;;  %v1948_v46 = vld [vmem:[%s2315_s8 + $0x74] sm:$0xf]  ;;  %v1611_v47 = vld [vmem:[%s2315_s8 + $0x88] sm:$0xf0] }
  0x86   : > { %1143 = vmatpush.bf16.msrb.mxu2 %v1999_v48  ;;  %v1602_v48 = vor.u32 %v1950_v41, %v1601_v40 }
  0x87   : > { %1192 = vmatpush.bf16.msrb.mxu3 %v2007_v49  ;;  %v1606_v49 = vor.u32 %v1947_v42, %v1603_v43 }
  0x88   : > { %1241 = vmatpush.bf16.msrb.mxu0 %v2015_v50  ;;  %1290 = vmatpush.bf16.msrb.mxu1 %v2023_v51  ;;  %v1610_v50 = vor.u32 %v1951_v45, %v1609_v44  ;;  %v1614_v51 = vor.u32 %v1948_v46, %v1611_v47  ;;  %v1697_v45 = vld [vmem:[%s2315_s8 + $0x128] sm:$0xf]  ;;  %v1974_v46 = vld [vmem:[%s2315_s8 + $0x13c] sm:$0xf0]  ;;  %v1971_v47 = vld [vmem:[%s2315_s8 + $0x12c] sm:$0xf] }
  0x8a   : > { %1144 = vmatpush.bf16.msrb.mxu2 %v1998_v52  ;;  %v1625_v52 = vld [vmem:[%s2315_s8 + $0x98] sm:$0xf] }
  0x8b   : > { %1193 = vmatpush.bf16.msrb.mxu3 %v2006_v53  ;;  %v1956_v53 = vld [vmem:[%s2315_s8 + $0xac] sm:$0xf0] }
  0x8c   : > { %1242 = vmatpush.bf16.msrb.mxu0 %v2014_v62  ;;  %1291 = vmatpush.bf16.msrb.mxu1 %v2022_v3  ;;  %v1626_v60 = vor.u32 %v1956_v53, %v1625_v52  ;;  %v1634_v62 = vor.u32 %v1957_v57, %v1633_v56  ;;  %v1651_v3 = vld [vmem:[%s2315_s8 + $0xe0] sm:$0xf0]  ;;  %v1707_v52 = vld [vmem:[%s2315_s8 + $0x148] sm:$0xf0]  ;;  %v1698_v56 = vor.u32 %v1974_v46, %v1697_v45 }
  0x8d   : > { %1077 = vmatmul.bf16.gmra.mxu2 %v1690_v63  ;;  %1057 = vmatmul.bf16.gmra.mxu0 %v1594_v1  ;;  %v1638_v63 = vor.u32 %v1954_v58, %v1635_v59  ;;  %v1962_v1 = vld [vmem:[%s2315_s8 + $0xdc] sm:$0xf0] }
  0x8e   : > { %1126 = vmatmul.bf16.gmra.mxu3 %v1694_v0  ;;  %v1649_v0 = vld [vmem:[%s2315_s8 + $0xc8] sm:$0xf] }
  0x8f   : > { %1106 = vmatmul.bf16.gmra.mxu1 %v1598_v2  ;;  %v1959_v2 = vld [vmem:[%s2315_s8 + $0xcc] sm:$0xf]  ;;  %v1650_v8 = vor.u32 %v1962_v1, %v1649_v0 }
  0x90   : > { %v1654_v9 = vor.u32 %v1959_v2, %v1651_v3 }
  0x9d   : > { %1082 = vmatmul.bf16.gmra.mxu2 %v1714_v12  ;;  %1062 = vmatmul.bf16.gmra.mxu0 %v1618_v14 }
  0x9e   : > { %1131 = vmatmul.bf16.gmra.mxu3 %v1718_v13 }
  0x9f   : > { %1111 = vmatmul.bf16.gmra.mxu1 %v1622_v15 }
  0xad   : > { %1145 = vmatmul.bf16.vlgmr.msrb.gmra.mxu2 %v1554_v24  ;;  %1243 = vmatmul.bf16.vlgmr.msrb.gmra.mxu0 %v1562_v26  ;;  %v1675_v24 = vld [vmem:[%s2315_s8 + $0x110] sm:$0xf0]  ;;  %v1969_v26 = vld [vmem:[%s2315_s8 + $0x114] sm:$0xf0] }
  0xae   : > { %1194 = vmatmul.bf16.vlgmr.msrb.gmra.mxu3 %v1558_v25  ;;  %v1681_v25 = vld [vmem:[%s2315_s8 + $0x100] sm:$0xf]  ;;  %v1678_v33 = vor.u32 %v1965_v23, %v1675_v24 }
  0xaf   : > { %1292 = vmatmul.bf16.vlgmr.msrb.gmra.mxu1 %v1566_v27  ;;  %v1966_v27 = vld [vmem:[%s2315_s8 + $0x104] sm:$0xf]  ;;  %v1682_v34 = vor.u32 %v1969_v26, %v1681_v25 }
  0xb0   : > { %v1686_v35 = vor.u32 %v1966_v27, %v1683_v28 }
  0xbd   : > { %1150 = vmatmul.bf16.gmra.mxu2 %v1578_v36  ;;  %1248 = vmatmul.bf16.gmra.mxu0 %v1586_v38 }
  0xbe   : > { %1199 = vmatmul.bf16.gmra.mxu3 %v1582_v37 }
  0xbf   : > { %1297 = vmatmul.bf16.gmra.mxu1 %v1590_v39 }
  0xcd   : > { %1155 = vmatmul.bf16.gmra.mxu2 %v1602_v48  ;;  %1253 = vmatmul.bf16.gmra.mxu0 %v1610_v50  ;;  %v1699_v48 = vld [vmem:[%s2315_s8 + $0x140] sm:$0xf0]  ;;  %v1975_v50 = vld [vmem:[%s2315_s8 + $0x144] sm:$0xf0] }
  0xce   : > { %1204 = vmatmul.bf16.gmra.mxu3 %v1606_v49  ;;  %v1705_v49 = vld [vmem:[%s2315_s8 + $0x130] sm:$0xf]  ;;  %v1702_v57 = vor.u32 %v1971_v47, %v1699_v48 }
  0xcf   : > { %1302 = vmatmul.bf16.gmra.mxu1 %v1614_v51  ;;  %v1972_v51 = vld [vmem:[%s2315_s8 + $0x134] sm:$0xf]  ;;  %v1706_v58 = vor.u32 %v1975_v50, %v1705_v49 }
  0xd0   : > { %v1710_v59 = vor.u32 %v1972_v51, %v1707_v52 }
  0xdd   : > { %1160 = vmatmul.bf16.gmra.mxu2 %v1626_v60  ;;  %1258 = vmatmul.bf16.gmra.mxu0 %v1634_v62 }
  0xde   : > { %1209 = vmatmul.bf16.gmra.mxu3 %v1630_v61 }
  0xdf   : > { %1307 = vmatmul.bf16.gmra.mxu1 %v1638_v63 }
  0xea   : > { %v1048_v12 = vpop.f32.mrf.mxu0 }
  0xec   : > { %v1097_v13 = vpop.f32.mrf.mxu1 }
  0xed   : > { %v2423_v14 = vadd.f32 %v1097_v13, %v1048_v12  ;;  %1165 = vmatmul.bf16.gmra.mxu2 %v1650_v8  ;;  %1263 = vmatmul.bf16.gmra.mxu0 %v1658_v10  ;;  %v1723_v8 = vld [vmem:[%s2315_s8 + $0x170] sm:$0xf0]  ;;  %v1981_v10 = vld [vmem:[%s2315_s8 + $0x174] sm:$0xf0]  ;;  %v1731_v12 = vld [vmem:[%s2315_s8 + $0x178] sm:$0xf0] }
  0xee   : > { %1214 = vmatmul.bf16.gmra.mxu3 %v1654_v9  ;;  %v1729_v9 = vld [vmem:[%s2315_s8 + $0x160] sm:$0xf] }
  0xef   : > { %1312 = vmatmul.bf16.gmra.mxu1 %v1662_v11  ;;  %v1978_v11 = vld [vmem:[%s2315_s8 + $0x164] sm:$0xf]  ;;  %v1730_v21 = vor.u32 %v1981_v10, %v1729_v9 }
  0xf0   : > { %v1068_v15 = vpop.f32.mrf.mxu2  ;;  %v1734_v22 = vor.u32 %v1978_v11, %v1731_v12 }
  0xf1   : > { %v1117_v16 = vpop.f32.mrf.mxu3 }
  0xf2   : > { %v2425_v17 = vadd.f32 %v1117_v16, %v1068_v15  ;;  %v1050_v18 = vpop.f32.mrf.mxu0 }
  0xf4   : > { %v1099_v19 = vpop.f32.mrf.mxu1 }
  0xf5   : > { %v2427_v20 = vadd.f32 %v1099_v19, %v1050_v18  ;;  %v1722_v18 = vor.u32 %v1980_v6, %v1721_v5  ;;  %v1726_v19 = vor.u32 %v1977_v7, %v1723_v8 }
  0xf8   : > { %v1070_v29 = vpop.f32.mrf.mxu2 }
  0xf9   : > { %v1119_v30 = vpop.f32.mrf.mxu3 }
  0xfa   : > { %v2437_v31 = vadd.f32 %v1119_v30, %v1070_v29  ;;  %v1053_v36 = vpop.f32.mrf.mxu0 }
  0xfc   : > { %v1102_v37 = vpop.f32.mrf.mxu1 }
  0xfd   : > { %v2439_v38 = vadd.f32 %v1102_v37, %v1053_v36  ;;  %1170 = vmatmul.bf16.gmra.mxu2 %v1674_v32  ;;  %1268 = vmatmul.bf16.gmra.mxu0 %v1682_v34 }
  0xfe   : > { %1219 = vmatmul.bf16.gmra.mxu3 %v1678_v33 }
  0xff   : > { %1317 = vmatmul.bf16.gmra.mxu1 %v1686_v35 }
 0x100   : > { %v1073_v39 = vpop.f32.mrf.mxu2 }
 0x101   : > { %v1122_v40 = vpop.f32.mrf.mxu3 }
 0x102   : > { %v2441_v41 = vadd.f32 %v1122_v40, %v1073_v39  ;;  %v1055_v42 = vpop.f32.mrf.mxu0 }
 0x104   : > { %v1104_v43 = vpop.f32.mrf.mxu1 }
 0x105   : > { %v2443_v44 = vadd.f32 %v1104_v43, %v1055_v42 }
 0x108   : > { %v1075_v53 = vpop.f32.mrf.mxu2 }
 0x109   : > { %v1124_v54 = vpop.f32.mrf.mxu3 }
 0x10a   : > { %v2453_v55 = vadd.f32 %v1124_v54, %v1075_v53  ;;  %v1058_v60 = vpop.f32.mrf.mxu0 }
 0x10c   : > { %v1107_v61 = vpop.f32.mrf.mxu1 }
 0x10d   : > { %v2455_v62 = vadd.f32 %v1107_v61, %v1058_v60  ;;  %1175 = vmatmul.bf16.gmra.mxu2 %v1698_v56  ;;  %1273 = vmatmul.bf16.gmra.mxu0 %v1706_v58 }
 0x10e   : > { %1224 = vmatmul.bf16.gmra.mxu3 %v1702_v57 }
 0x10f   : > { %1322 = vmatmul.bf16.gmra.mxu1 %v1710_v59 }
 0x110   : > { %v1078_v63 = vpop.f32.mrf.mxu2 }
 0x111   : > { %v1127_v0 = vpop.f32.mrf.mxu3 }
 0x112   : > { %v2457_v1 = vadd.f32 %v1127_v0, %v1078_v63  ;;  %v1060_v2 = vpop.f32.mrf.mxu0 }
 0x114   : > { %v1109_v3 = vpop.f32.mrf.mxu1 }
 0x115   : > { %v2459_v4 = vadd.f32 %v1109_v3, %v1060_v2 }
 0x118   : > { %v1080_v13 = vpop.f32.mrf.mxu2 }
 0x119   : > { %v1129_v15 = vpop.f32.mrf.mxu3 }
 0x11a   : > { %v2469_v16 = vadd.f32 %v1129_v15, %v1080_v13  ;;  %v1063_v23 = vpop.f32.mrf.mxu0 }
 0x11c   : > { %v1112_v24 = vpop.f32.mrf.mxu1 }
 0x11d   : > { %v2471_v25 = vadd.f32 %v1112_v24, %v1063_v23  ;;  %1180 = vmatmul.bf16.gmra.mxu2 %v1722_v18  ;;  %1278 = vmatmul.bf16.gmra.mxu0 %v1730_v21 }
 0x11e   : > { %1229 = vmatmul.bf16.gmra.mxu3 %v1726_v19 }
 0x11f   : > { %1327 = vmatmul.bf16.gmra.mxu1 %v1734_v22 }
 0x120   : > { %v1083_v26 = vpop.f32.mrf.mxu2 }
 0x121   : > { %v1132_v27 = vpop.f32.mrf.mxu3 }
 0x122   : > { %v2473_v28 = vadd.f32 %v1132_v27, %v1083_v26  ;;  %v1065_v29 = vpop.f32.mrf.mxu0 }
 0x124   : > { %v1114_v30 = vpop.f32.mrf.mxu1 }
 0x125   : > { %v2475_v32 = vadd.f32 %v1114_v30, %v1065_v29 }
 0x128   : > { %v1085_v33 = vpop.f32.mrf.mxu2 }
 0x129   : > { %v1134_v34 = vpop.f32.mrf.mxu3 }
 0x12a   : > { %v2477_v35 = vadd.f32 %v1134_v34, %v1085_v33  ;;  %v1244_v36 = vpop.f32.mrf.mxu0 }
 0x12c   : > { %v1293_v37 = vpop.f32.mrf.mxu1 }
 0x130   : > { %v1146_v39 = vpop.f32.mrf.mxu2 }
 0x131   : > { %v1195_v40 = vpop.f32.mrf.mxu3  ;;  %v1147_v42 = vadd.f32 %v1146_v39, %v2423_v14 }
 0x132   : > { %v1246_v45 = vpop.f32.mrf.mxu0 }
 0x133   : > { %v1196_v43 = vadd.f32 %v1195_v40, %v1147_v42 }
 0x134   : > { %v1295_v46 = vpop.f32.mrf.mxu1 }
 0x135   : > { %v1245_v47 = vadd.f32 %v1244_v36, %v1196_v43 }
 0x137   : > { %v2480_v48 = vadd.f32 %v1293_v37, %v1245_v47 }
 0x138   : > { %v1148_v49 = vpop.f32.mrf.mxu2 }
 0x139   : > { %v1197_v50 = vpop.f32.mrf.mxu3  ;;  %v1149_v51 = vadd.f32 %v1148_v49, %v2427_v20 }
 0x13a   : > { %v1249_v53 = vpop.f32.mrf.mxu0 }
 0x13b   : > { %v1198_v52 = vadd.f32 %v1197_v50, %v1149_v51 }
 0x13c   : > { %v1298_v54 = vpop.f32.mrf.mxu1 }
 0x13d   : > { %v1247_v56 = vadd.f32 %v1246_v45, %v1198_v52 }
 0x13f   : > { %v2483_v57 = vadd.f32 %v1295_v46, %v1247_v56 }
 0x140   : > { %v1151_v58 = vpop.f32.mrf.mxu2 }
 0x141   : > { %v1200_v59 = vpop.f32.mrf.mxu3  ;;  %v1152_v14 = vadd.f32 %v1151_v58, %v2439_v38 }
 0x142   : > { %v1251_v61 = vpop.f32.mrf.mxu0 }
 0x143   : > { %v1201_v60 = vadd.f32 %v1200_v59, %v1152_v14 }
 0x144   : > { %v1300_v63 = vpop.f32.mrf.mxu1 }
 0x145   : > { %v1250_v0 = vadd.f32 %v1249_v53, %v1201_v60 }
 0x147   : > { %v2486_v2 = vadd.f32 %v1298_v54, %v1250_v0 }
 0x148   : > { %v1153_v3 = vpop.f32.mrf.mxu2 }
 0x149   : > { %v1202_v5 = vpop.f32.mrf.mxu3  ;;  %v1154_v20 = vadd.f32 %v1153_v3, %v2443_v44 }
 0x14a   : > { %v1254_v7 = vpop.f32.mrf.mxu0 }
 0x14b   : > { %v1203_v6 = vadd.f32 %v1202_v5, %v1154_v20 }
 0x14c   : > { %v1303_v8 = vpop.f32.mrf.mxu1 }
 0x14d   : > { %v1252_v9 = vadd.f32 %v1251_v61, %v1203_v6 }
 0x14f   : > { %v2489_v10 = vadd.f32 %v1300_v63, %v1252_v9 }
 0x150   : > { %v1156_v11 = vpop.f32.mrf.mxu2 }
 0x151   : > { %v1205_v12 = vpop.f32.mrf.mxu3  ;;  %v1157_v38 = vadd.f32 %v1156_v11, %v2455_v62 }
 0x152   : > { %v1256_v15 = vpop.f32.mrf.mxu0 }
 0x153   : > { %v1206_v13 = vadd.f32 %v1205_v12, %v1157_v38 }
 0x154   : > { %v1305_v18 = vpop.f32.mrf.mxu1 }
 0x155   : > { %v1255_v19 = vadd.f32 %v1254_v7, %v1206_v13 }
 0x157   : > { %v2492_v21 = vadd.f32 %v1303_v8, %v1255_v19 }
 0x158   : > { %v1158_v22 = vpop.f32.mrf.mxu2 }
 0x159   : > { %v1207_v23 = vpop.f32.mrf.mxu3  ;;  %v1159_v44 = vadd.f32 %v1158_v22, %v2459_v4 }
 0x15a   : > { %v1259_v26 = vpop.f32.mrf.mxu0 }
 0x15b   : > { %v1208_v24 = vadd.f32 %v1207_v23, %v1159_v44 }
 0x15c   : > { %v1308_v27 = vpop.f32.mrf.mxu1 }
 0x15d   : > { %v1257_v29 = vadd.f32 %v1256_v15, %v1208_v24 }
 0x15f   : > { %v2495_v30 = vadd.f32 %v1305_v18, %v1257_v29 }
 0x160   : > { %v1161_v33 = vpop.f32.mrf.mxu2 }
 0x161   : > { %v1210_v34 = vpop.f32.mrf.mxu3  ;;  %v1162_v62 = vadd.f32 %v1161_v33, %v2471_v25 }
 0x162   : > { %v1261_v37 = vpop.f32.mrf.mxu0 }
 0x163   : > { %v1211_v36 = vadd.f32 %v1210_v34, %v1162_v62 }
 0x164   : > { %v1310_v39 = vpop.f32.mrf.mxu1 }
 0x165   : > { %v1260_v40 = vadd.f32 %v1259_v26, %v1211_v36 }
 0x167   : > { %v2498_v42 = vadd.f32 %v1308_v27, %v1260_v40 }
 0x168   : > { %v1163_v43 = vpop.f32.mrf.mxu2 }
 0x169   : > { %v1212_v45 = vpop.f32.mrf.mxu3  ;;  %v1164_v4 = vadd.f32 %v1163_v43, %v2475_v32 }
 0x16a   : > { %v1264_v47 = vpop.f32.mrf.mxu0 }
 0x16b   : > { %v1213_v46 = vadd.f32 %v1212_v45, %v1164_v4 }
 0x16c   : > { %v1313_v49 = vpop.f32.mrf.mxu1 }
 0x16d   : > { %v1262_v50 = vadd.f32 %v1261_v37, %v1213_v46 }
 0x16f   : > { %v2501_v51 = vadd.f32 %v1310_v39, %v1262_v50 }
 0x170   : > { %v1166_v52 = vpop.f32.mrf.mxu2 }
 0x171   : > { %v1215_v53 = vpop.f32.mrf.mxu3  ;;  %v1167_v25 = vadd.f32 %v1166_v52, %v2425_v17 }
 0x172   : > { %v1266_v56 = vpop.f32.mrf.mxu0 }
 0x173   : > { %v1216_v54 = vadd.f32 %v1215_v53, %v1167_v25 }
 0x174   : > { %v1315_v58 = vpop.f32.mrf.mxu1 }
 0x175   : > { %v1265_v59 = vadd.f32 %v1264_v47, %v1216_v54 }
 0x177   : > { %v2504_v14 = vadd.f32 %v1313_v49, %v1265_v59 }
 0x178   : > { %v1168_v60 = vpop.f32.mrf.mxu2 }
 0x179   : > { %v1217_v61 = vpop.f32.mrf.mxu3  ;;  %v1169_v32 = vadd.f32 %v1168_v60, %v2437_v31 }
 0x17a   : > { %v1269_v0 = vpop.f32.mrf.mxu0 }
 0x17b   : > { %v1218_v63 = vadd.f32 %v1217_v61, %v1169_v32 }
 0x17c   : > { %v1318_v3 = vpop.f32.mrf.mxu1 }
 0x17d   : > { %v1267_v5 = vadd.f32 %v1266_v56, %v1218_v63 }
 0x17f   : > { %v2507_v20 = vadd.f32 %v1315_v58, %v1267_v5 }
 0x180   : > { %v1171_v6 = vpop.f32.mrf.mxu2 }
 0x181   : > { %v1220_v7 = vpop.f32.mrf.mxu3  ;;  %v1172_v17 = vadd.f32 %v1171_v6, %v2441_v41 }
 0x182   : > { %v1271_v9 = vpop.f32.mrf.mxu0 }
 0x183   : > { %v1221_v8 = vadd.f32 %v1220_v7, %v1172_v17 }
 0x184   : > { %v1320_v12 = vpop.f32.mrf.mxu1 }
 0x185   : > { %v1270_v11 = vadd.f32 %v1269_v0, %v1221_v8 }
 0x187   : > { %v2510_v38 = vadd.f32 %v1318_v3, %v1270_v11 }
 0x188   : > { %v1173_v13 = vpop.f32.mrf.mxu2 }
 0x189   : > { %v1222_v15 = vpop.f32.mrf.mxu3  ;;  %v1174_v31 = vadd.f32 %v1173_v13, %v2453_v55 }
 0x18a   : > { %v1274_v22 = vpop.f32.mrf.mxu0 }
 0x18b   : > { %v1223_v18 = vadd.f32 %v1222_v15, %v1174_v31 }
 0x18c   : > { %v1323_v44 = vpop.f32.mrf.mxu1 }
 0x18d   : > { %v1272_v19 = vadd.f32 %v1271_v9, %v1223_v18 }
 0x18f   : > { %v2513_v23 = vadd.f32 %v1320_v12, %v1272_v19 }
 0x190   : > { %v1176_v24 = vpop.f32.mrf.mxu2 }
 0x191   : > { %v1225_v26 = vpop.f32.mrf.mxu3  ;;  %v1177_v41 = vadd.f32 %v1176_v24, %v2457_v1 }
 0x192   : > { %v1276_v34 = vpop.f32.mrf.mxu0 }
 0x193   : > { %v1226_v27 = vadd.f32 %v1225_v26, %v1177_v41 }
 0x194   : > { %v1325_v55 = vpop.f32.mrf.mxu1 }
 0x195   : > { %v1275_v29 = vadd.f32 %v1274_v22, %v1226_v27 }
 0x197   : > { %v2516_v33 = vadd.f32 %v1323_v44, %v1275_v29 }
 0x198   : > { %v1178_v62 = vpop.f32.mrf.mxu2 }
 0x199   : > { %v1227_v36 = vpop.f32.mrf.mxu3  ;;  %v1179_v37 = vadd.f32 %v1178_v62, %v2469_v16 }
 0x19a   : > { %v1279_v47 = vpop.f32.mrf.mxu0 }
 0x19b   : > { %v1228_v39 = vadd.f32 %v1227_v36, %v1179_v37 }
 0x19c   : > { %v1328_v49 = vpop.f32.mrf.mxu1 }
 0x19d   : > { %v1277_v40 = vadd.f32 %v1276_v34, %v1228_v39 }
 0x19f   : > { %v2519_v43 = vadd.f32 %v1325_v55, %v1277_v40 }
 0x1a0   : > { %v1181_v45 = vpop.f32.mrf.mxu2 }
 0x1a1   : > { %v1230_v4 = vpop.f32.mrf.mxu3  ;;  %v1182_v46 = vadd.f32 %v1181_v45, %v2473_v28 }
 0x1a2   : > { %v1281_v56 = vpop.f32.mrf.mxu0 }
 0x1a3   : > { %v1231_v1 = vadd.f32 %v1230_v4, %v1182_v46 }
 0x1a4   : > { %v1330_v59 = vpop.f32.mrf.mxu1 }
 0x1a5   : > { %v1280_v50 = vadd.f32 %v1279_v47, %v1231_v1 }
 0x1a7   : > { %v2522_v52 = vadd.f32 %v1328_v49, %v1280_v50 }
 0x1a8   : > { %v1183_v53 = vpop.f32.mrf.mxu2 }
 0x1a9   : > { %v1184_v25 = vadd.f32 %v1183_v53, %v2477_v35  ;;  %v1232_v54 = vpop.f32.mrf.mxu3 }
 0x1ab   : > { %v1233_v16 = vadd.f32 %v1232_v54, %v1184_v25  ;;  %1336 = sbr.rel (%p1927_p10) target bundleno = 451 (0x1c3), region = 59 }
 0x1ad   : > { %v1282_v58 = vadd.f32 %v1281_v56, %v1233_v16 }
 0x1af   : > { %v2525_v60 = vadd.f32 %v1330_v59, %v1282_v58 }
 0x1b0   : > { %v2088_v28 = vld [vmem:[%s2725_s2] ss:$0 sm:$0xff] }
 0x1b1   : > { %v1341_v61 = vadd.f32 %v2088_v28, %v2480_v48  ;;  %v1342_v32 = vadd.f32 %v2088_v28, %v2483_v57  ;;  %v1343_v35 = vadd.f32 %v2088_v28, %v2486_v2  ;;  %v1344_v63 = vadd.f32 %v2088_v28, %v2489_v10 }
 0x1b2   : > { %v1345_v0 = vadd.f32 %v2088_v28, %v2492_v21  ;;  %v1346_v3 = vadd.f32 %v2088_v28, %v2495_v30  ;;  %v1347_v5 = vadd.f32 %v2088_v28, %v2498_v42  ;;  %v1348_v6 = vadd.f32 %v2088_v28, %v2501_v51 }
 0x1b3   : > { %1357 = vst [vmem:[%s2726_s3] sm:$0xff] %v1341_v61  ;;  %v1349_v7 = vadd.f32 %v2088_v28, %v2504_v14  ;;  %v1350_v17 = vadd.f32 %v2088_v28, %v2507_v20  ;;  %v1351_v8 = vadd.f32 %v2088_v28, %v2510_v38  ;;  %v1352_v9 = vadd.f32 %v2088_v28, %v2513_v23 }
 0x1b4   : > { %1358 = vst [vmem:[%s2726_s3 + $0x8] sm:$0xff] %v1342_v32  ;;  %v1353_v11 = vadd.f32 %v2088_v28, %v2516_v33  ;;  %v1354_v12 = vadd.f32 %v2088_v28, %v2519_v43  ;;  %v1355_v13 = vadd.f32 %v2088_v28, %v2522_v52  ;;  %v1356_v15 = vadd.f32 %v2088_v28, %v2525_v60 }
 0x1b5   : > { %1359 = vst [vmem:[%s2726_s3 + $0x10] sm:$0xff] %v1343_v35 }
 0x1b6   : > { %1360 = vst [vmem:[%s2726_s3 + $0x18] sm:$0xff] %v1344_v63 }
 0x1b7   : > { %1361 = vst [vmem:[%s2726_s3 + $0x20] sm:$0xff] %v1345_v0 }
 0x1b8   : > { %1362 = vst [vmem:[%s2726_s3 + $0x28] sm:$0xff] %v1346_v3 }
 0x1b9   : > { %1363 = vst [vmem:[%s2726_s3 + $0x30] sm:$0xff] %v1347_v5 }
 0x1ba   : > { %1364 = vst [vmem:[%s2726_s3 + $0x38] sm:$0xff] %v1348_v6 }
 0x1bb   : > { %1365 = vst [vmem:[%s2726_s3 + $0x40] sm:$0xff] %v1349_v7 }
 0x1bc   : > { %1366 = vst [vmem:[%s2726_s3 + $0x48] sm:$0xff] %v1350_v17 }
 0x1bd   : > { %1367 = vst [vmem:[%s2726_s3 + $0x50] sm:$0xff] %v1351_v8 }
 0x1be   : > { %1368 = vst [vmem:[%s2726_s3 + $0x58] sm:$0xff] %v1352_v9 }
 0x1bf   : > { %1369 = vst [vmem:[%s2726_s3 + $0x60] sm:$0xff] %v1353_v11 }
 0x1c0   : > { %1370 = vst [vmem:[%s2726_s3 + $0x68] sm:$0xff] %v1354_v12 }
 0x1c1   : > { %1371 = vst [vmem:[%s2726_s3 + $0x70] sm:$0xff] %v1355_v13 }
 0x1c2   : > { %1372 = vst [vmem:[%s2726_s3 + $0x78] sm:$0xff] %v1356_v15 }
 0x1c3 PF: > { %p1928_p11 = scmp.eq.s32.totalorder %s2119_s14, 0 }
 0x1c5   : > { %1376 = sbr.rel (%p1928_p11) target bundleno = 477 (0x1dd), region = 63 }
 0x1ca   : > { %v1377_v31 = vld [vmem:[%s2726_s3] sm:$0xff]  ;;  %v1378_v18 = vld [vmem:[%s2726_s3 + $0x8] sm:$0xff]  ;;  %v1379_v19 = vld [vmem:[%s2726_s3 + $0x10] sm:$0xff] }
 0x1cb   : > { %v1393_v22 = vadd.f32 %v1377_v31, %v2480_v48  ;;  %v1394_v44 = vadd.f32 %v1378_v18, %v2483_v57  ;;  %v1395_v24 = vadd.f32 %v1379_v19, %v2486_v2  ;;  %v1380_v26 = vld [vmem:[%s2726_s3 + $0x18] sm:$0xff]  ;;  %v1381_v41 = vld [vmem:[%s2726_s3 + $0x20] sm:$0xff]  ;;  %v1382_v27 = vld [vmem:[%s2726_s3 + $0x28] sm:$0xff] }
 0x1cc   : > { %v1396_v29 = vadd.f32 %v1380_v26, %v2489_v10  ;;  %v1383_v48 = vld [vmem:[%s2726_s3 + $0x30] sm:$0xff]  ;;  %v1397_v57 = vadd.f32 %v1381_v41, %v2492_v21  ;;  %v1384_v2 = vld [vmem:[%s2726_s3 + $0x38] sm:$0xff]  ;;  %v1398_v10 = vadd.f32 %v1382_v27, %v2495_v30  ;;  %v1385_v34 = vld [vmem:[%s2726_s3 + $0x40] sm:$0xff] }
 0x1cd   : > { %1409 = vst [vmem:[%s2726_s3] sm:$0xff] %v1393_v22  ;;  %v1399_v21 = vadd.f32 %v1383_v48, %v2498_v42  ;;  %v1386_v62 = vld [vmem:[%s2726_s3 + $0x48] sm:$0xff]  ;;  %v1400_v30 = vadd.f32 %v1384_v2, %v2501_v51  ;;  %v1387_v36 = vld [vmem:[%s2726_s3 + $0x50] sm:$0xff]  ;;  %v1401_v42 = vadd.f32 %v1385_v34, %v2504_v14  ;;  %v1388_v37 = vld [vmem:[%s2726_s3 + $0x58] sm:$0xff] }
 0x1ce   : > { %1410 = vst [vmem:[%s2726_s3 + $0x8] sm:$0xff] %v1394_v44  ;;  %v1402_v51 = vadd.f32 %v1386_v62, %v2507_v20  ;;  %v1389_v55 = vld [vmem:[%s2726_s3 + $0x60] sm:$0xff]  ;;  %v1403_v14 = vadd.f32 %v1387_v36, %v2510_v38  ;;  %v1390_v39 = vld [vmem:[%s2726_s3 + $0x68] sm:$0xff]  ;;  %v1404_v20 = vadd.f32 %v1388_v37, %v2513_v23  ;;  %v1391_v40 = vld [vmem:[%s2726_s3 + $0x70] sm:$0xff] }
 0x1cf   : > { %1411 = vst [vmem:[%s2726_s3 + $0x10] sm:$0xff] %v1395_v24  ;;  %v1405_v38 = vadd.f32 %v1389_v55, %v2516_v33  ;;  %v1392_v45 = vld [vmem:[%s2726_s3 + $0x78] sm:$0xff]  ;;  %v1406_v23 = vadd.f32 %v1390_v39, %v2519_v43  ;;  %v1407_v4 = vadd.f32 %v1391_v40, %v2522_v52 }
 0x1d0   : > { %1412 = vst [vmem:[%s2726_s3 + $0x18] sm:$0xff] %v1396_v29  ;;  %v1408_v33 = vadd.f32 %v1392_v45, %v2525_v60 }
 0x1d1   : > { %1413 = vst [vmem:[%s2726_s3 + $0x20] sm:$0xff] %v1397_v57 }
 0x1d2   : > { %1414 = vst [vmem:[%s2726_s3 + $0x28] sm:$0xff] %v1398_v10 }
 0x1d3   : > { %1415 = vst [vmem:[%s2726_s3 + $0x30] sm:$0xff] %v1399_v21 }
 0x1d4   : > { %1416 = vst [vmem:[%s2726_s3 + $0x38] sm:$0xff] %v1400_v30 }
 0x1d5   : > { %1417 = vst [vmem:[%s2726_s3 + $0x40] sm:$0xff] %v1401_v42 }
 0x1d6   : > { %1418 = vst [vmem:[%s2726_s3 + $0x48] sm:$0xff] %v1402_v51 }
 0x1d7   : > { %1419 = vst [vmem:[%s2726_s3 + $0x50] sm:$0xff] %v1403_v14 }
 0x1d8   : > { %1420 = vst [vmem:[%s2726_s3 + $0x58] sm:$0xff] %v1404_v20 }
 0x1d9   : > { %1421 = vst [vmem:[%s2726_s3 + $0x60] sm:$0xff] %v1405_v38 }
 0x1da   : > { %1422 = vst [vmem:[%s2726_s3 + $0x68] sm:$0xff] %v1406_v23 }
 0x1db   : > { %1423 = vst [vmem:[%s2726_s3 + $0x70] sm:$0xff] %v1407_v4 }
 0x1dc   : > { %1424 = vst [vmem:[%s2726_s3 + $0x78] sm:$0xff] %v1408_v33 }
 0x1dd PF: > { %s13_s16 = sadd.s32 1, %s2127_s16   ;;  %s2727_s12 = smov %s2115_s13 }
 0x1de   : > { %p10_p12 = scmp.ge.s32.totalorder %s13_s16, 5   ;;  %s2728_s13 = smov %s2184_s20 }
 0x1df   : > { %s2729_s14 = smov %s2123_s15  ;;  %s2730_s15 = smov %s2732_s17 }
 0x1e0   :  { %12 = sbr.rel (!%p10_p12) target bundleno = 3 (0x3), region = 104 }

// kernel: improved_unet_forward.51
= control target key start
LH: loop header
LB: loop body
LE: loop exit
PB: predicated region body
PF: predicated region fallthrough
CT: control target
= control target key end

     0   :  { %s1464_s12 = smov 0   ;;  %s1466_s13 = smov 0   ;;  %s1930_s0 = inlined_call_operand.vmem [shape: bf16[128,1152], index: 0, kind: input, shape index: {}]   ;;  %s1931_s1 = inlined_call_operand.vmem [shape: bf16[1152,128], index: 1, kind: input, shape index: {}]   ;;  %s1932_s2 = inlined_call_operand.vmem [shape: f32[1,128], index: 2, kind: input, shape index: {}]   ;;  %s1933_s3 = inlined_call_operand.vmem [shape: f32[128,128], index: 3, kind: output, shape index: {}]  }
   0x1   :  { %s1468_s14 = smov 0   ;;  %s1470_s15 = smov 0  }
   0x2   :  { %s1472_s16 = smov 0  }
   0x3 LB: > { %s25_s17 = sadd.s32 1, %s1438_s15  ;;  %p48_p1 = scmp.ne.s32.totalorder %s1430_s13, %s1426_s12  ;;  %s1442_s16 = sphi %s1472_s16, %s13_s16   ;;  %s1438_s15 = sphi %s1470_s15, %s1937_s15   ;;  %s1434_s14 = sphi %s1468_s14, %s1936_s14   ;;  %s1430_s13 = sphi %s1466_s13, %s1935_s13   ;;  %s1426_s12 = sphi %s1464_s12, %s1934_s12  }
   0x4   : > { %p26_p0 = scmp.ge.s32.totalorder %s25_s17, 3  ;;  %p49_p2 = scmp.eq.s32.totalorder %s1442_s16, 0 }
   0x5   : > { %s41_s19 = sadd.s32 1, %s1430_s13  ;;  %p1054_p5 = scmp.ge.s32.totalorder %s1442_s16, 3 }
   0x6   : > { %s1939_s17 = smov (%p26_p0, %s25_s17), 0  ;;  %p50_p3 = por %p49_p2, %p48_p1 }
   0x7   : > { %s37_s18 = ssub.s32 %s1438_s15, %s1939_s17  ;;  %162 = sbr.rel (%p1054_p5) target bundleno = 49 (0x31), region = 20 }
   0x8   : > { %p39_p4 = scmp.eq.s32.totalorder %s37_s18, 0 }
   0xa   : > { %s1499_s20 = scalar_select %p39_p4, %s1430_s13, %s41_s19  }
   0xc   : > { %165 = sbr.rel (!%p50_p3) target bundleno = 49 (0x31), region = 24  ;;  %s167_s21 = sand.u32 (%p50_p3), 1, %s1430_s13  }
   0xd   : > { %s1288_s22 = smul.u32 (%p50_p3), 12, %s1438_s15 }
   0xe   : > { %s1361_s23 = smul.u32 (%p50_p3), 192, %s167_s21 }
   0xf   : > { %s1507_s26 = scalar_lea.vmem (%p50_p3), %s1930_s0, %s1288_s22 }
  0x10   : > { %v190_v0 = vld [vmem:[%s1507_s26] sm:$0xff] (%p50_p3)  ;;  %v194_v2 = vld [vmem:[%s1507_s26 + $0x48] sm:$0xff] (%p50_p3)  ;;  %s1512_s27 = scalar_lea.vmem (%p50_p3), [#allocation2], %s1361_s23  ;;  %v198_v4 = vld [vmem:[%s1507_s26 + $0x90] sm:$0xff] (%p50_p3) }
  0x11   : > { %v192_v1 = vld [vmem:[%s1507_s26 + $0x24] sm:$0xff]  ;;  %191 = vst [vmem:[%s1512_s27] sm:$0xff] %v190_v0  ;;  %v196_v3 = vld [vmem:[%s1507_s26 + $0x6c] sm:$0xff]  ;;  %v200_v5 = vld [vmem:[%s1507_s26 + $0xb4] sm:$0xff] }
  0x12   : > { %193 = vst [vmem:[%s1512_s27 + $0xc] sm:$0xff] %v192_v1  ;;  %v202_v6 = vld [vmem:[%s1507_s26 + $0xd8] sm:$0xff]  ;;  %v206_v8 = vld [vmem:[%s1507_s26 + $0x120] sm:$0xff]  ;;  %v210_v10 = vld [vmem:[%s1507_s26 + $0x168] sm:$0xff] }
  0x13   : > { %195 = vst [vmem:[%s1512_s27 + $0x18] sm:$0xff] %v194_v2  ;;  %v204_v7 = vld [vmem:[%s1507_s26 + $0xfc] sm:$0xff]  ;;  %v208_v9 = vld [vmem:[%s1507_s26 + $0x144] sm:$0xff]  ;;  %v212_v11 = vld [vmem:[%s1507_s26 + $0x18c] sm:$0xff] }
  0x14   : > { %197 = vst [vmem:[%s1512_s27 + $0x24] sm:$0xff] %v196_v3  ;;  %v214_v12 = vld [vmem:[%s1507_s26 + $0x1b0] sm:$0xff]  ;;  %v218_v14 = vld [vmem:[%s1507_s26 + $0x1f8] sm:$0xff]  ;;  %v1056_v16 = vld [vmem:[%s1507_s26 + $0x8] sm:$0xf] }
  0x15   : > { %199 = vst [vmem:[%s1512_s27 + $0x30] sm:$0xff] %v198_v4  ;;  %v216_v13 = vld [vmem:[%s1507_s26 + $0x1d4] sm:$0xff]  ;;  %v220_v15 = vld [vmem:[%s1507_s26 + $0x21c] sm:$0xff]  ;;  %v1058_v17 = vld [vmem:[%s1507_s26 + $0x2c] sm:$0xf] }
  0x16   : > { %201 = vst [vmem:[%s1512_s27 + $0x3c] sm:$0xff] %v200_v5  ;;  %v1060_v18 = vld [vmem:[%s1507_s26 + $0x50] sm:$0xf]  ;;  %v1062_v19 = vld [vmem:[%s1507_s26 + $0x74] sm:$0xf] }
  0x17   : > { %203 = vst [vmem:[%s1512_s27 + $0x48] sm:$0xff] %v202_v6  ;;  %v1064_v20 = vld [vmem:[%s1507_s26 + $0x98] sm:$0xf]  ;;  %v1066_v21 = vld [vmem:[%s1507_s26 + $0xbc] sm:$0xf] }
  0x18   : > { %205 = vst [vmem:[%s1512_s27 + $0x54] sm:$0xff] %v204_v7  ;;  %v1068_v22 = vld [vmem:[%s1507_s26 + $0xe0] sm:$0xf]  ;;  %v1070_v23 = vld [vmem:[%s1507_s26 + $0x104] sm:$0xf] }
  0x19   : > { %207 = vst [vmem:[%s1512_s27 + $0x60] sm:$0xff] %v206_v8  ;;  %v1072_v24 = vld [vmem:[%s1507_s26 + $0x128] sm:$0xf]  ;;  %v1074_v25 = vld [vmem:[%s1507_s26 + $0x14c] sm:$0xf] }
  0x1a   : > { %209 = vst [vmem:[%s1512_s27 + $0x6c] sm:$0xff] %v208_v9  ;;  %v1076_v26 = vld [vmem:[%s1507_s26 + $0x170] sm:$0xf]  ;;  %v1078_v27 = vld [vmem:[%s1507_s26 + $0x194] sm:$0xf] }
  0x1b   : > { %211 = vst [vmem:[%s1512_s27 + $0x78] sm:$0xff] %v210_v10  ;;  %v1080_v28 = vld [vmem:[%s1507_s26 + $0x1b8] sm:$0xf]  ;;  %v1082_v29 = vld [vmem:[%s1507_s26 + $0x1dc] sm:$0xf] }
  0x1c   : > { %213 = vst [vmem:[%s1512_s27 + $0x84] sm:$0xff] %v212_v11  ;;  %v1084_v30 = vld [vmem:[%s1507_s26 + $0x200] sm:$0xf]  ;;  %v1086_v31 = vld [vmem:[%s1507_s26 + $0x224] sm:$0xf] }
  0x1d   : > { %215 = vst [vmem:[%s1512_s27 + $0x90] sm:$0xff] %v214_v12 }
  0x1e   : > { %217 = vst [vmem:[%s1512_s27 + $0x9c] sm:$0xff] %v216_v13 }
  0x1f   : > { %219 = vst [vmem:[%s1512_s27 + $0xa8] sm:$0xff] %v218_v14 }
  0x20   : > { %221 = vst [vmem:[%s1512_s27 + $0xb4] sm:$0xff] %v220_v15 }
  0x21   : > { %1057 = vst [vmem:[%s1512_s27 + $0x8] sm:$0xf] %v1056_v16 }
  0x22   : > { %1059 = vst [vmem:[%s1512_s27 + $0x14] sm:$0xf] %v1058_v17 }
  0x23   : > { %1061 = vst [vmem:[%s1512_s27 + $0x20] sm:$0xf] %v1060_v18 }
  0x24   : > { %1063 = vst [vmem:[%s1512_s27 + $0x2c] sm:$0xf] %v1062_v19 }
  0x25   : > { %1065 = vst [vmem:[%s1512_s27 + $0x38] sm:$0xf] %v1064_v20 }
  0x26   : > { %1067 = vst [vmem:[%s1512_s27 + $0x44] sm:$0xf] %v1066_v21 }
  0x27   : > { %1069 = vst [vmem:[%s1512_s27 + $0x50] sm:$0xf] %v1068_v22 }
  0x28   : > { %1071 = vst [vmem:[%s1512_s27 + $0x5c] sm:$0xf] %v1070_v23 }
  0x29   : > { %1073 = vst [vmem:[%s1512_s27 + $0x68] sm:$0xf] %v1072_v24 }
  0x2a   : > { %1075 = vst [vmem:[%s1512_s27 + $0x74] sm:$0xf] %v1074_v25 }
  0x2b   : > { %1077 = vst [vmem:[%s1512_s27 + $0x80] sm:$0xf] %v1076_v26 }
  0x2c   : > { %1079 = vst [vmem:[%s1512_s27 + $0x8c] sm:$0xf] %v1078_v27 }
  0x2d   : > { %1081 = vst [vmem:[%s1512_s27 + $0x98] sm:$0xf] %v1080_v28 }
  0x2e   : > { %1083 = vst [vmem:[%s1512_s27 + $0xa4] sm:$0xf] %v1082_v29 }
  0x2f   : > { %1085 = vst [vmem:[%s1512_s27 + $0xb0] sm:$0xf] %v1084_v30 }
  0x30   : > { %1087 = vst [vmem:[%s1512_s27 + $0xbc] sm:$0xf] %v1086_v31 }
  0x31 PF: > { %p1088_p6 = scmp.ge.s32.totalorder %s1442_s16, 1  ;;  %p278_p7 = scmp.lt.s32.totalorder %s1442_s16, 4 }
  0x33   : > { %p279_p8 = pnand %p1088_p6, %p278_p7 }
  0x34   : > { %s324_s28 = smul.u32 (!%p279_p8), 48, %s1434_s14  ;;  %s285_s6 = sand.u32 (!%p279_p8), 1, %s1426_s12  }
  0x35   : > { %282 = sbr.rel (%p279_p8) target bundleno = 361 (0x169), region = 54  ;;  %p1282_p10 = scmp.ne.s32.totalorder (!%p279_p8), %s1434_s14, 0 }
  0x36   : > { %p325_p9 = scmp.lt.s32.totalorder (!%p279_p8), %s324_s28, 143  ;;  %s1362_s7 = smul.u32 (!%p279_p8), 192, %s285_s6 }
  0x38   : > { %s1634_s8 = scalar_lea.vmem (!%p279_p8), [#allocation2], %s1362_s7 }
  0x3a   : > { %s1941_s28 = smov (!%p325_p9, %s324_s28), 143  ;;  %v1092_v53 = vld [vmem:[%s1634_s8] sm:$0xf]  ;;  %v1290_v54 = vld [vmem:[%s1634_s8 + $0x8] sm:$0xf0] }
  0x3b   : > { %s1089_s29 = sshll.u32 %s1941_s28, 2  ;;  %v1164_v57 = vld [vmem:[%s1634_s8 + $0x90] sm:$0xf]  ;;  %v1308_v59 = vld [vmem:[%s1634_s8 + $0x98] sm:$0xf0]  ;;  %v1093_v0 = vor.u32 %v1290_v54, %v1092_v53 }
  0x3c   : > { %s1581_s5 = scalar_lea.vmem %s1931_s1, %s1089_s29  ;;  %v1289_v60 = vld [vmem:[%s1634_s8 + $0x4] sm:$0xf]  ;;  %v1094_v61 = vld [vmem:[%s1634_s8 + $0xc] sm:$0xf0]  ;;  %v1100_v62 = vld [vmem:[%s1634_s8 + $0x8] sm:$0xf]  ;;  %v1165_v1 = vor.u32 %v1308_v59, %v1164_v57 }
  0x3d   : > { %v1320_v32 = vld [vmem:[%s1581_s5 + $0x38] sm:$0xff]  ;;  %v1319_v35 = vld [vmem:[%s1581_s5 + $0x30] sm:$0xff]  ;;  %v1318_v38 = vld [vmem:[%s1581_s5 + $0x28] sm:$0xff]  ;;  %v1097_v2 = vor.u32 %v1289_v60, %v1094_v61 }
  0x3e   : > { %v1585_v33 = vld [vmem:[%s1581_s5 + $0x78] sm:$0xff]  ;;  %697 = vmatpush.bf16.msra.mxu0 %v1320_v32  ;;  %1337 = vmatpush.bf16.msra.mxu3 %v1320_v32  ;;  %v1594_v36 = vld [vmem:[%s1581_s5 + $0x70] sm:$0xff]  ;;  %v1326_v39 = vld [vmem:[%s1581_s5 + $0x68] sm:$0xff] }
  0x3f   : > { %v1588_v34 = vld [vmem:[%s1581_s5 + $0xb8] sm:$0xff]  ;;  %746 = vmatpush.bf16.msra.mxu1 %v1585_v33  ;;  %v1597_v37 = vld [vmem:[%s1581_s5 + $0xb0] sm:$0xff]  ;;  %v1604_v40 = vld [vmem:[%s1581_s5 + $0xa8] sm:$0xff] }
  0x40   : > { %795 = vmatpush.bf16.msra.mxu2 %v1588_v34  ;;  %v1317_v41 = vld [vmem:[%s1581_s5 + $0x20] sm:$0xff]  ;;  %v1316_v44 = vld [vmem:[%s1581_s5 + $0x18] sm:$0xff]  ;;  %v1315_v47 = vld [vmem:[%s1581_s5 + $0x10] sm:$0xff] }
  0x41   : > { %v1609_v42 = vld [vmem:[%s1581_s5 + $0x60] sm:$0xff]  ;;  %v1324_v45 = vld [vmem:[%s1581_s5 + $0x58] sm:$0xff]  ;;  %v1323_v48 = vld [vmem:[%s1581_s5 + $0x50] sm:$0xff] }
  0x42   : > { %698 = vmatpush.bf16.msra.mxu0 %v1319_v35  ;;  %1338 = vmatpush.bf16.msra.mxu3 %v1319_v35  ;;  %v1612_v43 = vld [vmem:[%s1581_s5 + $0xa0] sm:$0xff]  ;;  %v1620_v46 = vld [vmem:[%s1581_s5 + $0x98] sm:$0xff]  ;;  %v1626_v49 = vld [vmem:[%s1581_s5 + $0x90] sm:$0xff] }
  0x43   : > { %747 = vmatpush.bf16.msra.mxu1 %v1594_v36  ;;  %v1314_v50 = vld [vmem:[%s1581_s5 + $0x8] sm:$0xff]  ;;  %v1313_v55 = vld [vmem:[%s1581_s5] sm:$0xff]  ;;  %v1291_v63 = vld [vmem:[%s1634_s8 + $0x10] sm:$0xf0] }
  0x44   : > { %796 = vmatpush.bf16.msra.mxu2 %v1597_v37  ;;  %v1322_v51 = vld [vmem:[%s1581_s5 + $0x48] sm:$0xff]  ;;  %v1321_v56 = vld [vmem:[%s1581_s5 + $0x40] sm:$0xff]  ;;  %v1101_v3 = vor.u32 %v1291_v63, %v1100_v62  ;;  %v1104_v4 = vld [vmem:[%s1634_s8 + $0x18] sm:$0xf] }
  0x45   : > { %v1632_v52 = vld [vmem:[%s1581_s5 + $0x88] sm:$0xff]  ;;  %v1642_v58 = vld [vmem:[%s1581_s5 + $0x80] sm:$0xff]  ;;  %v1311_v7 = vld [vmem:[%s1634_s8 + $0xb0] sm:$0xf0] }
  0x46   : > { %699 = vmatpush.bf16.msra.mxu0 %v1318_v38  ;;  %1339 = vmatpush.bf16.msra.mxu3 %v1318_v38  ;;  %v1293_v5 = vld [vmem:[%s1634_s8 + $0x20] sm:$0xf0]  ;;  %v1176_v6 = vld [vmem:[%s1634_s8 + $0xa8] sm:$0xf]  ;;  %v1292_v8 = vld [vmem:[%s1634_s8 + $0x1c] sm:$0xf] }
  0x47   : > { %748 = vmatpush.bf16.msra.mxu1 %v1326_v39  ;;  %v1106_v9 = vld [vmem:[%s1634_s8 + $0x24] sm:$0xf0]  ;;  %v1112_v10 = vld [vmem:[%s1634_s8 + $0x20] sm:$0xf]  ;;  %v1294_v11 = vld [vmem:[%s1634_s8 + $0x28] sm:$0xf0]  ;;  %v1105_v12 = vor.u32 %v1293_v5, %v1104_v4  ;;  %v1177_v13 = vor.u32 %v1311_v7, %v1176_v6 }
  0x48   : > { %797 = vmatpush.bf16.msra.mxu2 %v1604_v40  ;;  %v1109_v14 = vor.u32 %v1292_v8, %v1106_v9  ;;  %v1113_v15 = vor.u32 %v1294_v11, %v1112_v10  ;;  %v1116_v16 = vld [vmem:[%s1634_s8 + $0x30] sm:$0xf]  ;;  %v1296_v17 = vld [vmem:[%s1634_s8 + $0x38] sm:$0xf0]  ;;  %v1295_v18 = vld [vmem:[%s1634_s8 + $0x34] sm:$0xf] }
  0x49   : > { %v1307_v19 = vld [vmem:[%s1634_s8 + $0x94] sm:$0xf]  ;;  %v1166_v20 = vld [vmem:[%s1634_s8 + $0x9c] sm:$0xf0]  ;;  %v1124_v22 = vld [vmem:[%s1634_s8 + $0x38] sm:$0xf]  ;;  %v1117_v24 = vor.u32 %v1296_v17, %v1116_v16 }
  0x4a   : > { %700 = vmatpush.bf16.msra.mxu0 %v1317_v41  ;;  %1340 = vmatpush.bf16.msra.mxu3 %v1317_v41  ;;  %v1118_v21 = vld [vmem:[%s1634_s8 + $0x3c] sm:$0xf0]  ;;  %v1297_v23 = vld [vmem:[%s1634_s8 + $0x40] sm:$0xf0]  ;;  %v1169_v25 = vor.u32 %v1307_v19, %v1166_v20  ;;  %v1128_v28 = vld [vmem:[%s1634_s8 + $0x48] sm:$0xf] }
  0x4b   : > { %749 = vmatpush.bf16.msra.mxu1 %v1609_v42  ;;  %v1121_v26 = vor.u32 %v1295_v18, %v1118_v21  ;;  %v1125_v27 = vor.u32 %v1297_v23, %v1124_v22  ;;  %v1299_v29 = vld [vmem:[%s1634_s8 + $0x50] sm:$0xf0]  ;;  %v1298_v30 = vld [vmem:[%s1634_s8 + $0x4c] sm:$0xf]  ;;  %v1178_v32 = vld [vmem:[%s1634_s8 + $0xb4] sm:$0xf0] }
  0x4c   : > { %798 = vmatpush.bf16.msra.mxu2 %v1612_v43  ;;  %v1310_v31 = vld [vmem:[%s1634_s8 + $0xac] sm:$0xf]  ;;  %v1300_v35 = vld [vmem:[%s1634_s8 + $0x58] sm:$0xf0]  ;;  %v1305_v53 = vld [vmem:[%s1634_s8 + $0x80] sm:$0xf0] }
  0x4d   : > { %v1181_v38 = vor.u32 %v1310_v31, %v1178_v32  ;;  %v1302_v41 = vld [vmem:[%s1634_s8 + $0x68] sm:$0xf0]  ;;  %v1304_v54 = vld [vmem:[%s1634_s8 + $0x7c] sm:$0xf]  ;;  %v1154_v57 = vld [vmem:[%s1634_s8 + $0x84] sm:$0xf0] }
  0x4e   : > { %701 = vmatpush.bf16.msra.mxu0 %v1316_v44  ;;  %1341 = vmatpush.bf16.msra.mxu3 %v1316_v44  ;;  %v1309_v44 = vld [vmem:[%s1634_s8 + $0xa0] sm:$0xf0]  ;;  %v1306_v59 = vld [vmem:[%s1634_s8 + $0x88] sm:$0xf0]  ;;  %v1157_v62 = vor.u32 %v1304_v54, %v1154_v57 }
  0x4f   : > { %750 = vmatpush.bf16.msra.mxu1 %v1324_v45 }
  0x50   : > { %799 = vmatpush.bf16.msra.mxu2 %v1620_v46 }
  0x52   : > { %702 = vmatpush.bf16.msra.mxu0 %v1315_v47  ;;  %1342 = vmatpush.bf16.msra.mxu3 %v1315_v47  ;;  %v1303_v47 = vld [vmem:[%s1634_s8 + $0x70] sm:$0xf0] }
  0x53   : > { %751 = vmatpush.bf16.msra.mxu1 %v1323_v48 }
  0x54   : > { %800 = vmatpush.bf16.msra.mxu2 %v1626_v49 }
  0x56   : > { %703 = vmatpush.bf16.msra.mxu0 %v1314_v50  ;;  %1343 = vmatpush.bf16.msra.mxu3 %v1314_v50 }
  0x57   : > { %752 = vmatpush.bf16.msra.mxu1 %v1322_v51 }
  0x58   : > { %801 = vmatpush.bf16.msra.mxu2 %v1632_v52 }
  0x5a   : > { %704 = vmatpush.bf16.msra.mxu0 %v1313_v55  ;;  %1344 = vmatpush.bf16.msra.mxu3 %v1313_v55  ;;  %v1184_v55 = vld [vmem:[%s1634_s8 + $0xb0] sm:$0xf] }
  0x5b   : > { %753 = vmatpush.bf16.msra.mxu1 %v1321_v56 }
  0x5c   : > { %802 = vmatpush.bf16.msra.mxu2 %v1642_v58 }
  0x5d   : > { %705 = vmatmul.bf16.vlgmr.msra.gmra.mxu0 %v1093_v0  ;;  %735 = vmatmul.bf16.vlgmr.msra.gmra.mxu3 %v1165_v1 }
  0x5e   : > { %1345 = vmatpush.bf16.msrb.mxu3 %v1585_v33  ;;  %754 = vmatmul.bf16.vlgmr.msra.gmra.mxu1 %v1097_v2  ;;  %v1130_v33 = vld [vmem:[%s1634_s8 + $0x54] sm:$0xf0] }
  0x5f   : > { %803 = vmatmul.bf16.vlgmr.msra.gmra.mxu2 %v1101_v3 }
  0x62   : > { %1346 = vmatpush.bf16.msrb.mxu3 %v1594_v36  ;;  %v1129_v36 = vor.u32 %v1299_v29, %v1128_v28 }
  0x66   : > { %1347 = vmatpush.bf16.msrb.mxu3 %v1326_v39 }
  0x6a   : > { %1348 = vmatpush.bf16.msrb.mxu3 %v1609_v42  ;;  %v1301_v42 = vld [vmem:[%s1634_s8 + $0x64] sm:$0xf] }
  0x6d   : > { %710 = vmatmul.bf16.gmra.mxu0 %v1105_v12  ;;  %740 = vmatmul.bf16.gmra.mxu3 %v1177_v13 }
  0x6e   : > { %1349 = vmatpush.bf16.msrb.mxu3 %v1324_v45  ;;  %759 = vmatmul.bf16.gmra.mxu1 %v1109_v14  ;;  %v1142_v45 = vld [vmem:[%s1634_s8 + $0x6c] sm:$0xf0] }
  0x6f   : > { %808 = vmatmul.bf16.gmra.mxu2 %v1113_v15  ;;  %v1145_v50 = vor.u32 %v1301_v42, %v1142_v45 }
  0x72   : > { %1350 = vmatpush.bf16.msrb.mxu3 %v1323_v48 }
  0x76   : > { %1351 = vmatpush.bf16.msrb.mxu3 %v1322_v51 }
  0x7a   : > { %1352 = vmatpush.bf16.msrb.mxu3 %v1321_v56  ;;  %v1312_v56 = vld [vmem:[%s1634_s8 + $0xb8] sm:$0xf0] }
  0x7b   : > { %v1185_v61 = vor.u32 %v1312_v56, %v1184_v55 }
  0x7d   : > { %715 = vmatmul.bf16.gmra.mxu0 %v1117_v24  ;;  %784 = vmatmul.bf16.vlgmr.msrb.gmra.mxu3 %v1169_v25 }
  0x7e   : > { %1353 = vmatpush.bf16.msra.mxu3 %v1588_v34  ;;  %764 = vmatmul.bf16.gmra.mxu1 %v1121_v26  ;;  %v1136_v34 = vld [vmem:[%s1634_s8 + $0x50] sm:$0xf] }
  0x7f   : > { %813 = vmatmul.bf16.gmra.mxu2 %v1125_v27  ;;  %v1137_v39 = vor.u32 %v1300_v35, %v1136_v34 }
  0x82   : > { %1354 = vmatpush.bf16.msra.mxu3 %v1597_v37  ;;  %v1133_v37 = vor.u32 %v1298_v30, %v1130_v33 }
  0x86   : > { %1355 = vmatpush.bf16.msra.mxu3 %v1604_v40  ;;  %v1140_v40 = vld [vmem:[%s1634_s8 + $0x60] sm:$0xf] }
  0x87   : > { %v1141_v48 = vor.u32 %v1302_v41, %v1140_v40 }
  0x8a   : > { %1356 = vmatpush.bf16.msra.mxu3 %v1612_v43  ;;  %v1172_v43 = vld [vmem:[%s1634_s8 + $0x98] sm:$0xf] }
  0x8d   : > { %720 = vmatmul.bf16.gmra.mxu0 %v1129_v36  ;;  %789 = vmatmul.bf16.gmra.mxu3 %v1181_v38 }
  0x8e   : > { %1357 = vmatpush.bf16.msra.mxu3 %v1620_v46  ;;  %769 = vmatmul.bf16.gmra.mxu1 %v1133_v37  ;;  %v1148_v46 = vld [vmem:[%s1634_s8 + $0x68] sm:$0xf] }
  0x8f   : > { %818 = vmatmul.bf16.gmra.mxu2 %v1137_v39  ;;  %v1149_v51 = vor.u32 %v1303_v47, %v1148_v46 }
  0x92   : > { %1358 = vmatpush.bf16.msra.mxu3 %v1626_v49  ;;  %v1173_v49 = vor.u32 %v1309_v44, %v1172_v43 }
  0x96   : > { %1359 = vmatpush.bf16.msra.mxu3 %v1632_v52  ;;  %v1152_v52 = vld [vmem:[%s1634_s8 + $0x78] sm:$0xf] }
  0x97   : > { %v1153_v60 = vor.u32 %v1305_v53, %v1152_v52 }
  0x9a   : > { %1360 = vmatpush.bf16.msra.mxu3 %v1642_v58  ;;  %v1160_v58 = vld [vmem:[%s1634_s8 + $0x80] sm:$0xf] }
  0x9b   : > { %v1161_v63 = vor.u32 %v1306_v59, %v1160_v58 }
  0x9d   : > { %725 = vmatmul.bf16.gmra.mxu0 %v1141_v48  ;;  %833 = vmatmul.bf16.vlgmr.msra.gmra.mxu3 %v1173_v49 }
  0x9e   : > { %774 = vmatmul.bf16.gmra.mxu1 %v1145_v50 }
  0x9f   : > { %823 = vmatmul.bf16.gmra.mxu2 %v1149_v51 }
  0xad   : > { %730 = vmatmul.bf16.gmra.mxu0 %v1153_v60  ;;  %838 = vmatmul.bf16.gmra.mxu3 %v1185_v61 }
  0xae   : > { %779 = vmatmul.bf16.gmra.mxu1 %v1157_v62 }
  0xaf   : > { %828 = vmatmul.bf16.gmra.mxu2 %v1161_v63 }
  0xda   : > { %v706_v0 = vpop.f32.mrf.mxu0 }
  0xdb   : > { %v755_v1 = vpop.f32.mrf.mxu1 }
  0xdc   : > { %v756_v2 = vadd.f32 %v755_v1, %v706_v0 }
  0xe0   : > { %v736_v3 = vpop.f32.mrf.mxu3 }
  0xe2   : > { %v804_v4 = vpop.f32.mrf.mxu2  ;;  %v708_v6 = vpop.f32.mrf.mxu0 }
  0xe3   : > { %v1702_v5 = vadd.f32 %v804_v4, %v756_v2  ;;  %v757_v7 = vpop.f32.mrf.mxu1 }
  0xe4   : > { %v758_v8 = vadd.f32 %v757_v7, %v708_v6 }
  0xe8   : > { %v738_v9 = vpop.f32.mrf.mxu3 }
  0xea   : > { %v806_v10 = vpop.f32.mrf.mxu2  ;;  %v711_v12 = vpop.f32.mrf.mxu0 }
  0xeb   : > { %v1704_v11 = vadd.f32 %v806_v10, %v758_v8  ;;  %v760_v13 = vpop.f32.mrf.mxu1 }
  0xec   : > { %v761_v14 = vadd.f32 %v760_v13, %v711_v12 }
  0xf0   : > { %v741_v15 = vpop.f32.mrf.mxu3 }
  0xf2   : > { %v809_v16 = vpop.f32.mrf.mxu2  ;;  %v713_v18 = vpop.f32.mrf.mxu0 }
  0xf3   : > { %v1706_v17 = vadd.f32 %v809_v16, %v761_v14  ;;  %v762_v19 = vpop.f32.mrf.mxu1 }
  0xf4   : > { %v763_v20 = vadd.f32 %v762_v19, %v713_v18 }
  0xf8   : > { %v743_v21 = vpop.f32.mrf.mxu3 }
  0xfa   : > { %v811_v22 = vpop.f32.mrf.mxu2  ;;  %v716_v24 = vpop.f32.mrf.mxu0 }
  0xfb   : > { %v1708_v23 = vadd.f32 %v811_v22, %v763_v20  ;;  %v765_v25 = vpop.f32.mrf.mxu1 }
  0xfc   : > { %v766_v26 = vadd.f32 %v765_v25, %v716_v24 }
 0x100   : > { %v785_v27 = vpop.f32.mrf.mxu3 }
 0x101   : > { %v786_v51 = vadd.f32 %v785_v27, %v736_v3 }
 0x102   : > { %v814_v28 = vpop.f32.mrf.mxu2  ;;  %v718_v30 = vpop.f32.mrf.mxu0 }
 0x103   : > { %v1710_v29 = vadd.f32 %v814_v28, %v766_v26  ;;  %v767_v31 = vpop.f32.mrf.mxu1 }
 0x104   : > { %v768_v32 = vadd.f32 %v767_v31, %v718_v30 }
 0x108   : > { %v787_v33 = vpop.f32.mrf.mxu3 }
 0x109   : > { %v788_v58 = vadd.f32 %v787_v33, %v738_v9 }
 0x10a   : > { %v816_v34 = vpop.f32.mrf.mxu2  ;;  %v721_v36 = vpop.f32.mrf.mxu0 }
 0x10b   : > { %v1712_v35 = vadd.f32 %v816_v34, %v768_v32  ;;  %v770_v38 = vpop.f32.mrf.mxu1 }
 0x10c   : > { %v771_v37 = vadd.f32 %v770_v38, %v721_v36 }
 0x110   : > { %v790_v39 = vpop.f32.mrf.mxu3 }
 0x111   : > { %v791_v3 = vadd.f32 %v790_v39, %v741_v15 }
 0x112   : > { %v819_v40 = vpop.f32.mrf.mxu2  ;;  %v723_v42 = vpop.f32.mrf.mxu0 }
 0x113   : > { %v1714_v41 = vadd.f32 %v819_v40, %v771_v37  ;;  %v772_v43 = vpop.f32.mrf.mxu1 }
 0x114   : > { %v773_v44 = vadd.f32 %v772_v43, %v723_v42 }
 0x118   : > { %v792_v45 = vpop.f32.mrf.mxu3 }
 0x119   : > { %v793_v9 = vadd.f32 %v792_v45, %v743_v21 }
 0x11a   : > { %v821_v46 = vpop.f32.mrf.mxu2  ;;  %v726_v48 = vpop.f32.mrf.mxu0 }
 0x11b   : > { %v1716_v47 = vadd.f32 %v821_v46, %v773_v44  ;;  %v775_v49 = vpop.f32.mrf.mxu1 }
 0x11c   : > { %v776_v50 = vadd.f32 %v775_v49, %v726_v48 }
 0x120   : > { %v834_v52 = vpop.f32.mrf.mxu3 }
 0x121   : > { %v1718_v54 = vadd.f32 %v834_v52, %v786_v51 }
 0x122   : > { %v824_v53 = vpop.f32.mrf.mxu2  ;;  %v728_v56 = vpop.f32.mrf.mxu0 }
 0x123   : > { %v1720_v55 = vadd.f32 %v824_v53, %v776_v50  ;;  %v777_v57 = vpop.f32.mrf.mxu1 }
 0x124   : > { %v778_v59 = vadd.f32 %v777_v57, %v728_v56 }
 0x128   : > { %v836_v60 = vpop.f32.mrf.mxu3 }
 0x129   : > { %v1722_v62 = vadd.f32 %v836_v60, %v788_v58 }
 0x12a   : > { %v826_v61 = vpop.f32.mrf.mxu2  ;;  %v731_v0 = vpop.f32.mrf.mxu0 }
 0x12b   : > { %v1724_v63 = vadd.f32 %v826_v61, %v778_v59  ;;  %v780_v1 = vpop.f32.mrf.mxu1 }
 0x12c   : > { %v781_v2 = vadd.f32 %v780_v1, %v731_v0 }
 0x130   : > { %v839_v4 = vpop.f32.mrf.mxu3 }
 0x131   : > { %v1726_v7 = vadd.f32 %v839_v4, %v791_v3 }
 0x132   : > { %v829_v6 = vpop.f32.mrf.mxu2  ;;  %v733_v10 = vpop.f32.mrf.mxu0 }
 0x133   : > { %v1728_v8 = vadd.f32 %v829_v6, %v781_v2  ;;  %v782_v12 = vpop.f32.mrf.mxu1 }
 0x134   : > { %v783_v13 = vadd.f32 %v782_v12, %v733_v10 }
 0x137   : > { %847 = sbr.rel (%p1282_p10) target bundleno = 335 (0x14f), region = 62 }
 0x138   : > { %v841_v14 = vpop.f32.mrf.mxu3 }
 0x139   : > { %v1730_v18 = vadd.f32 %v841_v14, %v793_v9 }
 0x13a   : > { %v831_v16 = vpop.f32.mrf.mxu2 }
 0x13b   : > { %v1732_v19 = vadd.f32 %v831_v16, %v783_v13 }
 0x13c   : > { %v1403_v15 = vld [vmem:[%s1932_s2] ss:$0 sm:$0xff] }
 0x13d   : > { %v852_v20 = vadd.f32 %v1403_v15, %v1702_v5  ;;  %v853_v22 = vadd.f32 %v1403_v15, %v1704_v11  ;;  %v854_v21 = vadd.f32 %v1403_v15, %v1706_v17  ;;  %v855_v24 = vadd.f32 %v1403_v15, %v1708_v23 }
 0x13e   : > { %v856_v25 = vadd.f32 %v1403_v15, %v1710_v29  ;;  %v857_v26 = vadd.f32 %v1403_v15, %v1712_v35  ;;  %v858_v27 = vadd.f32 %v1403_v15, %v1714_v41  ;;  %v859_v28 = vadd.f32 %v1403_v15, %v1716_v47 }
 0x13f   : > { %868 = vst [vmem:[%s1933_s3] sm:$0xff] %v852_v20  ;;  %v860_v30 = vadd.f32 %v1403_v15, %v1720_v55  ;;  %v861_v31 = vadd.f32 %v1403_v15, %v1724_v63  ;;  %v862_v32 = vadd.f32 %v1403_v15, %v1728_v8  ;;  %v863_v33 = vadd.f32 %v1403_v15, %v1732_v19 }
 0x140   : > { %869 = vst [vmem:[%s1933_s3 + $0x8] sm:$0xff] %v853_v22  ;;  %v864_v34 = vadd.f32 %v1403_v15, %v1718_v54  ;;  %v865_v36 = vadd.f32 %v1403_v15, %v1722_v62  ;;  %v866_v38 = vadd.f32 %v1403_v15, %v1726_v7  ;;  %v867_v37 = vadd.f32 %v1403_v15, %v1730_v18 }
 0x141   : > { %870 = vst [vmem:[%s1933_s3 + $0x10] sm:$0xff] %v854_v21 }
 0x142   : > { %871 = vst [vmem:[%s1933_s3 + $0x18] sm:$0xff] %v855_v24 }
 0x143   : > { %872 = vst [vmem:[%s1933_s3 + $0x20] sm:$0xff] %v856_v25 }
 0x144   : > { %873 = vst [vmem:[%s1933_s3 + $0x28] sm:$0xff] %v857_v26 }
 0x145   : > { %874 = vst [vmem:[%s1933_s3 + $0x30] sm:$0xff] %v858_v27 }
 0x146   : > { %875 = vst [vmem:[%s1933_s3 + $0x38] sm:$0xff] %v859_v28 }
 0x147   : > { %876 = vst [vmem:[%s1933_s3 + $0x40] sm:$0xff] %v860_v30 }
 0x148   : > { %877 = vst [vmem:[%s1933_s3 + $0x48] sm:$0xff] %v861_v31 }
 0x149   : > { %878 = vst [vmem:[%s1933_s3 + $0x50] sm:$0xff] %v862_v32 }
 0x14a   : > { %879 = vst [vmem:[%s1933_s3 + $0x58] sm:$0xff] %v863_v33 }
 0x14b   : > { %880 = vst [vmem:[%s1933_s3 + $0x60] sm:$0xff] %v864_v34 }
 0x14c   : > { %881 = vst [vmem:[%s1933_s3 + $0x68] sm:$0xff] %v865_v36 }
 0x14d   : > { %882 = vst [vmem:[%s1933_s3 + $0x70] sm:$0xff] %v866_v38 }
 0x14e   : > { %883 = vst [vmem:[%s1933_s3 + $0x78] sm:$0xff] %v867_v37 }
 0x14f PF: > { %p1283_p11 = scmp.eq.s32.totalorder %s1434_s14, 0 }
 0x151   : > { %887 = sbr.rel (%p1283_p11) target bundleno = 361 (0x169), region = 66 }
 0x156   : > { %v888_v39 = vld [vmem:[%s1933_s3] sm:$0xff]  ;;  %v889_v40 = vld [vmem:[%s1933_s3 + $0x8] sm:$0xff]  ;;  %v890_v42 = vld [vmem:[%s1933_s3 + $0x10] sm:$0xff] }
 0x157   : > { %v904_v43 = vadd.f32 %v888_v39, %v1702_v5  ;;  %v905_v44 = vadd.f32 %v889_v40, %v1704_v11  ;;  %v906_v45 = vadd.f32 %v890_v42, %v1706_v17  ;;  %v891_v46 = vld [vmem:[%s1933_s3 + $0x18] sm:$0xff]  ;;  %v892_v48 = vld [vmem:[%s1933_s3 + $0x20] sm:$0xff]  ;;  %v893_v49 = vld [vmem:[%s1933_s3 + $0x28] sm:$0xff] }
 0x158   : > { %v907_v50 = vadd.f32 %v891_v46, %v1708_v23  ;;  %v894_v5 = vld [vmem:[%s1933_s3 + $0x30] sm:$0xff]  ;;  %v908_v11 = vadd.f32 %v892_v48, %v1710_v29  ;;  %v895_v17 = vld [vmem:[%s1933_s3 + $0x38] sm:$0xff]  ;;  %v909_v23 = vadd.f32 %v893_v49, %v1712_v35  ;;  %v896_v51 = vld [vmem:[%s1933_s3 + $0x40] sm:$0xff] }
 0x159   : > { %920 = vst [vmem:[%s1933_s3] sm:$0xff] %v904_v43  ;;  %v910_v29 = vadd.f32 %v894_v5, %v1714_v41  ;;  %v897_v52 = vld [vmem:[%s1933_s3 + $0x48] sm:$0xff]  ;;  %v911_v35 = vadd.f32 %v895_v17, %v1716_v47  ;;  %v898_v53 = vld [vmem:[%s1933_s3 + $0x50] sm:$0xff]  ;;  %v912_v41 = vadd.f32 %v896_v51, %v1720_v55  ;;  %v899_v56 = vld [vmem:[%s1933_s3 + $0x58] sm:$0xff] }
 0x15a   : > { %921 = vst [vmem:[%s1933_s3 + $0x8] sm:$0xff] %v905_v44  ;;  %v913_v47 = vadd.f32 %v897_v52, %v1724_v63  ;;  %v900_v57 = vld [vmem:[%s1933_s3 + $0x60] sm:$0xff]  ;;  %v914_v55 = vadd.f32 %v898_v53, %v1728_v8  ;;  %v901_v58 = vld [vmem:[%s1933_s3 + $0x68] sm:$0xff]  ;;  %v915_v59 = vadd.f32 %v899_v56, %v1732_v19  ;;  %v902_v60 = vld [vmem:[%s1933_s3 + $0x70] sm:$0xff] }
 0x15b   : > { %922 = vst [vmem:[%s1933_s3 + $0x10] sm:$0xff] %v906_v45  ;;  %v916_v61 = vadd.f32 %v900_v57, %v1718_v54  ;;  %v903_v63 = vld [vmem:[%s1933_s3 + $0x78] sm:$0xff]  ;;  %v917_v0 = vadd.f32 %v901_v58, %v1722_v62  ;;  %v918_v1 = vadd.f32 %v902_v60, %v1726_v7 }
 0x15c   : > { %923 = vst [vmem:[%s1933_s3 + $0x18] sm:$0xff] %v907_v50  ;;  %v919_v54 = vadd.f32 %v903_v63, %v1730_v18 }
 0x15d   : > { %924 = vst [vmem:[%s1933_s3 + $0x20] sm:$0xff] %v908_v11 }
 0x15e   : > { %925 = vst [vmem:[%s1933_s3 + $0x28] sm:$0xff] %v909_v23 }
 0x15f   : > { %926 = vst [vmem:[%s1933_s3 + $0x30] sm:$0xff] %v910_v29 }
 0x160   : > { %927 = vst [vmem:[%s1933_s3 + $0x38] sm:$0xff] %v911_v35 }
 0x161   : > { %928 = vst [vmem:[%s1933_s3 + $0x40] sm:$0xff] %v912_v41 }
 0x162   : > { %929 = vst [vmem:[%s1933_s3 + $0x48] sm:$0xff] %v913_v47 }
 0x163   : > { %930 = vst [vmem:[%s1933_s3 + $0x50] sm:$0xff] %v914_v55 }
 0x164   : > { %931 = vst [vmem:[%s1933_s3 + $0x58] sm:$0xff] %v915_v59 }
 0x165   : > { %932 = vst [vmem:[%s1933_s3 + $0x60] sm:$0xff] %v916_v61 }
 0x166   : > { %933 = vst [vmem:[%s1933_s3 + $0x68] sm:$0xff] %v917_v0 }
 0x167   : > { %934 = vst [vmem:[%s1933_s3 + $0x70] sm:$0xff] %v918_v1 }
 0x168   : > { %935 = vst [vmem:[%s1933_s3 + $0x78] sm:$0xff] %v919_v54 }
 0x169 PF: > { %s13_s16 = sadd.s32 1, %s1442_s16   ;;  %s1934_s12 = smov %s1430_s13 }
 0x16a   : > { %p10_p12 = scmp.ge.s32.totalorder %s13_s16, 5   ;;  %s1935_s13 = smov %s1499_s20 }
 0x16b   : > { %s1936_s14 = smov %s1438_s15  ;;  %s1937_s15 = smov %s1939_s17 }
 0x16c   :  { %12 = sbr.rel (!%p10_p12) target bundleno = 3 (0x3), region = 113 }

// kernel: improved_unet_forward.53
= control target key start
LH: loop header
LB: loop body
LE: loop exit
PB: predicated region body
PF: predicated region fallthrough
CT: control target
= control target key end

     0   :  { %s1035_s12 = smov 0   ;;  %s1037_s13 = smov 0   ;;  %s1210_s0 = inlined_call_operand.vmem [shape: bf16[128,128], index: 0, kind: input, shape index: {}]   ;;  %s1211_s1 = inlined_call_operand.vmem [shape: bf16[128,256], index: 1, kind: input, shape index: {}]   ;;  %s1212_s2 = inlined_call_operand.vmem [shape: f32[1,256], index: 2, kind: input, shape index: {}]   ;;  %s1213_s3 = inlined_call_operand.vmem [shape: f32[128,256], index: 3, kind: output, shape index: {}]  }
   0x1   :  { %s1039_s14 = smov 0   ;;  %s1041_s15 = smov 0  }
   0x2   :  { %s1043_s16 = smov 0  }
   0x3 LB: > { %s28_s17 = sadd.s32 1, %s1009_s15  ;;  %s816_s18 = sadd.s32 4294967295, %s1013_s16   ;;  %s1013_s16 = sphi %s1043_s16, %s13_s16   ;;  %s1009_s15 = sphi %s1041_s15, %s1218_s15   ;;  %s1005_s14 = sphi %s1039_s14, %s1217_s14   ;;  %s1001_s13 = sphi %s1037_s13, %s1216_s13   ;;  %s997_s12 = sphi %s1035_s12, %s1215_s12  }
   0x4   : > { %p30_p0 = scmp.ge.s32.totalorder %s28_s17, 2  ;;  %p76_p1 = scmp.ne.s32.totalorder %s1001_s13, %s997_s12 }
   0x5   : > { %p77_p2 = scmp.eq.s32.totalorder %s1013_s16, 0  ;;  %p134_p4 = scmp.eq.s32.totalorder %s816_s18, 1 }
   0x6   : > { %s1220_s17 = smov (%p30_p0, %s28_s17), 0  ;;  %s69_s20 = sadd.s32 1, %s1001_s13 }
   0x7   : > { %p78_p3 = por %p77_p2, %p76_p1  ;;  %s65_s19 = ssub.s32 %s1009_s15, %s1220_s17 }
   0x8   : > { %p67_p5 = scmp.eq.s32.totalorder %s65_s19, 0  ;;  %p1070_p6 = por %p134_p4, %p76_p1 }
   0x9   : > { %p820_p7 = scmp.ge.s32.totalorder %s1013_s16, 2 }
   0xa   : > { %s1075_s22 = scalar_select %p67_p5, %s1001_s13, %s69_s20  }
   0xb   : > { %168 = sbr.rel (%p820_p7) target bundleno = 36 (0x24), region = 20 }
  0x10   : > { %171 = sbr.rel (!%p78_p3) target bundleno = 36 (0x24), region = 24  ;;  %s173_s23 = sand.u32 (%p78_p3), 1, %s1001_s13  }
  0x11   : > { %s822_s24 = sshll.u32 (%p78_p3), %s1009_s15, 2  ;;  %s821_s25 = sshll.u32 (%p78_p3), %s173_s23, 6 }
  0x12   : > { %s1083_s28 = scalar_lea.vmem (%p78_p3), %s1211_s1, %s822_s24  ;;  %s175_s29 = scalar_lea.vmem (%p78_p3), [#allocation2], %s821_s25 }
  0x13   : > { %v197_v0 = vld [vmem:[%s1083_s28] sm:$0xf] (%p78_p3)  ;;  %v199_v1 = vld [vmem:[%s1083_s28 + $0x8] sm:$0xf] (%p78_p3)  ;;  %v201_v2 = vld [vmem:[%s1083_s28 + $0x10] sm:$0xf] (%p78_p3) }
  0x14   : > { %198 = vst [vmem:[%s175_s29] sm:$0xf] (%p78_p3), %v197_v0  ;;  %v203_v3 = vld [vmem:[%s1083_s28 + $0x18] sm:$0xf] (%p78_p3)  ;;  %v205_v4 = vld [vmem:[%s1083_s28 + $0x20] sm:$0xf] (%p78_p3) }
  0x15   : > { %200 = vst [vmem:[%s175_s29 + $0x4] sm:$0xf] %v199_v1  ;;  %v207_v5 = vld [vmem:[%s1083_s28 + $0x28] sm:$0xf]  ;;  %v209_v6 = vld [vmem:[%s1083_s28 + $0x30] sm:$0xf] }
  0x16   : > { %202 = vst [vmem:[%s175_s29 + $0x8] sm:$0xf] %v201_v2  ;;  %v211_v7 = vld [vmem:[%s1083_s28 + $0x38] sm:$0xf]  ;;  %v213_v8 = vld [vmem:[%s1083_s28 + $0x40] sm:$0xf] }
  0x17   : > { %204 = vst [vmem:[%s175_s29 + $0xc] sm:$0xf] %v203_v3  ;;  %v215_v9 = vld [vmem:[%s1083_s28 + $0x48] sm:$0xf]  ;;  %v217_v10 = vld [vmem:[%s1083_s28 + $0x50] sm:$0xf] }
  0x18   : > { %206 = vst [vmem:[%s175_s29 + $0x10] sm:$0xf] %v205_v4  ;;  %v219_v11 = vld [vmem:[%s1083_s28 + $0x58] sm:$0xf]  ;;  %v221_v12 = vld [vmem:[%s1083_s28 + $0x60] sm:$0xf] }
  0x19   : > { %208 = vst [vmem:[%s175_s29 + $0x14] sm:$0xf] %v207_v5  ;;  %v223_v13 = vld [vmem:[%s1083_s28 + $0x68] sm:$0xf]  ;;  %v225_v14 = vld [vmem:[%s1083_s28 + $0x70] sm:$0xf] }
  0x1a   : > { %210 = vst [vmem:[%s175_s29 + $0x18] sm:$0xf] %v209_v6  ;;  %v227_v15 = vld [vmem:[%s1083_s28 + $0x78] sm:$0xf] }
  0x1b   : > { %212 = vst [vmem:[%s175_s29 + $0x1c] sm:$0xf] %v211_v7 }
  0x1c   : > { %214 = vst [vmem:[%s175_s29 + $0x20] sm:$0xf] %v213_v8 }
  0x1d   : > { %216 = vst [vmem:[%s175_s29 + $0x24] sm:$0xf] %v215_v9 }
  0x1e   : > { %218 = vst [vmem:[%s175_s29 + $0x28] sm:$0xf] %v217_v10 }
  0x1f   : > { %220 = vst [vmem:[%s175_s29 + $0x2c] sm:$0xf] %v219_v11 }
  0x20   : > { %222 = vst [vmem:[%s175_s29 + $0x30] sm:$0xf] %v221_v12 }
  0x21   : > { %224 = vst [vmem:[%s175_s29 + $0x34] sm:$0xf] %v223_v13 }
  0x22   : > { %226 = vst [vmem:[%s175_s29 + $0x38] sm:$0xf] %v225_v14 }
  0x23   : > { %228 = vst [vmem:[%s175_s29 + $0x3c] sm:$0xf] %v227_v15 }
  0x24 PF: > { %p823_p8 = scmp.ge.s32.totalorder %s1013_s16, 1  ;;  %p289_p9 = scmp.lt.s32.totalorder %s1013_s16, 3 }
  0x26   : > { %p290_p10 = pnand %p823_p8, %p289_p9 }
  0x27   : > { %s296_s30 = sand.u32 (!%p290_p10), 1, %s997_s12   ;;  %p339_p11 = scmp.lt.s32.totalorder (!%p290_p10), %s1005_s14, 1 }
  0x28   : > { %293 = sbr.rel (%p290_p10) target bundleno = 246 (0xf6), region = 69  ;;  %s824_s4 = sshll.u32 (!%p290_p10), %s296_s30, 6 }
  0x29   : > { %s1107_s5 = scalar_lea.vmem (!%p290_p10), [#allocation2], %s824_s4  ;;  %s825_s10 = sshll.u32 (!%p290_p10), %s296_s30, 7 }
  0x2a   : > { %s1155_s19 = scalar_lea.vmem (!%p290_p10), [#allocation3], %s825_s10 }
  0x2d   : > { %v909_v16 = vld [vmem:[%s1107_s5 + $0x38] sm:$0xff]  ;;  %s1111_s6 = scalar_select %p339_p11, %s1005_s14, 1  ;;  %v908_v17 = vld [vmem:[%s1107_s5 + $0x30] sm:$0xff]  ;;  %v907_v18 = vld [vmem:[%s1107_s5 + $0x28] sm:$0xff] }
  0x2e   : > { %471 = vmatpush.bf16.msra.mxu0 %v909_v16  ;;  %910 = vmatpush.bf16.msra.mxu1 %v909_v16  ;;  %v906_v19 = vld [vmem:[%s1107_s5 + $0x20] sm:$0xff]  ;;  %v905_v20 = vld [vmem:[%s1107_s5 + $0x18] sm:$0xff]  ;;  %v904_v21 = vld [vmem:[%s1107_s5 + $0x10] sm:$0xff]  ;;  %s891_s12 = sshll.u32 (%p1070_p6), %s1005_s14, 3 }
  0x2f   : > { %911 = vmatpush.bf16.msra.mxu2 %v909_v16  ;;  %912 = vmatpush.bf16.msra.mxu3 %v909_v16  ;;  %s341_s9 = scalar_lea.vmem %s1212_s2, %s1111_s6  ;;  %v903_v22 = vld [vmem:[%s1107_s5 + $0x8] sm:$0xff]  ;;  %v902_v23 = vld [vmem:[%s1107_s5] sm:$0xff]  ;;  %v896_v25 = vld [vmem:[%s1210_s0 + $0x10] sm:$0xff] }
  0x30   : > { %v894_v24 = vld [vmem:[%s1210_s0] sm:$0xff]  ;;  %v900_v27 = vld [vmem:[%s1210_s0 + $0x30] sm:$0xff]  ;;  %v895_v28 = vld [vmem:[%s1210_s0 + $0x8] sm:$0xff] }
  0x31   : > { %v898_v26 = vld [vmem:[%s1210_s0 + $0x20] sm:$0xff]  ;;  %v897_v29 = vld [vmem:[%s1210_s0 + $0x18] sm:$0xff]  ;;  %v899_v30 = vld [vmem:[%s1210_s0 + $0x28] sm:$0xff] }
  0x32   : > { %472 = vmatpush.bf16.msra.mxu0 %v908_v17  ;;  %913 = vmatpush.bf16.msra.mxu1 %v908_v17  ;;  %v901_v31 = vld [vmem:[%s1210_s0 + $0x38] sm:$0xff]  ;;  %v974_v32 = vld [vmem:[%s341_s9] ss:$0 sm:$0xff]  ;;  %s623_s9 = scalar_lea.vmem (%p1070_p6), %s1213_s3, %s891_s12 }
  0x33   : > { %914 = vmatpush.bf16.msra.mxu2 %v908_v17  ;;  %915 = vmatpush.bf16.msra.mxu3 %v908_v17 }
  0x36   : > { %473 = vmatpush.bf16.msra.mxu0 %v907_v18  ;;  %916 = vmatpush.bf16.msra.mxu1 %v907_v18 }
  0x37   : > { %917 = vmatpush.bf16.msra.mxu2 %v907_v18  ;;  %918 = vmatpush.bf16.msra.mxu3 %v907_v18 }
  0x3a   : > { %474 = vmatpush.bf16.msra.mxu0 %v906_v19  ;;  %919 = vmatpush.bf16.msra.mxu1 %v906_v19 }
  0x3b   : > { %920 = vmatpush.bf16.msra.mxu2 %v906_v19  ;;  %921 = vmatpush.bf16.msra.mxu3 %v906_v19 }
  0x3e   : > { %475 = vmatpush.bf16.msra.mxu0 %v905_v20  ;;  %922 = vmatpush.bf16.msra.mxu1 %v905_v20 }
  0x3f   : > { %923 = vmatpush.bf16.msra.mxu2 %v905_v20  ;;  %924 = vmatpush.bf16.msra.mxu3 %v905_v20 }
  0x42   : > { %476 = vmatpush.bf16.msra.mxu0 %v904_v21  ;;  %925 = vmatpush.bf16.msra.mxu1 %v904_v21 }
  0x43   : > { %926 = vmatpush.bf16.msra.mxu2 %v904_v21  ;;  %927 = vmatpush.bf16.msra.mxu3 %v904_v21 }
  0x46   : > { %477 = vmatpush.bf16.msra.mxu0 %v903_v22  ;;  %928 = vmatpush.bf16.msra.mxu1 %v903_v22 }
  0x47   : > { %929 = vmatpush.bf16.msra.mxu2 %v903_v22  ;;  %930 = vmatpush.bf16.msra.mxu3 %v903_v22 }
  0x4a   : > { %478 = vmatpush.bf16.msra.mxu0 %v902_v23  ;;  %931 = vmatpush.bf16.msra.mxu1 %v902_v23 }
  0x4b   : > { %932 = vmatpush.bf16.msra.mxu2 %v902_v23  ;;  %933 = vmatpush.bf16.msra.mxu3 %v902_v23 }
  0x4d   : > { %479 = vmatmul.bf16.vlgmr.msra.gmra.mxu0 %v894_v24  ;;  %489 = vmatmul.bf16.vlgmr.msra.gmra.mxu1 %v896_v25 }
  0x4e   : > { %499 = vmatmul.bf16.vlgmr.msra.gmra.mxu2 %v898_v26  ;;  %509 = vmatmul.bf16.vlgmr.msra.gmra.mxu3 %v900_v27 }
  0x5d   : > { %484 = vmatmul.bf16.gmra.mxu0 %v895_v28  ;;  %494 = vmatmul.bf16.gmra.mxu1 %v897_v29 }
  0x5e   : > { %504 = vmatmul.bf16.gmra.mxu2 %v899_v30  ;;  %514 = vmatmul.bf16.gmra.mxu3 %v901_v31 }
  0xca   : > { %v480_v33 = vpop.f32.mrf.mxu0  ;;  %v490_v34 = vpop.f32.mrf.mxu1 }
  0xcb   : > { %v528_v35 = vadd.f32 %v974_v32, %v480_v33  ;;  %v532_v36 = vadd.f32 %v974_v32, %v490_v34 }
  0xcd   : > { %544 = vst [vmem:[%s1155_s19] sm:$0xff] %v528_v35 }
  0xce   : > { %548 = vst [vmem:[%s1155_s19 + $0x20] sm:$0xff] %v532_v36 }
  0xd1   : > { %v500_v37 = vpop.f32.mrf.mxu2  ;;  %v510_v38 = vpop.f32.mrf.mxu3 }
  0xd2   : > { %v536_v39 = vadd.f32 %v974_v32, %v500_v37  ;;  %v540_v40 = vadd.f32 %v974_v32, %v510_v38  ;;  %v482_v41 = vpop.f32.mrf.mxu0  ;;  %v492_v42 = vpop.f32.mrf.mxu1 }
  0xd3   : > { %v529_v43 = vadd.f32 %v974_v32, %v482_v41  ;;  %v533_v44 = vadd.f32 %v974_v32, %v492_v42 }
  0xd4   : > { %552 = vst [vmem:[%s1155_s19 + $0x40] sm:$0xff] %v536_v39  ;;  %v682_v1 = vld [vmem:[%s1155_s19] sm:$0xff] (%p1070_p6) }
  0xd5   : > { %556 = vst [vmem:[%s1155_s19 + $0x60] sm:$0xff] %v540_v40  ;;  %v690_v5 = vld [vmem:[%s1155_s19 + $0x20] sm:$0xff] (%p1070_p6) }
  0xd6   : > { %545 = vst [vmem:[%s1155_s19 + $0x8] sm:$0xff] %v529_v43 }
  0xd7   : > { %549 = vst [vmem:[%s1155_s19 + $0x28] sm:$0xff] %v533_v44 }
  0xd8   : > { %683 = vst [vmem:[%s623_s9] sm:$0xff] (%p1070_p6), %v682_v1 }
  0xd9   : > { %v502_v45 = vpop.f32.mrf.mxu2  ;;  %v512_v46 = vpop.f32.mrf.mxu3  ;;  %691 = vst [vmem:[%s623_s9 + $0x40] sm:$0xff] (%p1070_p6), %v690_v5 }
  0xda   : > { %v537_v47 = vadd.f32 %v974_v32, %v502_v45  ;;  %v541_v48 = vadd.f32 %v974_v32, %v512_v46  ;;  %v485_v49 = vpop.f32.mrf.mxu0  ;;  %v495_v50 = vpop.f32.mrf.mxu1 }
  0xdb   : > { %v530_v51 = vadd.f32 %v974_v32, %v485_v49  ;;  %v534_v52 = vadd.f32 %v974_v32, %v495_v50  ;;  %v698_v9 = vld [vmem:[%s1155_s19 + $0x40] sm:$0xff] (%p1070_p6) }
  0xdc   : > { %553 = vst [vmem:[%s1155_s19 + $0x48] sm:$0xff] %v537_v47  ;;  %v706_v13 = vld [vmem:[%s1155_s19 + $0x60] sm:$0xff] (%p1070_p6) }
  0xdd   : > { %557 = vst [vmem:[%s1155_s19 + $0x68] sm:$0xff] %v541_v48  ;;  %v684_v2 = vld [vmem:[%s1155_s19 + $0x8] sm:$0xff] (%p1070_p6) }
  0xde   : > { %546 = vst [vmem:[%s1155_s19 + $0x10] sm:$0xff] %v530_v51  ;;  %v692_v6 = vld [vmem:[%s1155_s19 + $0x28] sm:$0xff] (%p1070_p6) }
  0xdf   : > { %550 = vst [vmem:[%s1155_s19 + $0x30] sm:$0xff] %v534_v52 }
  0xe0   : > { %685 = vst [vmem:[%s623_s9 + $0x10] sm:$0xff] (%p1070_p6), %v684_v2 }
  0xe1   : > { %v505_v53 = vpop.f32.mrf.mxu2  ;;  %v515_v54 = vpop.f32.mrf.mxu3  ;;  %693 = vst [vmem:[%s623_s9 + $0x50] sm:$0xff] (%p1070_p6), %v692_v6 }
  0xe2   : > { %v538_v55 = vadd.f32 %v974_v32, %v505_v53  ;;  %v542_v56 = vadd.f32 %v974_v32, %v515_v54  ;;  %v487_v57 = vpop.f32.mrf.mxu0  ;;  %v497_v58 = vpop.f32.mrf.mxu1  ;;  %699 = vst [vmem:[%s623_s9 + $0x80] sm:$0xff] (%p1070_p6), %v698_v9 }
  0xe3   : > { %v531_v59 = vadd.f32 %v974_v32, %v487_v57  ;;  %v535_v60 = vadd.f32 %v974_v32, %v497_v58  ;;  %v700_v10 = vld [vmem:[%s1155_s19 + $0x48] sm:$0xff] (%p1070_p6)  ;;  %707 = vst [vmem:[%s623_s9 + $0xc0] sm:$0xff] (%p1070_p6), %v706_v13 }
  0xe4   : > { %554 = vst [vmem:[%s1155_s19 + $0x50] sm:$0xff] %v538_v55  ;;  %v708_v14 = vld [vmem:[%s1155_s19 + $0x68] sm:$0xff] (%p1070_p6) }
  0xe5   : > { %558 = vst [vmem:[%s1155_s19 + $0x70] sm:$0xff] %v542_v56  ;;  %v686_v3 = vld [vmem:[%s1155_s19 + $0x10] sm:$0xff] (%p1070_p6) }
  0xe6   : > { %547 = vst [vmem:[%s1155_s19 + $0x18] sm:$0xff] %v531_v59  ;;  %v694_v7 = vld [vmem:[%s1155_s19 + $0x30] sm:$0xff] (%p1070_p6) }
  0xe7   : > { %551 = vst [vmem:[%s1155_s19 + $0x38] sm:$0xff] %v535_v60 }
  0xe8   : > { %687 = vst [vmem:[%s623_s9 + $0x20] sm:$0xff] (%p1070_p6), %v686_v3 }
  0xe9   : > { %v507_v61 = vpop.f32.mrf.mxu2  ;;  %v517_v62 = vpop.f32.mrf.mxu3  ;;  %618 = sbr.rel (!%p1070_p6) target bundleno = 246 (0xf6), region = 85  ;;  %695 = vst [vmem:[%s623_s9 + $0x60] sm:$0xff] (%p1070_p6), %v694_v7 }
  0xea   : > { %v539_v63 = vadd.f32 %v974_v32, %v507_v61  ;;  %v543_v0 = vadd.f32 %v974_v32, %v517_v62  ;;  %701 = vst [vmem:[%s623_s9 + $0x90] sm:$0xff] (%p1070_p6), %v700_v10 }
  0xeb   : > { %v702_v11 = vld [vmem:[%s1155_s19 + $0x50] sm:$0xff] (%p1070_p6)  ;;  %709 = vst [vmem:[%s623_s9 + $0xd0] sm:$0xff] (%p1070_p6), %v708_v14 }
  0xec   : > { %555 = vst [vmem:[%s1155_s19 + $0x58] sm:$0xff] %v539_v63  ;;  %v710_v15 = vld [vmem:[%s1155_s19 + $0x70] sm:$0xff] (%p1070_p6) }
  0xed   : > { %559 = vst [vmem:[%s1155_s19 + $0x78] sm:$0xff] %v543_v0  ;;  %v688_v4 = vld [vmem:[%s1155_s19 + $0x18] sm:$0xff] (%p1070_p6) }
  0xee   : > { %689 = vst [vmem:[%s623_s9 + $0x30] sm:$0xff] %v688_v4  ;;  %v696_v8 = vld [vmem:[%s1155_s19 + $0x38] sm:$0xff] }
  0xef   : > { %697 = vst [vmem:[%s623_s9 + $0x70] sm:$0xff] %v696_v8 }
  0xf0   : > { %703 = vst [vmem:[%s623_s9 + $0xa0] sm:$0xff] %v702_v11 }
  0xf1   : > { %711 = vst [vmem:[%s623_s9 + $0xe0] sm:$0xff] %v710_v15 }
  0xf3   : > { %v704_v12 = vld [vmem:[%s1155_s19 + $0x58] sm:$0xff] }
  0xf4   : > { %705 = vst [vmem:[%s623_s9 + $0xb0] sm:$0xff] %v704_v12  ;;  %v712_v16 = vld [vmem:[%s1155_s19 + $0x78] sm:$0xff] }
  0xf5   : > { %713 = vst [vmem:[%s623_s9 + $0xf0] sm:$0xff] %v712_v16 }
  0xf6 PF: > { %s13_s16 = sadd.s32 1, %s1013_s16   ;;  %s1215_s12 = smov %s1001_s13 }
  0xf7   : > { %p10_p12 = scmp.ge.s32.totalorder %s13_s16, 4   ;;  %s1216_s13 = smov %s1075_s22 }
  0xf8   : > { %s1217_s14 = smov %s1009_s15  ;;  %s1218_s15 = smov %s1220_s17 }
  0xf9   :  { %12 = sbr.rel (!%p10_p12) target bundleno = 3 (0x3), region = 160 }

// kernel: mul.177
= control target key start
LH: loop header
LB: loop body
LE: loop exit
PB: predicated region body
PF: predicated region fallthrough
CT: control target
= control target key end

     0   :  { %s474_s0 = inlined_call_operand.vmem [shape: f32[2,64], index: 0, kind: input, shape index: {}]   ;;  %s475_s1 = inlined_call_operand.vmem [shape: f32[2,16,16,64], index: 1, kind: output, shape index: {}]  }
   0x1   :  { %v211_v0 = vld [vmem:[%s474_s0] ss:$0 sm:$0xff]  ;;  %v216_v1 = vld [vmem:[%s474_s0 + $0x1] ss:$0 sm:$0xff] }
   0x2   :  { %5 = vst [vmem:[%s475_s1] sm:$0xff] %v211_v0 }
   0x3   :  { %135 = vst [vmem:[%s475_s1 + $0x100] sm:$0xff] %v216_v1 }
   0x4   :  { %136 = vst [vmem:[%s475_s1 + $0x10] sm:$0xff] %v211_v0 }
   0x5   :  { %137 = vst [vmem:[%s475_s1 + $0x110] sm:$0xff] %v216_v1 }
   0x6   :  { %138 = vst [vmem:[%s475_s1 + $0x20] sm:$0xff] %v211_v0 }
   0x7   :  { %139 = vst [vmem:[%s475_s1 + $0x120] sm:$0xff] %v216_v1 }
   0x8   :  { %140 = vst [vmem:[%s475_s1 + $0x30] sm:$0xff] %v211_v0 }
   0x9   :  { %141 = vst [vmem:[%s475_s1 + $0x130] sm:$0xff] %v216_v1 }
   0xa   :  { %142 = vst [vmem:[%s475_s1 + $0x40] sm:$0xff] %v211_v0 }
   0xb   :  { %143 = vst [vmem:[%s475_s1 + $0x140] sm:$0xff] %v216_v1 }
   0xc   :  { %144 = vst [vmem:[%s475_s1 + $0x50] sm:$0xff] %v211_v0 }
   0xd   :  { %145 = vst [vmem:[%s475_s1 + $0x150] sm:$0xff] %v216_v1 }
   0xe   :  { %146 = vst [vmem:[%s475_s1 + $0x60] sm:$0xff] %v211_v0 }
   0xf   :  { %147 = vst [vmem:[%s475_s1 + $0x160] sm:$0xff] %v216_v1 }
  0x10   :  { %148 = vst [vmem:[%s475_s1 + $0x70] sm:$0xff] %v211_v0 }
  0x11   :  { %149 = vst [vmem:[%s475_s1 + $0x170] sm:$0xff] %v216_v1 }
  0x12   :  { %150 = vst [vmem:[%s475_s1 + $0x80] sm:$0xff] %v211_v0 }
  0x13   :  { %151 = vst [vmem:[%s475_s1 + $0x180] sm:$0xff] %v216_v1 }
  0x14   :  { %152 = vst [vmem:[%s475_s1 + $0x90] sm:$0xff] %v211_v0 }
  0x15   :  { %153 = vst [vmem:[%s475_s1 + $0x190] sm:$0xff] %v216_v1 }
  0x16   :  { %154 = vst [vmem:[%s475_s1 + $0xa0] sm:$0xff] %v211_v0 }
  0x17   :  { %155 = vst [vmem:[%s475_s1 + $0x1a0] sm:$0xff] %v216_v1 }
  0x18   :  { %156 = vst [vmem:[%s475_s1 + $0xb0] sm:$0xff] %v211_v0 }
  0x19   :  { %157 = vst [vmem:[%s475_s1 + $0x1b0] sm:$0xff] %v216_v1 }
  0x1a   :  { %158 = vst [vmem:[%s475_s1 + $0xc0] sm:$0xff] %v211_v0 }
  0x1b   :  { %159 = vst [vmem:[%s475_s1 + $0x1c0] sm:$0xff] %v216_v1 }
  0x1c   :  { %160 = vst [vmem:[%s475_s1 + $0xd0] sm:$0xff] %v211_v0 }
  0x1d   :  { %161 = vst [vmem:[%s475_s1 + $0x1d0] sm:$0xff] %v216_v1 }
  0x1e   :  { %162 = vst [vmem:[%s475_s1 + $0xe0] sm:$0xff] %v211_v0 }
  0x1f   :  { %163 = vst [vmem:[%s475_s1 + $0x1e0] sm:$0xff] %v216_v1 }
  0x20   :  { %164 = vst [vmem:[%s475_s1 + $0xf0] sm:$0xff] %v211_v0 }
  0x21   :  { %165 = vst [vmem:[%s475_s1 + $0x1f0] sm:$0xff] %v216_v1 }
  0x22   :  { %166 = vst [vmem:[%s475_s1 + $0x8] sm:$0xff] %v211_v0 }
  0x23   :  { %167 = vst [vmem:[%s475_s1 + $0x108] sm:$0xff] %v216_v1 }
  0x24   :  { %168 = vst [vmem:[%s475_s1 + $0x18] sm:$0xff] %v211_v0 }
  0x25   :  { %169 = vst [vmem:[%s475_s1 + $0x118] sm:$0xff] %v216_v1 }
  0x26   :  { %170 = vst [vmem:[%s475_s1 + $0x28] sm:$0xff] %v211_v0 }
  0x27   :  { %171 = vst [vmem:[%s475_s1 + $0x128] sm:$0xff] %v216_v1 }
  0x28   :  { %172 = vst [vmem:[%s475_s1 + $0x38] sm:$0xff] %v211_v0 }
  0x29   :  { %173 = vst [vmem:[%s475_s1 + $0x138] sm:$0xff] %v216_v1 }
  0x2a   :  { %174 = vst [vmem:[%s475_s1 + $0x48] sm:$0xff] %v211_v0 }
  0x2b   :  { %175 = vst [vmem:[%s475_s1 + $0x148] sm:$0xff] %v216_v1 }
  0x2c   :  { %176 = vst [vmem:[%s475_s1 + $0x58] sm:$0xff] %v211_v0 }
  0x2d   :  { %177 = vst [vmem:[%s475_s1 + $0x158] sm:$0xff] %v216_v1 }
  0x2e   :  { %178 = vst [vmem:[%s475_s1 + $0x68] sm:$0xff] %v211_v0 }
  0x2f   :  { %179 = vst [vmem:[%s475_s1 + $0x168] sm:$0xff] %v216_v1 }
  0x30   :  { %180 = vst [vmem:[%s475_s1 + $0x78] sm:$0xff] %v211_v0 }
  0x31   :  { %181 = vst [vmem:[%s475_s1 + $0x178] sm:$0xff] %v216_v1 }
  0x32   :  { %182 = vst [vmem:[%s475_s1 + $0x88] sm:$0xff] %v211_v0 }
  0x33   :  { %183 = vst [vmem:[%s475_s1 + $0x188] sm:$0xff] %v216_v1 }
  0x34   :  { %184 = vst [vmem:[%s475_s1 + $0x98] sm:$0xff] %v211_v0 }
  0x35   :  { %185 = vst [vmem:[%s475_s1 + $0x198] sm:$0xff] %v216_v1 }
  0x36   :  { %186 = vst [vmem:[%s475_s1 + $0xa8] sm:$0xff] %v211_v0 }
  0x37   :  { %187 = vst [vmem:[%s475_s1 + $0x1a8] sm:$0xff] %v216_v1 }
  0x38   :  { %188 = vst [vmem:[%s475_s1 + $0xb8] sm:$0xff] %v211_v0 }
  0x39   :  { %189 = vst [vmem:[%s475_s1 + $0x1b8] sm:$0xff] %v216_v1 }
  0x3a   :  { %190 = vst [vmem:[%s475_s1 + $0xc8] sm:$0xff] %v211_v0 }
  0x3b   :  { %191 = vst [vmem:[%s475_s1 + $0x1c8] sm:$0xff] %v216_v1 }
  0x3c   :  { %192 = vst [vmem:[%s475_s1 + $0xd8] sm:$0xff] %v211_v0 }
  0x3d   :  { %193 = vst [vmem:[%s475_s1 + $0x1d8] sm:$0xff] %v216_v1 }
  0x3e   :  { %194 = vst [vmem:[%s475_s1 + $0xe8] sm:$0xff] %v211_v0 }
  0x3f   :  { %195 = vst [vmem:[%s475_s1 + $0x1e8] sm:$0xff] %v216_v1 }
  0x40   :  { %196 = vst [vmem:[%s475_s1 + $0xf8] sm:$0xff] %v211_v0 }
  0x41   :  { %197 = vst [vmem:[%s475_s1 + $0x1f8] sm:$0xff] %v216_v1 }

// kernel: improved_unet_forward.54
= control target key start
LH: loop header
LB: loop body
LE: loop exit
PB: predicated region body
PF: predicated region fallthrough
CT: control target
= control target key end

     0   :  { %s4013_s12 = smov 0   ;;  %s4015_s13 = smov 0   ;;  %s4822_s0 = inlined_call_operand.vmem [shape: bf16[512,1152], index: 0, kind: input, shape index: {}]   ;;  %s4823_s1 = inlined_call_operand.vmem [shape: bf16[1152,128], index: 1, kind: input, shape index: {}]   ;;  %s4824_s2 = inlined_call_operand.vmem [shape: f32[1,128], index: 2, kind: input, shape index: {}]   ;;  %s4825_s3 = inlined_call_operand.vmem [shape: f32[512,128], index: 3, kind: output, shape index: {}]  }
   0x1   :  { %s4017_s14 = smov 0  }
   0x2 LB: > { %s32_s15 = sadd.s32 1, %s3987_s13  ;;  %p2832_p0 = scmp.ge.s32.totalorder %s3991_s14, 1  ;;  %s3991_s14 = sphi %s4017_s14, %s13_s14   ;;  %s3987_s13 = sphi %s4015_s13, %s4827_s13   ;;  %s3983_s12 = sphi %s4013_s12, %s4826_s12  }
   0x3   : > { %p34_p1 = scmp.ge.s32.totalorder %s32_s15, 2  ;;  %p191_p2 = scmp.lt.s32.totalorder %s3991_s14, 3 }
   0x5   : > { %s4829_s15 = smov (%p34_p1, %s32_s15), 0  ;;  %p192_p3 = pnand %p2832_p0, %p191_p2 }
   0x6   : > { %s2833_s22 = sshll.u32 (!%p192_p3), %s3983_s12, 5 }
   0x7   : > { %195 = sbr.rel (%p192_p3) target bundleno = 753 (0x2f1), region = 32  ;;  %p236_p4 = scmp.lt.s32.totalorder (!%p192_p3), %s2833_s22, 63 }
   0xc   : > { %v3854_v0 = vld [vmem:[%s4823_s1 + $0x38] sm:$0xff]  ;;  %v3853_v1 = vld [vmem:[%s4823_s1 + $0x30] sm:$0xff]  ;;  %v3852_v2 = vld [vmem:[%s4823_s1 + $0x28] sm:$0xff]  ;;  %s4831_s22 = smov (!%p236_p4, %s2833_s22), 63 }
   0xd   : > { %3919 = vmatpush.bf16.msra.mxu1 %v3854_v0  ;;  %3920 = vmatpush.bf16.msra.mxu2 %v3854_v0  ;;  %v3851_v3 = vld [vmem:[%s4823_s1 + $0x20] sm:$0xff]  ;;  %v3850_v4 = vld [vmem:[%s4823_s1 + $0x18] sm:$0xff]  ;;  %v3849_v5 = vld [vmem:[%s4823_s1 + $0x10] sm:$0xff]  ;;  %s3943_s29 = smul.u32 36, %s4831_s22  ;;  %s2836_s5 = sshll.u32 %s4831_s22, 3 }
   0xe   : > { %3921 = vmatpush.bf16.msra.mxu3 %v3854_v0  ;;  %1739 = vmatpush.bf16.msra.mxu0 %v3854_v0  ;;  %v3848_v6 = vld [vmem:[%s4823_s1 + $0x8] sm:$0xff]  ;;  %v3847_v7 = vld [vmem:[%s4823_s1] sm:$0xff]  ;;  %v3870_v16 = vld [vmem:[%s4823_s1 + $0xb8] sm:$0xff]  ;;  %s4662_s11 = scalar_lea.vmem %s4825_s3, %s2836_s5 }
   0xf   : > { %s4061_s7 = scalar_lea.vmem %s4822_s0, %s3943_s29  ;;  %v3878_v17 = vld [vmem:[%s4823_s1 + $0xf8] sm:$0xff]  ;;  %v3869_v24 = vld [vmem:[%s4823_s1 + $0xb0] sm:$0xff]  ;;  %v3868_v28 = vld [vmem:[%s4823_s1 + $0xa8] sm:$0xff] }
  0x10   : > { %v2983_v8 = vld [vmem:[%s4061_s7 + $0x120] sm:$0xf]  ;;  %v3743_v9 = vld [vmem:[%s4061_s7 + $0x140] sm:$0xf0]  ;;  %v3862_v22 = vld [vmem:[%s4823_s1 + $0x78] sm:$0xff] }
  0x11   : > { %3922 = vmatpush.bf16.msra.mxu1 %v3853_v1  ;;  %3923 = vmatpush.bf16.msra.mxu2 %v3853_v1  ;;  %v3127_v10 = vld [vmem:[%s4061_s7 + $0x240] sm:$0xf]  ;;  %v3779_v11 = vld [vmem:[%s4061_s7 + $0x260] sm:$0xf0]  ;;  %v2984_v18 = vor.u32 %v3743_v9, %v2983_v8  ;;  %v3886_v23 = vld [vmem:[%s4823_s1 + $0x138] sm:$0xff] }
  0x12   : > { %3924 = vmatpush.bf16.msra.mxu3 %v3853_v1  ;;  %1740 = vmatpush.bf16.msra.mxu0 %v3853_v1  ;;  %v3271_v12 = vld [vmem:[%s4061_s7 + $0x360] sm:$0xf]  ;;  %v3815_v13 = vld [vmem:[%s4061_s7 + $0x380] sm:$0xf0]  ;;  %v3128_v19 = vor.u32 %v3779_v11, %v3127_v10  ;;  %v3877_v25 = vld [vmem:[%s4823_s1 + $0xf0] sm:$0xff] }
  0x13   : > { %v2839_v14 = vld [vmem:[%s4061_s7] sm:$0xf]  ;;  %v3707_v15 = vld [vmem:[%s4061_s7 + $0x20] sm:$0xf0]  ;;  %v3272_v20 = vor.u32 %v3815_v13, %v3271_v12  ;;  %v3861_v26 = vld [vmem:[%s4823_s1 + $0x70] sm:$0xff] }
  0x14   : > { %v2840_v21 = vor.u32 %v3707_v15, %v2839_v14  ;;  %v3885_v27 = vld [vmem:[%s4823_s1 + $0x130] sm:$0xff]  ;;  %v3876_v29 = vld [vmem:[%s4823_s1 + $0xe8] sm:$0xff]  ;;  %v3867_v33 = vld [vmem:[%s4823_s1 + $0xa0] sm:$0xff] }
  0x15   : > { %3925 = vmatpush.bf16.msra.mxu1 %v3852_v2  ;;  %3926 = vmatpush.bf16.msra.mxu2 %v3852_v2  ;;  %v3860_v30 = vld [vmem:[%s4823_s1 + $0x68] sm:$0xff]  ;;  %v3875_v34 = vld [vmem:[%s4823_s1 + $0xe0] sm:$0xff]  ;;  %v3866_v44 = vld [vmem:[%s4823_s1 + $0x98] sm:$0xff] }
  0x16   : > { %3927 = vmatpush.bf16.msra.mxu3 %v3852_v2  ;;  %1741 = vmatpush.bf16.msra.mxu0 %v3852_v2  ;;  %v3884_v31 = vld [vmem:[%s4823_s1 + $0x128] sm:$0xff]  ;;  %v3859_v42 = vld [vmem:[%s4823_s1 + $0x60] sm:$0xff]  ;;  %v3874_v45 = vld [vmem:[%s4823_s1 + $0xd8] sm:$0xff] }
  0x17   : > { %v3019_v32 = vld [vmem:[%s4061_s7 + $0x168] sm:$0xf]  ;;  %v3752_v35 = vld [vmem:[%s4061_s7 + $0x188] sm:$0xf0]  ;;  %v3883_v43 = vld [vmem:[%s4823_s1 + $0x120] sm:$0xff] }
  0x18   : > { %v3163_v36 = vld [vmem:[%s4061_s7 + $0x288] sm:$0xf]  ;;  %v3788_v37 = vld [vmem:[%s4061_s7 + $0x2a8] sm:$0xf0]  ;;  %v3020_v46 = vor.u32 %v3752_v35, %v3019_v32  ;;  %v3858_v50 = vld [vmem:[%s4823_s1 + $0x58] sm:$0xff] }
  0x19   : > { %3928 = vmatpush.bf16.msra.mxu1 %v3851_v3  ;;  %3929 = vmatpush.bf16.msra.mxu2 %v3851_v3  ;;  %v3307_v38 = vld [vmem:[%s4061_s7 + $0x3a8] sm:$0xf]  ;;  %v3824_v39 = vld [vmem:[%s4061_s7 + $0x3c8] sm:$0xf0]  ;;  %v3164_v47 = vor.u32 %v3788_v37, %v3163_v36  ;;  %v3882_v51 = vld [vmem:[%s4823_s1 + $0x118] sm:$0xff] }
  0x1a   : > { %3930 = vmatpush.bf16.msra.mxu3 %v3851_v3  ;;  %1742 = vmatpush.bf16.msra.mxu0 %v3851_v3  ;;  %v2875_v40 = vld [vmem:[%s4061_s7 + $0x48] sm:$0xf]  ;;  %v3716_v41 = vld [vmem:[%s4061_s7 + $0x68] sm:$0xf0]  ;;  %v3308_v48 = vor.u32 %v3824_v39, %v3307_v38  ;;  %v3865_v52 = vld [vmem:[%s4823_s1 + $0x90] sm:$0xff] }
  0x1b   : > { %v2876_v49 = vor.u32 %v3716_v41, %v2875_v40  ;;  %v3873_v53 = vld [vmem:[%s4823_s1 + $0xd0] sm:$0xff]  ;;  %v3864_v56 = vld [vmem:[%s4823_s1 + $0x88] sm:$0xff]  ;;  %v3863_v61 = vld [vmem:[%s4823_s1 + $0x80] sm:$0xff] }
  0x1c   : > { %v3857_v54 = vld [vmem:[%s4823_s1 + $0x50] sm:$0xff]  ;;  %v3872_v57 = vld [vmem:[%s4823_s1 + $0xc8] sm:$0xff]  ;;  %v3871_v62 = vld [vmem:[%s4823_s1 + $0xc0] sm:$0xff] }
  0x1d   : > { %3931 = vmatpush.bf16.msra.mxu1 %v3850_v4  ;;  %3932 = vmatpush.bf16.msra.mxu2 %v3850_v4  ;;  %v3881_v55 = vld [vmem:[%s4823_s1 + $0x110] sm:$0xff]  ;;  %v3856_v58 = vld [vmem:[%s4823_s1 + $0x48] sm:$0xff]  ;;  %v3902_v12 = vld [vmem:[%s4823_s1 + $0x1b8] sm:$0xff] }
  0x1e   : > { %3933 = vmatpush.bf16.msra.mxu3 %v3850_v4  ;;  %1743 = vmatpush.bf16.msra.mxu0 %v3850_v4  ;;  %v3880_v59 = vld [vmem:[%s4823_s1 + $0x108] sm:$0xff]  ;;  %v3055_v60 = vld [vmem:[%s4061_s7 + $0x1b0] sm:$0xf]  ;;  %v3761_v63 = vld [vmem:[%s4061_s7 + $0x1d0] sm:$0xf0] }
  0x1f   : > { %v3199_v0 = vld [vmem:[%s4061_s7 + $0x2d0] sm:$0xf]  ;;  %v3797_v1 = vld [vmem:[%s4061_s7 + $0x2f0] sm:$0xf0]  ;;  %v3056_v8 = vor.u32 %v3761_v63, %v3055_v60  ;;  %v3910_v13 = vld [vmem:[%s4823_s1 + $0x1f8] sm:$0xff] }
  0x20   : > { %v3343_v2 = vld [vmem:[%s4061_s7 + $0x3f0] sm:$0xf]  ;;  %v3833_v3 = vld [vmem:[%s4061_s7 + $0x410] sm:$0xf0]  ;;  %v3200_v9 = vor.u32 %v3797_v1, %v3199_v0  ;;  %v3894_v14 = vld [vmem:[%s4823_s1 + $0x178] sm:$0xff] }
  0x21   : > { %3934 = vmatpush.bf16.msra.mxu1 %v3849_v5  ;;  %3935 = vmatpush.bf16.msra.mxu2 %v3849_v5  ;;  %v2911_v4 = vld [vmem:[%s4061_s7 + $0x90] sm:$0xf]  ;;  %v3344_v10 = vor.u32 %v3833_v3, %v3343_v2  ;;  %v3918_v15 = vld [vmem:[%s4823_s1 + $0x238] sm:$0xff]  ;;  %v3704_v32 = vld [vmem:[%s4061_s7 + $0xc] sm:$0xf] }
  0x22   : > { %3936 = vmatpush.bf16.msra.mxu3 %v3849_v5  ;;  %1744 = vmatpush.bf16.msra.mxu0 %v3849_v5  ;;  %v3725_v5 = vld [vmem:[%s4061_s7 + $0xb0] sm:$0xf0]  ;;  %v3722_v60 = vld [vmem:[%s4061_s7 + $0x9c] sm:$0xf]  ;;  %v3727_v63 = vld [vmem:[%s4061_s7 + $0xc0] sm:$0xf0] }
  0x23   : > { %v2912_v11 = vor.u32 %v3725_v5, %v2911_v4  ;;  %v3709_v35 = vld [vmem:[%s4061_s7 + $0x30] sm:$0xf0]  ;;  %v3900_v4 = vld [vmem:[%s4823_s1 + $0x1a8] sm:$0xff] }
  0x24   : > { %v3901_v40 = vld [vmem:[%s4823_s1 + $0x1b0] sm:$0xff]  ;;  %v3908_v5 = vld [vmem:[%s4823_s1 + $0x1e8] sm:$0xff] }
  0x25   : > { %3937 = vmatpush.bf16.msra.mxu1 %v3848_v6  ;;  %3938 = vmatpush.bf16.msra.mxu2 %v3848_v6  ;;  %v3909_v41 = vld [vmem:[%s4823_s1 + $0x1f0] sm:$0xff] }
  0x26   : > { %3939 = vmatpush.bf16.msra.mxu3 %v3848_v6  ;;  %1745 = vmatpush.bf16.msra.mxu0 %v3848_v6  ;;  %v3855_v6 = vld [vmem:[%s4823_s1 + $0x40] sm:$0xff] }
  0x29   : > { %3940 = vmatpush.bf16.msra.mxu1 %v3847_v7  ;;  %3941 = vmatpush.bf16.msra.mxu2 %v3847_v7 }
  0x2a   : > { %3942 = vmatpush.bf16.msra.mxu3 %v3847_v7  ;;  %1746 = vmatpush.bf16.msra.mxu0 %v3847_v7  ;;  %v3879_v7 = vld [vmem:[%s4823_s1 + $0x100] sm:$0xff] }
  0x2c   : > { %1767 = vmatmul.bf16.vlgmr.msra.gmra.mxu1 %v2984_v18  ;;  %1787 = vmatmul.bf16.vlgmr.msra.gmra.mxu2 %v3128_v19  ;;  %v3235_v18 = vld [vmem:[%s4061_s7 + $0x318] sm:$0xf]  ;;  %v3806_v19 = vld [vmem:[%s4061_s7 + $0x338] sm:$0xf0] }
  0x2d   : > { %1917 = vmatpush.bf16.msrb.mxu2 %v3870_v16  ;;  %1807 = vmatmul.bf16.vlgmr.msra.gmra.mxu3 %v3272_v20  ;;  %v3091_v16 = vld [vmem:[%s4061_s7 + $0x1f8] sm:$0xf] }
  0x2e   : > { %2006 = vmatpush.bf16.msrb.mxu3 %v3878_v17  ;;  %1747 = vmatmul.bf16.vlgmr.msra.gmra.mxu0 %v2840_v21  ;;  %v3770_v17 = vld [vmem:[%s4061_s7 + $0x218] sm:$0xf0]  ;;  %v3379_v20 = vld [vmem:[%s4061_s7 + $0x438] sm:$0xf] }
  0x2f   : > { %1828 = vmatpush.bf16.msrb.mxu1 %v3862_v22  ;;  %2095 = vmatpush.bf16.msrb.mxu0 %v3886_v23  ;;  %v3842_v21 = vld [vmem:[%s4061_s7 + $0x458] sm:$0xf0]  ;;  %v2947_v22 = vld [vmem:[%s4061_s7 + $0xd8] sm:$0xf] }
  0x30   : > { %v3734_v23 = vld [vmem:[%s4061_s7 + $0xf8] sm:$0xf0] }
  0x31   : > { %1918 = vmatpush.bf16.msrb.mxu2 %v3869_v24  ;;  %v3092_v24 = vor.u32 %v3770_v17, %v3091_v16 }
  0x32   : > { %2007 = vmatpush.bf16.msrb.mxu3 %v3877_v25  ;;  %v3236_v25 = vor.u32 %v3806_v19, %v3235_v18 }
  0x33   : > { %1829 = vmatpush.bf16.msrb.mxu1 %v3861_v26  ;;  %2096 = vmatpush.bf16.msrb.mxu0 %v3885_v27  ;;  %v3380_v26 = vor.u32 %v3842_v21, %v3379_v20  ;;  %v2948_v27 = vor.u32 %v3734_v23, %v2947_v22  ;;  %v3739_v20 = vld [vmem:[%s4061_s7 + $0x124] sm:$0xf]  ;;  %v2985_v21 = vld [vmem:[%s4061_s7 + $0x144] sm:$0xf0]  ;;  %v3744_v23 = vld [vmem:[%s4061_s7 + $0x148] sm:$0xf0] }
  0x34   : > { %v2991_v22 = vld [vmem:[%s4061_s7 + $0x128] sm:$0xf] }
  0x35   : > { %1919 = vmatpush.bf16.msrb.mxu2 %v3868_v28  ;;  %v3703_v28 = vld [vmem:[%s4061_s7 + $0x4] sm:$0xf] }
  0x36   : > { %2008 = vmatpush.bf16.msrb.mxu3 %v3876_v29  ;;  %v2841_v29 = vld [vmem:[%s4061_s7 + $0x24] sm:$0xf0] }
  0x37   : > { %1830 = vmatpush.bf16.msrb.mxu1 %v3860_v30  ;;  %2097 = vmatpush.bf16.msrb.mxu0 %v3884_v31  ;;  %v2847_v30 = vld [vmem:[%s4061_s7 + $0x8] sm:$0xf]  ;;  %v3708_v31 = vld [vmem:[%s4061_s7 + $0x28] sm:$0xf0]  ;;  %v2844_v36 = vor.u32 %v3703_v28, %v2841_v29  ;;  %v2988_v28 = vor.u32 %v3739_v20, %v2985_v21  ;;  %v2992_v29 = vor.u32 %v3744_v23, %v2991_v22  ;;  %v3890_v20 = vld [vmem:[%s4823_s1 + $0x158] sm:$0xff] }
  0x38   : > { %v2848_v37 = vor.u32 %v3708_v31, %v2847_v30  ;;  %v3914_v21 = vld [vmem:[%s4823_s1 + $0x218] sm:$0xff]  ;;  %v3093_v23 = vld [vmem:[%s4061_s7 + $0x21c] sm:$0xf0] }
  0x39   : > { %1920 = vmatpush.bf16.msrb.mxu2 %v3867_v33  ;;  %v2849_v33 = vld [vmem:[%s4061_s7 + $0x2c] sm:$0xf0]  ;;  %v3766_v22 = vld [vmem:[%s4061_s7 + $0x1fc] sm:$0xf] }
  0x3a   : > { %2009 = vmatpush.bf16.msrb.mxu3 %v3875_v34  ;;  %v2855_v34 = vld [vmem:[%s4061_s7 + $0x10] sm:$0xf]  ;;  %v2852_v38 = vor.u32 %v3704_v32, %v2849_v33 }
  0x3b   : > { %1831 = vmatpush.bf16.msrb.mxu1 %v3859_v42  ;;  %2098 = vmatpush.bf16.msrb.mxu0 %v3883_v43  ;;  %v2856_v39 = vor.u32 %v3709_v35, %v2855_v34  ;;  %v3893_v42 = vld [vmem:[%s4823_s1 + $0x170] sm:$0xff]  ;;  %v3899_v34 = vld [vmem:[%s4823_s1 + $0x1a0] sm:$0xff] }
  0x3c   : > { %1772 = vmatmul.bf16.gmra.mxu1 %v3020_v46  ;;  %1792 = vmatmul.bf16.gmra.mxu2 %v3164_v47  ;;  %v3917_v43 = vld [vmem:[%s4823_s1 + $0x230] sm:$0xff]  ;;  %v3907_v35 = vld [vmem:[%s4823_s1 + $0x1e0] sm:$0xff] }
  0x3d   : > { %1921 = vmatpush.bf16.msrb.mxu2 %v3866_v44  ;;  %1812 = vmatmul.bf16.gmra.mxu3 %v3308_v48  ;;  %v3712_v44 = vld [vmem:[%s4061_s7 + $0x4c] sm:$0xf]  ;;  %v2883_v46 = vld [vmem:[%s4061_s7 + $0x50] sm:$0xf]  ;;  %v3717_v47 = vld [vmem:[%s4061_s7 + $0x70] sm:$0xf0] }
  0x3e   : > { %2010 = vmatpush.bf16.msrb.mxu3 %v3874_v45  ;;  %1752 = vmatmul.bf16.gmra.mxu0 %v2876_v49  ;;  %v2877_v45 = vld [vmem:[%s4061_s7 + $0x6c] sm:$0xf0]  ;;  %v3713_v48 = vld [vmem:[%s4061_s7 + $0x54] sm:$0xf]  ;;  %v2885_v49 = vld [vmem:[%s4061_s7 + $0x74] sm:$0xf0] }
  0x3f   : > { %1832 = vmatpush.bf16.msrb.mxu1 %v3858_v50  ;;  %2099 = vmatpush.bf16.msrb.mxu0 %v3882_v51  ;;  %v2891_v50 = vld [vmem:[%s4061_s7 + $0x58] sm:$0xf]  ;;  %v3718_v51 = vld [vmem:[%s4061_s7 + $0x78] sm:$0xf0] }
  0x41   : > { %1922 = vmatpush.bf16.msrb.mxu2 %v3865_v52  ;;  %v2880_v52 = vor.u32 %v3712_v44, %v2877_v45  ;;  %v3027_v44 = vld [vmem:[%s4061_s7 + $0x170] sm:$0xf]  ;;  %v3753_v45 = vld [vmem:[%s4061_s7 + $0x190] sm:$0xf0] }
  0x42   : > { %2011 = vmatpush.bf16.msrb.mxu3 %v3873_v53  ;;  %v2884_v53 = vor.u32 %v3717_v47, %v2883_v46  ;;  %v3749_v46 = vld [vmem:[%s4061_s7 + $0x174] sm:$0xf]  ;;  %v3029_v47 = vld [vmem:[%s4061_s7 + $0x194] sm:$0xf0] }
  0x43   : > { %1833 = vmatpush.bf16.msrb.mxu1 %v3857_v54  ;;  %2100 = vmatpush.bf16.msrb.mxu0 %v3881_v55  ;;  %v2888_v54 = vor.u32 %v3713_v48, %v2885_v49  ;;  %v2892_v55 = vor.u32 %v3718_v51, %v2891_v50  ;;  %v3035_v48 = vld [vmem:[%s4061_s7 + $0x178] sm:$0xf]  ;;  %v3754_v49 = vld [vmem:[%s4061_s7 + $0x198] sm:$0xf0] }
  0x45   : > { %1923 = vmatpush.bf16.msrb.mxu2 %v3864_v56  ;;  %v3721_v56 = vld [vmem:[%s4061_s7 + $0x94] sm:$0xf] }
  0x46   : > { %2012 = vmatpush.bf16.msrb.mxu3 %v3872_v57  ;;  %v2913_v57 = vld [vmem:[%s4061_s7 + $0xb4] sm:$0xf0] }
  0x47   : > { %1834 = vmatpush.bf16.msrb.mxu1 %v3856_v58  ;;  %2101 = vmatpush.bf16.msrb.mxu0 %v3880_v59  ;;  %v2919_v58 = vld [vmem:[%s4061_s7 + $0x98] sm:$0xf]  ;;  %v3726_v59 = vld [vmem:[%s4061_s7 + $0xb8] sm:$0xf0]  ;;  %v2916_v0 = vor.u32 %v3721_v56, %v2913_v57  ;;  %v3036_v56 = vor.u32 %v3754_v49, %v3035_v48  ;;  %v3775_v48 = vld [vmem:[%s4061_s7 + $0x244] sm:$0xf] }
  0x48   : > { %v2920_v1 = vor.u32 %v3726_v59, %v2919_v58  ;;  %v3129_v49 = vld [vmem:[%s4061_s7 + $0x264] sm:$0xf0] }
  0x49   : > { %1924 = vmatpush.bf16.msrb.mxu2 %v3863_v61  ;;  %v2921_v61 = vld [vmem:[%s4061_s7 + $0xbc] sm:$0xf0] }
  0x4a   : > { %2013 = vmatpush.bf16.msrb.mxu3 %v3871_v62  ;;  %v2927_v62 = vld [vmem:[%s4061_s7 + $0xa0] sm:$0xf]  ;;  %v2924_v2 = vor.u32 %v3722_v60, %v2921_v61 }
  0x4b   : > { %1835 = vmatpush.bf16.msrb.mxu1 %v3855_v6  ;;  %2102 = vmatpush.bf16.msrb.mxu0 %v3879_v7  ;;  %v2928_v3 = vor.u32 %v3727_v63, %v2927_v62  ;;  %v3892_v6 = vld [vmem:[%s4823_s1 + $0x168] sm:$0xff]  ;;  %v3757_v62 = vld [vmem:[%s4061_s7 + $0x1b4] sm:$0xf]  ;;  %v3057_v63 = vld [vmem:[%s4061_s7 + $0x1d4] sm:$0xf0] }
  0x4c   : > { %1777 = vmatmul.bf16.gmra.mxu1 %v3056_v8  ;;  %1797 = vmatmul.bf16.gmra.mxu2 %v3200_v9  ;;  %v3916_v7 = vld [vmem:[%s4823_s1 + $0x228] sm:$0xff]  ;;  %v3730_v8 = vld [vmem:[%s4061_s7 + $0xdc] sm:$0xf]  ;;  %v2949_v9 = vld [vmem:[%s4061_s7 + $0xfc] sm:$0xf0] }
  0x4d   : > { %1817 = vmatmul.bf16.gmra.mxu3 %v3344_v10  ;;  %2273 = vmatpush.bf16.msra.mxu2 %v3902_v12  ;;  %v2955_v10 = vld [vmem:[%s4061_s7 + $0xe0] sm:$0xf]  ;;  %v3731_v12 = vld [vmem:[%s4061_s7 + $0xe4] sm:$0xf]  ;;  %v2952_v16 = vor.u32 %v3730_v8, %v2949_v9  ;;  %v3060_v8 = vor.u32 %v3757_v62, %v3057_v63  ;;  %v3143_v62 = vld [vmem:[%s4061_s7 + $0x250] sm:$0xf] }
  0x4e   : > { %1757 = vmatmul.bf16.gmra.mxu0 %v2912_v11  ;;  %2362 = vmatpush.bf16.msra.mxu3 %v3910_v13  ;;  %v3735_v11 = vld [vmem:[%s4061_s7 + $0x100] sm:$0xf0]  ;;  %v2957_v13 = vld [vmem:[%s4061_s7 + $0x104] sm:$0xf0]  ;;  %v3781_v63 = vld [vmem:[%s4061_s7 + $0x270] sm:$0xf0] }
  0x4f   : > { %2184 = vmatpush.bf16.msra.mxu1 %v3894_v14  ;;  %2451 = vmatpush.bf16.msra.mxu0 %v3918_v15  ;;  %v2963_v14 = vld [vmem:[%s4061_s7 + $0xe8] sm:$0xf]  ;;  %v3736_v15 = vld [vmem:[%s4061_s7 + $0x108] sm:$0xf0]  ;;  %v2956_v17 = vor.u32 %v3735_v11, %v2955_v10  ;;  %v2960_v18 = vor.u32 %v3731_v12, %v2957_v13 }
  0x50   : > { %v2964_v19 = vor.u32 %v3736_v15, %v2963_v14  ;;  %v3898_v14 = vld [vmem:[%s4823_s1 + $0x198] sm:$0xff] }
  0x51   : > { %2274 = vmatpush.bf16.msra.mxu2 %v3901_v40  ;;  %v3906_v15 = vld [vmem:[%s4823_s1 + $0x1d8] sm:$0xff] }
  0x52   : > { %2363 = vmatpush.bf16.msra.mxu3 %v3909_v41  ;;  %v3915_v41 = vld [vmem:[%s4823_s1 + $0x220] sm:$0xff] }
  0x53   : > { %2185 = vmatpush.bf16.msra.mxu1 %v3893_v42  ;;  %2452 = vmatpush.bf16.msra.mxu0 %v3917_v43  ;;  %v3748_v42 = vld [vmem:[%s4061_s7 + $0x16c] sm:$0xf]  ;;  %v3021_v43 = vld [vmem:[%s4061_s7 + $0x18c] sm:$0xf0] }
  0x55   : > { %2275 = vmatpush.bf16.msra.mxu2 %v3900_v4  ;;  %v3071_v4 = vld [vmem:[%s4061_s7 + $0x1c0] sm:$0xf] }
  0x56   : > { %2364 = vmatpush.bf16.msra.mxu3 %v3908_v5  ;;  %v3763_v5 = vld [vmem:[%s4061_s7 + $0x1e0] sm:$0xf0] }
  0x57   : > { %2186 = vmatpush.bf16.msra.mxu1 %v3892_v6  ;;  %2453 = vmatpush.bf16.msra.mxu0 %v3916_v7  ;;  %v3072_v12 = vor.u32 %v3763_v5, %v3071_v4 }
  0x59   : > { %2276 = vmatpush.bf16.msra.mxu2 %v3899_v34  ;;  %v3096_v34 = vor.u32 %v3766_v22, %v3093_v23 }
  0x5a   : > { %2365 = vmatpush.bf16.msra.mxu3 %v3907_v35 }
  0x5b   : > { %2454 = vmatpush.bf16.msra.mxu0 %v3915_v41 }
  0x5c   : > { %1782 = vmatmul.bf16.gmra.mxu1 %v3092_v24  ;;  %1802 = vmatmul.bf16.gmra.mxu2 %v3236_v25  ;;  %v3740_v24 = vld [vmem:[%s4061_s7 + $0x12c] sm:$0xf]  ;;  %v2993_v25 = vld [vmem:[%s4061_s7 + $0x14c] sm:$0xf0] }
  0x5d   : > { %1822 = vmatmul.bf16.gmra.mxu3 %v3380_v26  ;;  %v2999_v26 = vld [vmem:[%s4061_s7 + $0x130] sm:$0xf]  ;;  %v2996_v31 = vor.u32 %v3740_v24, %v2993_v25  ;;  %2277 = vmatpush.bf16.msra.mxu2 %v3898_v14  ;;  %v3099_v24 = vld [vmem:[%s4061_s7 + $0x200] sm:$0xf]  ;;  %v3771_v25 = vld [vmem:[%s4061_s7 + $0x220] sm:$0xf0] }
  0x5e   : > { %1762 = vmatmul.bf16.gmra.mxu0 %v2948_v27  ;;  %v3745_v27 = vld [vmem:[%s4061_s7 + $0x150] sm:$0xf0]  ;;  %2366 = vmatpush.bf16.msra.mxu3 %v3906_v15  ;;  %v3100_v35 = vor.u32 %v3771_v25, %v3099_v24 }
  0x5f   : > { %v3000_v32 = vor.u32 %v3745_v27, %v2999_v26  ;;  %2455 = vmatpush.bf16.msra.mxu0 %v3914_v21  ;;  %v3767_v26 = vld [vmem:[%s4061_s7 + $0x204] sm:$0xf]  ;;  %v3101_v27 = vld [vmem:[%s4061_s7 + $0x224] sm:$0xf0]  ;;  %v3905_v14 = vld [vmem:[%s4823_s1 + $0x1d0] sm:$0xff] }
  0x60   : > { %v3104_v41 = vor.u32 %v3767_v26, %v3101_v27  ;;  %v3889_v25 = vld [vmem:[%s4823_s1 + $0x150] sm:$0xff]  ;;  %v3784_v27 = vld [vmem:[%s4061_s7 + $0x28c] sm:$0xf] }
  0x61   : > { %v3913_v26 = vld [vmem:[%s4823_s1 + $0x210] sm:$0xff] }
  0x62   : > { %2367 = vmatpush.bf16.msra.mxu3 %v3905_v14 }
  0x63   : > { %2456 = vmatpush.bf16.msra.mxu0 %v3913_v26  ;;  %v3209_v26 = vld [vmem:[%s4061_s7 + $0x2fc] sm:$0xf0] }
  0x6c   : > { %1836 = vmatmul.bf16.vlgmr.msrb.gmra.mxu1 %v2844_v36  ;;  %1925 = vmatmul.bf16.vlgmr.msrb.gmra.mxu2 %v2848_v37 }
  0x6d   : > { %2014 = vmatmul.bf16.vlgmr.msrb.gmra.mxu3 %v2852_v38  ;;  %v3891_v38 = vld [vmem:[%s4823_s1 + $0x160] sm:$0xff] }
  0x6e   : > { %2103 = vmatmul.bf16.vlgmr.msrb.gmra.mxu0 %v2856_v39  ;;  %2187 = vmatpush.bf16.msra.mxu1 %v3891_v38 }
  0x72   : > { %2188 = vmatpush.bf16.msra.mxu1 %v3890_v20 }
  0x76   : > { %2189 = vmatpush.bf16.msra.mxu1 %v3889_v25  ;;  %v3794_v25 = vld [vmem:[%s4061_s7 + $0x2dc] sm:$0xf] }
  0x7c   : > { %1841 = vmatmul.bf16.gmra.mxu1 %v2880_v52  ;;  %1930 = vmatmul.bf16.gmra.mxu2 %v2884_v53  ;;  %v3024_v52 = vor.u32 %v3748_v42, %v3021_v43  ;;  %v3028_v53 = vor.u32 %v3753_v45, %v3027_v44 }
  0x7d   : > { %2019 = vmatmul.bf16.gmra.mxu3 %v2888_v54 }
  0x7e   : > { %2108 = vmatmul.bf16.gmra.mxu0 %v2892_v55  ;;  %v3032_v55 = vor.u32 %v3749_v46, %v3029_v47 }
  0x8c   : > { %1846 = vmatmul.bf16.gmra.mxu1 %v2916_v0  ;;  %1935 = vmatmul.bf16.gmra.mxu2 %v2920_v1  ;;  %v3063_v0 = vld [vmem:[%s4061_s7 + $0x1b8] sm:$0xf]  ;;  %v3762_v1 = vld [vmem:[%s4061_s7 + $0x1d8] sm:$0xf0] }
  0x8d   : > { %2024 = vmatmul.bf16.gmra.mxu3 %v2924_v2  ;;  %v3758_v2 = vld [vmem:[%s4061_s7 + $0x1bc] sm:$0xf]  ;;  %v3064_v9 = vor.u32 %v3762_v1, %v3063_v0 }
  0x8e   : > { %2113 = vmatmul.bf16.gmra.mxu0 %v2928_v3  ;;  %v3065_v3 = vld [vmem:[%s4061_s7 + $0x1dc] sm:$0xf0] }
  0x8f   : > { %v3068_v11 = vor.u32 %v3758_v2, %v3065_v3  ;;  %v3132_v2 = vor.u32 %v3775_v48, %v3129_v49  ;;  %v3790_v48 = vld [vmem:[%s4061_s7 + $0x2b8] sm:$0xf0] }
  0x9c   : > { %1851 = vmatmul.bf16.gmra.mxu1 %v2952_v16  ;;  %1940 = vmatmul.bf16.gmra.mxu2 %v2956_v17 }
  0x9d   : > { %2029 = vmatmul.bf16.gmra.mxu3 %v2960_v18 }
  0x9e   : > { %2118 = vmatmul.bf16.gmra.mxu0 %v2964_v19 }
  0xa9   : > { %v4270_v30 = vpop.f32.mrf.mxu1 }
  0xab   : > { %v4272_v33 = vpop.f32.mrf.mxu0 }
  0xac   : > { %1856 = vmatmul.bf16.gmra.mxu1 %v2988_v28  ;;  %1945 = vmatmul.bf16.gmra.mxu2 %v2992_v29  ;;  %v3107_v28 = vld [vmem:[%s4061_s7 + $0x208] sm:$0xf]  ;;  %v3772_v29 = vld [vmem:[%s4061_s7 + $0x228] sm:$0xf0] }
  0xad   : > { %2034 = vmatmul.bf16.gmra.mxu3 %v2996_v31  ;;  %v3108_v42 = vor.u32 %v3772_v29, %v3107_v28  ;;  %v3165_v28 = vld [vmem:[%s4061_s7 + $0x2ac] sm:$0xf0] }
  0xae   : > { %2123 = vmatmul.bf16.gmra.mxu0 %v3000_v32 }
  0xaf   : > { %v4280_v36 = vpop.f32.mrf.mxu2 }
  0xb0   : > { %v4282_v37 = vpop.f32.mrf.mxu3 }
  0xb1   : > { %v4287_v39 = vpop.f32.mrf.mxu1 }
  0xb3   : > { %v4289_v40 = vpop.f32.mrf.mxu0 }
  0xb7   : > { %v4302_v50 = vpop.f32.mrf.mxu2 }
  0xb8   : > { %v4304_v51 = vpop.f32.mrf.mxu3 }
  0xb9   : > { %v4306_v54 = vpop.f32.mrf.mxu1 }
  0xbb   : > { %v4308_v57 = vpop.f32.mrf.mxu0 }
  0xbc   : > { %1861 = vmatmul.bf16.gmra.mxu1 %v3024_v52  ;;  %1950 = vmatmul.bf16.gmra.mxu2 %v3028_v53  ;;  %v3135_v52 = vld [vmem:[%s4061_s7 + $0x248] sm:$0xf]  ;;  %v3780_v53 = vld [vmem:[%s4061_s7 + $0x268] sm:$0xf0] }
  0xbd   : > { %2039 = vmatmul.bf16.gmra.mxu3 %v3032_v55  ;;  %v3776_v55 = vld [vmem:[%s4061_s7 + $0x24c] sm:$0xf]  ;;  %v3136_v3 = vor.u32 %v3780_v53, %v3135_v52 }
  0xbe   : > { %2128 = vmatmul.bf16.gmra.mxu0 %v3036_v56  ;;  %v3137_v56 = vld [vmem:[%s4061_s7 + $0x26c] sm:$0xf0] }
  0xbf   : > { %v4310_v58 = vpop.f32.mrf.mxu2  ;;  %v3140_v5 = vor.u32 %v3776_v55, %v3137_v56  ;;  %v3168_v55 = vor.u32 %v3784_v27, %v3165_v28  ;;  %v3215_v27 = vld [vmem:[%s4061_s7 + $0x2e0] sm:$0xf]  ;;  %v3799_v28 = vld [vmem:[%s4061_s7 + $0x300] sm:$0xf0] }
  0xc0   : > { %v4312_v59 = vpop.f32.mrf.mxu3 }
  0xc1   : > { %v4314_v60 = vpop.f32.mrf.mxu1 }
  0xc3   : > { %v4316_v61 = vpop.f32.mrf.mxu0 }
  0xc7   : > { %v4326_v6 = vpop.f32.mrf.mxu2 }
  0xc8   : > { %v4328_v7 = vpop.f32.mrf.mxu3 }
  0xc9   : > { %v4330_v10 = vpop.f32.mrf.mxu1 }
  0xcb   : > { %v4332_v13 = vpop.f32.mrf.mxu0 }
  0xcc   : > { %1866 = vmatmul.bf16.gmra.mxu1 %v3060_v8  ;;  %1955 = vmatmul.bf16.gmra.mxu2 %v3064_v9  ;;  %v3144_v8 = vor.u32 %v3781_v63, %v3143_v62 }
  0xcd   : > { %2044 = vmatmul.bf16.gmra.mxu3 %v3068_v11 }
  0xce   : > { %2133 = vmatmul.bf16.gmra.mxu0 %v3072_v12  ;;  %v3897_v12 = vld [vmem:[%s4823_s1 + $0x190] sm:$0xff] }
  0xcf   : > { %v4340_v16 = vpop.f32.mrf.mxu2  ;;  %2278 = vmatpush.bf16.msra.mxu2 %v3897_v12 }
  0xd0   : > { %v4342_v17 = vpop.f32.mrf.mxu3 }
  0xd1   : > { %v4344_v18 = vpop.f32.mrf.mxu1 }
  0xd3   : > { %v4346_v19 = vpop.f32.mrf.mxu0 }
  0xd7   : > { %v4362_v31 = vpop.f32.mrf.mxu2 }
  0xd8   : > { %v4364_v32 = vpop.f32.mrf.mxu3 }
  0xd9   : > { %v4366_v38 = vpop.f32.mrf.mxu1 }
  0xdb   : > { %v4368_v43 = vpop.f32.mrf.mxu0 }
  0xdc   : > { %1871 = vmatmul.bf16.gmra.mxu1 %v3096_v34  ;;  %1960 = vmatmul.bf16.gmra.mxu2 %v3100_v35  ;;  %v3171_v34 = vld [vmem:[%s4061_s7 + $0x290] sm:$0xf]  ;;  %v3789_v35 = vld [vmem:[%s4061_s7 + $0x2b0] sm:$0xf0] }
  0xdd   : > { %2049 = vmatmul.bf16.gmra.mxu3 %v3104_v41  ;;  %v3785_v41 = vld [vmem:[%s4061_s7 + $0x294] sm:$0xf]  ;;  %v3172_v56 = vor.u32 %v3789_v35, %v3171_v34 }
  0xde   : > { %2138 = vmatmul.bf16.gmra.mxu0 %v3108_v42  ;;  %v3173_v42 = vld [vmem:[%s4061_s7 + $0x2b4] sm:$0xf0] }
  0xdf   : > { %v4370_v44 = vpop.f32.mrf.mxu2  ;;  %v3176_v63 = vor.u32 %v3785_v41, %v3173_v42 }
  0xe0   : > { %v4372_v45 = vpop.f32.mrf.mxu3 }
  0xe1   : > { %v4374_v46 = vpop.f32.mrf.mxu1 }
  0xe3   : > { %v4376_v47 = vpop.f32.mrf.mxu0 }
  0xe7   : > { %v4386_v0 = vpop.f32.mrf.mxu2 }
  0xe8   : > { %v4388_v1 = vpop.f32.mrf.mxu3 }
  0xe9   : > { %v1837_v4 = vpop.f32.mrf.mxu1 }
  0xea   : > { %v1838_v9 = vadd.f32 %v1837_v4, %v4272_v33 }
  0xeb   : > { %v2104_v11 = vpop.f32.mrf.mxu0 }
  0xec   : > { %1876 = vmatmul.bf16.gmra.mxu1 %v3132_v2  ;;  %1965 = vmatmul.bf16.gmra.mxu2 %v3136_v3 }
  0xed   : > { %2054 = vmatmul.bf16.gmra.mxu3 %v3140_v5 }
  0xee   : > { %2143 = vmatmul.bf16.gmra.mxu0 %v3144_v8 }
  0xef   : > { %v1926_v15 = vpop.f32.mrf.mxu2 }
  0xf0   : > { %v1927_v33 = vadd.f32 %v1926_v15, %v1838_v9  ;;  %v2015_v20 = vpop.f32.mrf.mxu3 }
  0xf1   : > { %v1839_v21 = vpop.f32.mrf.mxu1 }
  0xf2   : > { %v2016_v22 = vadd.f32 %v2015_v20, %v1927_v33  ;;  %v1840_v23 = vadd.f32 %v1839_v21, %v4289_v40  ;;  %v3179_v40 = vld [vmem:[%s4061_s7 + $0x298] sm:$0xf]  ;;  %v3793_v20 = vld [vmem:[%s4061_s7 + $0x2d4] sm:$0xf] }
  0xf3   : > { %v2106_v24 = vpop.f32.mrf.mxu0  ;;  %v3180_v2 = vor.u32 %v3790_v48, %v3179_v40  ;;  %v3201_v21 = vld [vmem:[%s4061_s7 + $0x2f4] sm:$0xf0] }
  0xf4   : > { %v4406_v29 = vadd.f32 %v2104_v11, %v2016_v22  ;;  %v3204_v42 = vor.u32 %v3793_v20, %v3201_v21  ;;  %v3243_v20 = vld [vmem:[%s4061_s7 + $0x320] sm:$0xf]  ;;  %v3807_v21 = vld [vmem:[%s4061_s7 + $0x340] sm:$0xf0] }
  0xf7   : > { %v1928_v49 = vpop.f32.mrf.mxu2 }
  0xf8   : > { %v1929_v52 = vadd.f32 %v1928_v49, %v1840_v23  ;;  %v2017_v53 = vpop.f32.mrf.mxu3  ;;  %v3207_v23 = vld [vmem:[%s4061_s7 + $0x2d8] sm:$0xf]  ;;  %v3212_v49 = vor.u32 %v3794_v25, %v3209_v26  ;;  %v3808_v25 = vld [vmem:[%s4061_s7 + $0x348] sm:$0xf0] }
  0xf9   : > { %v1842_v62 = vpop.f32.mrf.mxu1 }
  0xfa   : > { %v2018_v3 = vadd.f32 %v2017_v53, %v1929_v52  ;;  %v1843_v4 = vadd.f32 %v1842_v62, %v4308_v57  ;;  %v3216_v52 = vor.u32 %v3799_v28, %v3215_v27  ;;  %v3896_v62 = vld [vmem:[%s4823_s1 + $0x188] sm:$0xff] }
  0xfb   : > { %v2109_v5 = vpop.f32.mrf.mxu0  ;;  %2279 = vmatpush.bf16.msra.mxu2 %v3896_v62 }
  0xfc   : > { %1881 = vmatmul.bf16.gmra.mxu1 %v3168_v55  ;;  %1970 = vmatmul.bf16.gmra.mxu2 %v3172_v56  ;;  %v4415_v8 = vadd.f32 %v2106_v24, %v2018_v3  ;;  %v3798_v24 = vld [vmem:[%s4061_s7 + $0x2f8] sm:$0xf0] }
  0xfd   : > { %2059 = vmatmul.bf16.gmra.mxu3 %v3176_v63  ;;  %v3208_v40 = vor.u32 %v3798_v24, %v3207_v23  ;;  %v3904_v63 = vld [vmem:[%s4823_s1 + $0x1c8] sm:$0xff]  ;;  %v3803_v23 = vld [vmem:[%s4061_s7 + $0x324] sm:$0xf] }
  0xfe   : > { %2148 = vmatmul.bf16.gmra.mxu0 %v3180_v2  ;;  %2368 = vmatpush.bf16.msra.mxu3 %v3904_v63  ;;  %v3245_v24 = vld [vmem:[%s4061_s7 + $0x344] sm:$0xf0] }
  0xff   : > { %v1931_v9 = vpop.f32.mrf.mxu2 }
 0x100   : > { %v1932_v11 = vadd.f32 %v1931_v9, %v1843_v4  ;;  %v2020_v12 = vpop.f32.mrf.mxu3 }
 0x101   : > { %v1844_v14 = vpop.f32.mrf.mxu1 }
 0x102   : > { %v2021_v15 = vadd.f32 %v2020_v12, %v1932_v11  ;;  %v1845_v57 = vadd.f32 %v1844_v14, %v4316_v61  ;;  %v3888_v12 = vld [vmem:[%s4823_s1 + $0x148] sm:$0xff] }
 0x103   : > { %v2111_v33 = vpop.f32.mrf.mxu0  ;;  %v3912_v14 = vld [vmem:[%s4823_s1 + $0x208] sm:$0xff]  ;;  %2190 = vmatpush.bf16.msra.mxu1 %v3888_v12 }
 0x104   : > { %v4420_v22 = vadd.f32 %v2109_v5, %v2021_v15  ;;  %v3802_v15 = vld [vmem:[%s4061_s7 + $0x31c] sm:$0xf]  ;;  %2457 = vmatpush.bf16.msra.mxu0 %v3912_v14  ;;  %v3812_v12 = vld [vmem:[%s4061_s7 + $0x36c] sm:$0xf]  ;;  %v3281_v14 = vld [vmem:[%s4061_s7 + $0x38c] sm:$0xf0] }
 0x107   : > { %v1933_v34 = vpop.f32.mrf.mxu2 }
 0x108   : > { %v1934_v35 = vadd.f32 %v1933_v34, %v1845_v57  ;;  %v2022_v41 = vpop.f32.mrf.mxu3  ;;  %v3237_v57 = vld [vmem:[%s4061_s7 + $0x33c] sm:$0xf0] }
 0x109   : > { %v1847_v48 = vpop.f32.mrf.mxu1  ;;  %v3240_v34 = vor.u32 %v3802_v15, %v3237_v57  ;;  %v3287_v15 = vld [vmem:[%s4061_s7 + $0x370] sm:$0xf]  ;;  %v3817_v57 = vld [vmem:[%s4061_s7 + $0x390] sm:$0xf0] }
 0x10a   : > { %v2023_v61 = vadd.f32 %v2022_v41, %v1934_v35  ;;  %v1848_v53 = vadd.f32 %v1847_v48, %v4332_v13  ;;  %v3244_v35 = vor.u32 %v3807_v21, %v3243_v20 }
 0x10b   : > { %v2114_v55 = vpop.f32.mrf.mxu0 }
 0x10c   : > { %1886 = vmatmul.bf16.gmra.mxu1 %v3204_v42  ;;  %1975 = vmatmul.bf16.gmra.mxu2 %v3208_v40  ;;  %v4429_v56 = vadd.f32 %v2111_v33, %v2023_v61  ;;  %v3248_v42 = vor.u32 %v3803_v23, %v3245_v24 }
 0x10d   : > { %2064 = vmatmul.bf16.gmra.mxu3 %v3212_v49 }
 0x10e   : > { %2153 = vmatmul.bf16.gmra.mxu0 %v3216_v52 }
 0x10f   : > { %v1936_v2 = vpop.f32.mrf.mxu2 }
 0x110   : > { %v1937_v13 = vadd.f32 %v1936_v2, %v1848_v53  ;;  %v2025_v3 = vpop.f32.mrf.mxu3 }
 0x111   : > { %v1849_v4 = vpop.f32.mrf.mxu1 }
 0x112   : > { %v2026_v5 = vadd.f32 %v2025_v3, %v1937_v13  ;;  %v1850_v9 = vadd.f32 %v1849_v4, %v4346_v19  ;;  %v3251_v19 = vld [vmem:[%s4061_s7 + $0x328] sm:$0xf]  ;;  %v3811_v3 = vld [vmem:[%s4061_s7 + $0x364] sm:$0xf] }
 0x113   : > { %v2116_v11 = vpop.f32.mrf.mxu0  ;;  %v3252_v40 = vor.u32 %v3808_v25, %v3251_v19  ;;  %v3273_v4 = vld [vmem:[%s4061_s7 + $0x384] sm:$0xf0] }
 0x114   : > { %v4446_v33 = vadd.f32 %v2114_v55, %v2026_v5  ;;  %v3276_v24 = vor.u32 %v3811_v3, %v3273_v4  ;;  %v3825_v3 = vld [vmem:[%s4061_s7 + $0x3d0] sm:$0xf0] }
 0x115   : > { %v3821_v4 = vld [vmem:[%s4061_s7 + $0x3b4] sm:$0xf] }
 0x117   : > { %v1938_v26 = vpop.f32.mrf.mxu2 }
 0x118   : > { %v1939_v27 = vadd.f32 %v1938_v26, %v1850_v9  ;;  %v2027_v28 = vpop.f32.mrf.mxu3  ;;  %v3279_v9 = vld [vmem:[%s4061_s7 + $0x368] sm:$0xf]  ;;  %v3284_v26 = vor.u32 %v3812_v12, %v3281_v14  ;;  %v3323_v12 = vld [vmem:[%s4061_s7 + $0x3b8] sm:$0xf]  ;;  %v3826_v14 = vld [vmem:[%s4061_s7 + $0x3d8] sm:$0xf0] }
 0x119   : > { %v1852_v41 = vpop.f32.mrf.mxu1 }
 0x11a   : > { %v2028_v48 = vadd.f32 %v2027_v28, %v1939_v27  ;;  %v1853_v49 = vadd.f32 %v1852_v41, %v4368_v43  ;;  %v3288_v27 = vor.u32 %v3817_v57, %v3287_v15  ;;  %v3903_v41 = vld [vmem:[%s4823_s1 + $0x1c0] sm:$0xff] }
 0x11b   : > { %v2119_v52 = vpop.f32.mrf.mxu0  ;;  %2369 = vmatpush.bf16.msra.mxu3 %v3903_v41 }
 0x11c   : > { %1891 = vmatmul.bf16.gmra.mxu1 %v3240_v34  ;;  %1980 = vmatmul.bf16.gmra.mxu2 %v3244_v35  ;;  %v4455_v61 = vadd.f32 %v2116_v11, %v2028_v48  ;;  %v3816_v11 = vld [vmem:[%s4061_s7 + $0x388] sm:$0xf0]  ;;  %v3895_v35 = vld [vmem:[%s4823_s1 + $0x180] sm:$0xff] }
 0x11d   : > { %2069 = vmatmul.bf16.gmra.mxu3 %v3248_v42  ;;  %v3280_v19 = vor.u32 %v3816_v11, %v3279_v9  ;;  %2280 = vmatpush.bf16.msra.mxu2 %v3895_v35  ;;  %v3317_v11 = vld [vmem:[%s4061_s7 + $0x3d4] sm:$0xf0] }
 0x11e   : > { %2158 = vmatmul.bf16.gmra.mxu0 %v3252_v40 }
 0x11f   : > { %v1941_v53 = vpop.f32.mrf.mxu2 }
 0x120   : > { %v1942_v55 = vadd.f32 %v1941_v53, %v1853_v49  ;;  %v2030_v62 = vpop.f32.mrf.mxu3 }
 0x121   : > { %v1854_v63 = vpop.f32.mrf.mxu1 }
 0x122   : > { %v2031_v2 = vadd.f32 %v2030_v62, %v1942_v55  ;;  %v1855_v43 = vadd.f32 %v1854_v63, %v4376_v47  ;;  %v3887_v62 = vld [vmem:[%s4823_s1 + $0x140] sm:$0xff]  ;;  %v3820_v63 = vld [vmem:[%s4061_s7 + $0x3ac] sm:$0xf] }
 0x123   : > { %v2121_v13 = vpop.f32.mrf.mxu0  ;;  %2191 = vmatpush.bf16.msra.mxu1 %v3887_v62  ;;  %v3351_v62 = vld [vmem:[%s4061_s7 + $0x3f8] sm:$0xf] }
 0x124   : > { %v4460_v5 = vadd.f32 %v2119_v52, %v2031_v2  ;;  %v3309_v2 = vld [vmem:[%s4061_s7 + $0x3cc] sm:$0xf0] }
 0x127   : > { %v1943_v20 = vpop.f32.mrf.mxu2 }
 0x128   : > { %v1944_v21 = vadd.f32 %v1943_v20, %v1855_v43  ;;  %v2032_v23 = vpop.f32.mrf.mxu3 }
 0x129   : > { %v1857_v25 = vpop.f32.mrf.mxu1 }
 0x12a   : > { %v2033_v47 = vadd.f32 %v2032_v23, %v1944_v21  ;;  %v1858_v42 = vadd.f32 %v1857_v25, %v4270_v30  ;;  %v3911_v30 = vld [vmem:[%s4823_s1 + $0x200] sm:$0xff]  ;;  %v3312_v21 = vor.u32 %v3820_v63, %v3309_v2  ;;  %v3324_v25 = vor.u32 %v3826_v14, %v3323_v12 }
 0x12b   : > { %v2124_v28 = vpop.f32.mrf.mxu0  ;;  %2458 = vmatpush.bf16.msra.mxu0 %v3911_v30  ;;  %v3830_v30 = vld [vmem:[%s4061_s7 + $0x3fc] sm:$0xf]  ;;  %v3353_v2 = vld [vmem:[%s4061_s7 + $0x41c] sm:$0xf0] }
 0x12c   : > { %1896 = vmatmul.bf16.gmra.mxu1 %v3276_v24  ;;  %1985 = vmatmul.bf16.gmra.mxu2 %v3280_v19  ;;  %v4468_v34 = vadd.f32 %v2121_v13, %v2033_v47  ;;  %v3315_v13 = vld [vmem:[%s4061_s7 + $0x3b0] sm:$0xf]  ;;  %v3320_v19 = vor.u32 %v3821_v4, %v3317_v11 }
 0x12d   : > { %2074 = vmatmul.bf16.gmra.mxu3 %v3284_v26  ;;  %v3316_v23 = vor.u32 %v3825_v3, %v3315_v13  ;;  %v3359_v13 = vld [vmem:[%s4061_s7 + $0x400] sm:$0xf]  ;;  %v3835_v3 = vld [vmem:[%s4061_s7 + $0x420] sm:$0xf0] }
 0x12e   : > { %2163 = vmatmul.bf16.gmra.mxu0 %v3288_v27 }
 0x12f   : > { %v1946_v40 = vpop.f32.mrf.mxu2 }
 0x130   : > { %v1947_v48 = vadd.f32 %v1946_v40, %v1858_v42  ;;  %v2035_v49 = vpop.f32.mrf.mxu3 }
 0x131   : > { %v1859_v52 = vpop.f32.mrf.mxu1 }
 0x132   : > { %v2036_v53 = vadd.f32 %v2035_v49, %v1947_v48  ;;  %v1860_v9 = vadd.f32 %v1859_v52, %v4287_v39  ;;  %v3829_v49 = vld [vmem:[%s4061_s7 + $0x3f4] sm:$0xf]  ;;  %v3345_v52 = vld [vmem:[%s4061_s7 + $0x414] sm:$0xf0] }
 0x133   : > { %v2126_v55 = vpop.f32.mrf.mxu0  ;;  %v3348_v11 = vor.u32 %v3829_v49, %v3345_v52  ;;  %v3389_v52 = vld [vmem:[%s4061_s7 + $0x464] sm:$0xf0] }
 0x134   : > { %v4485_v43 = vadd.f32 %v2124_v28, %v2036_v53 }
 0x137   : > { %v1948_v15 = vpop.f32.mrf.mxu2 }
 0x138   : > { %v1949_v57 = vadd.f32 %v1948_v15, %v1860_v9  ;;  %v2037_v20 = vpop.f32.mrf.mxu3  ;;  %v3356_v15 = vor.u32 %v3830_v30, %v3353_v2 }
 0x139   : > { %v1862_v24 = vpop.f32.mrf.mxu1 }
 0x13a   : > { %v2038_v26 = vadd.f32 %v2037_v20, %v1949_v57  ;;  %v1863_v47 = vadd.f32 %v1862_v24, %v4306_v54  ;;  %v3360_v57 = vor.u32 %v3835_v3, %v3359_v13 }
 0x13b   : > { %v2129_v27 = vpop.f32.mrf.mxu0 }
 0x13c   : > { %1901 = vmatmul.bf16.gmra.mxu1 %v3312_v21  ;;  %1990 = vmatmul.bf16.gmra.mxu2 %v3316_v23  ;;  %v4494_v39 = vadd.f32 %v2126_v55, %v2038_v26  ;;  %v3834_v55 = vld [vmem:[%s4061_s7 + $0x418] sm:$0xf0] }
 0x13d   : > { %2079 = vmatmul.bf16.gmra.mxu3 %v3320_v19  ;;  %v3352_v12 = vor.u32 %v3834_v55, %v3351_v62  ;;  %v3395_v62 = vld [vmem:[%s4061_s7 + $0x448] sm:$0xf]  ;;  %v3844_v55 = vld [vmem:[%s4061_s7 + $0x468] sm:$0xf0] }
 0x13e   : > { %2168 = vmatmul.bf16.gmra.mxu0 %v3324_v25 }
 0x13f   : > { %v1951_v28 = vpop.f32.mrf.mxu2 }
 0x140   : > { %v1952_v35 = vadd.f32 %v1951_v28, %v1863_v47  ;;  %v2040_v41 = vpop.f32.mrf.mxu3  ;;  %v3838_v28 = vld [vmem:[%s4061_s7 + $0x43c] sm:$0xf] }
 0x141   : > { %v1864_v42 = vpop.f32.mrf.mxu1 }
 0x142   : > { %v2041_v40 = vadd.f32 %v2040_v41, %v1952_v35  ;;  %v1865_v63 = vadd.f32 %v1864_v42, %v4314_v60  ;;  %v3381_v35 = vld [vmem:[%s4061_s7 + $0x45c] sm:$0xf0] }
 0x143   : > { %v2131_v48 = vpop.f32.mrf.mxu0  ;;  %v3387_v42 = vld [vmem:[%s4061_s7 + $0x440] sm:$0xf]  ;;  %v3384_v2 = vor.u32 %v3838_v28, %v3381_v35 }
 0x144   : > { %v4499_v53 = vadd.f32 %v2129_v27, %v2041_v40  ;;  %v3843_v40 = vld [vmem:[%s4061_s7 + $0x460] sm:$0xf0]  ;;  %v2865_v35 = vld [vmem:[%s4061_s7 + $0x3c] sm:$0xf0] }
 0x145   : > { %v3388_v13 = vor.u32 %v3843_v40, %v3387_v42  ;;  %v2871_v42 = vld [vmem:[%s4061_s7 + $0x20] sm:$0xf]  ;;  %v3711_v40 = vld [vmem:[%s4061_s7 + $0x40] sm:$0xf0] }
 0x147   : > { %v1953_v54 = vpop.f32.mrf.mxu2 }
 0x148   : > { %v1954_v4 = vadd.f32 %v1953_v54, %v1865_v63  ;;  %v2042_v9 = vpop.f32.mrf.mxu3 }
 0x149   : > { %v1867_v14 = vpop.f32.mrf.mxu1 }
 0x14a   : > { %v2043_v20 = vadd.f32 %v2042_v9, %v1954_v4  ;;  %v1868_v23 = vadd.f32 %v1867_v14, %v4330_v10  ;;  %v3396_v4 = vor.u32 %v3844_v55, %v3395_v62 }
 0x14b   : > { %v2134_v21 = vpop.f32.mrf.mxu0 }
 0x14c   : > { %1906 = vmatmul.bf16.gmra.mxu1 %v3348_v11  ;;  %1995 = vmatmul.bf16.gmra.mxu2 %v3352_v12  ;;  %v4508_v60 = vadd.f32 %v2131_v48, %v2043_v20  ;;  %v3839_v48 = vld [vmem:[%s4061_s7 + $0x444] sm:$0xf] }
 0x14d   : > { %2084 = vmatmul.bf16.gmra.mxu3 %v3356_v15  ;;  %v3392_v54 = vor.u32 %v3839_v48, %v3389_v52 }
 0x14e   : > { %2173 = vmatmul.bf16.gmra.mxu0 %v3360_v57 }
 0x14f   : > { %v1956_v24 = vpop.f32.mrf.mxu2 }
 0x150   : > { %v1957_v19 = vadd.f32 %v1956_v24, %v1868_v23  ;;  %v2045_v25 = vpop.f32.mrf.mxu3  ;;  %v3705_v24 = vld [vmem:[%s4061_s7 + $0x14] sm:$0xf] }
 0x151   : > { %v1869_v26 = vpop.f32.mrf.mxu1 }
 0x152   : > { %v2046_v27 = vadd.f32 %v2045_v25, %v1957_v19  ;;  %v1870_v49 = vadd.f32 %v1869_v26, %v4344_v18  ;;  %v2857_v19 = vld [vmem:[%s4061_s7 + $0x34] sm:$0xf0] }
 0x153   : > { %v2136_v47 = vpop.f32.mrf.mxu0  ;;  %v2863_v26 = vld [vmem:[%s4061_s7 + $0x18] sm:$0xf]  ;;  %v2860_v52 = vor.u32 %v3705_v24, %v2857_v19  ;;  %v2901_v19 = vld [vmem:[%s4061_s7 + $0x84] sm:$0xf0] }
 0x154   : > { %v4513_v41 = vadd.f32 %v2134_v21, %v2046_v27  ;;  %v3710_v27 = vld [vmem:[%s4061_s7 + $0x38] sm:$0xf0] }
 0x155   : > { %v2864_v62 = vor.u32 %v3710_v27, %v2863_v26  ;;  %v2907_v26 = vld [vmem:[%s4061_s7 + $0x68] sm:$0xf]  ;;  %v3720_v27 = vld [vmem:[%s4061_s7 + $0x88] sm:$0xf0] }
 0x157   : > { %v1958_v10 = vpop.f32.mrf.mxu2 }
 0x158   : > { %v1959_v30 = vadd.f32 %v1958_v10, %v1870_v49  ;;  %v2047_v63 = vpop.f32.mrf.mxu3 }
 0x159   : > { %v1872_v3 = vpop.f32.mrf.mxu1 }
 0x15a   : > { %v2048_v9 = vadd.f32 %v2047_v63, %v1959_v30  ;;  %v1873_v12 = vadd.f32 %v1872_v3, %v4366_v38  ;;  %v2872_v30 = vor.u32 %v3711_v40, %v2871_v42 }
 0x15b   : > { %v2139_v11 = vpop.f32.mrf.mxu0 }
 0x15c   : > { %1911 = vmatmul.bf16.gmra.mxu1 %v3384_v2  ;;  %2000 = vmatmul.bf16.gmra.mxu2 %v3388_v13  ;;  %v4522_v18 = vadd.f32 %v2136_v47, %v2048_v9  ;;  %v3706_v47 = vld [vmem:[%s4061_s7 + $0x1c] sm:$0xf] }
 0x15d   : > { %2089 = vmatmul.bf16.gmra.mxu3 %v3392_v54  ;;  %v2868_v10 = vor.u32 %v3706_v47, %v2865_v35 }
 0x15e   : > { %2178 = vmatmul.bf16.gmra.mxu0 %v3396_v4 }
 0x15f   : > { %v1961_v14 = vpop.f32.mrf.mxu2 }
 0x160   : > { %v1962_v15 = vadd.f32 %v1961_v14, %v1873_v12  ;;  %v2050_v57 = vpop.f32.mrf.mxu3  ;;  %v3714_v14 = vld [vmem:[%s4061_s7 + $0x5c] sm:$0xf] }
 0x161   : > { %v1874_v20 = vpop.f32.mrf.mxu1 }
 0x162   : > { %v2051_v21 = vadd.f32 %v2050_v57, %v1962_v15  ;;  %v1875_v28 = vadd.f32 %v1874_v20, %v4374_v46  ;;  %v2893_v15 = vld [vmem:[%s4061_s7 + $0x7c] sm:$0xf0] }
 0x163   : > { %v2141_v23 = vpop.f32.mrf.mxu0  ;;  %v2899_v20 = vld [vmem:[%s4061_s7 + $0x60] sm:$0xf]  ;;  %v2896_v35 = vor.u32 %v3714_v14, %v2893_v15  ;;  %v2937_v15 = vld [vmem:[%s4061_s7 + $0xcc] sm:$0xf0] }
 0x164   : > { %v4527_v25 = vadd.f32 %v2139_v11, %v2051_v21  ;;  %v3719_v21 = vld [vmem:[%s4061_s7 + $0x80] sm:$0xf0] }
 0x165   : > { %v2900_v42 = vor.u32 %v3719_v21, %v2899_v20  ;;  %v2943_v20 = vld [vmem:[%s4061_s7 + $0xb0] sm:$0xf]  ;;  %v3729_v21 = vld [vmem:[%s4061_s7 + $0xd0] sm:$0xf0] }
 0x167   : > { %v1963_v38 = vpop.f32.mrf.mxu2 }
 0x168   : > { %v1964_v48 = vadd.f32 %v1963_v38, %v1875_v28  ;;  %v2052_v49 = vpop.f32.mrf.mxu3 }
 0x169   : > { %v1877_v55 = vpop.f32.mrf.mxu1 }
 0x16a   : > { %v2053_v63 = vadd.f32 %v2052_v49, %v1964_v48  ;;  %v1878_v13 = vadd.f32 %v1877_v55, %v4280_v36  ;;  %v2908_v48 = vor.u32 %v3720_v27, %v2907_v26 }
 0x16b   : > { %v2144_v2 = vpop.f32.mrf.mxu0 }
 0x16c   : > { %2192 = vmatmul.bf16.vlgmr.msra.gmra.mxu1 %v2860_v52  ;;  %2281 = vmatmul.bf16.vlgmr.msra.gmra.mxu2 %v2864_v62  ;;  %v4536_v46 = vadd.f32 %v2141_v23, %v2053_v63  ;;  %v3715_v23 = vld [vmem:[%s4061_s7 + $0x64] sm:$0xf] }
 0x16d   : > { %2370 = vmatmul.bf16.vlgmr.msra.gmra.mxu3 %v2868_v10  ;;  %v2904_v38 = vor.u32 %v3715_v23, %v2901_v19 }
 0x16e   : > { %2459 = vmatmul.bf16.vlgmr.msra.gmra.mxu0 %v2872_v30 }
 0x16f   : > { %v1966_v3 = vpop.f32.mrf.mxu2 }
 0x170   : > { %v1967_v54 = vadd.f32 %v1966_v3, %v1878_v13  ;;  %v2055_v4 = vpop.f32.mrf.mxu3  ;;  %v3723_v3 = vld [vmem:[%s4061_s7 + $0xa4] sm:$0xf] }
 0x171   : > { %v1879_v9 = vpop.f32.mrf.mxu1 }
 0x172   : > { %v2056_v11 = vadd.f32 %v2055_v4, %v1967_v54  ;;  %v1880_v24 = vadd.f32 %v1879_v9, %v4302_v50  ;;  %v2929_v54 = vld [vmem:[%s4061_s7 + $0xc4] sm:$0xf0] }
 0x173   : > { %v2146_v12 = vpop.f32.mrf.mxu0  ;;  %v2935_v9 = vld [vmem:[%s4061_s7 + $0xa8] sm:$0xf]  ;;  %v2932_v19 = vor.u32 %v3723_v3, %v2929_v54  ;;  %v2973_v54 = vld [vmem:[%s4061_s7 + $0x114] sm:$0xf0] }
 0x174   : > { %v4541_v57 = vadd.f32 %v2144_v2, %v2056_v11  ;;  %v3728_v11 = vld [vmem:[%s4061_s7 + $0xc8] sm:$0xf0] }
 0x175   : > { %v2936_v26 = vor.u32 %v3728_v11, %v2935_v9  ;;  %v2979_v9 = vld [vmem:[%s4061_s7 + $0xf8] sm:$0xf]  ;;  %v3738_v11 = vld [vmem:[%s4061_s7 + $0x118] sm:$0xf0] }
 0x177   : > { %v1968_v36 = vpop.f32.mrf.mxu2 }
 0x178   : > { %v1969_v47 = vadd.f32 %v1968_v36, %v1880_v24  ;;  %v2057_v28 = vpop.f32.mrf.mxu3 }
 0x179   : > { %v1882_v40 = vpop.f32.mrf.mxu1 }
 0x17a   : > { %v2058_v49 = vadd.f32 %v2057_v28, %v1969_v47  ;;  %v1883_v62 = vadd.f32 %v1882_v40, %v4310_v58  ;;  %v2944_v47 = vor.u32 %v3729_v21, %v2943_v20 }
 0x17b   : > { %v2149_v52 = vpop.f32.mrf.mxu0 }
 0x17c   : > { %2197 = vmatmul.bf16.gmra.mxu1 %v2896_v35  ;;  %2286 = vmatmul.bf16.gmra.mxu2 %v2900_v42  ;;  %v4550_v50 = vadd.f32 %v2146_v12, %v2058_v49  ;;  %v3724_v12 = vld [vmem:[%s4061_s7 + $0xac] sm:$0xf] }
 0x17d   : > { %2375 = vmatmul.bf16.gmra.mxu3 %v2904_v38  ;;  %v2940_v36 = vor.u32 %v3724_v12, %v2937_v15 }
 0x17e   : > { %2464 = vmatmul.bf16.gmra.mxu0 %v2908_v48 }
 0x17f   : > { %v1971_v55 = vpop.f32.mrf.mxu2 }
 0x180   : > { %v1972_v10 = vadd.f32 %v1971_v55, %v1883_v62  ;;  %v2060_v30 = vpop.f32.mrf.mxu3  ;;  %v3732_v55 = vld [vmem:[%s4061_s7 + $0xec] sm:$0xf] }
 0x181   : > { %v1884_v63 = vpop.f32.mrf.mxu1 }
 0x182   : > { %v2061_v2 = vadd.f32 %v2060_v30, %v1972_v10  ;;  %v1885_v14 = vadd.f32 %v1884_v63, %v4326_v6  ;;  %v2965_v10 = vld [vmem:[%s4061_s7 + $0x10c] sm:$0xf0] }
 0x183   : > { %v2151_v13 = vpop.f32.mrf.mxu0  ;;  %v2971_v63 = vld [vmem:[%s4061_s7 + $0xf0] sm:$0xf]  ;;  %v2968_v15 = vor.u32 %v3732_v55, %v2965_v10  ;;  %v3009_v10 = vld [vmem:[%s4061_s7 + $0x15c] sm:$0xf0] }
 0x184   : > { %v4555_v4 = vadd.f32 %v2149_v52, %v2061_v2  ;;  %v3737_v2 = vld [vmem:[%s4061_s7 + $0x110] sm:$0xf0] }
 0x185   : > { %v2972_v20 = vor.u32 %v3737_v2, %v2971_v63  ;;  %v3015_v63 = vld [vmem:[%s4061_s7 + $0x140] sm:$0xf]  ;;  %v3747_v2 = vld [vmem:[%s4061_s7 + $0x160] sm:$0xf0] }
 0x187   : > { %v1973_v58 = vpop.f32.mrf.mxu2 }
 0x188   : > { %v1974_v23 = vadd.f32 %v1973_v58, %v1885_v14  ;;  %v2062_v24 = vpop.f32.mrf.mxu3 }
 0x189   : > { %v1887_v27 = vpop.f32.mrf.mxu1 }
 0x18a   : > { %v2063_v28 = vadd.f32 %v2062_v24, %v1974_v23  ;;  %v1888_v42 = vadd.f32 %v1887_v27, %v4340_v16  ;;  %v2980_v23 = vor.u32 %v3738_v11, %v2979_v9 }
 0x18b   : > { %v2154_v35 = vpop.f32.mrf.mxu0 }
 0x18c   : > { %2202 = vmatmul.bf16.gmra.mxu1 %v2932_v19  ;;  %2291 = vmatmul.bf16.gmra.mxu2 %v2936_v26  ;;  %v4564_v6 = vadd.f32 %v2151_v13, %v2063_v28  ;;  %v3733_v13 = vld [vmem:[%s4061_s7 + $0xf4] sm:$0xf] }
 0x18d   : > { %2380 = vmatmul.bf16.gmra.mxu3 %v2940_v36  ;;  %v2976_v58 = vor.u32 %v3733_v13, %v2973_v54 }
 0x18e   : > { %2469 = vmatmul.bf16.gmra.mxu0 %v2944_v47 }
 0x18f   : > { %v1976_v40 = vpop.f32.mrf.mxu2 }
 0x190   : > { %v1977_v38 = vadd.f32 %v1976_v40, %v1888_v42  ;;  %v2065_v48 = vpop.f32.mrf.mxu3  ;;  %v3741_v40 = vld [vmem:[%s4061_s7 + $0x134] sm:$0xf] }
 0x191   : > { %v1889_v49 = vpop.f32.mrf.mxu1 }
 0x192   : > { %v2066_v52 = vadd.f32 %v2065_v48, %v1977_v38  ;;  %v1890_v3 = vadd.f32 %v1889_v49, %v4362_v31  ;;  %v3001_v38 = vld [vmem:[%s4061_s7 + $0x154] sm:$0xf0] }
 0x193   : > { %v2156_v62 = vpop.f32.mrf.mxu0  ;;  %v3007_v49 = vld [vmem:[%s4061_s7 + $0x138] sm:$0xf]  ;;  %v3004_v54 = vor.u32 %v3741_v40, %v3001_v38  ;;  %v3045_v38 = vld [vmem:[%s4061_s7 + $0x1a4] sm:$0xf0] }
 0x194   : > { %v4569_v30 = vadd.f32 %v2154_v35, %v2066_v52  ;;  %v3746_v52 = vld [vmem:[%s4061_s7 + $0x158] sm:$0xf0] }
 0x195   : > { %v3008_v9 = vor.u32 %v3746_v52, %v3007_v49  ;;  %v3051_v49 = vld [vmem:[%s4061_s7 + $0x188] sm:$0xf]  ;;  %v3756_v52 = vld [vmem:[%s4061_s7 + $0x1a8] sm:$0xf0] }
 0x197   : > { %v1978_v16 = vpop.f32.mrf.mxu2 }
 0x198   : > { %v1979_v12 = vadd.f32 %v1978_v16, %v1890_v3  ;;  %v2067_v14 = vpop.f32.mrf.mxu3 }
 0x199   : > { %v1892_v21 = vpop.f32.mrf.mxu1 }
 0x19a   : > { %v2068_v24 = vadd.f32 %v2067_v14, %v1979_v12  ;;  %v1893_v26 = vadd.f32 %v1892_v21, %v4370_v44  ;;  %v3016_v12 = vor.u32 %v3747_v2, %v3015_v63 }
 0x19b   : > { %v2159_v19 = vpop.f32.mrf.mxu0 }
 0x19c   : > { %2207 = vmatmul.bf16.gmra.mxu1 %v2968_v15  ;;  %2296 = vmatmul.bf16.gmra.mxu2 %v2972_v20  ;;  %v4578_v31 = vadd.f32 %v2156_v62, %v2068_v24  ;;  %v3742_v62 = vld [vmem:[%s4061_s7 + $0x13c] sm:$0xf] }
 0x19d   : > { %2385 = vmatmul.bf16.gmra.mxu3 %v2976_v58  ;;  %v3012_v16 = vor.u32 %v3742_v62, %v3009_v10 }
 0x19e   : > { %2474 = vmatmul.bf16.gmra.mxu0 %v2980_v23 }
 0x19f   : > { %v1981_v27 = vpop.f32.mrf.mxu2 }
 0x1a0   : > { %v1982_v36 = vadd.f32 %v1981_v27, %v1893_v26  ;;  %v2070_v47 = vpop.f32.mrf.mxu3  ;;  %v3750_v27 = vld [vmem:[%s4061_s7 + $0x17c] sm:$0xf] }
 0x1a1   : > { %v1894_v28 = vpop.f32.mrf.mxu1 }
 0x1a2   : > { %v2071_v35 = vadd.f32 %v2070_v47, %v1982_v36  ;;  %v1895_v55 = vadd.f32 %v1894_v28, %v4386_v0  ;;  %v3037_v36 = vld [vmem:[%s4061_s7 + $0x19c] sm:$0xf0] }
 0x1a3   : > { %v2161_v42 = vpop.f32.mrf.mxu0  ;;  %v3043_v28 = vld [vmem:[%s4061_s7 + $0x180] sm:$0xf]  ;;  %v3040_v10 = vor.u32 %v3750_v27, %v3037_v36  ;;  %v3081_v36 = vld [vmem:[%s4061_s7 + $0x1ec] sm:$0xf0] }
 0x1a4   : > { %v4583_v48 = vadd.f32 %v2159_v19, %v2071_v35  ;;  %v3755_v35 = vld [vmem:[%s4061_s7 + $0x1a0] sm:$0xf0] }
 0x1a5   : > { %v3044_v63 = vor.u32 %v3755_v35, %v3043_v28  ;;  %v3087_v28 = vld [vmem:[%s4061_s7 + $0x1d0] sm:$0xf]  ;;  %v3765_v35 = vld [vmem:[%s4061_s7 + $0x1f0] sm:$0xf0] }
 0x1a7   : > { %v1983_v44 = vpop.f32.mrf.mxu2 }
 0x1a8   : > { %v1984_v13 = vadd.f32 %v1983_v44, %v1895_v55  ;;  %v2072_v3 = vpop.f32.mrf.mxu3 }
 0x1a9   : > { %v1897_v11 = vpop.f32.mrf.mxu1 }
 0x1aa   : > { %v2073_v14 = vadd.f32 %v2072_v3, %v1984_v13  ;;  %v1898_v20 = vadd.f32 %v1897_v11, %v4282_v37  ;;  %v3052_v13 = vor.u32 %v3756_v52, %v3051_v49 }
 0x1ab   : > { %v2164_v15 = vpop.f32.mrf.mxu0 }
 0x1ac   : > { %2212 = vmatmul.bf16.gmra.mxu1 %v3004_v54  ;;  %2301 = vmatmul.bf16.gmra.mxu2 %v3008_v9  ;;  %v4592_v0 = vadd.f32 %v2161_v42, %v2073_v14  ;;  %v3751_v42 = vld [vmem:[%s4061_s7 + $0x184] sm:$0xf] }
 0x1ad   : > { %2390 = vmatmul.bf16.gmra.mxu3 %v3012_v16  ;;  %v3048_v44 = vor.u32 %v3751_v42, %v3045_v38 }
 0x1ae   : > { %2479 = vmatmul.bf16.gmra.mxu0 %v3016_v12 }
 0x1af   : > { %v1986_v21 = vpop.f32.mrf.mxu2 }
 0x1b0   : > { %v1987_v58 = vadd.f32 %v1986_v21, %v1898_v20  ;;  %v2075_v23 = vpop.f32.mrf.mxu3  ;;  %v3759_v21 = vld [vmem:[%s4061_s7 + $0x1c4] sm:$0xf] }
 0x1b1   : > { %v1899_v24 = vpop.f32.mrf.mxu1 }
 0x1b2   : > { %v2076_v19 = vadd.f32 %v2075_v23, %v1987_v58  ;;  %v1900_v40 = vadd.f32 %v1899_v24, %v4304_v51  ;;  %v3073_v58 = vld [vmem:[%s4061_s7 + $0x1e4] sm:$0xf0] }
 0x1b3   : > { %v2166_v26 = vpop.f32.mrf.mxu0  ;;  %v3079_v24 = vld [vmem:[%s4061_s7 + $0x1c8] sm:$0xf]  ;;  %v3076_v38 = vor.u32 %v3759_v21, %v3073_v58  ;;  %v3117_v58 = vld [vmem:[%s4061_s7 + $0x234] sm:$0xf0] }
 0x1b4   : > { %v4597_v47 = vadd.f32 %v2164_v15, %v2076_v19  ;;  %v3764_v19 = vld [vmem:[%s4061_s7 + $0x1e8] sm:$0xf0] }
 0x1b5   : > { %v3080_v49 = vor.u32 %v3764_v19, %v3079_v24  ;;  %v3123_v24 = vld [vmem:[%s4061_s7 + $0x218] sm:$0xf]  ;;  %v3774_v19 = vld [vmem:[%s4061_s7 + $0x238] sm:$0xf0] }
 0x1b7   : > { %v1988_v37 = vpop.f32.mrf.mxu2 }
 0x1b8   : > { %v1989_v62 = vadd.f32 %v1988_v37, %v1900_v40  ;;  %v2077_v55 = vpop.f32.mrf.mxu3 }
 0x1b9   : > { %v1902_v2 = vpop.f32.mrf.mxu1 }
 0x1ba   : > { %v2078_v3 = vadd.f32 %v2077_v55, %v1989_v62  ;;  %v1903_v9 = vadd.f32 %v1902_v2, %v4312_v59  ;;  %v3088_v62 = vor.u32 %v3765_v35, %v3087_v28 }
 0x1bb   : > { %v2169_v54 = vpop.f32.mrf.mxu0 }
 0x1bc   : > { %2217 = vmatmul.bf16.gmra.mxu1 %v3040_v10  ;;  %2306 = vmatmul.bf16.gmra.mxu2 %v3044_v63  ;;  %v4606_v51 = vadd.f32 %v2166_v26, %v2078_v3  ;;  %v3760_v26 = vld [vmem:[%s4061_s7 + $0x1cc] sm:$0xf] }
 0x1bd   : > { %2395 = vmatmul.bf16.gmra.mxu3 %v3048_v44  ;;  %v3084_v37 = vor.u32 %v3760_v26, %v3081_v36 }
 0x1be   : > { %2484 = vmatmul.bf16.gmra.mxu0 %v3052_v13 }
 0x1bf   : > { %v1991_v11 = vpop.f32.mrf.mxu2 }
 0x1c0   : > { %v1992_v16 = vadd.f32 %v1991_v11, %v1903_v9  ;;  %v2080_v12 = vpop.f32.mrf.mxu3  ;;  %v3768_v11 = vld [vmem:[%s4061_s7 + $0x20c] sm:$0xf] }
 0x1c1   : > { %v1904_v14 = vpop.f32.mrf.mxu1 }
 0x1c2   : > { %v2081_v15 = vadd.f32 %v2080_v12, %v1992_v16  ;;  %v1905_v27 = vadd.f32 %v1904_v14, %v4328_v7  ;;  %v3109_v16 = vld [vmem:[%s4061_s7 + $0x22c] sm:$0xf0] }
 0x1c3   : > { %v2171_v20 = vpop.f32.mrf.mxu0  ;;  %v3115_v14 = vld [vmem:[%s4061_s7 + $0x210] sm:$0xf]  ;;  %v3112_v36 = vor.u32 %v3768_v11, %v3109_v16  ;;  %v3153_v16 = vld [vmem:[%s4061_s7 + $0x27c] sm:$0xf0] }
 0x1c4   : > { %v4611_v23 = vadd.f32 %v2169_v54, %v2081_v15  ;;  %v3773_v15 = vld [vmem:[%s4061_s7 + $0x230] sm:$0xf0] }
 0x1c5   : > { %v3116_v28 = vor.u32 %v3773_v15, %v3115_v14  ;;  %v3159_v14 = vld [vmem:[%s4061_s7 + $0x260] sm:$0xf]  ;;  %v3783_v15 = vld [vmem:[%s4061_s7 + $0x280] sm:$0xf0] }
 0x1c7   : > { %v1993_v59 = vpop.f32.mrf.mxu2 }
 0x1c8   : > { %v1994_v42 = vadd.f32 %v1993_v59, %v1905_v27  ;;  %v2082_v40 = vpop.f32.mrf.mxu3 }
 0x1c9   : > { %v1907_v52 = vpop.f32.mrf.mxu1 }
 0x1ca   : > { %v2083_v55 = vadd.f32 %v2082_v40, %v1994_v42  ;;  %v1908_v63 = vadd.f32 %v1907_v52, %v4342_v17  ;;  %v3124_v42 = vor.u32 %v3774_v19, %v3123_v24 }
 0x1cb   : > { %v2174_v10 = vpop.f32.mrf.mxu0 }
 0x1cc   : > { %2222 = vmatmul.bf16.gmra.mxu1 %v3076_v38  ;;  %2311 = vmatmul.bf16.gmra.mxu2 %v3080_v49  ;;  %v4620_v7 = vadd.f32 %v2171_v20, %v2083_v55  ;;  %v3769_v20 = vld [vmem:[%s4061_s7 + $0x214] sm:$0xf] }
 0x1cd   : > { %2400 = vmatmul.bf16.gmra.mxu3 %v3084_v37  ;;  %v3120_v59 = vor.u32 %v3769_v20, %v3117_v58 }
 0x1ce   : > { %2489 = vmatmul.bf16.gmra.mxu0 %v3088_v62 }
 0x1cf   : > { %v1996_v2 = vpop.f32.mrf.mxu2 }
 0x1d0   : > { %v1997_v44 = vadd.f32 %v1996_v2, %v1908_v63  ;;  %v2085_v13 = vpop.f32.mrf.mxu3  ;;  %v3777_v2 = vld [vmem:[%s4061_s7 + $0x254] sm:$0xf] }
 0x1d1   : > { %v1909_v3 = vpop.f32.mrf.mxu1 }
 0x1d2   : > { %v2086_v54 = vadd.f32 %v2085_v13, %v1997_v44  ;;  %v1910_v21 = vadd.f32 %v1909_v3, %v4364_v32  ;;  %v3145_v44 = vld [vmem:[%s4061_s7 + $0x274] sm:$0xf0] }
 0x1d3   : > { %v2176_v9 = vpop.f32.mrf.mxu0  ;;  %v3151_v3 = vld [vmem:[%s4061_s7 + $0x258] sm:$0xf]  ;;  %v3148_v58 = vor.u32 %v3777_v2, %v3145_v44 }
 0x1d4   : > { %v4625_v12 = vadd.f32 %v2174_v10, %v2086_v54  ;;  %v3782_v54 = vld [vmem:[%s4061_s7 + $0x278] sm:$0xf0] }
 0x1d5   : > { %v3152_v24 = vor.u32 %v3782_v54, %v3151_v3  ;;  %v3189_v3 = vld [vmem:[%s4061_s7 + $0x2c4] sm:$0xf0] }
 0x1d6   : > { %v3195_v54 = vld [vmem:[%s4061_s7 + $0x2a8] sm:$0xf] }
 0x1d7   : > { %v1998_v17 = vpop.f32.mrf.mxu2 }
 0x1d8   : > { %v1999_v26 = vadd.f32 %v1998_v17, %v1910_v21  ;;  %v2087_v27 = vpop.f32.mrf.mxu3 }
 0x1d9   : > { %v1912_v35 = vpop.f32.mrf.mxu1 }
 0x1da   : > { %v2088_v40 = vadd.f32 %v2087_v27, %v1999_v26  ;;  %v1913_v49 = vadd.f32 %v1912_v35, %v4372_v45  ;;  %v3160_v26 = vor.u32 %v3783_v15, %v3159_v14 }
 0x1db   : > { %v2179_v38 = vpop.f32.mrf.mxu0 }
 0x1dc   : > { %2227 = vmatmul.bf16.gmra.mxu1 %v3112_v36  ;;  %2316 = vmatmul.bf16.gmra.mxu2 %v3116_v28  ;;  %v4634_v32 = vadd.f32 %v2176_v9, %v2088_v40  ;;  %v3778_v9 = vld [vmem:[%s4061_s7 + $0x25c] sm:$0xf] }
 0x1dd   : > { %2405 = vmatmul.bf16.gmra.mxu3 %v3120_v59  ;;  %v3156_v17 = vor.u32 %v3778_v9, %v3153_v16  ;;  %v3792_v9 = vld [vmem:[%s4061_s7 + $0x2c8] sm:$0xf0] }
 0x1de   : > { %2494 = vmatmul.bf16.gmra.mxu0 %v3124_v42 }
 0x1df   : > { %v2001_v52 = vpop.f32.mrf.mxu2 }
 0x1e0   : > { %v2002_v37 = vadd.f32 %v2001_v52, %v1913_v49  ;;  %v2090_v62 = vpop.f32.mrf.mxu3  ;;  %v4655_v49 = vld [vmem:[%s4824_s2] ss:$0 sm:$0xff] }
 0x1e1   : > { %v1914_v55 = vpop.f32.mrf.mxu1 }
 0x1e2   : > { %v2091_v10 = vadd.f32 %v2090_v62, %v2002_v37  ;;  %v1915_v11 = vadd.f32 %v1914_v55, %v4388_v1  ;;  %v3786_v62 = vld [vmem:[%s4061_s7 + $0x29c] sm:$0xf]  ;;  %v3181_v55 = vld [vmem:[%s4061_s7 + $0x2bc] sm:$0xf0] }
 0x1e3   : > { %v2181_v63 = vpop.f32.mrf.mxu0  ;;  %v3184_v15 = vor.u32 %v3786_v62, %v3181_v55  ;;  %v3800_v62 = vld [vmem:[%s4061_s7 + $0x308] sm:$0xf0] }
 0x1e4   : > { %v4639_v13 = vadd.f32 %v2179_v38, %v2091_v10  ;;  %v3791_v10 = vld [vmem:[%s4061_s7 + $0x2c0] sm:$0xf0]  ;;  %v3796_v55 = vld [vmem:[%s4061_s7 + $0x2ec] sm:$0xf] }
 0x1e7   : > { %v2003_v45 = vpop.f32.mrf.mxu2 }
 0x1e8   : > { %v2004_v20 = vadd.f32 %v2003_v45, %v1915_v11  ;;  %v2092_v21 = vpop.f32.mrf.mxu3 }
 0x1e9   : > { %v2193_v19 = vpop.f32.mrf.mxu1 }
 0x1ea   : > { %v2093_v27 = vadd.f32 %v2092_v21, %v2004_v20  ;;  %v2194_v1 = vadd.f32 %v2193_v19, %v4406_v29  ;;  %v3187_v29 = vld [vmem:[%s4061_s7 + $0x2a0] sm:$0xf] }
 0x1eb   : > { %v2460_v36 = vpop.f32.mrf.mxu0  ;;  %v3188_v45 = vor.u32 %v3791_v10, %v3187_v29  ;;  %v3225_v10 = vld [vmem:[%s4061_s7 + $0x30c] sm:$0xf0] }
 0x1ec   : > { %2232 = vmatmul.bf16.gmra.mxu1 %v3148_v58  ;;  %2321 = vmatmul.bf16.gmra.mxu2 %v3152_v24  ;;  %v4648_v28 = vadd.f32 %v2181_v63, %v2093_v27  ;;  %v3787_v63 = vld [vmem:[%s4061_s7 + $0x2a4] sm:$0xf]  ;;  %v3196_v58 = vor.u32 %v3792_v9, %v3195_v54 }
 0x1ed   : > { %2410 = vmatmul.bf16.gmra.mxu3 %v3156_v17  ;;  %v3192_v21 = vor.u32 %v3787_v63, %v3189_v3  ;;  %v3231_v63 = vld [vmem:[%s4061_s7 + $0x2f0] sm:$0xf] }
 0x1ee   : > { %2499 = vmatmul.bf16.gmra.mxu0 %v3160_v26 }
 0x1ef   : > { %v2282_v35 = vpop.f32.mrf.mxu2 }
 0x1f0   : > { %v2283_v59 = vadd.f32 %v2282_v35, %v2194_v1  ;;  %v2371_v42 = vpop.f32.mrf.mxu3 }
 0x1f1   : > { %v2195_v40 = vpop.f32.mrf.mxu1 }
 0x1f2   : > { %v2372_v38 = vadd.f32 %v2371_v42, %v2283_v59  ;;  %v2196_v44 = vadd.f32 %v2195_v40, %v4415_v8 }
 0x1f3   : > { %v2462_v52 = vpop.f32.mrf.mxu0 }
 0x1f4   : > { %v2461_v37 = vadd.f32 %v2460_v36, %v2372_v38  ;;  %v3795_v38 = vld [vmem:[%s4061_s7 + $0x2e4] sm:$0xf] }
 0x1f6   : > { %v2548_v2 = vadd.f32 %v4655_v49, %v2461_v37  ;;  %v3223_v37 = vld [vmem:[%s4061_s7 + $0x2e8] sm:$0xf] }
 0x1f7   : > { %v2284_v11 = vpop.f32.mrf.mxu2 }
 0x1f8   : > { %2580 = vst [vmem:[%s4662_s11] sm:$0xff] %v2548_v2  ;;  %v2285_v16 = vadd.f32 %v2284_v11, %v2196_v44  ;;  %v2373_v14 = vpop.f32.mrf.mxu3  ;;  %v3801_v2 = vld [vmem:[%s4061_s7 + $0x310] sm:$0xf0]  ;;  %v3224_v11 = vor.u32 %v3800_v62, %v3223_v37  ;;  %v3267_v37 = vld [vmem:[%s4061_s7 + $0x338] sm:$0xf]  ;;  %v3810_v62 = vld [vmem:[%s4061_s7 + $0x358] sm:$0xf0] }
 0x1f9   : > { %v2198_v20 = vpop.f32.mrf.mxu1 }
 0x1fa   : > { %v2374_v24 = vadd.f32 %v2373_v14, %v2285_v16  ;;  %v2199_v26 = vadd.f32 %v2198_v20, %v4420_v22  ;;  %v3228_v14 = vor.u32 %v3796_v55, %v3225_v10 }
 0x1fb   : > { %v2465_v19 = vpop.f32.mrf.mxu0 }
 0x1fc   : > { %v2463_v17 = vadd.f32 %v2462_v52, %v2374_v24  ;;  %2237 = vmatmul.bf16.gmra.mxu1 %v3184_v15  ;;  %2326 = vmatmul.bf16.gmra.mxu2 %v3188_v45  ;;  %v3217_v52 = vld [vmem:[%s4061_s7 + $0x304] sm:$0xf0]  ;;  %v3232_v15 = vor.u32 %v3801_v2, %v3231_v63 }
 0x1fd   : > { %2415 = vmatmul.bf16.gmra.mxu3 %v3192_v21  ;;  %v3220_v9 = vor.u32 %v3795_v38, %v3217_v52  ;;  %v3261_v52 = vld [vmem:[%s4061_s7 + $0x354] sm:$0xf0] }
 0x1fe   : > { %2504 = vmatmul.bf16.gmra.mxu0 %v3196_v58  ;;  %v2549_v8 = vadd.f32 %v4655_v49, %v2463_v17 }
 0x1ff   : > { %v2287_v27 = vpop.f32.mrf.mxu2 }
 0x200   : > { %2581 = vst [vmem:[%s4662_s11 + $0x8] sm:$0xff] %v2549_v8  ;;  %v2288_v36 = vadd.f32 %v2287_v27, %v2199_v26  ;;  %v2376_v1 = vpop.f32.mrf.mxu3 }
 0x201   : > { %v2200_v35 = vpop.f32.mrf.mxu1 }
 0x202   : > { %v2377_v59 = vadd.f32 %v2376_v1, %v2288_v36  ;;  %v2201_v22 = vadd.f32 %v2200_v35, %v4429_v56  ;;  %v3804_v1 = vld [vmem:[%s4061_s7 + $0x32c] sm:$0xf]  ;;  %v3253_v35 = vld [vmem:[%s4061_s7 + $0x34c] sm:$0xf0] }
 0x203   : > { %v2467_v42 = vpop.f32.mrf.mxu0  ;;  %v3256_v10 = vor.u32 %v3804_v1, %v3253_v35  ;;  %v3303_v1 = vld [vmem:[%s4061_s7 + $0x380] sm:$0xf]  ;;  %v3819_v35 = vld [vmem:[%s4061_s7 + $0x3a0] sm:$0xf0] }
 0x204   : > { %v2466_v40 = vadd.f32 %v2465_v19, %v2377_v59  ;;  %v3259_v59 = vld [vmem:[%s4061_s7 + $0x330] sm:$0xf] }
 0x206   : > { %v2550_v29 = vadd.f32 %v4655_v49, %v2466_v40  ;;  %v3805_v40 = vld [vmem:[%s4061_s7 + $0x334] sm:$0xf] }
 0x207   : > { %v2289_v44 = vpop.f32.mrf.mxu2 }
 0x208   : > { %2582 = vst [vmem:[%s4662_s11 + $0x10] sm:$0xff] %v2550_v29  ;;  %v2290_v3 = vadd.f32 %v2289_v44, %v2201_v22  ;;  %v2378_v54 = vpop.f32.mrf.mxu3  ;;  %v3264_v44 = vor.u32 %v3805_v40, %v3261_v52 }
 0x209   : > { %v2203_v16 = vpop.f32.mrf.mxu1 }
 0x20a   : > { %v2379_v45 = vadd.f32 %v2378_v54, %v2290_v3  ;;  %v2204_v58 = vadd.f32 %v2203_v16, %v4446_v33  ;;  %v3268_v3 = vor.u32 %v3810_v62, %v3267_v37  ;;  %v3304_v62 = vor.u32 %v3819_v35, %v3303_v1 }
 0x20b   : > { %v2470_v20 = vpop.f32.mrf.mxu0 }
 0x20c   : > { %v2468_v21 = vadd.f32 %v2467_v42, %v2379_v45  ;;  %2242 = vmatmul.bf16.gmra.mxu1 %v3220_v9  ;;  %2331 = vmatmul.bf16.gmra.mxu2 %v3224_v11  ;;  %v3809_v42 = vld [vmem:[%s4061_s7 + $0x350] sm:$0xf0] }
 0x20d   : > { %2420 = vmatmul.bf16.gmra.mxu3 %v3228_v14  ;;  %v3260_v63 = vor.u32 %v3809_v42, %v3259_v59 }
 0x20e   : > { %2509 = vmatmul.bf16.gmra.mxu0 %v3232_v15  ;;  %v2551_v56 = vadd.f32 %v4655_v49, %v2468_v21 }
 0x20f   : > { %v2292_v24 = vpop.f32.mrf.mxu2 }
 0x210   : > { %2583 = vst [vmem:[%s4662_s11 + $0x18] sm:$0xff] %v2551_v56  ;;  %v2293_v19 = vadd.f32 %v2292_v24, %v2204_v58  ;;  %v2381_v17 = vpop.f32.mrf.mxu3  ;;  %v3813_v24 = vld [vmem:[%s4061_s7 + $0x374] sm:$0xf] }
 0x211   : > { %v2205_v8 = vpop.f32.mrf.mxu1 }
 0x212   : > { %v2382_v26 = vadd.f32 %v2381_v17, %v2293_v19  ;;  %v2206_v33 = vadd.f32 %v2205_v8, %v4455_v61  ;;  %v3289_v19 = vld [vmem:[%s4061_s7 + $0x394] sm:$0xf0]  ;;  %v3818_v8 = vld [vmem:[%s4061_s7 + $0x398] sm:$0xf0] }
 0x213   : > { %v2472_v27 = vpop.f32.mrf.mxu0  ;;  %v3295_v17 = vld [vmem:[%s4061_s7 + $0x378] sm:$0xf] }
 0x214   : > { %v2471_v36 = vadd.f32 %v2470_v20, %v2382_v26  ;;  %v3814_v26 = vld [vmem:[%s4061_s7 + $0x37c] sm:$0xf] }
 0x216   : > { %v2552_v38 = vadd.f32 %v4655_v49, %v2471_v36  ;;  %v3297_v36 = vld [vmem:[%s4061_s7 + $0x39c] sm:$0xf0] }
 0x217   : > { %v2294_v55 = vpop.f32.mrf.mxu2  ;;  %v3300_v37 = vor.u32 %v3814_v26, %v3297_v36 }
 0x218   : > { %2584 = vst [vmem:[%s4662_s11 + $0x20] sm:$0xff] %v2552_v38  ;;  %v2295_v29 = vadd.f32 %v2294_v55, %v2206_v33  ;;  %v2383_v22 = vpop.f32.mrf.mxu3  ;;  %v3292_v38 = vor.u32 %v3813_v24, %v3289_v19  ;;  %v3296_v33 = vor.u32 %v3818_v8, %v3295_v17 }
 0x219   : > { %v2208_v2 = vpop.f32.mrf.mxu1 }
 0x21a   : > { %v2384_v54 = vadd.f32 %v2383_v22, %v2295_v29  ;;  %v2209_v16 = vadd.f32 %v2208_v2, %v4460_v5 }
 0x21b   : > { %v2475_v9 = vpop.f32.mrf.mxu0 }
 0x21c   : > { %v2473_v11 = vadd.f32 %v2472_v27, %v2384_v54  ;;  %2247 = vmatmul.bf16.gmra.mxu1 %v3256_v10  ;;  %2336 = vmatmul.bf16.gmra.mxu2 %v3260_v63 }
 0x21d   : > { %2425 = vmatmul.bf16.gmra.mxu3 %v3264_v44 }
 0x21e   : > { %2514 = vmatmul.bf16.gmra.mxu0 %v3268_v3  ;;  %v2553_v61 = vadd.f32 %v4655_v49, %v2473_v11 }
 0x21f   : > { %v2297_v14 = vpop.f32.mrf.mxu2 }
 0x220   : > { %2585 = vst [vmem:[%s4662_s11 + $0x28] sm:$0xff] %v2553_v61  ;;  %v2298_v15 = vadd.f32 %v2297_v14, %v2209_v16  ;;  %v2386_v45 = vpop.f32.mrf.mxu3  ;;  %v3822_v61 = vld [vmem:[%s4061_s7 + $0x3bc] sm:$0xf]  ;;  %v3325_v16 = vld [vmem:[%s4061_s7 + $0x3dc] sm:$0xf0] }
 0x221   : > { %v2210_v20 = vpop.f32.mrf.mxu1  ;;  %v3331_v14 = vld [vmem:[%s4061_s7 + $0x3c0] sm:$0xf]  ;;  %v3328_v8 = vor.u32 %v3822_v61, %v3325_v16 }
 0x222   : > { %v2387_v21 = vadd.f32 %v2386_v45, %v2298_v15  ;;  %v2211_v5 = vadd.f32 %v2210_v20, %v4468_v34  ;;  %v3827_v15 = vld [vmem:[%s4061_s7 + $0x3e0] sm:$0xf0] }
 0x223   : > { %v2477_v56 = vpop.f32.mrf.mxu0  ;;  %v3823_v45 = vld [vmem:[%s4061_s7 + $0x3c4] sm:$0xf]  ;;  %v3332_v26 = vor.u32 %v3827_v15, %v3331_v14 }
 0x224   : > { %v2476_v58 = vadd.f32 %v2475_v9, %v2387_v21  ;;  %v3333_v21 = vld [vmem:[%s4061_s7 + $0x3e4] sm:$0xf0] }
 0x226   : > { %v2554_v27 = vadd.f32 %v4655_v49, %v2476_v58  ;;  %v3828_v58 = vld [vmem:[%s4061_s7 + $0x3e8] sm:$0xf0] }
 0x227   : > { %v2299_v59 = vpop.f32.mrf.mxu2 }
 0x228   : > { %2586 = vst [vmem:[%s4662_s11 + $0x30] sm:$0xff] %v2554_v27  ;;  %v2300_v42 = vadd.f32 %v2299_v59, %v2211_v5  ;;  %v2388_v40 = vpop.f32.mrf.mxu3  ;;  %v3336_v5 = vor.u32 %v3823_v45, %v3333_v21 }
 0x229   : > { %v2213_v52 = vpop.f32.mrf.mxu1 }
 0x22a   : > { %v2389_v55 = vadd.f32 %v2388_v40, %v2300_v42  ;;  %v2214_v10 = vadd.f32 %v2213_v52, %v4485_v43 }
 0x22b   : > { %v2480_v29 = vpop.f32.mrf.mxu0 }
 0x22c   : > { %v2478_v22 = vadd.f32 %v2477_v56, %v2389_v55  ;;  %2252 = vmatmul.bf16.gmra.mxu1 %v3292_v38  ;;  %2341 = vmatmul.bf16.gmra.mxu2 %v3296_v33  ;;  %v3339_v56 = vld [vmem:[%s4061_s7 + $0x3c8] sm:$0xf] }
 0x22d   : > { %2430 = vmatmul.bf16.gmra.mxu3 %v3300_v37  ;;  %v3340_v36 = vor.u32 %v3828_v58, %v3339_v56 }
 0x22e   : > { %2519 = vmatmul.bf16.gmra.mxu0 %v3304_v62  ;;  %v2555_v34 = vadd.f32 %v4655_v49, %v2478_v22  ;;  %v3361_v22 = vld [vmem:[%s4061_s7 + $0x424] sm:$0xf0] }
 0x22f   : > { %v2302_v63 = vpop.f32.mrf.mxu2 }
 0x230   : > { %2587 = vst [vmem:[%s4662_s11 + $0x38] sm:$0xff] %v2555_v34  ;;  %v2303_v2 = vadd.f32 %v2302_v63, %v2214_v10  ;;  %v2391_v44 = vpop.f32.mrf.mxu3  ;;  %v3367_v34 = vld [vmem:[%s4061_s7 + $0x408] sm:$0xf]  ;;  %v3836_v10 = vld [vmem:[%s4061_s7 + $0x428] sm:$0xf0] }
 0x231   : > { %v2215_v3 = vpop.f32.mrf.mxu1  ;;  %v3832_v63 = vld [vmem:[%s4061_s7 + $0x40c] sm:$0xf]  ;;  %v3368_v14 = vor.u32 %v3836_v10, %v3367_v34 }
 0x232   : > { %v2392_v54 = vadd.f32 %v2391_v44, %v2303_v2  ;;  %v2216_v43 = vadd.f32 %v2215_v3, %v4494_v39  ;;  %v3369_v44 = vld [vmem:[%s4061_s7 + $0x42c] sm:$0xf0] }
 0x233   : > { %v2482_v9 = vpop.f32.mrf.mxu0  ;;  %v3375_v3 = vld [vmem:[%s4061_s7 + $0x410] sm:$0xf]  ;;  %v3372_v45 = vor.u32 %v3832_v63, %v3369_v44 }
 0x234   : > { %v2481_v11 = vadd.f32 %v2480_v29, %v2392_v54  ;;  %v3831_v29 = vld [vmem:[%s4061_s7 + $0x404] sm:$0xf]  ;;  %v3837_v54 = vld [vmem:[%s4061_s7 + $0x430] sm:$0xf0] }
 0x235   : > { %v3364_v16 = vor.u32 %v3831_v29, %v3361_v22 }
 0x236   : > { %v2556_v20 = vadd.f32 %v4655_v49, %v2481_v11 }
 0x237   : > { %v2304_v24 = vpop.f32.mrf.mxu2 }
 0x238   : > { %2588 = vst [vmem:[%s4662_s11 + $0x40] sm:$0xff] %v2556_v20  ;;  %v2305_v19 = vadd.f32 %v2304_v24, %v2216_v43  ;;  %v2393_v17 = vpop.f32.mrf.mxu3  ;;  %v3376_v20 = vor.u32 %v3837_v54, %v3375_v3 }
 0x239   : > { %v2218_v27 = vpop.f32.mrf.mxu1 }
 0x23a   : > { %v2394_v1 = vadd.f32 %v2393_v17, %v2305_v19  ;;  %v2219_v42 = vadd.f32 %v2218_v27, %v4499_v53 }
 0x23b   : > { %v2485_v35 = vpop.f32.mrf.mxu0 }
 0x23c   : > { %v2483_v59 = vadd.f32 %v2482_v9, %v2394_v1  ;;  %2257 = vmatmul.bf16.gmra.mxu1 %v3328_v8  ;;  %2346 = vmatmul.bf16.gmra.mxu2 %v3332_v26  ;;  %v3397_v1 = vld [vmem:[%s4061_s7 + $0x46c] sm:$0xf0] }
 0x23d   : > { %2435 = vmatmul.bf16.gmra.mxu3 %v3336_v5 }
 0x23e   : > { %2524 = vmatmul.bf16.gmra.mxu0 %v3340_v36  ;;  %v2557_v39 = vadd.f32 %v4655_v49, %v2483_v59  ;;  %v3840_v36 = vld [vmem:[%s4061_s7 + $0x44c] sm:$0xf]  ;;  %v3845_v59 = vld [vmem:[%s4061_s7 + $0x470] sm:$0xf0] }
 0x23f   : > { %v2307_v40 = vpop.f32.mrf.mxu2 }
 0x240   : > { %2589 = vst [vmem:[%s4662_s11 + $0x48] sm:$0xff] %v2557_v39  ;;  %v2308_v38 = vadd.f32 %v2307_v40, %v2219_v42  ;;  %v2396_v33 = vpop.f32.mrf.mxu3  ;;  %v3841_v39 = vld [vmem:[%s4061_s7 + $0x454] sm:$0xf]  ;;  %v3405_v40 = vld [vmem:[%s4061_s7 + $0x474] sm:$0xf0] }
 0x241   : > { %v2220_v52 = vpop.f32.mrf.mxu1  ;;  %v3408_v34 = vor.u32 %v3841_v39, %v3405_v40 }
 0x242   : > { %v2397_v37 = vadd.f32 %v2396_v33, %v2308_v38  ;;  %v2221_v53 = vadd.f32 %v2220_v52, %v4508_v60  ;;  %v3411_v38 = vld [vmem:[%s4061_s7 + $0x458] sm:$0xf]  ;;  %v3846_v33 = vld [vmem:[%s4061_s7 + $0x478] sm:$0xf0] }
 0x243   : > { %v2487_v62 = vpop.f32.mrf.mxu0  ;;  %v3412_v10 = vor.u32 %v3846_v33, %v3411_v38 }
 0x244   : > { %v2486_v55 = vadd.f32 %v2485_v35, %v2397_v37  ;;  %v3403_v35 = vld [vmem:[%s4061_s7 + $0x450] sm:$0xf] }
 0x245   : > { %v3404_v29 = vor.u32 %v3845_v59, %v3403_v35 }
 0x246   : > { %v2558_v2 = vadd.f32 %v4655_v49, %v2486_v55  ;;  %v3400_v55 = vor.u32 %v3840_v36, %v3397_v1 }
 0x247   : > { %v2309_v9 = vpop.f32.mrf.mxu2 }
 0x248   : > { %2590 = vst [vmem:[%s4662_s11 + $0x50] sm:$0xff] %v2558_v2  ;;  %v2310_v11 = vadd.f32 %v2309_v9, %v2221_v53  ;;  %v2398_v61 = vpop.f32.mrf.mxu3 }
 0x249   : > { %v2223_v15 = vpop.f32.mrf.mxu1 }
 0x24a   : > { %v2399_v43 = vadd.f32 %v2398_v61, %v2310_v11  ;;  %v2224_v58 = vadd.f32 %v2223_v15, %v4513_v41 }
 0x24b   : > { %v2490_v21 = vpop.f32.mrf.mxu0 }
 0x24c   : > { %v2488_v56 = vadd.f32 %v2487_v62, %v2399_v43  ;;  %2262 = vmatmul.bf16.gmra.mxu1 %v3364_v16  ;;  %2351 = vmatmul.bf16.gmra.mxu2 %v3368_v14 }
 0x24d   : > { %2440 = vmatmul.bf16.gmra.mxu3 %v3372_v45 }
 0x24e   : > { %2529 = vmatmul.bf16.gmra.mxu0 %v3376_v20  ;;  %v2559_v60 = vadd.f32 %v4655_v49, %v2488_v56 }
 0x24f   : > { %v2312_v24 = vpop.f32.mrf.mxu2 }
 0x250   : > { %2591 = vst [vmem:[%s4662_s11 + $0x58] sm:$0xff] %v2559_v60  ;;  %v2313_v19 = vadd.f32 %v2312_v24, %v2224_v58  ;;  %v2401_v17 = vpop.f32.mrf.mxu3 }
 0x251   : > { %v2225_v8 = vpop.f32.mrf.mxu1 }
 0x252   : > { %v2402_v26 = vadd.f32 %v2401_v17, %v2313_v19  ;;  %v2226_v41 = vadd.f32 %v2225_v8, %v4522_v18 }
 0x253   : > { %v2492_v27 = vpop.f32.mrf.mxu0 }
 0x254   : > { %v2491_v5 = vadd.f32 %v2490_v21, %v2402_v26 }
 0x256   : > { %v2560_v42 = vadd.f32 %v4655_v49, %v2491_v5 }
 0x257   : > { %v2314_v52 = vpop.f32.mrf.mxu2 }
 0x258   : > { %2592 = vst [vmem:[%s4662_s11 + $0x60] sm:$0xff] %v2560_v42  ;;  %v2315_v37 = vadd.f32 %v2314_v52, %v2226_v41  ;;  %v2403_v62 = vpop.f32.mrf.mxu3 }
 0x259   : > { %v2228_v22 = vpop.f32.mrf.mxu1 }
 0x25a   : > { %v2404_v63 = vadd.f32 %v2403_v62, %v2315_v37  ;;  %v2229_v44 = vadd.f32 %v2228_v22, %v4527_v25 }
 0x25b   : > { %v2495_v2 = vpop.f32.mrf.mxu0 }
 0x25c   : > { %v2493_v53 = vadd.f32 %v2492_v27, %v2404_v63  ;;  %2267 = vmatmul.bf16.gmra.mxu1 %v3400_v55  ;;  %2356 = vmatmul.bf16.gmra.mxu2 %v3404_v29 }
 0x25d   : > { %2445 = vmatmul.bf16.gmra.mxu3 %v3408_v34 }
 0x25e   : > { %2534 = vmatmul.bf16.gmra.mxu0 %v3412_v10  ;;  %v2561_v18 = vadd.f32 %v4655_v49, %v2493_v53 }
 0x25f   : > { %v2317_v3 = vpop.f32.mrf.mxu2 }
 0x260   : > { %2593 = vst [vmem:[%s4662_s11 + $0x68] sm:$0xff] %v2561_v18  ;;  %v2318_v54 = vadd.f32 %v2317_v3, %v2229_v44  ;;  %v2406_v9 = vpop.f32.mrf.mxu3 }
 0x261   : > { %v2230_v11 = vpop.f32.mrf.mxu1 }
 0x262   : > { %v2407_v61 = vadd.f32 %v2406_v9, %v2318_v54  ;;  %v2231_v45 = vadd.f32 %v2230_v11, %v4536_v46 }
 0x263   : > { %v2497_v16 = vpop.f32.mrf.mxu0 }
 0x264   : > { %v2496_v14 = vadd.f32 %v2495_v2, %v2407_v61 }
 0x266   : > { %v2562_v15 = vadd.f32 %v4655_v49, %v2496_v14 }
 0x267   : > { %v2319_v20 = vpop.f32.mrf.mxu2 }
 0x268   : > { %2594 = vst [vmem:[%s4662_s11 + $0x70] sm:$0xff] %v2562_v15  ;;  %v2320_v43 = vadd.f32 %v2319_v20, %v2231_v45  ;;  %v2408_v21 = vpop.f32.mrf.mxu3 }
 0x269   : > { %v2233_v56 = vpop.f32.mrf.mxu1 }
 0x26a   : > { %v2409_v60 = vadd.f32 %v2408_v21, %v2320_v43  ;;  %v2234_v19 = vadd.f32 %v2233_v56, %v4541_v57 }
 0x26b   : > { %v2500_v25 = vpop.f32.mrf.mxu0 }
 0x26c   : > { %v2498_v58 = vadd.f32 %v2497_v16, %v2409_v60 }
 0x26e   : > { %v2563_v24 = vadd.f32 %v4655_v49, %v2498_v58 }
 0x26f   : > { %v2322_v17 = vpop.f32.mrf.mxu2 }
 0x270   : > { %2595 = vst [vmem:[%s4662_s11 + $0x78] sm:$0xff] %v2563_v24  ;;  %v2323_v8 = vadd.f32 %v2322_v17, %v2234_v19  ;;  %v2411_v26 = vpop.f32.mrf.mxu3 }
 0x271   : > { %v2235_v27 = vpop.f32.mrf.mxu1 }
 0x272   : > { %v2412_v5 = vadd.f32 %v2411_v26, %v2323_v8  ;;  %v2236_v35 = vadd.f32 %v2235_v27, %v4550_v50 }
 0x273   : > { %v2502_v46 = vpop.f32.mrf.mxu0 }
 0x274   : > { %v2501_v36 = vadd.f32 %v2500_v25, %v2412_v5 }
 0x276   : > { %v2564_v1 = vadd.f32 %v4655_v49, %v2501_v36 }
 0x277   : > { %v2324_v59 = vpop.f32.mrf.mxu2 }
 0x278   : > { %2596 = vst [vmem:[%s4662_s11 + $0x80] sm:$0xff] %v2564_v1  ;;  %v2325_v39 = vadd.f32 %v2324_v59, %v2236_v35  ;;  %v2413_v42 = vpop.f32.mrf.mxu3 }
 0x279   : > { %v2238_v41 = vpop.f32.mrf.mxu1 }
 0x27a   : > { %v2414_v40 = vadd.f32 %v2413_v42, %v2325_v39  ;;  %v2239_v52 = vadd.f32 %v2238_v41, %v4555_v4 }
 0x27b   : > { %v2505_v57 = vpop.f32.mrf.mxu0 }
 0x27c   : > { %v2503_v38 = vadd.f32 %v2502_v46, %v2414_v40 }
 0x27e   : > { %v2565_v33 = vadd.f32 %v4655_v49, %v2503_v38 }
 0x27f   : > { %v2327_v37 = vpop.f32.mrf.mxu2 }
 0x280   : > { %2597 = vst [vmem:[%s4662_s11 + $0x88] sm:$0xff] %v2565_v33  ;;  %v2328_v62 = vadd.f32 %v2327_v37, %v2239_v52  ;;  %v2416_v55 = vpop.f32.mrf.mxu3 }
 0x281   : > { %v2240_v29 = vpop.f32.mrf.mxu1 }
 0x282   : > { %v2417_v22 = vadd.f32 %v2416_v55, %v2328_v62  ;;  %v2241_v63 = vadd.f32 %v2240_v29, %v4564_v6 }
 0x283   : > { %v2507_v50 = vpop.f32.mrf.mxu0 }
 0x284   : > { %v2506_v34 = vadd.f32 %v2505_v57, %v2417_v22 }
 0x286   : > { %v2566_v10 = vadd.f32 %v4655_v49, %v2506_v34 }
 0x287   : > { %v2329_v2 = vpop.f32.mrf.mxu2 }
 0x288   : > { %2598 = vst [vmem:[%s4662_s11 + $0x90] sm:$0xff] %v2566_v10  ;;  %v2330_v53 = vadd.f32 %v2329_v2, %v2241_v63  ;;  %v2418_v18 = vpop.f32.mrf.mxu3 }
 0x289   : > { %v2243_v44 = vpop.f32.mrf.mxu1 }
 0x28a   : > { %v2419_v3 = vadd.f32 %v2418_v18, %v2330_v53  ;;  %v2244_v11 = vadd.f32 %v2243_v44, %v4569_v30 }
 0x28b   : > { %v2510_v4 = vpop.f32.mrf.mxu0 }
 0x28c   : > { %v2508_v54 = vadd.f32 %v2507_v50, %v2419_v3 }
 0x28e   : > { %v2567_v9 = vadd.f32 %v4655_v49, %v2508_v54 }
 0x28f   : > { %v2332_v61 = vpop.f32.mrf.mxu2 }
 0x290   : > { %2599 = vst [vmem:[%s4662_s11 + $0x98] sm:$0xff] %v2567_v9  ;;  %v2333_v16 = vadd.f32 %v2332_v61, %v2244_v11  ;;  %v2421_v14 = vpop.f32.mrf.mxu3 }
 0x291   : > { %v2245_v15 = vpop.f32.mrf.mxu1 }
 0x292   : > { %v2422_v45 = vadd.f32 %v2421_v14, %v2333_v16  ;;  %v2246_v21 = vadd.f32 %v2245_v15, %v4578_v31 }
 0x293   : > { %v2512_v6 = vpop.f32.mrf.mxu0 }
 0x294   : > { %v2511_v20 = vadd.f32 %v2510_v4, %v2422_v45 }
 0x296   : > { %v2568_v43 = vadd.f32 %v4655_v49, %v2511_v20 }
 0x297   : > { %v2334_v56 = vpop.f32.mrf.mxu2 }
 0x298   : > { %2600 = vst [vmem:[%s4662_s11 + $0xa0] sm:$0xff] %v2568_v43  ;;  %v2335_v60 = vadd.f32 %v2334_v56, %v2246_v21  ;;  %v2423_v25 = vpop.f32.mrf.mxu3 }
 0x299   : > { %v2248_v58 = vpop.f32.mrf.mxu1 }
 0x29a   : > { %v2424_v24 = vadd.f32 %v2423_v25, %v2335_v60  ;;  %v2249_v8 = vadd.f32 %v2248_v58, %v4583_v48 }
 0x29b   : > { %v2515_v30 = vpop.f32.mrf.mxu0 }
 0x29c   : > { %v2513_v19 = vadd.f32 %v2512_v6, %v2424_v24 }
 0x29e   : > { %v2569_v17 = vadd.f32 %v4655_v49, %v2513_v19 }
 0x29f   : > { %v2337_v26 = vpop.f32.mrf.mxu2 }
 0x2a0   : > { %2601 = vst [vmem:[%s4662_s11 + $0xa8] sm:$0xff] %v2569_v17  ;;  %v2338_v27 = vadd.f32 %v2337_v26, %v2249_v8  ;;  %v2426_v5 = vpop.f32.mrf.mxu3 }
 0x2a1   : > { %v2250_v46 = vpop.f32.mrf.mxu1 }
 0x2a2   : > { %v2427_v36 = vadd.f32 %v2426_v5, %v2338_v27  ;;  %v2251_v59 = vadd.f32 %v2250_v46, %v4592_v0 }
 0x2a3   : > { %v2517_v31 = vpop.f32.mrf.mxu0 }
 0x2a4   : > { %v2516_v1 = vadd.f32 %v2515_v30, %v2427_v36 }
 0x2a6   : > { %v2570_v35 = vadd.f32 %v4655_v49, %v2516_v1 }
 0x2a7   : > { %v2339_v39 = vpop.f32.mrf.mxu2 }
 0x2a8   : > { %2602 = vst [vmem:[%s4662_s11 + $0xb0] sm:$0xff] %v2570_v35  ;;  %v2340_v42 = vadd.f32 %v2339_v39, %v2251_v59  ;;  %v2428_v41 = vpop.f32.mrf.mxu3 }
 0x2a9   : > { %v2253_v40 = vpop.f32.mrf.mxu1 }
 0x2aa   : > { %v2429_v57 = vadd.f32 %v2428_v41, %v2340_v42  ;;  %v2254_v52 = vadd.f32 %v2253_v40, %v4597_v47 }
 0x2ab   : > { %v2520_v48 = vpop.f32.mrf.mxu0 }
 0x2ac   : > { %v2518_v38 = vadd.f32 %v2517_v31, %v2429_v57 }
 0x2ae   : > { %v2571_v33 = vadd.f32 %v4655_v49, %v2518_v38 }
 0x2af   : > { %v2342_v37 = vpop.f32.mrf.mxu2 }
 0x2b0   : > { %2603 = vst [vmem:[%s4662_s11 + $0xb8] sm:$0xff] %v2571_v33  ;;  %v2343_v62 = vadd.f32 %v2342_v37, %v2254_v52  ;;  %v2431_v55 = vpop.f32.mrf.mxu3 }
 0x2b1   : > { %v2255_v29 = vpop.f32.mrf.mxu1 }
 0x2b2   : > { %v2432_v22 = vadd.f32 %v2431_v55, %v2343_v62  ;;  %v2256_v10 = vadd.f32 %v2255_v29, %v4606_v51 }
 0x2b3   : > { %v2522_v0 = vpop.f32.mrf.mxu0 }
 0x2b4   : > { %v2521_v50 = vadd.f32 %v2520_v48, %v2432_v22 }
 0x2b6   : > { %v2572_v34 = vadd.f32 %v4655_v49, %v2521_v50 }
 0x2b7   : > { %v2344_v63 = vpop.f32.mrf.mxu2 }
 0x2b8   : > { %2604 = vst [vmem:[%s4662_s11 + $0xc0] sm:$0xff] %v2572_v34  ;;  %v2345_v2 = vadd.f32 %v2344_v63, %v2256_v10  ;;  %v2433_v53 = vpop.f32.mrf.mxu3 }
 0x2b9   : > { %v2258_v18 = vpop.f32.mrf.mxu1 }
 0x2ba   : > { %v2434_v44 = vadd.f32 %v2433_v53, %v2345_v2  ;;  %v2259_v54 = vadd.f32 %v2258_v18, %v4611_v23 }
 0x2bb   : > { %v2525_v47 = vpop.f32.mrf.mxu0 }
 0x2bc   : > { %v2523_v3 = vadd.f32 %v2522_v0, %v2434_v44 }
 0x2be   : > { %v2573_v4 = vadd.f32 %v4655_v49, %v2523_v3 }
 0x2bf   : > { %v2347_v9 = vpop.f32.mrf.mxu2 }
 0x2c0   : > { %2605 = vst [vmem:[%s4662_s11 + $0xc8] sm:$0xff] %v2573_v4  ;;  %v2348_v11 = vadd.f32 %v2347_v9, %v2259_v54  ;;  %v2436_v61 = vpop.f32.mrf.mxu3 }
 0x2c1   : > { %v2260_v16 = vpop.f32.mrf.mxu1 }
 0x2c2   : > { %v2437_v14 = vadd.f32 %v2436_v61, %v2348_v11  ;;  %v2261_v6 = vadd.f32 %v2260_v16, %v4620_v7 }
 0x2c3   : > { %v2527_v51 = vpop.f32.mrf.mxu0 }
 0x2c4   : > { %v2526_v15 = vadd.f32 %v2525_v47, %v2437_v14 }
 0x2c6   : > { %v2574_v45 = vadd.f32 %v4655_v49, %v2526_v15 }
 0x2c7   : > { %v2349_v20 = vpop.f32.mrf.mxu2 }
 0x2c8   : > { %2606 = vst [vmem:[%s4662_s11 + $0xd0] sm:$0xff] %v2574_v45  ;;  %v2350_v43 = vadd.f32 %v2349_v20, %v2261_v6  ;;  %v2438_v21 = vpop.f32.mrf.mxu3 }
 0x2c9   : > { %v2263_v56 = vpop.f32.mrf.mxu1 }
 0x2ca   : > { %v2439_v60 = vadd.f32 %v2438_v21, %v2350_v43  ;;  %v2264_v24 = vadd.f32 %v2263_v56, %v4625_v12 }
 0x2cb   : > { %v2530_v25 = vpop.f32.mrf.mxu0 }
 0x2cc   : > { %v2528_v23 = vadd.f32 %v2527_v51, %v2439_v60 }
 0x2ce   : > { %v2575_v58 = vadd.f32 %v4655_v49, %v2528_v23 }
 0x2cf   : > { %v2352_v30 = vpop.f32.mrf.mxu2 }
 0x2d0   : > { %2607 = vst [vmem:[%s4662_s11 + $0xd8] sm:$0xff] %v2575_v58  ;;  %v2353_v19 = vadd.f32 %v2352_v30, %v2264_v24  ;;  %v2441_v17 = vpop.f32.mrf.mxu3 }
 0x2d1   : > { %v2265_v8 = vpop.f32.mrf.mxu1 }
 0x2d2   : > { %v2442_v7 = vadd.f32 %v2441_v17, %v2353_v19  ;;  %v2266_v5 = vadd.f32 %v2265_v8, %v4634_v32 }
 0x2d3   : > { %v2532_v46 = vpop.f32.mrf.mxu0 }
 0x2d4   : > { %v2531_v26 = vadd.f32 %v2530_v25, %v2442_v7 }
 0x2d6   : > { %v2576_v27 = vadd.f32 %v4655_v49, %v2531_v26 }
 0x2d7   : > { %v2354_v36 = vpop.f32.mrf.mxu2 }
 0x2d8   : > { %2608 = vst [vmem:[%s4662_s11 + $0xe0] sm:$0xff] %v2576_v27  ;;  %v2355_v31 = vadd.f32 %v2354_v36, %v2266_v5  ;;  %v2443_v1 = vpop.f32.mrf.mxu3 }
 0x2d9   : > { %v2268_v35 = vpop.f32.mrf.mxu1 }
 0x2da   : > { %v2444_v12 = vadd.f32 %v2443_v1, %v2355_v31  ;;  %v2269_v42 = vadd.f32 %v2268_v35, %v4639_v13 }
 0x2db   : > { %v2535_v48 = vpop.f32.mrf.mxu0 }
 0x2dc   : > { %v2533_v59 = vadd.f32 %v2532_v46, %v2444_v12 }
 0x2de   : > { %v2577_v39 = vadd.f32 %v4655_v49, %v2533_v59 }
 0x2df   : > { %v2357_v41 = vpop.f32.mrf.mxu2 }
 0x2e0   : > { %2609 = vst [vmem:[%s4662_s11 + $0xe8] sm:$0xff] %v2577_v39  ;;  %v2358_v40 = vadd.f32 %v2357_v41, %v2269_v42  ;;  %v2446_v57 = vpop.f32.mrf.mxu3 }
 0x2e1   : > { %v2270_v38 = vpop.f32.mrf.mxu1 }
 0x2e2   : > { %v2447_v32 = vadd.f32 %v2446_v57, %v2358_v40  ;;  %v2271_v37 = vadd.f32 %v2270_v38, %v4648_v28 }
 0x2e3   : > { %v2537_v0 = vpop.f32.mrf.mxu0 }
 0x2e4   : > { %v2536_v33 = vadd.f32 %v2535_v48, %v2447_v32 }
 0x2e6   : > { %v2578_v52 = vadd.f32 %v4655_v49, %v2536_v33 }
 0x2e7   : > { %v2359_v62 = vpop.f32.mrf.mxu2 }
 0x2e8   : > { %2610 = vst [vmem:[%s4662_s11 + $0xf0] sm:$0xff] %v2578_v52  ;;  %v2360_v55 = vadd.f32 %v2359_v62, %v2271_v37  ;;  %v2448_v29 = vpop.f32.mrf.mxu3 }
 0x2ea   : > { %v2449_v22 = vadd.f32 %v2448_v29, %v2360_v55 }
 0x2ec   : > { %v2538_v13 = vadd.f32 %v2537_v0, %v2449_v22 }
 0x2ee   : > { %v2579_v50 = vadd.f32 %v4655_v49, %v2538_v13 }
 0x2f0   : > { %2611 = vst [vmem:[%s4662_s11 + $0xf8] sm:$0xff] %v2579_v50 }
 0x2f1 PF: > { %s13_s14 = sadd.s32 1, %s3991_s14   ;;  %s4826_s12 = smov %s3987_s13 }
 0x2f2   : > { %p10_p5 = scmp.ge.s32.totalorder %s13_s14, 4   ;;  %s4827_s13 = smov %s4829_s15 }
 0x2f4   :  { %12 = sbr.rel (!%p10_p5) target bundleno = 2 (0x2), region = 76 }

</bundles_post_ra>
